<compile_context>
chip_gen: v6e
topology: v6e:2x2x1
jax: 0.10.0
libtpu: 0.0.40
codegen_flags: <defaults>
</compile_context>

<pallas_src>
import functools

import jax
import jax.numpy as jnp
from jax.experimental import pallas as pl
from jax.experimental.pallas import tpu as pltpu


# ----------------------------- in-kernel helpers ----------------------------

def _stable_sigmoid(z):
    # sigmoid(z) with exp of a non-positive argument only (no inf intermediates)
    t = jnp.exp(-jnp.abs(z))
    inv = 1.0 / (1.0 + t)
    return jnp.where(z >= 0, inv, t * inv)


def _fill_flat_pad(scratch_ref, src, base, hw):
    """Zero the flat padded scratch and place src (HW, C) at row `base`."""
    scratch_ref[...] = jnp.zeros_like(scratch_ref)
    scratch_ref[base:base + hw, :] = src


def _tap(scratch_ref, col, base, hw, w, dy, dx):
    """Shifted 3x3 tap (zero-padded conv semantics) from the flat scratch."""
    start = base + dy * w + dx
    v = scratch_ref[start:start + hw, :]
    if dx < 0:                       # mask columns whose source x would wrap
        v = jnp.where(col >= -dx, v, 0.0)
    elif dx > 0:
        v = jnp.where(col < w - dx, v, 0.0)
    return v


def _dwconv3x3(scratch_ref, col, src, w_ref, bias, H, W):
    """Depthwise 3x3, padding=1. src: (HW, C); w_ref: (9, C); bias: (1, C)."""
    hw = H * W
    base = W + 1
    _fill_flat_pad(scratch_ref, src, base, hw)
    acc = bias
    t = 0
    for dy in (-1, 0, 1):
        for dx in (-1, 0, 1):
            acc = acc + _tap(scratch_ref, col, base, hw, W, dy, dx) * w_ref[t:t + 1, :]
            t += 1
    return acc


def _dwconv3x3_pair(scratch_ref, col, src, wq_ref, wk_ref, H, W):
    """Two bias-free depthwise 3x3 convs sharing the same input taps."""
    hw = H * W
    base = W + 1
    _fill_flat_pad(scratch_ref, src, base, hw)
    aq = jnp.zeros_like(src)
    ak = jnp.zeros_like(src)
    t = 0
    for dy in (-1, 0, 1):
        for dx in (-1, 0, 1):
            tap = _tap(scratch_ref, col, base, hw, W, dy, dx)
            aq = aq + tap * wq_ref[t:t + 1, :]
            ak = ak + tap * wk_ref[t:t + 1, :]
            t += 1
    return aq, ak


def _conv3x3_dilated2(scratch_ref, col, src, w_ref, H, W):
    """Full 3x3 conv, dilation=2, padding=2, as 9 shifted (HW,Cin)@(Cin,Cout)."""
    hw = H * W
    d = 2
    base = d * W + d
    _fill_flat_pad(scratch_ref, src, base, hw)
    acc = jnp.zeros((hw, w_ref.shape[2]), jnp.float32)
    t = 0
    for dy in (-d, 0, d):
        for dx in (-d, 0, d):
            tap = _tap(scratch_ref, col, base, hw, W, dy, dx)
            acc = acc + jnp.dot(tap, w_ref[t], preferred_element_type=jnp.float32)
            t += 1
    return acc


# ------------------------------ fused kernel --------------------------------

def _decom_encoder_kernel(H, W, C, num_heads,
                          x_ref,
                          d1w_ref, d1b_ref, d3w_ref, d3b_ref,
                          c1w_ref, dww_ref, dwb_ref, c3w_ref,
                          qw_ref, kw_ref, epew_ref, projw_ref,
                          temp_ref, aw_ref,
                          rlf_ref, shf_ref,
                          pad_h, pad_c):
    hw = H * W
    ch = C // num_heads
    k1 = ch // 2                       # torch.topk k = int(C/2)
    k2 = (ch * 4) // 5                 # torch.topk k = int(C*4/5)
    # x-coordinate of each flattened pixel (for conv boundary masks), hoisted.
    col = jax.lax.broadcasted_iota(jnp.int32, (hw, 1), 0) % W

    x = x_ref[...]                                             # (HW, C)

    # ---------------- Decomposition ----------------
    d1 = jnp.dot(x, d1w_ref[...], preferred_element_type=jnp.float32) + d1b_ref[...]
    d3 = _conv3x3_dilated2(pad_c, col, x, d3w_ref, H, W) + d3b_ref[...]
    hf_weight = _stable_sigmoid(d1 - d3)
    lf = (1.0 - hf_weight) * x
    hf = lf * x                                                # HF = LF * x (as in reference)
    v = _stable_sigmoid(lf) * hf + lf                          # AdaptiveHF input_y

    # ---------------- DwRefineBlock applied twice to LF ----------------
    def refine(t):
        h1 = jnp.maximum(jnp.dot(t, c1w_ref[...],
                                 preferred_element_type=jnp.float32), 0.0)
        h2 = jnp.maximum(_dwconv3x3(pad_h, col, h1, dww_ref, dwb_ref[...], H, W), 0.0)
        h3 = jnp.maximum(jnp.dot(h2, c3w_ref[...],
                                 preferred_element_type=jnp.float32), 0.0)
        return h3 + t

    rlf_ref[...] = refine(refine(lf))

    # ---------------- AdaptiveHF(HF, LF) ----------------
    q, k = _dwconv3x3_pair(pad_c, col, hf, qw_ref, kw_ref, H, W)
    lepe = hf * epew_ref[...]                                  # depthwise 1x1, bias=False

    # project_out is linear: (attn_out + lepe) @ Wp == lepe @ Wp + sum_h out_h @ Wp[rows_h]
    out = jnp.dot(lepe, projw_ref[...], preferred_element_type=jnp.float32)
    for h in range(num_heads):                                 # static unroll (num_heads=2)
        cs = h * ch
        qh = jnp.transpose(q[:, cs:cs + ch])                   # (ch, HW)
        kh = jnp.transpose(k[:, cs:cs + ch])
        vh = jnp.transpose(v[:, cs:cs + ch])
        # F.normalize(dim=-1): x / max(||x||, 1e-12) == x * rsqrt(max(sum x^2, 1e-24))
        qn = qh * jax.lax.rsqrt(jnp.maximum(jnp.sum(qh * qh, axis=-1, keepdims=True), 1e-24))
        kn = kh * jax.lax.rsqrt(jnp.maximum(jnp.sum(kh * kh, axis=-1, keepdims=True), 1e-24))
        attn = jax.lax.dot_general(qn, kn, (((1,), (1,)), ((), ())),
                                   preferred_element_type=jnp.float32) * temp_ref[h]
        # top-k row masks via vectorized rank counting
        # (matches torch.topk exactly when there are no ties in a row).
        ranks = jnp.sum(jnp.where(attn[:, None, :] > attn[:, :, None], 1.0, 0.0), axis=-1)
        rmax = jnp.max(attn, axis=-1, keepdims=True)           # top-1 is inside every mask
        e = jnp.exp(attn - rmax)                               # shared by both softmaxes
        e1 = jnp.where(ranks < float(k1), e, 0.0)
        e2 = jnp.where(ranks < float(k2), e, 0.0)
        p1 = e1 * pl.reciprocal(jnp.sum(e1, axis=-1, keepdims=True), approx=True)
        p2 = e2 * pl.reciprocal(jnp.sum(e2, axis=-1, keepdims=True), approx=True)
        pmix = aw_ref[0] * p1 + aw_ref[1] * p2                 # (ch, ch)
        out_h = jnp.dot(pmix, vh, preferred_element_type=jnp.float32)   # (ch, HW)
        out = out + jnp.dot(jnp.transpose(out_h), projw_ref[cs:cs + ch, :],
                            preferred_element_type=jnp.float32)
    shf_ref[...] = out


# ------------------------------- wrapper -------------------------------------

def decom_encoder_forward(params, x_nchw, num_heads):
    B, C, H, W = x_nchw.shape
    HW = H * W
    hid = params['c1_w'].shape[1]
    assert C % num_heads == 0

    x_flat = jnp.transpose(x_nchw.astype(jnp.float32), (0, 2, 3, 1)).reshape(B, HW, C)

    def full(shape):
        return pl.BlockSpec(shape, lambda b, n=len(shape): (0,) * n)

    act = pl.BlockSpec((None, HW, C), lambda b: (b, 0, 0))
    smem = pl.BlockSpec(memory_space=pltpu.MemorySpace.SMEM)

    kernel = functools.partial(_decom_encoder_kernel, H, W, C, num_heads)

    rlf, shf = pl.pallas_call(
        kernel,
        out_shape=(jax.ShapeDtypeStruct((B, HW, C), jnp.float32),
                   jax.ShapeDtypeStruct((B, HW, C), jnp.float32)),
        grid=(B,),
        in_specs=[
            act,                                   # x (per-image block)
            full((C, C)), full((1, C)),            # D1 weight / bias
            full((9, C, C)), full((1, C)),         # D3 (dilated) weight / bias
            full((C, hid)),                        # con1 (bias=False)
            full((9, hid)), full((1, hid)),        # dwconv2 weight / bias
            full((hid, C)),                        # con3 (bias=False)
            full((9, C)), full((9, C)),            # AdaptiveHF dw_conv1 / dw_conv2
            full((1, C)),                          # epe (depthwise 1x1, bias=False)
            full((C, C)),                          # project_out (bias=False)
            smem, smem,                            # temperature, (attn1, attn2)
        ],
        out_specs=(act, act),
        scratch_shapes=[
            pltpu.VMEM((HW + 2 * W + 2, hid), jnp.float32),  # flat-padded h1 (refine dw)
            pltpu.VMEM((HW + 4 * W + 4, C), jnp.float32),    # flat-padded x / HF (d3, q/k)
        ],
        compiler_params=pltpu.CompilerParams(
            dimension_semantics=("parallel",)),    # v7x: one image per TensorCore
    )(x_flat,
      params['d1_w'], params['d1_b'], params['d3_w'], params['d3_b'],
      params['c1_w'], params['dw_w'], params['dw_b'], params['c3_w'],
      params['q_w'], params['k_w'], params['epe_w'], params['proj_w'],
      params['temperature'], params['attn_w'])

    def to_nchw(t):
        return jnp.transpose(t.reshape(B, H, W, C), (0, 3, 1, 2))

    return to_nchw(rlf), to_nchw(shf)


def init_params(key, in_dim, out_dim, num_heads, hid=384):
    ks = jax.random.split(key, 12)
    s = 0.05
    return {
        # Decomposition (D1, D3 have default bias=True)
        'd1_w': jax.random.normal(ks[0], (in_dim, out_dim), jnp.float32) * s,
        'd1_b': jax.random.normal(ks[1], (1, out_dim), jnp.float32) * s,
        'd3_w': jax.random.normal(ks[2], (9, in_dim, out_dim), jnp.float32) * s,
        'd3_b': jax.random.normal(ks[3], (1, out_dim), jnp.float32) * s,
        # DwRefineBlock (con1/con3 bias=False, dwconv2 default bias=True)
        'c1_w': jax.random.normal(ks[4], (in_dim, hid), jnp.float32) * s,
        'dw_w': jax.random.normal(ks[5], (9, hid), jnp.float32) * s,
        'dw_b': jax.random.normal(ks[6], (1, hid), jnp.float32) * s,
        'c3_w': jax.random.normal(ks[7], (hid, in_dim), jnp.float32) * s,
        # AdaptiveHF (bias=False everywhere)
        'q_w': jax.random.normal(ks[8], (9, out_dim), jnp.float32) * s,
        'k_w': jax.random.normal(ks[9], (9, out_dim), jnp.float32) * s,
        'epe_w': jax.random.normal(ks[10], (1, out_dim), jnp.float32) * s,
        'proj_w': jax.random.normal(ks[11], (in_dim, out_dim), jnp.float32) * s,
        'temperature': jnp.ones((num_heads,), jnp.float32),     # torch.ones init
        'attn_w': jnp.array([0.2, 0.2], jnp.float32),           # attn1, attn2
    }


# --------------------------------- main --------------------------------------

if __name__ == "__main__":
    in_dim = out_dim = 16
    num_heads = 2
    B, H, W = 2, 8, 8

    key = jax.random.PRNGKey(0)
    kx, kp = jax.random.split(key)
    x = jax.random.normal(kx, (B, in_dim, H, W), jnp.float32)
    params = init_params(kp, in_dim, out_dim, num_heads)

    fwd = jax.jit(functools.partial(decom_encoder_forward, num_heads=num_heads))
    refine_LF, sparseHF = fwd(params, x)
    jax.block_until_ready((refine_LF, sparseHF))

    assert refine_LF.shape == (B, in_dim, H, W)
    assert sparseHF.shape == (B, out_dim, H, W)
    assert bool(jnp.isfinite(refine_LF).all()) and bool(jnp.isfinite(sparseHF).all())
    print("KERNEL_OK")
</pallas_src>

<mosaic_0001>
module attributes {stable_mosaic.version = 11 : i64} {
  func.func @_decom_encoder_kernel(%arg0: i32, %arg1: memref<1x64x16xf32, #tpu.memory_space<vmem>>, %arg2: memref<16x16xf32, #tpu.memory_space<vmem>>, %arg3: memref<1x16xf32, #tpu.memory_space<vmem>>, %arg4: memref<9x16x16xf32, #tpu.memory_space<vmem>>, %arg5: memref<1x16xf32, #tpu.memory_space<vmem>>, %arg6: memref<16x384xf32, #tpu.memory_space<vmem>>, %arg7: memref<9x384xf32, #tpu.memory_space<vmem>>, %arg8: memref<1x384xf32, #tpu.memory_space<vmem>>, %arg9: memref<384x16xf32, #tpu.memory_space<vmem>>, %arg10: memref<9x16xf32, #tpu.memory_space<vmem>>, %arg11: memref<9x16xf32, #tpu.memory_space<vmem>>, %arg12: memref<1x16xf32, #tpu.memory_space<vmem>>, %arg13: memref<16x16xf32, #tpu.memory_space<vmem>>, %arg14: memref<2xf32, #tpu.memory_space<smem>>, %arg15: memref<2xf32, #tpu.memory_space<smem>>, %arg16: memref<1x64x16xf32, #tpu.memory_space<vmem>>, %arg17: memref<1x64x16xf32, #tpu.memory_space<vmem>>, %arg18: memref<82x384xf32, #tpu.memory_space<vmem>>, %arg19: memref<100x16xf32, #tpu.memory_space<vmem>>) attributes {dimension_semantics = [#tpu.dimension_semantics<parallel>], iteration_bounds = array<i64: 2>, scalar_prefetch = 0 : i64, scratch_operands = 2 : i64, tpu.core_type = #tpu.core_type<tc>, window_params = [{transform_indices = @transform_0, window_bounds = array<i64: 1, 64, 16>}, {pipeline_mode = #tpu.pipeline_mode<synchronous>, transform_indices = @transform_1, window_bounds = array<i64: 16, 16>}, {pipeline_mode = #tpu.pipeline_mode<synchronous>, transform_indices = @transform_2, window_bounds = array<i64: 1, 16>}, {pipeline_mode = #tpu.pipeline_mode<synchronous>, transform_indices = @transform_3, window_bounds = array<i64: 9, 16, 16>}, {pipeline_mode = #tpu.pipeline_mode<synchronous>, transform_indices = @transform_4, window_bounds = array<i64: 1, 16>}, {pipeline_mode = #tpu.pipeline_mode<synchronous>, transform_indices = @transform_5, window_bounds = array<i64: 16, 384>}, {pipeline_mode = #tpu.pipeline_mode<synchronous>, transform_indices = @transform_6, window_bounds = array<i64: 9, 384>}, {pipeline_mode = #tpu.pipeline_mode<synchronous>, transform_indices = @transform_7, window_bounds = array<i64: 1, 384>}, {pipeline_mode = #tpu.pipeline_mode<synchronous>, transform_indices = @transform_8, window_bounds = array<i64: 384, 16>}, {pipeline_mode = #tpu.pipeline_mode<synchronous>, transform_indices = @transform_9, window_bounds = array<i64: 9, 16>}, {pipeline_mode = #tpu.pipeline_mode<synchronous>, transform_indices = @transform_10, window_bounds = array<i64: 9, 16>}, {pipeline_mode = #tpu.pipeline_mode<synchronous>, transform_indices = @transform_11, window_bounds = array<i64: 1, 16>}, {pipeline_mode = #tpu.pipeline_mode<synchronous>, transform_indices = @transform_12, window_bounds = array<i64: 16, 16>}, {transform_indices = @transform_13, window_bounds = array<i64: 2>}, {transform_indices = @transform_14, window_bounds = array<i64: 2>}, {transform_indices = @transform_15, window_bounds = array<i64: 1, 64, 16>}, {transform_indices = @transform_16, window_bounds = array<i64: 1, 64, 16>}]} {
    %0 = tpu.iota {dimensions = array<i32: 0>} : vector<64x1xi32>
    %c8_i32 = arith.constant 8 : i32
    %c0_i32 = arith.constant 0 : i32
    %1 = arith.cmpi eq, %c8_i32, %c0_i32 : i32
    %c1_i32 = arith.constant 1 : i32
    %2 = arith.select %1, %c1_i32, %c8_i32 : i32
    %3 = vector.broadcast %2 : i32 to vector<64x1xi32>
    %4 = arith.remsi %0, %3 : vector<64x1xi32>
    %c0_i32_0 = arith.constant 0 : i32
    %5 = vector.broadcast %c0_i32_0 : i32 to vector<64x1xi32>
    %6 = arith.cmpi ne, %4, %5 : vector<64x1xi32>
    %c0_i32_1 = arith.constant 0 : i32
    %7 = vector.broadcast %c0_i32_1 : i32 to vector<64x1xi32>
    %8 = arith.cmpi slt, %4, %7 : vector<64x1xi32>
    %c0_i32_2 = arith.constant 0 : i32
    %9 = arith.cmpi slt, %2, %c0_i32_2 : i32
    %10 = vector.broadcast %9 : i1 to vector<64x1xi1>
    %11 = vector.broadcast %10 : vector<64x1xi1> to vector<64x1xi1>
    %12 = arith.xori %8, %11 : vector<64x1xi1>
    %13 = arith.andi %12, %6 : vector<64x1xi1>
    %14 = vector.broadcast %2 : i32 to vector<64x1xi32>
    %15 = arith.addi %4, %14 : vector<64x1xi32>
    %16 = arith.select %13, %15, %4 : vector<64x1xi1>, vector<64x1xi32>
    %c0 = arith.constant 0 : index
    %c0_3 = arith.constant 0 : index
    %c0_4 = arith.constant 0 : index
    %17 = vector.load %arg1[%c0, %c0_3, %c0_4] : memref<1x64x16xf32, #tpu.memory_space<vmem>>, vector<1x64x16xf32>
    %18 = vector.shape_cast %17 : vector<1x64x16xf32> to vector<64x16xf32>
    %c0_5 = arith.constant 0 : index
    %c0_6 = arith.constant 0 : index
    %19 = vector.load %arg2[%c0_5, %c0_6] : memref<16x16xf32, #tpu.memory_space<vmem>>, vector<16x16xf32>
    %cst = arith.constant dense<0.000000e+00> : vector<64x16xf32>
    %20 = tpu.matmul %18, %19, %cst {dimension_numbers = #tpu.dot_dimension_numbers<[1], [0], [0], [1], [0, 0, 1, 1], [], []>} : vector<64x16xf32>, vector<16x16xf32>, vector<64x16xf32> -> vector<64x16xf32>
    %c0_7 = arith.constant 0 : index
    %c0_8 = arith.constant 0 : index
    %21 = vector.load %arg3[%c0_7, %c0_8] : memref<1x16xf32, #tpu.memory_space<vmem>>, vector<1x16xf32>
    %22 = vector.broadcast %21 : vector<1x16xf32> to vector<64x16xf32>
    %23 = arith.addf %20, %22 : vector<64x16xf32>
    %cst_9 = arith.constant 0.000000e+00 : f32
    %24 = vector.broadcast %cst_9 : f32 to vector<100x16xf32>
    %c0_10 = arith.constant 0 : index
    %c0_11 = arith.constant 0 : index
    %25 = vector.load %arg19[%c0_10, %c0_11] : memref<100x16xf32, #tpu.memory_space<vmem>>, vector<100x16xf32>
    tpu.vector_store %arg19[%c0_10, %c0_11], %24 {strides = array<i32>} : memref<100x16xf32, #tpu.memory_space<vmem>>, vector<100x16xf32>,
    %c18 = arith.constant 18 : index
    %c0_12 = arith.constant 0 : index
    %26 = vector.load %arg19[%c18, %c0_12] : memref<100x16xf32, #tpu.memory_space<vmem>>, vector<64x16xf32>
    tpu.vector_store %arg19[%c18, %c0_12], %18 {strides = array<i32>} : memref<100x16xf32, #tpu.memory_space<vmem>>, vector<64x16xf32>,
    %cst_13 = arith.constant 0.000000e+00 : f32
    %27 = vector.broadcast %cst_13 : f32 to vector<64x16xf32>
    %c0_14 = arith.constant 0 : index
    %c0_15 = arith.constant 0 : index
    %28 = vector.load %arg19[%c0_14, %c0_15] : memref<100x16xf32, #tpu.memory_space<vmem>>, vector<64x16xf32>
    %c2_i32 = arith.constant 2 : i32
    %29 = vector.broadcast %c2_i32 : i32 to vector<64x1xi32>
    %30 = arith.cmpi sge, %16, %29 : vector<64x1xi32>
    %cst_16 = arith.constant 0.000000e+00 : f32
    %31 = vector.shape_cast %30 : vector<64x1xi1> to vector<64x1xi1>
    %32 = vector.broadcast %31 : vector<64x1xi1> to vector<64x16xi1>
    %33 = vector.broadcast %cst_16 : f32 to vector<64x16xf32>
    %34 = arith.select %32, %28, %33 : vector<64x16xi1>, vector<64x16xf32>
    %c0_17 = arith.constant 0 : index
    %c0_18 = arith.constant 0 : index
    %c0_19 = arith.constant 0 : index
    %35 = vector.load %arg4[%c0_17, %c0_18, %c0_19] : memref<9x16x16xf32, #tpu.memory_space<vmem>>, vector<1x16x16xf32>
    %36 = vector.shape_cast %35 : vector<1x16x16xf32> to vector<16x16xf32>
    %cst_20 = arith.constant dense<0.000000e+00> : vector<64x16xf32>
    %37 = tpu.matmul %34, %36, %cst_20 {dimension_numbers = #tpu.dot_dimension_numbers<[1], [0], [0], [1], [0, 0, 1, 1], [], []>} : vector<64x16xf32>, vector<16x16xf32>, vector<64x16xf32> -> vector<64x16xf32>
    %38 = arith.addf %27, %37 : vector<64x16xf32>
    %c2 = arith.constant 2 : index
    %c0_21 = arith.constant 0 : index
    %39 = vector.load %arg19[%c2, %c0_21] : memref<100x16xf32, #tpu.memory_space<vmem>>, vector<64x16xf32>
    %c1 = arith.constant 1 : index
    %c0_22 = arith.constant 0 : index
    %c0_23 = arith.constant 0 : index
    %40 = vector.load %arg4[%c1, %c0_22, %c0_23] : memref<9x16x16xf32, #tpu.memory_space<vmem>>, vector<1x16x16xf32>
    %41 = vector.shape_cast %40 : vector<1x16x16xf32> to vector<16x16xf32>
    %cst_24 = arith.constant dense<0.000000e+00> : vector<64x16xf32>
    %42 = tpu.matmul %39, %41, %cst_24 {dimension_numbers = #tpu.dot_dimension_numbers<[1], [0], [0], [1], [0, 0, 1, 1], [], []>} : vector<64x16xf32>, vector<16x16xf32>, vector<64x16xf32> -> vector<64x16xf32>
    %43 = arith.addf %38, %42 : vector<64x16xf32>
    %c4 = arith.constant 4 : index
    %c0_25 = arith.constant 0 : index
    %44 = vector.load %arg19[%c4, %c0_25] : memref<100x16xf32, #tpu.memory_space<vmem>>, vector<64x16xf32>
    %c6_i32 = arith.constant 6 : i32
    %45 = vector.broadcast %c6_i32 : i32 to vector<64x1xi32>
    %46 = arith.cmpi slt, %16, %45 : vector<64x1xi32>
    %cst_26 = arith.constant 0.000000e+00 : f32
    %47 = vector.shape_cast %46 : vector<64x1xi1> to vector<64x1xi1>
    %48 = vector.broadcast %47 : vector<64x1xi1> to vector<64x16xi1>
    %49 = vector.broadcast %cst_26 : f32 to vector<64x16xf32>
    %50 = arith.select %48, %44, %49 : vector<64x16xi1>, vector<64x16xf32>
    %c2_27 = arith.constant 2 : index
    %c0_28 = arith.constant 0 : index
    %c0_29 = arith.constant 0 : index
    %51 = vector.load %arg4[%c2_27, %c0_28, %c0_29] : memref<9x16x16xf32, #tpu.memory_space<vmem>>, vector<1x16x16xf32>
    %52 = vector.shape_cast %51 : vector<1x16x16xf32> to vector<16x16xf32>
    %cst_30 = arith.constant dense<0.000000e+00> : vector<64x16xf32>
    %53 = tpu.matmul %50, %52, %cst_30 {dimension_numbers = #tpu.dot_dimension_numbers<[1], [0], [0], [1], [0, 0, 1, 1], [], []>} : vector<64x16xf32>, vector<16x16xf32>, vector<64x16xf32> -> vector<64x16xf32>
    %54 = arith.addf %43, %53 : vector<64x16xf32>
    %c16 = arith.constant 16 : index
    %c0_31 = arith.constant 0 : index
    %55 = vector.load %arg19[%c16, %c0_31] : memref<100x16xf32, #tpu.memory_space<vmem>>, vector<64x16xf32>
    %c2_i32_32 = arith.constant 2 : i32
    %56 = vector.broadcast %c2_i32_32 : i32 to vector<64x1xi32>
    %57 = arith.cmpi sge, %16, %56 : vector<64x1xi32>
    %cst_33 = arith.constant 0.000000e+00 : f32
    %58 = vector.shape_cast %57 : vector<64x1xi1> to vector<64x1xi1>
    %59 = vector.broadcast %58 : vector<64x1xi1> to vector<64x16xi1>
    %60 = vector.broadcast %cst_33 : f32 to vector<64x16xf32>
    %61 = arith.select %59, %55, %60 : vector<64x16xi1>, vector<64x16xf32>
    %c3 = arith.constant 3 : index
    %c0_34 = arith.constant 0 : index
    %c0_35 = arith.constant 0 : index
    %62 = vector.load %arg4[%c3, %c0_34, %c0_35] : memref<9x16x16xf32, #tpu.memory_space<vmem>>, vector<1x16x16xf32>
    %63 = vector.shape_cast %62 : vector<1x16x16xf32> to vector<16x16xf32>
    %cst_36 = arith.constant dense<0.000000e+00> : vector<64x16xf32>
    %64 = tpu.matmul %61, %63, %cst_36 {dimension_numbers = #tpu.dot_dimension_numbers<[1], [0], [0], [1], [0, 0, 1, 1], [], []>} : vector<64x16xf32>, vector<16x16xf32>, vector<64x16xf32> -> vector<64x16xf32>
    %65 = arith.addf %54, %64 : vector<64x16xf32>
    %c18_37 = arith.constant 18 : index
    %c0_38 = arith.constant 0 : index
    %66 = vector.load %arg19[%c18_37, %c0_38] : memref<100x16xf32, #tpu.memory_space<vmem>>, vector<64x16xf32>
    %c4_39 = arith.constant 4 : index
    %c0_40 = arith.constant 0 : index
    %c0_41 = arith.constant 0 : index
    %67 = vector.load %arg4[%c4_39, %c0_40, %c0_41] : memref<9x16x16xf32, #tpu.memory_space<vmem>>, vector<1x16x16xf32>
    %68 = vector.shape_cast %67 : vector<1x16x16xf32> to vector<16x16xf32>
    %cst_42 = arith.constant dense<0.000000e+00> : vector<64x16xf32>
    %69 = tpu.matmul %66, %68, %cst_42 {dimension_numbers = #tpu.dot_dimension_numbers<[1], [0], [0], [1], [0, 0, 1, 1], [], []>} : vector<64x16xf32>, vector<16x16xf32>, vector<64x16xf32> -> vector<64x16xf32>
    %70 = arith.addf %65, %69 : vector<64x16xf32>
    %c20 = arith.constant 20 : index
    %c0_43 = arith.constant 0 : index
    %71 = vector.load %arg19[%c20, %c0_43] : memref<100x16xf32, #tpu.memory_space<vmem>>, vector<64x16xf32>
    %c6_i32_44 = arith.constant 6 : i32
    %72 = vector.broadcast %c6_i32_44 : i32 to vector<64x1xi32>
    %73 = arith.cmpi slt, %16, %72 : vector<64x1xi32>
    %cst_45 = arith.constant 0.000000e+00 : f32
    %74 = vector.shape_cast %73 : vector<64x1xi1> to vector<64x1xi1>
    %75 = vector.broadcast %74 : vector<64x1xi1> to vector<64x16xi1>
    %76 = vector.broadcast %cst_45 : f32 to vector<64x16xf32>
    %77 = arith.select %75, %71, %76 : vector<64x16xi1>, vector<64x16xf32>
    %c5 = arith.constant 5 : index
    %c0_46 = arith.constant 0 : index
    %c0_47 = arith.constant 0 : index
    %78 = vector.load %arg4[%c5, %c0_46, %c0_47] : memref<9x16x16xf32, #tpu.memory_space<vmem>>, vector<1x16x16xf32>
    %79 = vector.shape_cast %78 : vector<1x16x16xf32> to vector<16x16xf32>
    %cst_48 = arith.constant dense<0.000000e+00> : vector<64x16xf32>
    %80 = tpu.matmul %77, %79, %cst_48 {dimension_numbers = #tpu.dot_dimension_numbers<[1], [0], [0], [1], [0, 0, 1, 1], [], []>} : vector<64x16xf32>, vector<16x16xf32>, vector<64x16xf32> -> vector<64x16xf32>
    %81 = arith.addf %70, %80 : vector<64x16xf32>
    %c32 = arith.constant 32 : index
    %c0_49 = arith.constant 0 : index
    %82 = vector.load %arg19[%c32, %c0_49] : memref<100x16xf32, #tpu.memory_space<vmem>>, vector<64x16xf32>
    %c2_i32_50 = arith.constant 2 : i32
    %83 = vector.broadcast %c2_i32_50 : i32 to vector<64x1xi32>
    %84 = arith.cmpi sge, %16, %83 : vector<64x1xi32>
    %cst_51 = arith.constant 0.000000e+00 : f32
    %85 = vector.shape_cast %84 : vector<64x1xi1> to vector<64x1xi1>
    %86 = vector.broadcast %85 : vector<64x1xi1> to vector<64x16xi1>
    %87 = vector.broadcast %cst_51 : f32 to vector<64x16xf32>
    %88 = arith.select %86, %82, %87 : vector<64x16xi1>, vector<64x16xf32>
    %c6 = arith.constant 6 : index
    %c0_52 = arith.constant 0 : index
    %c0_53 = arith.constant 0 : index
    %89 = vector.load %arg4[%c6, %c0_52, %c0_53] : memref<9x16x16xf32, #tpu.memory_space<vmem>>, vector<1x16x16xf32>
    %90 = vector.shape_cast %89 : vector<1x16x16xf32> to vector<16x16xf32>
    %cst_54 = arith.constant dense<0.000000e+00> : vector<64x16xf32>
    %91 = tpu.matmul %88, %90, %cst_54 {dimension_numbers = #tpu.dot_dimension_numbers<[1], [0], [0], [1], [0, 0, 1, 1], [], []>} : vector<64x16xf32>, vector<16x16xf32>, vector<64x16xf32> -> vector<64x16xf32>
    %92 = arith.addf %81, %91 : vector<64x16xf32>
    %c34 = arith.constant 34 : index
    %c0_55 = arith.constant 0 : index
    %93 = vector.load %arg19[%c34, %c0_55] : memref<100x16xf32, #tpu.memory_space<vmem>>, vector<64x16xf32>
    %c7 = arith.constant 7 : index
    %c0_56 = arith.constant 0 : index
    %c0_57 = arith.constant 0 : index
    %94 = vector.load %arg4[%c7, %c0_56, %c0_57] : memref<9x16x16xf32, #tpu.memory_space<vmem>>, vector<1x16x16xf32>
    %95 = vector.shape_cast %94 : vector<1x16x16xf32> to vector<16x16xf32>
    %cst_58 = arith.constant dense<0.000000e+00> : vector<64x16xf32>
    %96 = tpu.matmul %93, %95, %cst_58 {dimension_numbers = #tpu.dot_dimension_numbers<[1], [0], [0], [1], [0, 0, 1, 1], [], []>} : vector<64x16xf32>, vector<16x16xf32>, vector<64x16xf32> -> vector<64x16xf32>
    %97 = arith.addf %92, %96 : vector<64x16xf32>
    %c36 = arith.constant 36 : index
    %c0_59 = arith.constant 0 : index
    %98 = vector.load %arg19[%c36, %c0_59] : memref<100x16xf32, #tpu.memory_space<vmem>>, vector<64x16xf32>
    %c6_i32_60 = arith.constant 6 : i32
    %99 = vector.broadcast %c6_i32_60 : i32 to vector<64x1xi32>
    %100 = arith.cmpi slt, %16, %99 : vector<64x1xi32>
    %cst_61 = arith.constant 0.000000e+00 : f32
    %101 = vector.shape_cast %100 : vector<64x1xi1> to vector<64x1xi1>
    %102 = vector.broadcast %101 : vector<64x1xi1> to vector<64x16xi1>
    %103 = vector.broadcast %cst_61 : f32 to vector<64x16xf32>
    %104 = arith.select %102, %98, %103 : vector<64x16xi1>, vector<64x16xf32>
    %c8 = arith.constant 8 : index
    %c0_62 = arith.constant 0 : index
    %c0_63 = arith.constant 0 : index
    %105 = vector.load %arg4[%c8, %c0_62, %c0_63] : memref<9x16x16xf32, #tpu.memory_space<vmem>>, vector<1x16x16xf32>
    %106 = vector.shape_cast %105 : vector<1x16x16xf32> to vector<16x16xf32>
    %cst_64 = arith.constant dense<0.000000e+00> : vector<64x16xf32>
    %107 = tpu.matmul %104, %106, %cst_64 {dimension_numbers = #tpu.dot_dimension_numbers<[1], [0], [0], [1], [0, 0, 1, 1], [], []>} : vector<64x16xf32>, vector<16x16xf32>, vector<64x16xf32> -> vector<64x16xf32>
    %108 = arith.addf %97, %107 : vector<64x16xf32>
    %c0_65 = arith.constant 0 : index
    %c0_66 = arith.constant 0 : index
    %109 = vector.load %arg5[%c0_65, %c0_66] : memref<1x16xf32, #tpu.memory_space<vmem>>, vector<1x16xf32>
    %110 = vector.broadcast %109 : vector<1x16xf32> to vector<64x16xf32>
    %111 = arith.addf %108, %110 : vector<64x16xf32>
    %112 = arith.subf %23, %111 : vector<64x16xf32>
    %113 = math.absf %112 : vector<64x16xf32>
    %cst_67 = arith.constant 0.000000e+00 : f32
    %114 = vector.broadcast %cst_67 : f32 to vector<64x16xf32>
    %115 = arith.subf %114, %113 : vector<64x16xf32>
    %116 = math.exp %115 : vector<64x16xf32>
    %cst_68 = arith.constant 1.000000e+00 : f32
    %117 = vector.broadcast %cst_68 : f32 to vector<64x16xf32>
    %118 = arith.addf %117, %116 : vector<64x16xf32>
    %cst_69 = arith.constant 1.000000e+00 : f32
    %119 = vector.broadcast %cst_69 : f32 to vector<64x16xf32>
    %120 = arith.divf %119, %118 : vector<64x16xf32>
    %cst_70 = arith.constant 0.000000e+00 : f32
    %121 = vector.broadcast %cst_70 : f32 to vector<64x16xf32>
    %122 = arith.cmpf oge, %112, %121 : vector<64x16xf32>
    %123 = arith.mulf %116, %120 : vector<64x16xf32>
    %124 = arith.select %122, %120, %123 : vector<64x16xi1>, vector<64x16xf32>
    %cst_71 = arith.constant 1.000000e+00 : f32
    %125 = vector.broadcast %cst_71 : f32 to vector<64x16xf32>
    %126 = arith.subf %125, %124 : vector<64x16xf32>
    %127 = arith.mulf %126, %18 : vector<64x16xf32>
    %128 = arith.mulf %127, %18 : vector<64x16xf32>
    %129 = math.absf %127 : vector<64x16xf32>
    %cst_72 = arith.constant 0.000000e+00 : f32
    %130 = vector.broadcast %cst_72 : f32 to vector<64x16xf32>
    %131 = arith.subf %130, %129 : vector<64x16xf32>
    %132 = math.exp %131 : vector<64x16xf32>
    %cst_73 = arith.constant 1.000000e+00 : f32
    %133 = vector.broadcast %cst_73 : f32 to vector<64x16xf32>
    %134 = arith.addf %133, %132 : vector<64x16xf32>
    %cst_74 = arith.constant 1.000000e+00 : f32
    %135 = vector.broadcast %cst_74 : f32 to vector<64x16xf32>
    %136 = arith.divf %135, %134 : vector<64x16xf32>
    %cst_75 = arith.constant 0.000000e+00 : f32
    %137 = vector.broadcast %cst_75 : f32 to vector<64x16xf32>
    %138 = arith.cmpf oge, %127, %137 : vector<64x16xf32>
    %139 = arith.mulf %132, %136 : vector<64x16xf32>
    %140 = arith.select %138, %136, %139 : vector<64x16xi1>, vector<64x16xf32>
    %141 = arith.mulf %140, %128 : vector<64x16xf32>
    %142 = arith.addf %141, %127 : vector<64x16xf32>
    %c0_76 = arith.constant 0 : index
    %c0_77 = arith.constant 0 : index
    %143 = vector.load %arg6[%c0_76, %c0_77] : memref<16x384xf32, #tpu.memory_space<vmem>>, vector<16x384xf32>
    %cst_78 = arith.constant dense<0.000000e+00> : vector<64x384xf32>
    %144 = tpu.matmul %127, %143, %cst_78 {dimension_numbers = #tpu.dot_dimension_numbers<[1], [0], [0], [1], [0, 0, 1, 1], [], []>} : vector<64x16xf32>, vector<16x384xf32>, vector<64x384xf32> -> vector<64x384xf32>
    %cst_79 = arith.constant 0.000000e+00 : f32
    %145 = vector.broadcast %cst_79 : f32 to vector<64x384xf32>
    %146 = arith.maximumf %144, %145 : vector<64x384xf32>
    %c0_80 = arith.constant 0 : index
    %c0_81 = arith.constant 0 : index
    %147 = vector.load %arg8[%c0_80, %c0_81] : memref<1x384xf32, #tpu.memory_space<vmem>>, vector<1x384xf32>
    %cst_82 = arith.constant 0.000000e+00 : f32
    %148 = vector.broadcast %cst_82 : f32 to vector<82x384xf32>
    %c0_83 = arith.constant 0 : index
    %c0_84 = arith.constant 0 : index
    %149 = vector.load %arg18[%c0_83, %c0_84] : memref<82x384xf32, #tpu.memory_space<vmem>>, vector<82x384xf32>
    tpu.vector_store %arg18[%c0_83, %c0_84], %148 {strides = array<i32>} : memref<82x384xf32, #tpu.memory_space<vmem>>, vector<82x384xf32>,
    %c9 = arith.constant 9 : index
    %c0_85 = arith.constant 0 : index
    %150 = vector.load %arg18[%c9, %c0_85] : memref<82x384xf32, #tpu.memory_space<vmem>>, vector<64x384xf32>
    tpu.vector_store %arg18[%c9, %c0_85], %146 {strides = array<i32>} : memref<82x384xf32, #tpu.memory_space<vmem>>, vector<64x384xf32>,
    %c0_86 = arith.constant 0 : index
    %c0_87 = arith.constant 0 : index
    %151 = vector.load %arg18[%c0_86, %c0_87] : memref<82x384xf32, #tpu.memory_space<vmem>>, vector<64x384xf32>
    %c1_i32_88 = arith.constant 1 : i32
    %152 = vector.broadcast %c1_i32_88 : i32 to vector<64x1xi32>
    %153 = arith.cmpi sge, %16, %152 : vector<64x1xi32>
    %cst_89 = arith.constant 0.000000e+00 : f32
    %154 = vector.shape_cast %153 : vector<64x1xi1> to vector<64x1xi1>
    %155 = vector.broadcast %154 : vector<64x1xi1> to vector<64x384xi1>
    %156 = vector.broadcast %cst_89 : f32 to vector<64x384xf32>
    %157 = arith.select %155, %151, %156 : vector<64x384xi1>, vector<64x384xf32>
    %c0_90 = arith.constant 0 : index
    %c0_91 = arith.constant 0 : index
    %158 = vector.load %arg7[%c0_90, %c0_91] : memref<9x384xf32, #tpu.memory_space<vmem>>, vector<1x384xf32>
    %159 = vector.broadcast %158 : vector<1x384xf32> to vector<64x384xf32>
    %160 = arith.mulf %157, %159 : vector<64x384xf32>
    %161 = vector.broadcast %147 : vector<1x384xf32> to vector<64x384xf32>
    %162 = arith.addf %161, %160 : vector<64x384xf32>
    %c1_92 = arith.constant 1 : index
    %c0_93 = arith.constant 0 : index
    %163 = vector.load %arg18[%c1_92, %c0_93] : memref<82x384xf32, #tpu.memory_space<vmem>>, vector<64x384xf32>
    %c1_94 = arith.constant 1 : index
    %c0_95 = arith.constant 0 : index
    %164 = vector.load %arg7[%c1_94, %c0_95] : memref<9x384xf32, #tpu.memory_space<vmem>>, vector<1x384xf32>
    %165 = vector.broadcast %164 : vector<1x384xf32> to vector<64x384xf32>
    %166 = arith.mulf %163, %165 : vector<64x384xf32>
    %167 = arith.addf %162, %166 : vector<64x384xf32>
    %c2_96 = arith.constant 2 : index
    %c0_97 = arith.constant 0 : index
    %168 = vector.load %arg18[%c2_96, %c0_97] : memref<82x384xf32, #tpu.memory_space<vmem>>, vector<64x384xf32>
    %c7_i32 = arith.constant 7 : i32
    %169 = vector.broadcast %c7_i32 : i32 to vector<64x1xi32>
    %170 = arith.cmpi slt, %16, %169 : vector<64x1xi32>
    %cst_98 = arith.constant 0.000000e+00 : f32
    %171 = vector.shape_cast %170 : vector<64x1xi1> to vector<64x1xi1>
    %172 = vector.broadcast %171 : vector<64x1xi1> to vector<64x384xi1>
    %173 = vector.broadcast %cst_98 : f32 to vector<64x384xf32>
    %174 = arith.select %172, %168, %173 : vector<64x384xi1>, vector<64x384xf32>
    %c2_99 = arith.constant 2 : index
    %c0_100 = arith.constant 0 : index
    %175 = vector.load %arg7[%c2_99, %c0_100] : memref<9x384xf32, #tpu.memory_space<vmem>>, vector<1x384xf32>
    %176 = vector.broadcast %175 : vector<1x384xf32> to vector<64x384xf32>
    %177 = arith.mulf %174, %176 : vector<64x384xf32>
    %178 = arith.addf %167, %177 : vector<64x384xf32>
    %c8_101 = arith.constant 8 : index
    %c0_102 = arith.constant 0 : index
    %179 = vector.load %arg18[%c8_101, %c0_102] : memref<82x384xf32, #tpu.memory_space<vmem>>, vector<64x384xf32>
    %c1_i32_103 = arith.constant 1 : i32
    %180 = vector.broadcast %c1_i32_103 : i32 to vector<64x1xi32>
    %181 = arith.cmpi sge, %16, %180 : vector<64x1xi32>
    %cst_104 = arith.constant 0.000000e+00 : f32
    %182 = vector.shape_cast %181 : vector<64x1xi1> to vector<64x1xi1>
    %183 = vector.broadcast %182 : vector<64x1xi1> to vector<64x384xi1>
    %184 = vector.broadcast %cst_104 : f32 to vector<64x384xf32>
    %185 = arith.select %183, %179, %184 : vector<64x384xi1>, vector<64x384xf32>
    %c3_105 = arith.constant 3 : index
    %c0_106 = arith.constant 0 : index
    %186 = vector.load %arg7[%c3_105, %c0_106] : memref<9x384xf32, #tpu.memory_space<vmem>>, vector<1x384xf32>
    %187 = vector.broadcast %186 : vector<1x384xf32> to vector<64x384xf32>
    %188 = arith.mulf %185, %187 : vector<64x384xf32>
    %189 = arith.addf %178, %188 : vector<64x384xf32>
    %c9_107 = arith.constant 9 : index
    %c0_108 = arith.constant 0 : index
    %190 = vector.load %arg18[%c9_107, %c0_108] : memref<82x384xf32, #tpu.memory_space<vmem>>, vector<64x384xf32>
    %c4_109 = arith.constant 4 : index
    %c0_110 = arith.constant 0 : index
    %191 = vector.load %arg7[%c4_109, %c0_110] : memref<9x384xf32, #tpu.memory_space<vmem>>, vector<1x384xf32>
    %192 = vector.broadcast %191 : vector<1x384xf32> to vector<64x384xf32>
    %193 = arith.mulf %190, %192 : vector<64x384xf32>
    %194 = arith.addf %189, %193 : vector<64x384xf32>
    %c10 = arith.constant 10 : index
    %c0_111 = arith.constant 0 : index
    %195 = vector.load %arg18[%c10, %c0_111] : memref<82x384xf32, #tpu.memory_space<vmem>>, vector<64x384xf32>
    %c7_i32_112 = arith.constant 7 : i32
    %196 = vector.broadcast %c7_i32_112 : i32 to vector<64x1xi32>
    %197 = arith.cmpi slt, %16, %196 : vector<64x1xi32>
    %cst_113 = arith.constant 0.000000e+00 : f32
    %198 = vector.shape_cast %197 : vector<64x1xi1> to vector<64x1xi1>
    %199 = vector.broadcast %198 : vector<64x1xi1> to vector<64x384xi1>
    %200 = vector.broadcast %cst_113 : f32 to vector<64x384xf32>
    %201 = arith.select %199, %195, %200 : vector<64x384xi1>, vector<64x384xf32>
    %c5_114 = arith.constant 5 : index
    %c0_115 = arith.constant 0 : index
    %202 = vector.load %arg7[%c5_114, %c0_115] : memref<9x384xf32, #tpu.memory_space<vmem>>, vector<1x384xf32>
    %203 = vector.broadcast %202 : vector<1x384xf32> to vector<64x384xf32>
    %204 = arith.mulf %201, %203 : vector<64x384xf32>
    %205 = arith.addf %194, %204 : vector<64x384xf32>
    %c16_116 = arith.constant 16 : index
    %c0_117 = arith.constant 0 : index
    %206 = vector.load %arg18[%c16_116, %c0_117] : memref<82x384xf32, #tpu.memory_space<vmem>>, vector<64x384xf32>
    %c1_i32_118 = arith.constant 1 : i32
    %207 = vector.broadcast %c1_i32_118 : i32 to vector<64x1xi32>
    %208 = arith.cmpi sge, %16, %207 : vector<64x1xi32>
    %cst_119 = arith.constant 0.000000e+00 : f32
    %209 = vector.shape_cast %208 : vector<64x1xi1> to vector<64x1xi1>
    %210 = vector.broadcast %209 : vector<64x1xi1> to vector<64x384xi1>
    %211 = vector.broadcast %cst_119 : f32 to vector<64x384xf32>
    %212 = arith.select %210, %206, %211 : vector<64x384xi1>, vector<64x384xf32>
    %c6_120 = arith.constant 6 : index
    %c0_121 = arith.constant 0 : index
    %213 = vector.load %arg7[%c6_120, %c0_121] : memref<9x384xf32, #tpu.memory_space<vmem>>, vector<1x384xf32>
    %214 = vector.broadcast %213 : vector<1x384xf32> to vector<64x384xf32>
    %215 = arith.mulf %212, %214 : vector<64x384xf32>
    %216 = arith.addf %205, %215 : vector<64x384xf32>
    %c17 = arith.constant 17 : index
    %c0_122 = arith.constant 0 : index
    %217 = vector.load %arg18[%c17, %c0_122] : memref<82x384xf32, #tpu.memory_space<vmem>>, vector<64x384xf32>
    %c7_123 = arith.constant 7 : index
    %c0_124 = arith.constant 0 : index
    %218 = vector.load %arg7[%c7_123, %c0_124] : memref<9x384xf32, #tpu.memory_space<vmem>>, vector<1x384xf32>
    %219 = vector.broadcast %218 : vector<1x384xf32> to vector<64x384xf32>
    %220 = arith.mulf %217, %219 : vector<64x384xf32>
    %221 = arith.addf %216, %220 : vector<64x384xf32>
    %c18_125 = arith.constant 18 : index
    %c0_126 = arith.constant 0 : index
    %222 = vector.load %arg18[%c18_125, %c0_126] : memref<82x384xf32, #tpu.memory_space<vmem>>, vector<64x384xf32>
    %c7_i32_127 = arith.constant 7 : i32
    %223 = vector.broadcast %c7_i32_127 : i32 to vector<64x1xi32>
    %224 = arith.cmpi slt, %16, %223 : vector<64x1xi32>
    %cst_128 = arith.constant 0.000000e+00 : f32
    %225 = vector.shape_cast %224 : vector<64x1xi1> to vector<64x1xi1>
    %226 = vector.broadcast %225 : vector<64x1xi1> to vector<64x384xi1>
    %227 = vector.broadcast %cst_128 : f32 to vector<64x384xf32>
    %228 = arith.select %226, %222, %227 : vector<64x384xi1>, vector<64x384xf32>
    %c8_129 = arith.constant 8 : index
    %c0_130 = arith.constant 0 : index
    %229 = vector.load %arg7[%c8_129, %c0_130] : memref<9x384xf32, #tpu.memory_space<vmem>>, vector<1x384xf32>
    %230 = vector.broadcast %229 : vector<1x384xf32> to vector<64x384xf32>
    %231 = arith.mulf %228, %230 : vector<64x384xf32>
    %232 = arith.addf %221, %231 : vector<64x384xf32>
    %cst_131 = arith.constant 0.000000e+00 : f32
    %233 = vector.broadcast %cst_131 : f32 to vector<64x384xf32>
    %234 = arith.maximumf %232, %233 : vector<64x384xf32>
    %c0_132 = arith.constant 0 : index
    %c0_133 = arith.constant 0 : index
    %235 = vector.load %arg9[%c0_132, %c0_133] : memref<384x16xf32, #tpu.memory_space<vmem>>, vector<384x16xf32>
    %cst_134 = arith.constant dense<0.000000e+00> : vector<64x16xf32>
    %236 = tpu.matmul %234, %235, %cst_134 {dimension_numbers = #tpu.dot_dimension_numbers<[1], [0], [0], [1], [0, 0, 1, 1], [], []>} : vector<64x384xf32>, vector<384x16xf32>, vector<64x16xf32> -> vector<64x16xf32>
    %cst_135 = arith.constant 0.000000e+00 : f32
    %237 = vector.broadcast %cst_135 : f32 to vector<64x16xf32>
    %238 = arith.maximumf %236, %237 : vector<64x16xf32>
    %239 = arith.addf %238, %127 : vector<64x16xf32>
    %c0_136 = arith.constant 0 : index
    %c0_137 = arith.constant 0 : index
    %240 = vector.load %arg6[%c0_136, %c0_137] : memref<16x384xf32, #tpu.memory_space<vmem>>, vector<16x384xf32>
    %cst_138 = arith.constant dense<0.000000e+00> : vector<64x384xf32>
    %241 = tpu.matmul %239, %240, %cst_138 {dimension_numbers = #tpu.dot_dimension_numbers<[1], [0], [0], [1], [0, 0, 1, 1], [], []>} : vector<64x16xf32>, vector<16x384xf32>, vector<64x384xf32> -> vector<64x384xf32>
    %cst_139 = arith.constant 0.000000e+00 : f32
    %242 = vector.broadcast %cst_139 : f32 to vector<64x384xf32>
    %243 = arith.maximumf %241, %242 : vector<64x384xf32>
    %c0_140 = arith.constant 0 : index
    %c0_141 = arith.constant 0 : index
    %244 = vector.load %arg8[%c0_140, %c0_141] : memref<1x384xf32, #tpu.memory_space<vmem>>, vector<1x384xf32>
    %cst_142 = arith.constant 0.000000e+00 : f32
    %245 = vector.broadcast %cst_142 : f32 to vector<82x384xf32>
    %c0_143 = arith.constant 0 : index
    %c0_144 = arith.constant 0 : index
    %246 = vector.load %arg18[%c0_143, %c0_144] : memref<82x384xf32, #tpu.memory_space<vmem>>, vector<82x384xf32>
    tpu.vector_store %arg18[%c0_143, %c0_144], %245 {strides = array<i32>} : memref<82x384xf32, #tpu.memory_space<vmem>>, vector<82x384xf32>,
    %c9_145 = arith.constant 9 : index
    %c0_146 = arith.constant 0 : index
    %247 = vector.load %arg18[%c9_145, %c0_146] : memref<82x384xf32, #tpu.memory_space<vmem>>, vector<64x384xf32>
    tpu.vector_store %arg18[%c9_145, %c0_146], %243 {strides = array<i32>} : memref<82x384xf32, #tpu.memory_space<vmem>>, vector<64x384xf32>,
    %c0_147 = arith.constant 0 : index
    %c0_148 = arith.constant 0 : index
    %248 = vector.load %arg18[%c0_147, %c0_148] : memref<82x384xf32, #tpu.memory_space<vmem>>, vector<64x384xf32>
    %c1_i32_149 = arith.constant 1 : i32
    %249 = vector.broadcast %c1_i32_149 : i32 to vector<64x1xi32>
    %250 = arith.cmpi sge, %16, %249 : vector<64x1xi32>
    %cst_150 = arith.constant 0.000000e+00 : f32
    %251 = vector.shape_cast %250 : vector<64x1xi1> to vector<64x1xi1>
    %252 = vector.broadcast %251 : vector<64x1xi1> to vector<64x384xi1>
    %253 = vector.broadcast %cst_150 : f32 to vector<64x384xf32>
    %254 = arith.select %252, %248, %253 : vector<64x384xi1>, vector<64x384xf32>
    %c0_151 = arith.constant 0 : index
    %c0_152 = arith.constant 0 : index
    %255 = vector.load %arg7[%c0_151, %c0_152] : memref<9x384xf32, #tpu.memory_space<vmem>>, vector<1x384xf32>
    %256 = vector.broadcast %255 : vector<1x384xf32> to vector<64x384xf32>
    %257 = arith.mulf %254, %256 : vector<64x384xf32>
    %258 = vector.broadcast %244 : vector<1x384xf32> to vector<64x384xf32>
    %259 = arith.addf %258, %257 : vector<64x384xf32>
    %c1_153 = arith.constant 1 : index
    %c0_154 = arith.constant 0 : index
    %260 = vector.load %arg18[%c1_153, %c0_154] : memref<82x384xf32, #tpu.memory_space<vmem>>, vector<64x384xf32>
    %c1_155 = arith.constant 1 : index
    %c0_156 = arith.constant 0 : index
    %261 = vector.load %arg7[%c1_155, %c0_156] : memref<9x384xf32, #tpu.memory_space<vmem>>, vector<1x384xf32>
    %262 = vector.broadcast %261 : vector<1x384xf32> to vector<64x384xf32>
    %263 = arith.mulf %260, %262 : vector<64x384xf32>
    %264 = arith.addf %259, %263 : vector<64x384xf32>
    %c2_157 = arith.constant 2 : index
    %c0_158 = arith.constant 0 : index
    %265 = vector.load %arg18[%c2_157, %c0_158] : memref<82x384xf32, #tpu.memory_space<vmem>>, vector<64x384xf32>
    %c7_i32_159 = arith.constant 7 : i32
    %266 = vector.broadcast %c7_i32_159 : i32 to vector<64x1xi32>
    %267 = arith.cmpi slt, %16, %266 : vector<64x1xi32>
    %cst_160 = arith.constant 0.000000e+00 : f32
    %268 = vector.shape_cast %267 : vector<64x1xi1> to vector<64x1xi1>
    %269 = vector.broadcast %268 : vector<64x1xi1> to vector<64x384xi1>
    %270 = vector.broadcast %cst_160 : f32 to vector<64x384xf32>
    %271 = arith.select %269, %265, %270 : vector<64x384xi1>, vector<64x384xf32>
    %c2_161 = arith.constant 2 : index
    %c0_162 = arith.constant 0 : index
    %272 = vector.load %arg7[%c2_161, %c0_162] : memref<9x384xf32, #tpu.memory_space<vmem>>, vector<1x384xf32>
    %273 = vector.broadcast %272 : vector<1x384xf32> to vector<64x384xf32>
    %274 = arith.mulf %271, %273 : vector<64x384xf32>
    %275 = arith.addf %264, %274 : vector<64x384xf32>
    %c8_163 = arith.constant 8 : index
    %c0_164 = arith.constant 0 : index
    %276 = vector.load %arg18[%c8_163, %c0_164] : memref<82x384xf32, #tpu.memory_space<vmem>>, vector<64x384xf32>
    %c1_i32_165 = arith.constant 1 : i32
    %277 = vector.broadcast %c1_i32_165 : i32 to vector<64x1xi32>
    %278 = arith.cmpi sge, %16, %277 : vector<64x1xi32>
    %cst_166 = arith.constant 0.000000e+00 : f32
    %279 = vector.shape_cast %278 : vector<64x1xi1> to vector<64x1xi1>
    %280 = vector.broadcast %279 : vector<64x1xi1> to vector<64x384xi1>
    %281 = vector.broadcast %cst_166 : f32 to vector<64x384xf32>
    %282 = arith.select %280, %276, %281 : vector<64x384xi1>, vector<64x384xf32>
    %c3_167 = arith.constant 3 : index
    %c0_168 = arith.constant 0 : index
    %283 = vector.load %arg7[%c3_167, %c0_168] : memref<9x384xf32, #tpu.memory_space<vmem>>, vector<1x384xf32>
    %284 = vector.broadcast %283 : vector<1x384xf32> to vector<64x384xf32>
    %285 = arith.mulf %282, %284 : vector<64x384xf32>
    %286 = arith.addf %275, %285 : vector<64x384xf32>
    %c9_169 = arith.constant 9 : index
    %c0_170 = arith.constant 0 : index
    %287 = vector.load %arg18[%c9_169, %c0_170] : memref<82x384xf32, #tpu.memory_space<vmem>>, vector<64x384xf32>
    %c4_171 = arith.constant 4 : index
    %c0_172 = arith.constant 0 : index
    %288 = vector.load %arg7[%c4_171, %c0_172] : memref<9x384xf32, #tpu.memory_space<vmem>>, vector<1x384xf32>
    %289 = vector.broadcast %288 : vector<1x384xf32> to vector<64x384xf32>
    %290 = arith.mulf %287, %289 : vector<64x384xf32>
    %291 = arith.addf %286, %290 : vector<64x384xf32>
    %c10_173 = arith.constant 10 : index
    %c0_174 = arith.constant 0 : index
    %292 = vector.load %arg18[%c10_173, %c0_174] : memref<82x384xf32, #tpu.memory_space<vmem>>, vector<64x384xf32>
    %c7_i32_175 = arith.constant 7 : i32
    %293 = vector.broadcast %c7_i32_175 : i32 to vector<64x1xi32>
    %294 = arith.cmpi slt, %16, %293 : vector<64x1xi32>
    %cst_176 = arith.constant 0.000000e+00 : f32
    %295 = vector.shape_cast %294 : vector<64x1xi1> to vector<64x1xi1>
    %296 = vector.broadcast %295 : vector<64x1xi1> to vector<64x384xi1>
    %297 = vector.broadcast %cst_176 : f32 to vector<64x384xf32>
    %298 = arith.select %296, %292, %297 : vector<64x384xi1>, vector<64x384xf32>
    %c5_177 = arith.constant 5 : index
    %c0_178 = arith.constant 0 : index
    %299 = vector.load %arg7[%c5_177, %c0_178] : memref<9x384xf32, #tpu.memory_space<vmem>>, vector<1x384xf32>
    %300 = vector.broadcast %299 : vector<1x384xf32> to vector<64x384xf32>
    %301 = arith.mulf %298, %300 : vector<64x384xf32>
    %302 = arith.addf %291, %301 : vector<64x384xf32>
    %c16_179 = arith.constant 16 : index
    %c0_180 = arith.constant 0 : index
    %303 = vector.load %arg18[%c16_179, %c0_180] : memref<82x384xf32, #tpu.memory_space<vmem>>, vector<64x384xf32>
    %c1_i32_181 = arith.constant 1 : i32
    %304 = vector.broadcast %c1_i32_181 : i32 to vector<64x1xi32>
    %305 = arith.cmpi sge, %16, %304 : vector<64x1xi32>
    %cst_182 = arith.constant 0.000000e+00 : f32
    %306 = vector.shape_cast %305 : vector<64x1xi1> to vector<64x1xi1>
    %307 = vector.broadcast %306 : vector<64x1xi1> to vector<64x384xi1>
    %308 = vector.broadcast %cst_182 : f32 to vector<64x384xf32>
    %309 = arith.select %307, %303, %308 : vector<64x384xi1>, vector<64x384xf32>
    %c6_183 = arith.constant 6 : index
    %c0_184 = arith.constant 0 : index
    %310 = vector.load %arg7[%c6_183, %c0_184] : memref<9x384xf32, #tpu.memory_space<vmem>>, vector<1x384xf32>
    %311 = vector.broadcast %310 : vector<1x384xf32> to vector<64x384xf32>
    %312 = arith.mulf %309, %311 : vector<64x384xf32>
    %313 = arith.addf %302, %312 : vector<64x384xf32>
    %c17_185 = arith.constant 17 : index
    %c0_186 = arith.constant 0 : index
    %314 = vector.load %arg18[%c17_185, %c0_186] : memref<82x384xf32, #tpu.memory_space<vmem>>, vector<64x384xf32>
    %c7_187 = arith.constant 7 : index
    %c0_188 = arith.constant 0 : index
    %315 = vector.load %arg7[%c7_187, %c0_188] : memref<9x384xf32, #tpu.memory_space<vmem>>, vector<1x384xf32>
    %316 = vector.broadcast %315 : vector<1x384xf32> to vector<64x384xf32>
    %317 = arith.mulf %314, %316 : vector<64x384xf32>
    %318 = arith.addf %313, %317 : vector<64x384xf32>
    %c18_189 = arith.constant 18 : index
    %c0_190 = arith.constant 0 : index
    %319 = vector.load %arg18[%c18_189, %c0_190] : memref<82x384xf32, #tpu.memory_space<vmem>>, vector<64x384xf32>
    %c7_i32_191 = arith.constant 7 : i32
    %320 = vector.broadcast %c7_i32_191 : i32 to vector<64x1xi32>
    %321 = arith.cmpi slt, %16, %320 : vector<64x1xi32>
    %cst_192 = arith.constant 0.000000e+00 : f32
    %322 = vector.shape_cast %321 : vector<64x1xi1> to vector<64x1xi1>
    %323 = vector.broadcast %322 : vector<64x1xi1> to vector<64x384xi1>
    %324 = vector.broadcast %cst_192 : f32 to vector<64x384xf32>
    %325 = arith.select %323, %319, %324 : vector<64x384xi1>, vector<64x384xf32>
    %c8_193 = arith.constant 8 : index
    %c0_194 = arith.constant 0 : index
    %326 = vector.load %arg7[%c8_193, %c0_194] : memref<9x384xf32, #tpu.memory_space<vmem>>, vector<1x384xf32>
    %327 = vector.broadcast %326 : vector<1x384xf32> to vector<64x384xf32>
    %328 = arith.mulf %325, %327 : vector<64x384xf32>
    %329 = arith.addf %318, %328 : vector<64x384xf32>
    %cst_195 = arith.constant 0.000000e+00 : f32
    %330 = vector.broadcast %cst_195 : f32 to vector<64x384xf32>
    %331 = arith.maximumf %329, %330 : vector<64x384xf32>
    %c0_196 = arith.constant 0 : index
    %c0_197 = arith.constant 0 : index
    %332 = vector.load %arg9[%c0_196, %c0_197] : memref<384x16xf32, #tpu.memory_space<vmem>>, vector<384x16xf32>
    %cst_198 = arith.constant dense<0.000000e+00> : vector<64x16xf32>
    %333 = tpu.matmul %331, %332, %cst_198 {dimension_numbers = #tpu.dot_dimension_numbers<[1], [0], [0], [1], [0, 0, 1, 1], [], []>} : vector<64x384xf32>, vector<384x16xf32>, vector<64x16xf32> -> vector<64x16xf32>
    %cst_199 = arith.constant 0.000000e+00 : f32
    %334 = vector.broadcast %cst_199 : f32 to vector<64x16xf32>
    %335 = arith.maximumf %333, %334 : vector<64x16xf32>
    %336 = arith.addf %335, %239 : vector<64x16xf32>
    %c0_200 = arith.constant 0 : index
    %c0_201 = arith.constant 0 : index
    %c0_202 = arith.constant 0 : index
    %337 = vector.load %arg16[%c0_200, %c0_201, %c0_202] : memref<1x64x16xf32, #tpu.memory_space<vmem>>, vector<1x64x16xf32>
    %338 = vector.shape_cast %337 : vector<1x64x16xf32> to vector<64x16xf32>
    %339 = vector.shape_cast %336 : vector<64x16xf32> to vector<1x64x16xf32>
    tpu.vector_store %arg16[%c0_200, %c0_201, %c0_202], %339 {strides = array<i32>} : memref<1x64x16xf32, #tpu.memory_space<vmem>>, vector<1x64x16xf32>,
    %cst_203 = arith.constant 0.000000e+00 : f32
    %340 = vector.broadcast %cst_203 : f32 to vector<100x16xf32>
    %c0_204 = arith.constant 0 : index
    %c0_205 = arith.constant 0 : index
    %341 = vector.load %arg19[%c0_204, %c0_205] : memref<100x16xf32, #tpu.memory_space<vmem>>, vector<100x16xf32>
    tpu.vector_store %arg19[%c0_204, %c0_205], %340 {strides = array<i32>} : memref<100x16xf32, #tpu.memory_space<vmem>>, vector<100x16xf32>,
    %c9_206 = arith.constant 9 : index
    %c0_207 = arith.constant 0 : index
    %342 = vector.load %arg19[%c9_206, %c0_207] : memref<100x16xf32, #tpu.memory_space<vmem>>, vector<64x16xf32>
    tpu.vector_store %arg19[%c9_206, %c0_207], %128 {strides = array<i32>} : memref<100x16xf32, #tpu.memory_space<vmem>>, vector<64x16xf32>,
    %cst_208 = arith.constant 0.000000e+00 : f32
    %343 = vector.broadcast %cst_208 : f32 to vector<64x16xf32>
    %cst_209 = arith.constant 0.000000e+00 : f32
    %344 = vector.broadcast %cst_209 : f32 to vector<64x16xf32>
    %c0_210 = arith.constant 0 : index
    %c0_211 = arith.constant 0 : index
    %345 = vector.load %arg19[%c0_210, %c0_211] : memref<100x16xf32, #tpu.memory_space<vmem>>, vector<64x16xf32>
    %c1_i32_212 = arith.constant 1 : i32
    %346 = vector.broadcast %c1_i32_212 : i32 to vector<64x1xi32>
    %347 = arith.cmpi sge, %16, %346 : vector<64x1xi32>
    %cst_213 = arith.constant 0.000000e+00 : f32
    %348 = vector.shape_cast %347 : vector<64x1xi1> to vector<64x1xi1>
    %349 = vector.broadcast %348 : vector<64x1xi1> to vector<64x16xi1>
    %350 = vector.broadcast %cst_213 : f32 to vector<64x16xf32>
    %351 = arith.select %349, %345, %350 : vector<64x16xi1>, vector<64x16xf32>
    %c0_214 = arith.constant 0 : index
    %c0_215 = arith.constant 0 : index
    %352 = vector.load %arg10[%c0_214, %c0_215] : memref<9x16xf32, #tpu.memory_space<vmem>>, vector<1x16xf32>
    %353 = vector.broadcast %352 : vector<1x16xf32> to vector<64x16xf32>
    %354 = arith.mulf %351, %353 : vector<64x16xf32>
    %355 = arith.addf %343, %354 : vector<64x16xf32>
    %c0_216 = arith.constant 0 : index
    %c0_217 = arith.constant 0 : index
    %356 = vector.load %arg11[%c0_216, %c0_217] : memref<9x16xf32, #tpu.memory_space<vmem>>, vector<1x16xf32>
    %357 = vector.broadcast %356 : vector<1x16xf32> to vector<64x16xf32>
    %358 = arith.mulf %351, %357 : vector<64x16xf32>
    %359 = arith.addf %344, %358 : vector<64x16xf32>
    %c1_218 = arith.constant 1 : index
    %c0_219 = arith.constant 0 : index
    %360 = vector.load %arg19[%c1_218, %c0_219] : memref<100x16xf32, #tpu.memory_space<vmem>>, vector<64x16xf32>
    %c1_220 = arith.constant 1 : index
    %c0_221 = arith.constant 0 : index
    %361 = vector.load %arg10[%c1_220, %c0_221] : memref<9x16xf32, #tpu.memory_space<vmem>>, vector<1x16xf32>
    %362 = vector.broadcast %361 : vector<1x16xf32> to vector<64x16xf32>
    %363 = arith.mulf %360, %362 : vector<64x16xf32>
    %364 = arith.addf %355, %363 : vector<64x16xf32>
    %c1_222 = arith.constant 1 : index
    %c0_223 = arith.constant 0 : index
    %365 = vector.load %arg11[%c1_222, %c0_223] : memref<9x16xf32, #tpu.memory_space<vmem>>, vector<1x16xf32>
    %366 = vector.broadcast %365 : vector<1x16xf32> to vector<64x16xf32>
    %367 = arith.mulf %360, %366 : vector<64x16xf32>
    %368 = arith.addf %359, %367 : vector<64x16xf32>
    %c2_224 = arith.constant 2 : index
    %c0_225 = arith.constant 0 : index
    %369 = vector.load %arg19[%c2_224, %c0_225] : memref<100x16xf32, #tpu.memory_space<vmem>>, vector<64x16xf32>
    %c7_i32_226 = arith.constant 7 : i32
    %370 = vector.broadcast %c7_i32_226 : i32 to vector<64x1xi32>
    %371 = arith.cmpi slt, %16, %370 : vector<64x1xi32>
    %cst_227 = arith.constant 0.000000e+00 : f32
    %372 = vector.shape_cast %371 : vector<64x1xi1> to vector<64x1xi1>
    %373 = vector.broadcast %372 : vector<64x1xi1> to vector<64x16xi1>
    %374 = vector.broadcast %cst_227 : f32 to vector<64x16xf32>
    %375 = arith.select %373, %369, %374 : vector<64x16xi1>, vector<64x16xf32>
    %c2_228 = arith.constant 2 : index
    %c0_229 = arith.constant 0 : index
    %376 = vector.load %arg10[%c2_228, %c0_229] : memref<9x16xf32, #tpu.memory_space<vmem>>, vector<1x16xf32>
    %377 = vector.broadcast %376 : vector<1x16xf32> to vector<64x16xf32>
    %378 = arith.mulf %375, %377 : vector<64x16xf32>
    %379 = arith.addf %364, %378 : vector<64x16xf32>
    %c2_230 = arith.constant 2 : index
    %c0_231 = arith.constant 0 : index
    %380 = vector.load %arg11[%c2_230, %c0_231] : memref<9x16xf32, #tpu.memory_space<vmem>>, vector<1x16xf32>
    %381 = vector.broadcast %380 : vector<1x16xf32> to vector<64x16xf32>
    %382 = arith.mulf %375, %381 : vector<64x16xf32>
    %383 = arith.addf %368, %382 : vector<64x16xf32>
    %c8_232 = arith.constant 8 : index
    %c0_233 = arith.constant 0 : index
    %384 = vector.load %arg19[%c8_232, %c0_233] : memref<100x16xf32, #tpu.memory_space<vmem>>, vector<64x16xf32>
    %c1_i32_234 = arith.constant 1 : i32
    %385 = vector.broadcast %c1_i32_234 : i32 to vector<64x1xi32>
    %386 = arith.cmpi sge, %16, %385 : vector<64x1xi32>
    %cst_235 = arith.constant 0.000000e+00 : f32
    %387 = vector.shape_cast %386 : vector<64x1xi1> to vector<64x1xi1>
    %388 = vector.broadcast %387 : vector<64x1xi1> to vector<64x16xi1>
    %389 = vector.broadcast %cst_235 : f32 to vector<64x16xf32>
    %390 = arith.select %388, %384, %389 : vector<64x16xi1>, vector<64x16xf32>
    %c3_236 = arith.constant 3 : index
    %c0_237 = arith.constant 0 : index
    %391 = vector.load %arg10[%c3_236, %c0_237] : memref<9x16xf32, #tpu.memory_space<vmem>>, vector<1x16xf32>
    %392 = vector.broadcast %391 : vector<1x16xf32> to vector<64x16xf32>
    %393 = arith.mulf %390, %392 : vector<64x16xf32>
    %394 = arith.addf %379, %393 : vector<64x16xf32>
    %c3_238 = arith.constant 3 : index
    %c0_239 = arith.constant 0 : index
    %395 = vector.load %arg11[%c3_238, %c0_239] : memref<9x16xf32, #tpu.memory_space<vmem>>, vector<1x16xf32>
    %396 = vector.broadcast %395 : vector<1x16xf32> to vector<64x16xf32>
    %397 = arith.mulf %390, %396 : vector<64x16xf32>
    %398 = arith.addf %383, %397 : vector<64x16xf32>
    %c9_240 = arith.constant 9 : index
    %c0_241 = arith.constant 0 : index
    %399 = vector.load %arg19[%c9_240, %c0_241] : memref<100x16xf32, #tpu.memory_space<vmem>>, vector<64x16xf32>
    %c4_242 = arith.constant 4 : index
    %c0_243 = arith.constant 0 : index
    %400 = vector.load %arg10[%c4_242, %c0_243] : memref<9x16xf32, #tpu.memory_space<vmem>>, vector<1x16xf32>
    %401 = vector.broadcast %400 : vector<1x16xf32> to vector<64x16xf32>
    %402 = arith.mulf %399, %401 : vector<64x16xf32>
    %403 = arith.addf %394, %402 : vector<64x16xf32>
    %c4_244 = arith.constant 4 : index
    %c0_245 = arith.constant 0 : index
    %404 = vector.load %arg11[%c4_244, %c0_245] : memref<9x16xf32, #tpu.memory_space<vmem>>, vector<1x16xf32>
    %405 = vector.broadcast %404 : vector<1x16xf32> to vector<64x16xf32>
    %406 = arith.mulf %399, %405 : vector<64x16xf32>
    %407 = arith.addf %398, %406 : vector<64x16xf32>
    %c10_246 = arith.constant 10 : index
    %c0_247 = arith.constant 0 : index
    %408 = vector.load %arg19[%c10_246, %c0_247] : memref<100x16xf32, #tpu.memory_space<vmem>>, vector<64x16xf32>
    %c7_i32_248 = arith.constant 7 : i32
    %409 = vector.broadcast %c7_i32_248 : i32 to vector<64x1xi32>
    %410 = arith.cmpi slt, %16, %409 : vector<64x1xi32>
    %cst_249 = arith.constant 0.000000e+00 : f32
    %411 = vector.shape_cast %410 : vector<64x1xi1> to vector<64x1xi1>
    %412 = vector.broadcast %411 : vector<64x1xi1> to vector<64x16xi1>
    %413 = vector.broadcast %cst_249 : f32 to vector<64x16xf32>
    %414 = arith.select %412, %408, %413 : vector<64x16xi1>, vector<64x16xf32>
    %c5_250 = arith.constant 5 : index
    %c0_251 = arith.constant 0 : index
    %415 = vector.load %arg10[%c5_250, %c0_251] : memref<9x16xf32, #tpu.memory_space<vmem>>, vector<1x16xf32>
    %416 = vector.broadcast %415 : vector<1x16xf32> to vector<64x16xf32>
    %417 = arith.mulf %414, %416 : vector<64x16xf32>
    %418 = arith.addf %403, %417 : vector<64x16xf32>
    %c5_252 = arith.constant 5 : index
    %c0_253 = arith.constant 0 : index
    %419 = vector.load %arg11[%c5_252, %c0_253] : memref<9x16xf32, #tpu.memory_space<vmem>>, vector<1x16xf32>
    %420 = vector.broadcast %419 : vector<1x16xf32> to vector<64x16xf32>
    %421 = arith.mulf %414, %420 : vector<64x16xf32>
    %422 = arith.addf %407, %421 : vector<64x16xf32>
    %c16_254 = arith.constant 16 : index
    %c0_255 = arith.constant 0 : index
    %423 = vector.load %arg19[%c16_254, %c0_255] : memref<100x16xf32, #tpu.memory_space<vmem>>, vector<64x16xf32>
    %c1_i32_256 = arith.constant 1 : i32
    %424 = vector.broadcast %c1_i32_256 : i32 to vector<64x1xi32>
    %425 = arith.cmpi sge, %16, %424 : vector<64x1xi32>
    %cst_257 = arith.constant 0.000000e+00 : f32
    %426 = vector.shape_cast %425 : vector<64x1xi1> to vector<64x1xi1>
    %427 = vector.broadcast %426 : vector<64x1xi1> to vector<64x16xi1>
    %428 = vector.broadcast %cst_257 : f32 to vector<64x16xf32>
    %429 = arith.select %427, %423, %428 : vector<64x16xi1>, vector<64x16xf32>
    %c6_258 = arith.constant 6 : index
    %c0_259 = arith.constant 0 : index
    %430 = vector.load %arg10[%c6_258, %c0_259] : memref<9x16xf32, #tpu.memory_space<vmem>>, vector<1x16xf32>
    %431 = vector.broadcast %430 : vector<1x16xf32> to vector<64x16xf32>
    %432 = arith.mulf %429, %431 : vector<64x16xf32>
    %433 = arith.addf %418, %432 : vector<64x16xf32>
    %c6_260 = arith.constant 6 : index
    %c0_261 = arith.constant 0 : index
    %434 = vector.load %arg11[%c6_260, %c0_261] : memref<9x16xf32, #tpu.memory_space<vmem>>, vector<1x16xf32>
    %435 = vector.broadcast %434 : vector<1x16xf32> to vector<64x16xf32>
    %436 = arith.mulf %429, %435 : vector<64x16xf32>
    %437 = arith.addf %422, %436 : vector<64x16xf32>
    %c17_262 = arith.constant 17 : index
    %c0_263 = arith.constant 0 : index
    %438 = vector.load %arg19[%c17_262, %c0_263] : memref<100x16xf32, #tpu.memory_space<vmem>>, vector<64x16xf32>
    %c7_264 = arith.constant 7 : index
    %c0_265 = arith.constant 0 : index
    %439 = vector.load %arg10[%c7_264, %c0_265] : memref<9x16xf32, #tpu.memory_space<vmem>>, vector<1x16xf32>
    %440 = vector.broadcast %439 : vector<1x16xf32> to vector<64x16xf32>
    %441 = arith.mulf %438, %440 : vector<64x16xf32>
    %442 = arith.addf %433, %441 : vector<64x16xf32>
    %c7_266 = arith.constant 7 : index
    %c0_267 = arith.constant 0 : index
    %443 = vector.load %arg11[%c7_266, %c0_267] : memref<9x16xf32, #tpu.memory_space<vmem>>, vector<1x16xf32>
    %444 = vector.broadcast %443 : vector<1x16xf32> to vector<64x16xf32>
    %445 = arith.mulf %438, %444 : vector<64x16xf32>
    %446 = arith.addf %437, %445 : vector<64x16xf32>
    %c18_268 = arith.constant 18 : index
    %c0_269 = arith.constant 0 : index
    %447 = vector.load %arg19[%c18_268, %c0_269] : memref<100x16xf32, #tpu.memory_space<vmem>>, vector<64x16xf32>
    %c7_i32_270 = arith.constant 7 : i32
    %448 = vector.broadcast %c7_i32_270 : i32 to vector<64x1xi32>
    %449 = arith.cmpi slt, %16, %448 : vector<64x1xi32>
    %cst_271 = arith.constant 0.000000e+00 : f32
    %450 = vector.shape_cast %449 : vector<64x1xi1> to vector<64x1xi1>
    %451 = vector.broadcast %450 : vector<64x1xi1> to vector<64x16xi1>
    %452 = vector.broadcast %cst_271 : f32 to vector<64x16xf32>
    %453 = arith.select %451, %447, %452 : vector<64x16xi1>, vector<64x16xf32>
    %c8_272 = arith.constant 8 : index
    %c0_273 = arith.constant 0 : index
    %454 = vector.load %arg10[%c8_272, %c0_273] : memref<9x16xf32, #tpu.memory_space<vmem>>, vector<1x16xf32>
    %455 = vector.broadcast %454 : vector<1x16xf32> to vector<64x16xf32>
    %456 = arith.mulf %453, %455 : vector<64x16xf32>
    %457 = arith.addf %442, %456 : vector<64x16xf32>
    %c8_274 = arith.constant 8 : index
    %c0_275 = arith.constant 0 : index
    %458 = vector.load %arg11[%c8_274, %c0_275] : memref<9x16xf32, #tpu.memory_space<vmem>>, vector<1x16xf32>
    %459 = vector.broadcast %458 : vector<1x16xf32> to vector<64x16xf32>
    %460 = arith.mulf %453, %459 : vector<64x16xf32>
    %461 = arith.addf %446, %460 : vector<64x16xf32>
    %c0_276 = arith.constant 0 : index
    %c0_277 = arith.constant 0 : index
    %462 = vector.load %arg12[%c0_276, %c0_277] : memref<1x16xf32, #tpu.memory_space<vmem>>, vector<1x16xf32>
    %463 = vector.broadcast %462 : vector<1x16xf32> to vector<64x16xf32>
    %464 = arith.mulf %128, %463 : vector<64x16xf32>
    %c0_278 = arith.constant 0 : index
    %c0_279 = arith.constant 0 : index
    %465 = vector.load %arg13[%c0_278, %c0_279] : memref<16x16xf32, #tpu.memory_space<vmem>>, vector<16x16xf32>
    %cst_280 = arith.constant dense<0.000000e+00> : vector<64x16xf32>
    %466 = tpu.matmul %464, %465, %cst_280 {dimension_numbers = #tpu.dot_dimension_numbers<[1], [0], [0], [1], [0, 0, 1, 1], [], []>} : vector<64x16xf32>, vector<16x16xf32>, vector<64x16xf32> -> vector<64x16xf32>
    %467 = vector.extract_strided_slice %457 {offsets = [0, 0], sizes = [64, 8], strides = [1, 1]} : vector<64x16xf32> to vector<64x8xf32>
    %468 = tpu.transpose %467, [1, 0] : vector<64x8xf32> -> vector<8x64xf32>
    %469 = vector.extract_strided_slice %461 {offsets = [0, 0], sizes = [64, 8], strides = [1, 1]} : vector<64x16xf32> to vector<64x8xf32>
    %470 = tpu.transpose %469, [1, 0] : vector<64x8xf32> -> vector<8x64xf32>
    %471 = vector.extract_strided_slice %142 {offsets = [0, 0], sizes = [64, 8], strides = [1, 1]} : vector<64x16xf32> to vector<64x8xf32>
    %472 = tpu.transpose %471, [1, 0] : vector<64x8xf32> -> vector<8x64xf32>
    %473 = arith.mulf %468, %468 : vector<8x64xf32>
    %cst_281 = arith.constant dense<0.000000e+00> : vector<8xf32>
    %474 = vector.multi_reduction <add>, %473, %cst_281 [1] : vector<8x64xf32> to vector<8xf32>
    %475 = vector.shape_cast %474 : vector<8xf32> to vector<8x1xf32>
    %cst_282 = arith.constant 1.000000e-24 : f32
    %476 = vector.broadcast %cst_282 : f32 to vector<8x1xf32>
    %477 = arith.maximumf %475, %476 : vector<8x1xf32>
    %478 = math.rsqrt %477 : vector<8x1xf32>
    %479 = vector.broadcast %478 : vector<8x1xf32> to vector<8x64xf32>
    %480 = arith.mulf %468, %479 : vector<8x64xf32>
    %481 = arith.mulf %470, %470 : vector<8x64xf32>
    %cst_283 = arith.constant dense<0.000000e+00> : vector<8xf32>
    %482 = vector.multi_reduction <add>, %481, %cst_283 [1] : vector<8x64xf32> to vector<8xf32>
    %483 = vector.shape_cast %482 : vector<8xf32> to vector<8x1xf32>
    %cst_284 = arith.constant 1.000000e-24 : f32
    %484 = vector.broadcast %cst_284 : f32 to vector<8x1xf32>
    %485 = arith.maximumf %483, %484 : vector<8x1xf32>
    %486 = math.rsqrt %485 : vector<8x1xf32>
    %487 = vector.broadcast %486 : vector<8x1xf32> to vector<8x64xf32>
    %488 = arith.mulf %470, %487 : vector<8x64xf32>
    %cst_285 = arith.constant dense<0.000000e+00> : vector<8x8xf32>
    %489 = tpu.matmul %480, %488, %cst_285 {dimension_numbers = #tpu.dot_dimension_numbers<[1], [1], [0], [0], [0, 0, 1, 0], [], []>} : vector<8x64xf32>, vector<8x64xf32>, vector<8x8xf32> -> vector<8x8xf32>
    %c0_286 = arith.constant 0 : index
    %490 = memref.load %arg14[%c0_286] : memref<2xf32, #tpu.memory_space<smem>>
    %491 = vector.broadcast %490 : f32 to vector<8x8xf32>
    %492 = arith.mulf %489, %491 : vector<8x8xf32>
    %493 = vector.shape_cast %492 : vector<8x8xf32> to vector<8x1x8xf32>
    %494 = vector.shape_cast %492 : vector<8x8xf32> to vector<8x8x1xf32>
    %495 = vector.broadcast %493 : vector<8x1x8xf32> to vector<8x8x8xf32>
    %496 = vector.broadcast %494 : vector<8x8x1xf32> to vector<8x8x8xf32>
    %497 = arith.cmpf ogt, %495, %496 : vector<8x8x8xf32>
    %cst_287 = arith.constant 1.000000e+00 : f32
    %cst_288 = arith.constant 0.000000e+00 : f32
    %498 = vector.broadcast %cst_287 : f32 to vector<8x8x8xf32>
    %499 = vector.broadcast %cst_288 : f32 to vector<8x8x8xf32>
    %500 = arith.select %497, %498, %499 : vector<8x8x8xi1>, vector<8x8x8xf32>
    %cst_289 = arith.constant dense<0.000000e+00> : vector<8x8xf32>
    %501 = vector.multi_reduction <add>, %500, %cst_289 [2] : vector<8x8x8xf32> to vector<8x8xf32>
    %cst_290 = arith.constant dense<0xFF800000> : vector<8xf32>
    %502 = vector.multi_reduction <maximumf>, %492, %cst_290 [1] : vector<8x8xf32> to vector<8xf32>
    %503 = vector.shape_cast %502 : vector<8xf32> to vector<8x1xf32>
    %504 = vector.broadcast %503 : vector<8x1xf32> to vector<8x8xf32>
    %505 = arith.subf %492, %504 : vector<8x8xf32>
    %506 = math.exp %505 : vector<8x8xf32>
    %cst_291 = arith.constant 4.000000e+00 : f32
    %507 = vector.broadcast %cst_291 : f32 to vector<8x8xf32>
    %508 = arith.cmpf olt, %501, %507 : vector<8x8xf32>
    %cst_292 = arith.constant 0.000000e+00 : f32
    %509 = vector.broadcast %cst_292 : f32 to vector<8x8xf32>
    %510 = arith.select %508, %506, %509 : vector<8x8xi1>, vector<8x8xf32>
    %cst_293 = arith.constant 6.000000e+00 : f32
    %511 = vector.broadcast %cst_293 : f32 to vector<8x8xf32>
    %512 = arith.cmpf olt, %501, %511 : vector<8x8xf32>
    %cst_294 = arith.constant 0.000000e+00 : f32
    %513 = vector.broadcast %cst_294 : f32 to vector<8x8xf32>
    %514 = arith.select %512, %506, %513 : vector<8x8xi1>, vector<8x8xf32>
    %cst_295 = arith.constant dense<0.000000e+00> : vector<8xf32>
    %515 = vector.multi_reduction <add>, %510, %cst_295 [1] : vector<8x8xf32> to vector<8xf32>
    %516 = vector.shape_cast %515 : vector<8xf32> to vector<8x1xf32>
    %517 = tpu.reciprocal %516 {approx = true} : vector<8x1xf32> -> vector<8x1xf32>
    %518 = vector.broadcast %517 : vector<8x1xf32> to vector<8x8xf32>
    %519 = arith.mulf %510, %518 : vector<8x8xf32>
    %cst_296 = arith.constant dense<0.000000e+00> : vector<8xf32>
    %520 = vector.multi_reduction <add>, %514, %cst_296 [1] : vector<8x8xf32> to vector<8xf32>
    %521 = vector.shape_cast %520 : vector<8xf32> to vector<8x1xf32>
    %522 = tpu.reciprocal %521 {approx = true} : vector<8x1xf32> -> vector<8x1xf32>
    %523 = vector.broadcast %522 : vector<8x1xf32> to vector<8x8xf32>
    %524 = arith.mulf %514, %523 : vector<8x8xf32>
    %c0_297 = arith.constant 0 : index
    %525 = memref.load %arg15[%c0_297] : memref<2xf32, #tpu.memory_space<smem>>
    %526 = vector.broadcast %525 : f32 to vector<8x8xf32>
    %527 = arith.mulf %526, %519 : vector<8x8xf32>
    %c1_298 = arith.constant 1 : index
    %528 = memref.load %arg15[%c1_298] : memref<2xf32, #tpu.memory_space<smem>>
    %529 = vector.broadcast %528 : f32 to vector<8x8xf32>
    %530 = arith.mulf %529, %524 : vector<8x8xf32>
    %531 = arith.addf %527, %530 : vector<8x8xf32>
    %cst_299 = arith.constant dense<0.000000e+00> : vector<8x64xf32>
    %532 = tpu.matmul %531, %472, %cst_299 {dimension_numbers = #tpu.dot_dimension_numbers<[1], [0], [0], [1], [0, 0, 1, 1], [], []>} : vector<8x8xf32>, vector<8x64xf32>, vector<8x64xf32> -> vector<8x64xf32>
    %533 = tpu.transpose %532, [1, 0] : vector<8x64xf32> -> vector<64x8xf32>
    %c0_300 = arith.constant 0 : index
    %c0_301 = arith.constant 0 : index
    %534 = vector.load %arg13[%c0_300, %c0_301] : memref<16x16xf32, #tpu.memory_space<vmem>>, vector<8x16xf32>
    %cst_302 = arith.constant dense<0.000000e+00> : vector<64x16xf32>
    %535 = tpu.matmul %533, %534, %cst_302 {dimension_numbers = #tpu.dot_dimension_numbers<[1], [0], [0], [1], [0, 0, 1, 1], [], []>} : vector<64x8xf32>, vector<8x16xf32>, vector<64x16xf32> -> vector<64x16xf32>
    %536 = arith.addf %466, %535 : vector<64x16xf32>
    %537 = vector.extract_strided_slice %457 {offsets = [0, 8], sizes = [64, 8], strides = [1, 1]} : vector<64x16xf32> to vector<64x8xf32>
    %538 = tpu.transpose %537, [1, 0] : vector<64x8xf32> -> vector<8x64xf32>
    %539 = vector.extract_strided_slice %461 {offsets = [0, 8], sizes = [64, 8], strides = [1, 1]} : vector<64x16xf32> to vector<64x8xf32>
    %540 = tpu.transpose %539, [1, 0] : vector<64x8xf32> -> vector<8x64xf32>
    %541 = vector.extract_strided_slice %142 {offsets = [0, 8], sizes = [64, 8], strides = [1, 1]} : vector<64x16xf32> to vector<64x8xf32>
    %542 = tpu.transpose %541, [1, 0] : vector<64x8xf32> -> vector<8x64xf32>
    %543 = arith.mulf %538, %538 : vector<8x64xf32>
    %cst_303 = arith.constant dense<0.000000e+00> : vector<8xf32>
    %544 = vector.multi_reduction <add>, %543, %cst_303 [1] : vector<8x64xf32> to vector<8xf32>
    %545 = vector.shape_cast %544 : vector<8xf32> to vector<8x1xf32>
    %cst_304 = arith.constant 1.000000e-24 : f32
    %546 = vector.broadcast %cst_304 : f32 to vector<8x1xf32>
    %547 = arith.maximumf %545, %546 : vector<8x1xf32>
    %548 = math.rsqrt %547 : vector<8x1xf32>
    %549 = vector.broadcast %548 : vector<8x1xf32> to vector<8x64xf32>
    %550 = arith.mulf %538, %549 : vector<8x64xf32>
    %551 = arith.mulf %540, %540 : vector<8x64xf32>
    %cst_305 = arith.constant dense<0.000000e+00> : vector<8xf32>
    %552 = vector.multi_reduction <add>, %551, %cst_305 [1] : vector<8x64xf32> to vector<8xf32>
    %553 = vector.shape_cast %552 : vector<8xf32> to vector<8x1xf32>
    %cst_306 = arith.constant 1.000000e-24 : f32
    %554 = vector.broadcast %cst_306 : f32 to vector<8x1xf32>
    %555 = arith.maximumf %553, %554 : vector<8x1xf32>
    %556 = math.rsqrt %555 : vector<8x1xf32>
    %557 = vector.broadcast %556 : vector<8x1xf32> to vector<8x64xf32>
    %558 = arith.mulf %540, %557 : vector<8x64xf32>
    %cst_307 = arith.constant dense<0.000000e+00> : vector<8x8xf32>
    %559 = tpu.matmul %550, %558, %cst_307 {dimension_numbers = #tpu.dot_dimension_numbers<[1], [1], [0], [0], [0, 0, 1, 0], [], []>} : vector<8x64xf32>, vector<8x64xf32>, vector<8x8xf32> -> vector<8x8xf32>
    %c1_308 = arith.constant 1 : index
    %560 = memref.load %arg14[%c1_308] : memref<2xf32, #tpu.memory_space<smem>>
    %561 = vector.broadcast %560 : f32 to vector<8x8xf32>
    %562 = arith.mulf %559, %561 : vector<8x8xf32>
    %563 = vector.shape_cast %562 : vector<8x8xf32> to vector<8x1x8xf32>
    %564 = vector.shape_cast %562 : vector<8x8xf32> to vector<8x8x1xf32>
    %565 = vector.broadcast %563 : vector<8x1x8xf32> to vector<8x8x8xf32>
    %566 = vector.broadcast %564 : vector<8x8x1xf32> to vector<8x8x8xf32>
    %567 = arith.cmpf ogt, %565, %566 : vector<8x8x8xf32>
    %cst_309 = arith.constant 1.000000e+00 : f32
    %cst_310 = arith.constant 0.000000e+00 : f32
    %568 = vector.broadcast %cst_309 : f32 to vector<8x8x8xf32>
    %569 = vector.broadcast %cst_310 : f32 to vector<8x8x8xf32>
    %570 = arith.select %567, %568, %569 : vector<8x8x8xi1>, vector<8x8x8xf32>
    %cst_311 = arith.constant dense<0.000000e+00> : vector<8x8xf32>
    %571 = vector.multi_reduction <add>, %570, %cst_311 [2] : vector<8x8x8xf32> to vector<8x8xf32>
    %cst_312 = arith.constant dense<0xFF800000> : vector<8xf32>
    %572 = vector.multi_reduction <maximumf>, %562, %cst_312 [1] : vector<8x8xf32> to vector<8xf32>
    %573 = vector.shape_cast %572 : vector<8xf32> to vector<8x1xf32>
    %574 = vector.broadcast %573 : vector<8x1xf32> to vector<8x8xf32>
    %575 = arith.subf %562, %574 : vector<8x8xf32>
    %576 = math.exp %575 : vector<8x8xf32>
    %cst_313 = arith.constant 4.000000e+00 : f32
    %577 = vector.broadcast %cst_313 : f32 to vector<8x8xf32>
    %578 = arith.cmpf olt, %571, %577 : vector<8x8xf32>
    %cst_314 = arith.constant 0.000000e+00 : f32
    %579 = vector.broadcast %cst_314 : f32 to vector<8x8xf32>
    %580 = arith.select %578, %576, %579 : vector<8x8xi1>, vector<8x8xf32>
    %cst_315 = arith.constant 6.000000e+00 : f32
    %581 = vector.broadcast %cst_315 : f32 to vector<8x8xf32>
    %582 = arith.cmpf olt, %571, %581 : vector<8x8xf32>
    %cst_316 = arith.constant 0.000000e+00 : f32
    %583 = vector.broadcast %cst_316 : f32 to vector<8x8xf32>
    %584 = arith.select %582, %576, %583 : vector<8x8xi1>, vector<8x8xf32>
    %cst_317 = arith.constant dense<0.000000e+00> : vector<8xf32>
    %585 = vector.multi_reduction <add>, %580, %cst_317 [1] : vector<8x8xf32> to vector<8xf32>
    %586 = vector.shape_cast %585 : vector<8xf32> to vector<8x1xf32>
    %587 = tpu.reciprocal %586 {approx = true} : vector<8x1xf32> -> vector<8x1xf32>
    %588 = vector.broadcast %587 : vector<8x1xf32> to vector<8x8xf32>
    %589 = arith.mulf %580, %588 : vector<8x8xf32>
    %cst_318 = arith.constant dense<0.000000e+00> : vector<8xf32>
    %590 = vector.multi_reduction <add>, %584, %cst_318 [1] : vector<8x8xf32> to vector<8xf32>
    %591 = vector.shape_cast %590 : vector<8xf32> to vector<8x1xf32>
    %592 = tpu.reciprocal %591 {approx = true} : vector<8x1xf32> -> vector<8x1xf32>
    %593 = vector.broadcast %592 : vector<8x1xf32> to vector<8x8xf32>
    %594 = arith.mulf %584, %593 : vector<8x8xf32>
    %c0_319 = arith.constant 0 : index
    %595 = memref.load %arg15[%c0_319] : memref<2xf32, #tpu.memory_space<smem>>
    %596 = vector.broadcast %595 : f32 to vector<8x8xf32>
    %597 = arith.mulf %596, %589 : vector<8x8xf32>
    %c1_320 = arith.constant 1 : index
    %598 = memref.load %arg15[%c1_320] : memref<2xf32, #tpu.memory_space<smem>>
    %599 = vector.broadcast %598 : f32 to vector<8x8xf32>
    %600 = arith.mulf %599, %594 : vector<8x8xf32>
    %601 = arith.addf %597, %600 : vector<8x8xf32>
    %cst_321 = arith.constant dense<0.000000e+00> : vector<8x64xf32>
    %602 = tpu.matmul %601, %542, %cst_321 {dimension_numbers = #tpu.dot_dimension_numbers<[1], [0], [0], [1], [0, 0, 1, 1], [], []>} : vector<8x8xf32>, vector<8x64xf32>, vector<8x64xf32> -> vector<8x64xf32>
    %603 = tpu.transpose %602, [1, 0] : vector<8x64xf32> -> vector<64x8xf32>
    %c8_322 = arith.constant 8 : index
    %c0_323 = arith.constant 0 : index
    %604 = vector.load %arg13[%c8_322, %c0_323] : memref<16x16xf32, #tpu.memory_space<vmem>>, vector<8x16xf32>
    %cst_324 = arith.constant dense<0.000000e+00> : vector<64x16xf32>
    %605 = tpu.matmul %603, %604, %cst_324 {dimension_numbers = #tpu.dot_dimension_numbers<[1], [0], [0], [1], [0, 0, 1, 1], [], []>} : vector<64x8xf32>, vector<8x16xf32>, vector<64x16xf32> -> vector<64x16xf32>
    %606 = arith.addf %536, %605 : vector<64x16xf32>
    %c0_325 = arith.constant 0 : index
    %c0_326 = arith.constant 0 : index
    %c0_327 = arith.constant 0 : index
    %607 = vector.load %arg17[%c0_325, %c0_326, %c0_327] : memref<1x64x16xf32, #tpu.memory_space<vmem>>, vector<1x64x16xf32>
    %608 = vector.shape_cast %607 : vector<1x64x16xf32> to vector<64x16xf32>
    %609 = vector.shape_cast %606 : vector<64x16xf32> to vector<1x64x16xf32>
    tpu.vector_store %arg17[%c0_325, %c0_326, %c0_327], %609 {strides = array<i32>} : memref<1x64x16xf32, #tpu.memory_space<vmem>>, vector<1x64x16xf32>,
    return
  }
  func.func @transform_0(%arg0: i32) -> (i32, i32, i32) {
    %c0_i32 = arith.constant 0 : i32
    %c0_i32_0 = arith.constant 0 : i32
    %c0_i32_1 = arith.constant 0 : i32
    return %arg0, %c0_i32, %c0_i32_0 : i32, i32, i32
  }
  func.func @transform_1(%arg0: i32) -> (i32, i32) {
    %c0_i32 = arith.constant 0 : i32
    %c0_i32_0 = arith.constant 0 : i32
    %c0_i32_1 = arith.constant 0 : i32
    return %c0_i32, %c0_i32_0 : i32, i32
  }
  func.func @transform_2(%arg0: i32) -> (i32, i32) {
    %c0_i32 = arith.constant 0 : i32
    %c0_i32_0 = arith.constant 0 : i32
    %c0_i32_1 = arith.constant 0 : i32
    return %c0_i32, %c0_i32_0 : i32, i32
  }
  func.func @transform_3(%arg0: i32) -> (i32, i32, i32) {
    %c0_i32 = arith.constant 0 : i32
    %c0_i32_0 = arith.constant 0 : i32
    %c0_i32_1 = arith.constant 0 : i32
    %c0_i32_2 = arith.constant 0 : i32
    return %c0_i32, %c0_i32_0, %c0_i32_1 : i32, i32, i32
  }
  func.func @transform_4(%arg0: i32) -> (i32, i32) {
    %c0_i32 = arith.constant 0 : i32
    %c0_i32_0 = arith.constant 0 : i32
    %c0_i32_1 = arith.constant 0 : i32
    return %c0_i32, %c0_i32_0 : i32, i32
  }
  func.func @transform_5(%arg0: i32) -> (i32, i32) {
    %c0_i32 = arith.constant 0 : i32
    %c0_i32_0 = arith.constant 0 : i32
    %c0_i32_1 = arith.constant 0 : i32
    return %c0_i32, %c0_i32_0 : i32, i32
  }
  func.func @transform_6(%arg0: i32) -> (i32, i32) {
    %c0_i32 = arith.constant 0 : i32
    %c0_i32_0 = arith.constant 0 : i32
    %c0_i32_1 = arith.constant 0 : i32
    return %c0_i32, %c0_i32_0 : i32, i32
  }
  func.func @transform_7(%arg0: i32) -> (i32, i32) {
    %c0_i32 = arith.constant 0 : i32
    %c0_i32_0 = arith.constant 0 : i32
    %c0_i32_1 = arith.constant 0 : i32
    return %c0_i32, %c0_i32_0 : i32, i32
  }
  func.func @transform_8(%arg0: i32) -> (i32, i32) {
    %c0_i32 = arith.constant 0 : i32
    %c0_i32_0 = arith.constant 0 : i32
    %c0_i32_1 = arith.constant 0 : i32
    return %c0_i32, %c0_i32_0 : i32, i32
  }
  func.func @transform_9(%arg0: i32) -> (i32, i32) {
    %c0_i32 = arith.constant 0 : i32
    %c0_i32_0 = arith.constant 0 : i32
    %c0_i32_1 = arith.constant 0 : i32
    return %c0_i32, %c0_i32_0 : i32, i32
  }
  func.func @transform_10(%arg0: i32) -> (i32, i32) {
    %c0_i32 = arith.constant 0 : i32
    %c0_i32_0 = arith.constant 0 : i32
    %c0_i32_1 = arith.constant 0 : i32
    return %c0_i32, %c0_i32_0 : i32, i32
  }
  func.func @transform_11(%arg0: i32) -> (i32, i32) {
    %c0_i32 = arith.constant 0 : i32
    %c0_i32_0 = arith.constant 0 : i32
    %c0_i32_1 = arith.constant 0 : i32
    return %c0_i32, %c0_i32_0 : i32, i32
  }
  func.func @transform_12(%arg0: i32) -> (i32, i32) {
    %c0_i32 = arith.constant 0 : i32
    %c0_i32_0 = arith.constant 0 : i32
    %c0_i32_1 = arith.constant 0 : i32
    return %c0_i32, %c0_i32_0 : i32, i32
  }
  func.func @transform_13(%arg0: i32) -> i32 {
    %c0_i32 = arith.constant 0 : i32
    %c0_i32_0 = arith.constant 0 : i32
    return %c0_i32 : i32
  }
  func.func @transform_14(%arg0: i32) -> i32 {
    %c0_i32 = arith.constant 0 : i32
    %c0_i32_0 = arith.constant 0 : i32
    return %c0_i32 : i32
  }
  func.func @transform_15(%arg0: i32) -> (i32, i32, i32) {
    %c0_i32 = arith.constant 0 : i32
    %c0_i32_0 = arith.constant 0 : i32
    %c0_i32_1 = arith.constant 0 : i32
    return %arg0, %c0_i32, %c0_i32_0 : i32, i32, i32
  }
  func.func @transform_16(%arg0: i32) -> (i32, i32, i32) {
    %c0_i32 = arith.constant 0 : i32
    %c0_i32_0 = arith.constant 0 : i32
    %c0_i32_1 = arith.constant 0 : i32
    return %arg0, %c0_i32, %c0_i32_0 : i32, i32, i32
  }
}

</mosaic_0001>

<bundles_post_ra>
// kernel: decom_encoder_forward.1
= control target key start
LH: loop header
LB: loop body
LE: loop exit
PB: predicated region body
PF: predicated region fallthrough
CT: control target
= control target key end

     0   :  { %s17081_s0 = inlined_call_operand.vmem [shape: f32[2,64,16], index: 0, kind: input, shape index: {}]   ;;  %s17082_s1 = inlined_call_operand.vmem [shape: f32[16,16], index: 1, kind: input, shape index: {}]   ;;  %s17083_s2 = inlined_call_operand.vmem [shape: f32[1,16], index: 2, kind: input, shape index: {}]   ;;  %s17084_s3 = inlined_call_operand.vmem [shape: f32[9,16,16], index: 3, kind: input, shape index: {}]   ;;  %s17085_s4 = inlined_call_operand.vmem [shape: f32[1,16], index: 4, kind: input, shape index: {}]   ;;  %s17086_s5 = inlined_call_operand.vmem [shape: f32[16,384], index: 5, kind: input, shape index: {}]   ;;  %s17087_s6 = inlined_call_operand.vmem [shape: f32[9,384], index: 6, kind: input, shape index: {}]   ;;  %s17088_s7 = inlined_call_operand.vmem [shape: f32[1,384], index: 7, kind: input, shape index: {}]   ;;  %s17089_s8 = inlined_call_operand.vmem [shape: f32[384,16], index: 8, kind: input, shape index: {}]   ;;  %s17090_s9 = inlined_call_operand.vmem [shape: f32[9,16], index: 9, kind: input, shape index: {}]   ;;  %s17091_s10 = inlined_call_operand.vmem [shape: f32[9,16], index: 10, kind: input, shape index: {}]   ;;  %s17092_s11 = inlined_call_operand.vmem [shape: f32[1,16], index: 11, kind: input, shape index: {}]   ;;  %s17093_s12 = inlined_call_operand.vmem [shape: f32[16,16], index: 12, kind: input, shape index: {}]   ;;  %s17094_s13 = inlined_call_operand.vmem [shape: f32[2], index: 13, kind: input, shape index: {}]   ;;  %s17095_s14 = inlined_call_operand.hbm [shape: f32[2], index: 14, kind: input, shape index: {}]   ;;  %s17096_s15 = inlined_call_operand.hbm [shape: f32[2,64,16], index: 15, kind: output, shape index: {0}]   ;;  %s17097_s16 = inlined_call_operand.hbm [shape: f32[2,64,16], index: 16, kind: output, shape index: {1}]  }
   0x1   :  { %17516 = sst [smem:[#allocation107_spill]] %s17081_s0 }
   0x2   :  { %17517 = sst [smem:[#allocation108_spill]] %s17082_s1 }
   0x3   :  { %17518 = sst [smem:[#allocation109_spill]] %s17083_s2 }
   0x4   :  { %17519 = sst [smem:[#allocation110_spill]] %s17084_s3 }
   0x5   :  { %17520 = sst [smem:[#allocation111_spill]] %s17094_s13 }
   0x6   :  { %17521 = sst [smem:[#allocation112_spill]] %s17095_s14 }
   0x7   :  { %22 = vsyncpa [#allocation7], 0 }
   0x8   :  { %23 = vsyncpa [#allocation6], 0 }
   0x9   :  { %24 = vsyncpa [#allocation5], 0 }
   0xa   :  { %26 = vsyncpa [#allocation5 + $0x1], 0 }
   0xb   :  { %27 = vsyncpa [#allocation11], 0 }
   0xc   :  { %29 = vsyncpa [#allocation11 + $0x1], 0  ;;  %s10887_s21 = smov 0   ;;  %s10889_s22 = smov 0  }
   0xd   :  { %s10891_s23 = smov 0   ;;  %s10893_s24 = smov 0  }
   0xe LB: > { %s10908_s25 = sadd.s32 4294967295, %s10789_s24   ;;  %s9562_s26 = sadd.s32 4294967294, %s10789_s24   ;;  %s10789_s24 = sphi %s10893_s24, %s18376_s24   ;;  %s10785_s23 = sphi %s10891_s23, %s18375_s23   ;;  %s10781_s22 = sphi %s10889_s22, %s18374_s22   ;;  %s10777_s21 = sphi %s10887_s21, %s18373_s21  }
   0xf   : > { %s10912_s27 = sadd.s32 1, %s10789_s24   ;;  %s362_s28 = sadd.s32 1, %s10785_s23 }
  0x10   : > { %s359_s29 = ssub.s32 %s10789_s24, %s10912_s27  ;;  %p372_p0 = scmp.ne.s32.totalorder %s10785_s23, %s10781_s22 }
  0x11   : > { %p360_p1 = scmp.eq.s32.totalorder %s359_s29, 0  ;;  %p373_p2 = scmp.eq.s32.totalorder %s10908_s25, 1 }
  0x12   : > { %p378_p3 = scmp.ne.s32.totalorder %s10781_s22, %s10777_s21  ;;  %p379_p4 = scmp.eq.s32.totalorder %s9562_s26, 1 }
  0x13   : > { %s10923_s30 = scalar_select %p360_p1, %s10785_s23, %s362_s28  }
  0x14   : > { %p10925_p5 = por %p373_p2, %p372_p0  ;;  %p10929_p6 = por %p379_p4, %p378_p3 }
  0x15   : > { %17522 = sst [smem:[#allocation16_spill]] %s10923_s30  ;;  %p9563_p7 = scmp.ge.s32.totalorder %s10789_s24, 1 }
  0x16   : > { %p412_p8 = scmp.lt.s32.totalorder %s10789_s24, 3  ;;  %p10526_p9 = scmp.eq.s32.totalorder %s10908_s25, 0 }
  0x17   : > { %s17526_s13 = sld [smem:[#allocation111_spill]] }
  0x18   : > { %p10936_p10 = pnand %p9563_p7, %p412_p8 }
  0x1a   : > { %p10512_p11 = pneg %p10936_p10 }
  0x1c   : > { %p10947_p12 = pnand %p10526_p9, %p10512_p11 }
  0x1d   : > { %s461_s26 = sshll.u32 %s17526_s13, 4  ;;  %s462_s26 = int_to_ptr.vmem [resolvable:$true] %s461_s26 }
  0x1e   : > { %s10665_s29 = scalar_lea.vmem %s462_s26, 16  ;;  %p10667_p0 = pneg %p10947_p12 }
  0x1f   : > { %p10666_p13 = scmp.ne.s32.totalorder %s462_s26, %s10665_s29  ;;  %p10673_p3 = scmp.lt.s32.totalorder %s462_s26, %s462_s26 }
  0x20   : > { %p10674_p4 = scmp.lt.s32.totalorder %s10665_s29, %s10665_s29 }
  0x21   : > { %p10668_p1 = pnand %p10667_p0, %p10666_p13 }
  0x22   : > { %p10675_p7 = por %p10674_p4, %p10673_p3 }
  0x23   : > { %p10669_p2 = pneg %p10668_p1 }
  0x25   : > { %p10676_p8 = pnand %p10675_p7, %p10669_p2 }
  0x27   : > { %10679 = shalt.err (!%p10676_p8)
}
  0x28   : > { %s10791_s19 = smov [#allocation4]   ;;  %s10792_s20 = smov [#allocation8]  }
  0x29   : > { %10515 = dma.vmem_to_smem (!%p10947_p12), %s462_s26, 16, %s10791_s19, [#allocation7]  }
  0x2a   : > { %s17528_s14 = sld [smem:[#allocation112_spill]] }
  0x2c   : > { %491 = sbr.rel (%p10936_p10) target bundleno = 4199 (0x1067), region = 80 }
  0x30   : > { %10518 = dma.hbm_to_smem (!%p10947_p12), %s17528_s14, 16, %s10792_s20, [#allocation6]  }
  0x31   : > { %10760 = dma.done.wait (%p10526_p9), [#allocation7], 16  }
  0x32   : > { %10762 = vsyncadd (%p10526_p9), [#allocation7], 4294967280 }
  0x33   : > { %10764 = dma.done.wait (%p10526_p9), [#allocation6], 16  }
  0x34   : > { %10766 = vsyncadd (%p10526_p9), [#allocation6], 4294967280 }
  0x35   : > { %501 = sfence }
  0x36   : > { %s17529_s1 = sld [smem:[#allocation108_spill]]  ;;  %p551_p10 = scmp.lt.s32.totalorder %s10908_s25, 1  ;;  %vm17164_vm0 = vcmask 130048   ;;  %v10793_v3 = vmov 0.0   ;;  %vm820_vm1 = vcmask 125952   ;;  %v17099_v7 = vlaneseq }
  0x37   : > { %s17530_s3 = sld [smem:[#allocation110_spill]]  ;;  %810 = vst.msk [vmem:[#allocation3 + $0x10] sm:$0xff] %vm17164_vm0, %v10793_v3  ;;  %811 = vst.msk [vmem:[#allocation3 + $0x18] sm:$0xff] %vm17164_vm0, %v10793_v3  ;;  %s17514_s13 = sshll.u32 %s10908_s25, 10 }
  0x38   : > { %808 = vst.msk [vmem:[#allocation3] sm:$0xff] %vm17164_vm0, %v10793_v3  ;;  %809 = vst.msk [vmem:[#allocation3 + $0x8] sm:$0xff] %vm17164_vm0, %v10793_v3  ;;  %s552_s26 = scalar_select %p551_p10, %s10908_s25, 1  ;;  %v11043_v12 = vshrl.u32 %v17099_v7, 7 }
  0x39   : > { %812 = vst.msk [vmem:[#allocation3 + $0x20] sm:$0xff] %vm17164_vm0, %v10793_v3  ;;  %813 = vst.msk [vmem:[#allocation3 + $0x28] sm:$0xff] %vm17164_vm0, %v10793_v3  ;;  %s17555_s2 = sld [smem:[#allocation109_spill]] }
  0x3a   : > { %814 = vst.msk [vmem:[#allocation3 + $0x30] sm:$0xff] %vm17164_vm0, %v10793_v3  ;;  %815 = vst.msk [vmem:[#allocation3 + $0x38] sm:$0xff] %vm17164_vm0, %v10793_v3  ;;  %s9795_s29 = sshll.u32 %s552_s26, 6  ;;  %v558_v22 = vadd.s32 8, %v11043_v12  ;;  %v11086_v24 = vand.u32 7, %v11043_v12  ;;  %v559_v26 = vadd.s32 16, %v11043_v12 }
  0x3b   : > { %816 = vst.msk [vmem:[#allocation3 + $0x40] sm:$0xff] %vm17164_vm0, %v10793_v3  ;;  %817 = vst.msk [vmem:[#allocation3 + $0x48] sm:$0xff] %vm17164_vm0, %v10793_v3  ;;  %v560_v28 = vadd.s32 24, %v11043_v12  ;;  %v561_v34 = vadd.s32 32, %v11043_v12  ;;  %v562_v44 = vadd.s32 40, %v11043_v12  ;;  %v563_v49 = vadd.s32 48, %v11043_v12 }
  0x3c   : > { %v670_v0 = vld [vmem:[%s17529_s1 + $0x8] sm:$0xff]  ;;  %v669_v1 = vld [vmem:[%s17529_s1] sm:$0xff]  ;;  %818 = vst.msk [vmem:[#allocation3 + $0x50] sm:$0xff] %vm17164_vm0, %v10793_v3  ;;  %819 = vst.msk [vmem:[#allocation3 + $0x58] sm:$0xff] %vm17164_vm0, %v10793_v3  ;;  %s17531_s1 = sld [smem:[#allocation107_spill]]  ;;  %v11112_v32 = vand.u32 7, %v558_v22 }
  0x3d   : > { %v9584_v2 = vld [vmem:[%s17530_s3 + $0x18] sm:$0xff]  ;;  %10128 = vmatprep.subr.mxu0 %v670_v0  ;;  %2737 = vst [vmem:[#allocation2 + $0xb0] sm:$0xff] %v10793_v3  ;;  %2738 = vst [vmem:[#allocation2] sm:$0xff] %v10793_v3  ;;  %v9583_v4 = vld [vmem:[%s17530_s3 + $0x10] sm:$0xff]  ;;  %vm838_vm2 = vcmp.ge.s32.totalorder %v11086_v24, 2  ;;  %v11118_v33 = vand.u32 7, %v559_v26 }
  0x3e   : > { %10144 = vmatprep.subr.mxu1 %v9584_v2  ;;  %2739 = vst [vmem:[#allocation2 + $0xd8] sm:$0xff] %v10793_v3  ;;  %2740 = vst [vmem:[#allocation2 + $0x18] sm:$0xff] %v10793_v3  ;;  %10129 = vmatpush3.msra.mxu0 %v670_v0  ;;  %v871_v5 = vld [vmem:[%s17530_s3 + $0x8] sm:$0xff]  ;;  %v870_v11 = vld [vmem:[%s17530_s3] sm:$0xff]  ;;  %v11136_v39 = vand.u32 7, %v560_v28  ;;  %vm839_vm3 = vcmp.ge.s32.totalorder %v11112_v32, 2 }
  0x3f   : > { %2741 = vst [vmem:[#allocation2 + $0x50] sm:$0xff] %v10793_v3  ;;  %2742 = vst [vmem:[#allocation2 + $0x68] sm:$0xff] %v10793_v3  ;;  %10145 = vmatpush3.msra.mxu1 %v9584_v2  ;;  %v9602_v6 = vld [vmem:[%s17530_s3 + $0x28] sm:$0xff]  ;;  %10130 = vmatprep.subr.mxu0 %v669_v1  ;;  %v873_v17 = vld [vmem:[#allocation3 + $0xa] sm:$0xff]  ;;  %vm840_vm4 = vcmp.ge.s32.totalorder %v11118_v33, 2  ;;  %v11155_v46 = vand.u32 7, %v561_v34 }
  0x40   : > { %2764 = vst [vmem:[#allocation2 + $0xe0] sm:$0xff] %v10793_v3  ;;  %2765 = vst [vmem:[#allocation2 + $0x70] sm:$0xff] %v10793_v3  ;;  %10146 = vmatprep.subr.mxu1 %v9583_v4  ;;  %10131 = vmatpush3.msra.mxu0 %v669_v1  ;;  %v872_v16 = vld [vmem:[#allocation3 + $0x2] sm:$0xff]  ;;  %v9601_v19 = vld [vmem:[%s17530_s3 + $0x20] sm:$0xff]  ;;  %vm1149_vm5 = vcmp.lt.s32.totalorder %v11086_v24, 6  ;;  %vm841_vm6 = vcmp.ge.s32.totalorder %v11136_v39, 2 }
  0x41   : > { %2766 = vst [vmem:[#allocation2 + $0xa8] sm:$0xff] %v10793_v3  ;;  %2767 = vst [vmem:[#allocation2 + $0x58] sm:$0x3] %v10793_v3  ;;  %10147 = vmatpush3.msra.mxu1 %v9583_v4  ;;  %10160 = vmatprep.subr.mxu0 %v871_v5  ;;  %v830_v21 = vld [vmem:[#allocation3] sm:$0xff]  ;;  %v11091_v25 = vld [vmem:[%s17530_s3 + $0x38] sm:$0xff]  ;;  %vm1150_vm7 = vcmp.lt.s32.totalorder %v11112_v32, 6 }
  0x42   : > { %2768 = vst [vmem:[#allocation2 + $0xf0] sm:$0x3] %v10793_v3  ;;  %2769 = vst [vmem:[#allocation2 + $0xa0] sm:$0x3] %v10793_v3  ;;  %s555_s14 = scalar_lea.vmem %s17531_s1, %s9795_s29  ;;  %10176 = vmatprep.subr.mxu1 %v9602_v6  ;;  %10148 = vmatprep.mubr.msk.f32.mxu1 %vm17164_vm0, %v872_v16  ;;  %v11083_v23 = vld [vmem:[#allocation3 + $0x4] sm:$0xff]  ;;  %v862_v42 = vsel %vm838_vm2, %v830_v21, 0.0 }
  0x43   : > { %821 = vst.msk [vmem:[#allocation3 + $0x60] sm:$0xf] %vm820_vm1, %v10793_v3  ;;  %v11033_v8 = vld [vmem:[%s555_s14] sm:$0xff]  ;;  %v11035_v9 = vld [vmem:[%s555_s14 + $0x8] sm:$0xff]  ;;  %v11037_v10 = vld [vmem:[%s555_s14 + $0x10] sm:$0xff]  ;;  %10149 = vmatmul.mubr.msk.f32.vlgmr.msra.gmra.mxu1 %vm17164_vm0, %v873_v17  ;;  %v11199_v59 = vand.u32 7, %v562_v44 }
  0x44   : > { %17532 = vst [vmem:[#allocation17_spill] sm:$0xff] %v11033_v8  ;;  %17533 = vst [vmem:[#allocation18_spill] sm:$0xff] %v11035_v9  ;;  %10132 = vmatprep.mubr.msk.f32.mxu0 %vm17164_vm0, %v11033_v8  ;;  %v11053_v13 = vld [vmem:[%s555_s14 + $0x18] sm:$0xff]  ;;  %v11055_v14 = vld [vmem:[%s555_s14 + $0x20] sm:$0xff]  ;;  %10177 = vmatpush3.msra.mxu1 %v9602_v6  ;;  %v564_v61 = vadd.s32 56, %v11043_v12  ;;  %v1173_v62 = vsel %vm1149_vm5, %v11083_v23, 0.0 }
  0x45   : > { %17534 = vst [vmem:[#allocation19_spill] sm:$0xff] %v11037_v10  ;;  %17535 = vst [vmem:[#allocation20_spill] sm:$0xff] %v11043_v12  ;;  %v11057_v15 = vld [vmem:[%s555_s14 + $0x28] sm:$0xff]  ;;  %10133 = vmatmul.mubr.msk.f32.vlgmr.msra.gmra.mxu0 %vm17164_vm0, %v11035_v9  ;;  %v11067_v18 = vld [vmem:[%s555_s14 + $0x30] sm:$0xff]  ;;  %10178 = vmatprep.subr.mxu1 %v9601_v19  ;;  %vm842_vm8 = vcmp.ge.s32.totalorder %v11155_v46, 2  ;;  %v11211_v63 = vand.u32 7, %v563_v49 }
  0x46   : > { %822 = vst.msk [vmem:[#allocation3 + $0x12] sm:$0xff] %vm17164_vm0, %v11033_v8  ;;  %823 = vst.msk [vmem:[#allocation3 + $0x1a] sm:$0xff] %vm17164_vm0, %v11035_v9  ;;  %10161 = vmatpush3.msra.mxu0 %v871_v5  ;;  %v11075_v20 = vld [vmem:[%s555_s14 + $0x38] sm:$0xff]  ;;  %10135 = vmatprep.mubr.msk.f32.mxu0 %vm17164_vm0, %v11037_v10  ;;  %v11101_v27 = vld [vmem:[%s17530_s3 + $0x48] sm:$0xff]  ;;  %vm1151_vm9 = vcmp.lt.s32.totalorder %v11118_v33, 6  ;;  %vm843_vm10 = vcmp.ge.s32.totalorder %v11199_v59, 2 }
  0x47   : > { %824 = vst.msk [vmem:[#allocation3 + $0x22] sm:$0xff] %vm17164_vm0, %v11037_v10  ;;  %17536 = vst [vmem:[#allocation21_spill] sm:$0xff] %v11053_v13  ;;  %10162 = vmatprep.subr.mxu0 %v870_v11  ;;  %10179 = vmatpush3.msra.mxu1 %v9601_v19  ;;  %v831_v35 = vld [vmem:[#allocation3 + $0x8] sm:$0xff]  ;;  %v11219_v4 = vld [vmem:[#allocation3 + $0x58] sm:$0xff]  ;;  %vm1152_vm11 = vcmp.lt.s32.totalorder %v11136_v39, 6  ;;  %v11259_v28 = vand.u32 7, %v564_v61 }
  0x48   : > { %17537 = vst [vmem:[#allocation22_spill] sm:$0xff] %v11055_v14  ;;  %17538 = vst [vmem:[#allocation23_spill] sm:$0xff] %v11057_v15  ;;  %10163 = vmatpush3.msra.mxu0 %v870_v11  ;;  %10208 = vmatprep.subr.mxu1 %v11101_v27  ;;  %v863_v55 = vsel %vm839_vm3, %v831_v35, 0.0  ;;  %v9611_v60 = vld [vmem:[%s17530_s3 + $0x30] sm:$0xff]  ;;  %v11221_v5 = vld [vmem:[#allocation3 + $0x52] sm:$0xff]  ;;  %vm844_vm12 = vcmp.ge.s32.totalorder %v11211_v63, 2 }
  0x49   : > { %825 = vst.msk [vmem:[#allocation3 + $0x2a] sm:$0xff] %vm17164_vm0, %v11053_v13  ;;  %826 = vst.msk [vmem:[#allocation3 + $0x32] sm:$0xff] %vm17164_vm0, %v11055_v14  ;;  %10136 = vmatmul.mubr.msk.f32.gmra.mxu0 %vm17164_vm0, %v11053_v13  ;;  %10192 = vmatprep.subr.mxu0 %v11091_v25  ;;  %v11249_v23 = vld [vmem:[#allocation3 + $0x54] sm:$0xff]  ;;  %vm17098_vm13 = vcmp.lt.s32.totalorder %v11155_v46, 6  ;;  %vm845_vm14 = vcmp.ge.s32.totalorder %v11259_v28, 2  ;;  %vm1154_vm15 = vcmp.lt.s32.totalorder %v11199_v59, 6 }
  0x4a   : > { %827 = vst.msk [vmem:[#allocation3 + $0x3a] sm:$0xff] %vm17164_vm0, %v11057_v15  ;;  %17539 = vst [vmem:[#allocation24_spill] sm:$0xff] %v11067_v18  ;;  %10138 = vmatprep.mubr.msk.f32.mxu0 %vm17164_vm0, %v11055_v14  ;;  %v11223_v6 = vld [vmem:[#allocation3 + $0x5a] sm:$0xff]  ;;  %v11578_v8 = vld [vmem:[%s17555_s2] ss:$0 sm:$0xff]  ;;  %s16352_s14 = sand.u32 1, %s10781_s22  }
  0x4b   : > { %828 = vst.msk [vmem:[#allocation3 + $0x42] sm:$0xff] %vm17164_vm0, %v11067_v18  ;;  %17540 = vst [vmem:[#allocation25_spill] sm:$0xff] %v11075_v20  ;;  %v11251_v26 = vld [vmem:[#allocation3 + $0x5c] sm:$0xff]  ;;  %s17513_s30 = sshll.u32 %s16352_s14, 6  ;;  %s7234_s29 = sld [smem:[#allocation4]] }
  0x4c   : > { %829 = vst.msk [vmem:[#allocation3 + $0x4a] sm:$0xff] %vm17164_vm0, %v11075_v20  ;;  %17541 = vst [vmem:[#allocation26_spill] sm:$0xff] %v11086_v24  ;;  %v9621_v35 = vld [vmem:[%s17530_s3 + $0x40] sm:$0xff]  ;;  %s16358_s18 = scalar_lea.vmem [#allocation9], %s17513_s30  ;;  %s9741_s19 = sld [smem:[#allocation8 + $0x1]] }
  0x4d   : > { %6585 = vst.msk [vmem:[#allocation3] sm:$0xff] %vm17164_vm0, %v10793_v3  ;;  %v11106_v29 = vld [vmem:[#allocation3 + $0x12] sm:$0xff]  ;;  %v11108_v30 = vld [vmem:[#allocation3 + $0x1a] sm:$0xff]  ;;  %17542 = vst [vmem:[#allocation27_spill] sm:$0xff] %v11112_v32  ;;  %10139 = vmatmul.mubr.msk.f32.gmra.mxu0 %vm17164_vm0, %v11057_v15  ;;  %s7786_s20 = sld [smem:[#allocation8]]  ;;  %s9428_s1 = sshll.u32 %s16358_s18, 4  ;;  %s16968_s1 = int_to_ptr.vmem [resolvable:$true] %s9428_s1 }
  0x4e   : > { %v11110_v31 = vld [vmem:[#allocation3 + $0x22] sm:$0xff]  ;;  %10151 = vmatprep.mubr.msk.f32.mxu1 %vm17164_vm0, %v11106_v29  ;;  %17543 = vst [vmem:[#allocation28_spill] sm:$0xff] %v11118_v33  ;;  %v11126_v36 = vld [vmem:[#allocation3 + $0xc] sm:$0xff]  ;;  %10141 = vmatprep.mubr.msk.f32.mxu0 %vm17164_vm0, %v11067_v18  ;;  %17544 = vst [vmem:[#allocation29_spill] sm:$0xff] %v11136_v39  ;;  %s9769_s28 = sld [smem:[#allocation4 + $0x1]]  ;;  %s10798_s30 = smov [#allocation9]  }
  0x4f   : > { %10152 = vmatmul.mubr.msk.f32.gmra.mxu1 %vm17164_vm0, %v11108_v30  ;;  %v11134_v38 = vld [vmem:[#allocation3 + $0x10] sm:$0xff]  ;;  %6586 = vst.msk [vmem:[#allocation3 + $0x8] sm:$0xff] %vm17164_vm0, %v10793_v3  ;;  %v11147_v43 = vld [vmem:[#allocation3 + $0x18] sm:$0xff]  ;;  %17545 = vst [vmem:[#allocation30_spill] sm:$0xff] %v11155_v46  ;;  %v1174_v21 = vsel %vm1150_vm7, %v11126_v36, 0.0  ;;  %s10695_s2 = sshll.u32 %s10798_s30, 4  ;;  %s10696_s2 = int_to_ptr.vmem [resolvable:$false] %s10695_s2 }
  0x50   : > { %10154 = vmatprep.mubr.msk.f32.mxu1 %vm17164_vm0, %v11110_v31  ;;  %v11132_v37 = vld [vmem:[#allocation3 + $0x2a] sm:$0xff]  ;;  %v11140_v40 = vld [vmem:[#allocation3 + $0x14] sm:$0xff]  ;;  %v11150_v45 = vld [vmem:[#allocation3 + $0x1c] sm:$0xff]  ;;  %v864_v58 = vsel %vm840_vm4, %v11134_v38, 0.0  ;;  %17546 = vst [vmem:[#allocation31_spill] sm:$0xff] %v11199_v59  ;;  %v865_v19 = vsel %vm841_vm6, %v11147_v43, 0.0  ;;  %p10698_p13 = scmp.lt.s32.totalorder %s16968_s1, %s10696_s2 }
  0x51   : > { %v11142_v41 = vld [vmem:[#allocation3 + $0x32] sm:$0xff]  ;;  %6587 = vst.msk [vmem:[#allocation3 + $0x10] sm:$0xff] %vm17164_vm0, %v10793_v3  ;;  %v11157_v47 = vld [vmem:[#allocation3 + $0x20] sm:$0xff]  ;;  %v11159_v48 = vld [vmem:[#allocation3 + $0x28] sm:$0xff]  ;;  %10142 = vmatmul.mubr.msk.f32.gmra.mxu0 %vm17164_vm0, %v11075_v20  ;;  %v1175_v34 = vsel %vm1151_vm9, %v11140_v40, 0.0  ;;  %v1176_v44 = vsel %vm1152_vm11, %v11150_v45, 0.0 }
  0x52   : > { %v11162_v50 = vld [vmem:[#allocation3 + $0x24] sm:$0xff]  ;;  %6588 = vst.msk [vmem:[#allocation3 + $0x18] sm:$0xff] %vm17164_vm0, %v10793_v3  ;;  %v11171_v51 = vld [vmem:[#allocation3 + $0x30] sm:$0xff]  ;;  %10164 = vmatprep.mubr.msk.f32.mxu0 %vm17164_vm0, %v862_v42  ;;  %v11182_v54 = vld [vmem:[#allocation3 + $0x3a] sm:$0xff]  ;;  %v867_v42 = vsel %vm843_vm10, %v11159_v48, 0.0 }
  0x53   : > { %10155 = vmatmul.mubr.msk.f32.gmra.mxu1 %vm17164_vm0, %v11132_v37  ;;  %v11173_v52 = vld [vmem:[#allocation3 + $0x2c] sm:$0xff]  ;;  %v11175_v53 = vld [vmem:[#allocation3 + $0x34] sm:$0xff]  ;;  %6589 = vst.msk [vmem:[#allocation3 + $0x20] sm:$0xff] %vm17164_vm0, %v10793_v3  ;;  %v11189_v57 = vld [vmem:[#allocation3 + $0x3c] sm:$0xff]  ;;  %v868_v49 = vsel %vm844_vm12, %v11171_v51, 0.0 }
  0x54   : > { %10157 = vmatprep.mubr.msk.f32.mxu1 %vm17164_vm0, %v11142_v41  ;;  %v11187_v56 = vld [vmem:[#allocation3 + $0x38] sm:$0xff]  ;;  %6590 = vst.msk [vmem:[#allocation3 + $0x28] sm:$0xff] %vm17164_vm0, %v10793_v3  ;;  %6591 = vst.msk [vmem:[#allocation3 + $0x30] sm:$0xff] %vm17164_vm0, %v10793_v3  ;;  %v11213_v0 = vld [vmem:[#allocation3 + $0x40] sm:$0xff] }
  0x55   : > { %6592 = vst.msk [vmem:[#allocation3 + $0x38] sm:$0xff] %vm17164_vm0, %v10793_v3  ;;  %17547 = vst [vmem:[#allocation32_spill] sm:$0xff] %v11211_v63  ;;  %v11215_v1 = vld [vmem:[#allocation3 + $0x42] sm:$0xff]  ;;  %10165 = vmatmul.mubr.msk.f32.vlgmr.msra.gmra.mxu0 %vm17164_vm0, %v863_v55  ;;  %v11231_v16 = vld [vmem:[#allocation3 + $0x4a] sm:$0xff] }
  0x56   : > { %v11217_v2 = vld [vmem:[#allocation3 + $0x44] sm:$0xff]  ;;  %v11233_v17 = vld [vmem:[#allocation3 + $0x4c] sm:$0xff]  ;;  %10193 = vmatpush3.msra.mxu0 %v11091_v25  ;;  %10167 = vmatprep.mubr.msk.f32.mxu0 %vm17164_vm0, %v864_v58  ;;  %v866_v25 = vsel %vm842_vm8, %v11157_v47, 0.0  ;;  %17548 = vst [vmem:[#allocation33_spill] sm:$0xff] %v11259_v28  ;;  %6596 = vst.msk [vmem:[#allocation3 + $0x58] sm:$0xff] %vm17164_vm0, %v10793_v3  ;;  %v869_v58 = vsel %vm845_vm14, %v11187_v56, 0.0 }
  0x57   : > { %10158 = vmatmul.mubr.msk.f32.gmra.mxu1 %vm17164_vm0, %v11182_v54  ;;  %v11229_v11 = vld [vmem:[#allocation3 + $0x48] sm:$0xff]  ;;  %6593 = vst.msk [vmem:[#allocation3 + $0x40] sm:$0xff] %vm17164_vm0, %v10793_v3  ;;  %v11245_v22 = vld [vmem:[#allocation3 + $0x50] sm:$0xff]  ;;  %10194 = vmatprep.subr.mxu0 %v9611_v60  ;;  %v9642_v55 = vld [vmem:[%s17530_s3 + $0x68] sm:$0xff] }
  0x58   : > { %6594 = vst.msk [vmem:[#allocation3 + $0x48] sm:$0xff] %vm17164_vm0, %v10793_v3  ;;  %10180 = vmatprep.mubr.msk.f32.mxu1 %vm17164_vm0, %v1173_v62  ;;  %6595 = vst.msk [vmem:[#allocation3 + $0x50] sm:$0xff] %vm17164_vm0, %v10793_v3  ;;  %10195 = vmatpush3.msra.mxu0 %v9611_v60  ;;  %v9632_v36 = vld [vmem:[%s17530_s3 + $0x58] sm:$0xff]  ;;  %v1178_v60 = vsel %vm1154_vm15, %v11173_v52, 0.0  ;;  %v1329_v62 = vsel %vm838_vm2, %v11134_v38, 0.0  ;;  %v1331_v38 = vsel %vm840_vm4, %v11157_v47, 0.0 }
  0x59   : > { %6597 = vst.msk [vmem:[#allocation3 + $0x60] sm:$0xf] %vm820_vm1, %v10793_v3  ;;  %10168 = vmatmul.mubr.msk.f32.gmra.mxu0 %vm17164_vm0, %v865_v19  ;;  %vm1155_vm1 = vcmp.lt.s32.totalorder %v11211_v63, 6  ;;  %10224 = vmatprep.subr.mxu0 %v9632_v36 }
  0x5a   : > { %10170 = vmatprep.mubr.msk.f32.mxu0 %vm17164_vm0, %v866_v25  ;;  %v1179_v61 = vsel %vm1155_vm1, %v11175_v53, 0.0  ;;  %v9631_v25 = vld [vmem:[%s17530_s3 + $0x50] sm:$0xff] }
  0x5b   : > { %10181 = vmatmul.mubr.msk.f32.vlgmr.msra.gmra.mxu1 %vm17164_vm0, %v1174_v21  ;;  %v1330_v21 = vsel %vm839_vm3, %v11147_v43, 0.0  ;;  %v1333_v43 = vsel %vm842_vm8, %v11171_v51, 0.0 }
  0x5c   : > { %10209 = vmatpush3.msra.mxu1 %v11101_v27  ;;  %10183 = vmatprep.mubr.msk.f32.mxu1 %vm17164_vm0, %v1175_v34  ;;  %v1177_v27 = vsel %vm17098_vm13, %v11162_v50, 0.0  ;;  %vm1156_vm13 = vcmp.lt.s32.totalorder %v11259_v28, 6  ;;  %v1332_v34 = vsel %vm841_vm6, %v11159_v48, 0.0 }
  0x5d   : > { %10210 = vmatprep.subr.mxu1 %v9621_v35  ;;  %10171 = vmatmul.mubr.msk.f32.gmra.mxu0 %vm17164_vm0, %v867_v42  ;;  %v1180_v19 = vsel %vm1156_vm13, %v11189_v57, 0.0  ;;  %v1335_v42 = vsel %vm844_vm12, %v11213_v0, 0.0 }
  0x5e   : > { %10211 = vmatpush3.msra.mxu1 %v9621_v35  ;;  %10173 = vmatprep.mubr.msk.f32.mxu0 %vm17164_vm0, %v868_v49  ;;  %v9641_v35 = vld [vmem:[%s17530_s3 + $0x60] sm:$0xff]  ;;  %v1633_v49 = vsel %vm1149_vm5, %v11140_v40, 0.0  ;;  %v1789_v40 = vsel %vm838_vm2, %v11157_v47, 0.0  ;;  %v1790_v47 = vsel %vm839_vm3, %v11159_v48, 0.0  ;;  %vm17549_vm2 = vcmp.lt.s32.totalorder %v11155_v46, 6 }
  0x5f   : > { %10184 = vmatmul.mubr.msk.f32.gmra.mxu1 %vm17164_vm0, %v1176_v44  ;;  %10240 = vmatprep.subr.mxu1 %v9642_v55  ;;  %v1336_v44 = vsel %vm845_vm14, %v11229_v11, 0.0  ;;  %v1638_v48 = vsel %vm1154_vm15, %v11189_v57, 0.0  ;;  %vm17550_vm3 = vmmov %vm17549_vm2 }
  0x60   : > { %10186 = vmatprep.mubr.msk.f32.mxu1 %vm17164_vm0, %v1177_v27  ;;  %v1634_v27 = vsel %vm1150_vm7, %v11150_v45, 0.0  ;;  %v1636_v45 = vsel %vm1152_vm11, %v11173_v52, 0.0 }
  0x61   : > { %10174 = vmatmul.mubr.msk.f32.gmra.mxu0 %vm17164_vm0, %v869_v58  ;;  %v9651_v58 = vld [vmem:[%s17530_s3 + $0x70] sm:$0xff] }
  0x62   : > { %10196 = vmatprep.mubr.msk.f32.mxu0 %vm17164_vm0, %v1329_v62  ;;  %v9661_v62 = vld [vmem:[%s17530_s3 + $0x80] sm:$0xff] }
  0x63   : > { %10187 = vmatmul.mubr.msk.f32.gmra.mxu1 %vm17164_vm0, %v1178_v60  ;;  %v1637_v60 = vsel %vm17549_vm2, %v11175_v53, 0.0 }
  0x64   : > { %10189 = vmatprep.mubr.msk.f32.mxu1 %vm17164_vm0, %v1179_v61  ;;  %v1791_v61 = vsel %vm840_vm4, %v11171_v51, 0.0  ;;  %v1792_v51 = vsel %vm841_vm6, %v11187_v56, 0.0 }
  0x65   : > { %10197 = vmatmul.mubr.msk.f32.vlgmr.msra.gmra.mxu0 %vm17164_vm0, %v1330_v21  ;;  %v1793_v21 = vsel %vm842_vm8, %v11213_v0, 0.0  ;;  %v1795_v0 = vsel %vm844_vm12, %v11245_v22, 0.0 }
  0x66   : > { %10225 = vmatpush3.msra.mxu0 %v9632_v36  ;;  %10199 = vmatprep.mubr.msk.f32.mxu0 %vm17164_vm0, %v1331_v38  ;;  %v9652_v36 = vld [vmem:[%s17530_s3 + $0x78] sm:$0xff]  ;;  %v1794_v38 = vsel %vm843_vm10, %v11229_v11, 0.0  ;;  %v2093_v11 = vsel %vm1149_vm5, %v11162_v50, 0.0 }
  0x67   : > { %10190 = vmatmul.mubr.msk.f32.gmra.mxu1 %vm17164_vm0, %v1180_v19  ;;  %10226 = vmatprep.subr.mxu0 %v9631_v25  ;;  %v1639_v19 = vsel %vm1155_vm1, %v11217_v2, 0.0 }
  0x68   : > { %10212 = vmatprep.mubr.msk.f32.mxu1 %vm17164_vm0, %v11106_v29  ;;  %10227 = vmatpush3.msra.mxu0 %v9631_v25  ;;  %v1334_v29 = vsel %vm843_vm10, %v11187_v56, 0.0  ;;  %v1640_v56 = vsel %vm1156_vm13, %v11233_v17, 0.0  ;;  %v1796_v25 = vsel %vm845_vm14, %v11219_v4, 0.0  ;;  %v2095_v4 = vsel %vm1151_vm9, %v11175_v53, 0.0 }
  0x69   : > { %10200 = vmatmul.mubr.msk.f32.gmra.mxu0 %vm17164_vm0, %v1332_v34  ;;  %10256 = vmatprep.subr.mxu0 %v9652_v36  ;;  %v2100_v53 = vsel %vm1156_vm13, %v11251_v26, 0.0 }
  0x6a   : > { %10202 = vmatprep.mubr.msk.f32.mxu0 %vm17164_vm0, %v1333_v43 }
  0x6b   : > { %10213 = vmatmul.mubr.msk.f32.vlgmr.msra.gmra.mxu1 %vm17164_vm0, %v11108_v30  ;;  %v9662_v30 = vld [vmem:[%s17530_s3 + $0x88] sm:$0xff] }
  0x6c   : > { %10241 = vmatpush3.msra.mxu1 %v9642_v55  ;;  %10215 = vmatprep.mubr.msk.f32.mxu1 %vm17164_vm0, %v11110_v31  ;;  %v1635_v55 = vsel %vm1151_vm9, %v11162_v50, 0.0  ;;  %v2098_v50 = vsel %vm1154_vm15, %v11233_v17, 0.0 }
  0x6d   : > { %10242 = vmatprep.subr.mxu1 %v9641_v35  ;;  %10203 = vmatmul.mubr.msk.f32.gmra.mxu0 %vm17164_vm0, %v1334_v29 }
  0x6e   : > { %10243 = vmatpush3.msra.mxu1 %v9641_v35  ;;  %10205 = vmatprep.mubr.msk.f32.mxu0 %vm17164_vm0, %v1335_v42 }
  0x6f   : > { %10216 = vmatmul.mubr.msk.f32.gmra.mxu1 %vm17164_vm0, %v11132_v37  ;;  %10272 = vmatprep.subr.mxu1 %v9662_v30 }
  0x70   : > { %10218 = vmatprep.mubr.msk.f32.mxu1 %vm17164_vm0, %v11142_v41 }
  0x71   : > { %10206 = vmatmul.mubr.msk.f32.gmra.mxu0 %vm17164_vm0, %v1336_v44 }
  0x72   : > { %10228 = vmatprep.mubr.msk.f32.mxu0 %vm17164_vm0, %v1633_v49 }
  0x73   : > { %10219 = vmatmul.mubr.msk.f32.gmra.mxu1 %vm17164_vm0, %v11182_v54 }
  0x74   : > { %10221 = vmatprep.mubr.msk.f32.mxu1 %vm17164_vm0, %v11215_v1 }
  0x75   : > { %10229 = vmatmul.mubr.msk.f32.vlgmr.msra.gmra.mxu0 %vm17164_vm0, %v1634_v27 }
  0x76   : > { %10257 = vmatpush3.msra.mxu0 %v9652_v36  ;;  %10231 = vmatprep.mubr.msk.f32.mxu0 %vm17164_vm0, %v1635_v55 }
  0x77   : > { %10222 = vmatmul.mubr.msk.f32.gmra.mxu1 %vm17164_vm0, %v11231_v16  ;;  %10258 = vmatprep.subr.mxu0 %v9651_v58 }
  0x78   : > { %10244 = vmatprep.mubr.msk.f32.mxu1 %vm17164_vm0, %v1789_v40  ;;  %10259 = vmatpush3.msra.mxu0 %v9651_v58 }
  0x79   : > { %10232 = vmatmul.mubr.msk.f32.gmra.mxu0 %vm17164_vm0, %v1636_v45 }
  0x7a   : > { %10234 = vmatprep.mubr.msk.f32.mxu0 %vm17164_vm0, %v1637_v60 }
  0x7b   : > { %10245 = vmatmul.mubr.msk.f32.vlgmr.msra.gmra.mxu1 %vm17164_vm0, %v1790_v47 }
  0x7c   : > { %10273 = vmatpush3.msra.mxu1 %v9662_v30  ;;  %10247 = vmatprep.mubr.msk.f32.mxu1 %vm17164_vm0, %v1791_v61 }
  0x7d   : > { %10274 = vmatprep.subr.mxu1 %v9661_v62  ;;  %10235 = vmatmul.mubr.msk.f32.gmra.mxu0 %vm17164_vm0, %v1638_v48 }
  0x7e   : > { %10275 = vmatpush3.msra.mxu1 %v9661_v62  ;;  %10237 = vmatprep.mubr.msk.f32.mxu0 %vm17164_vm0, %v1639_v19 }
  0x7f   : > { %10248 = vmatmul.mubr.msk.f32.gmra.mxu1 %vm17164_vm0, %v1792_v51 }
  0x80   : > { %10250 = vmatprep.mubr.msk.f32.mxu1 %vm17164_vm0, %v1793_v21 }
  0x81   : > { %10238 = vmatmul.mubr.msk.f32.gmra.mxu0 %vm17164_vm0, %v1640_v56 }
  0x82   : > { %10260 = vmatprep.mubr.msk.f32.mxu0 %vm17164_vm0, %v11110_v31  ;;  %v2094_v31 = vsel %vm1150_vm7, %v11173_v52, 0.0  ;;  %v2099_v52 = vsel %vm1155_vm1, %v11249_v23, 0.0 }
  0x83   : > { %10251 = vmatmul.mubr.msk.f32.gmra.mxu1 %vm17164_vm0, %v1794_v38 }
  0x84   : > { %10253 = vmatprep.mubr.msk.f32.mxu1 %vm17164_vm0, %v1795_v0 }
  0x85   : > { %10261 = vmatmul.mubr.msk.f32.vlgmr.msra.gmra.mxu0 %vm17164_vm0, %v11132_v37  ;;  %v2096_v37 = vsel %vm1152_vm11, %v11189_v57, 0.0  ;;  %v2467_v57 = vld [vmem:[%s17086_s5 + $0x18] sm:$0xff] }
  0x86   : > { %10263 = vmatprep.mubr.msk.f32.mxu0 %vm17164_vm0, %v11142_v41  ;;  %v2097_v41 = vsel %vm17550_vm3, %v11217_v2, 0.0  ;;  %v2464_v2 = vld [vmem:[%s17086_s5] sm:$0xff] }
  0x87   : > { %10254 = vmatmul.mubr.msk.f32.gmra.mxu1 %vm17164_vm0, %v1796_v25 }
  0x88   : > { %10276 = vmatprep.mubr.msk.f32.mxu1 %vm17164_vm0, %v2093_v11 }
  0x89   : > { %10264 = vmatmul.mubr.msk.f32.gmra.mxu0 %vm17164_vm0, %v11182_v54  ;;  %v2468_v54 = vld [vmem:[%s17086_s5 + $0x20] sm:$0xff] }
  0x8a   : > { %10266 = vmatprep.mubr.msk.f32.mxu0 %vm17164_vm0, %v11215_v1  ;;  %2522 = vmatprep.subr.mxu0 %v2468_v54  ;;  %v2469_v1 = vld [vmem:[%s17086_s5 + $0x28] sm:$0xff] }
  0x8b   : > { %10277 = vmatmul.mubr.msk.f32.vlgmr.msra.gmra.mxu1 %vm17164_vm0, %v2094_v31  ;;  %2523 = vmatpush1.msra.mxu0 %v2467_v57 }
  0x8c   : > { %10279 = vmatprep.mubr.msk.f32.mxu1 %vm17164_vm0, %v2095_v4  ;;  %10288 = vmatprep.subr.mxu1 %v2469_v1 }
  0x8d   : > { %10267 = vmatmul.mubr.msk.f32.gmra.mxu0 %vm17164_vm0, %v11231_v16  ;;  %10289 = vmatpush3.msra.mxu1 %v2469_v1 }
  0x8e   : > { %10269 = vmatprep.mubr.msk.f32.mxu0 %vm17164_vm0, %v11221_v5  ;;  %v2466_v5 = vld [vmem:[%s17086_s5 + $0x10] sm:$0xff] }
  0x8f   : > { %10280 = vmatmul.mubr.msk.f32.gmra.mxu1 %vm17164_vm0, %v2096_v37  ;;  %10290 = vmatprep.subr.mxu1 %v2466_v5 }
  0x90   : > { %10282 = vmatprep.mubr.msk.f32.mxu1 %vm17164_vm0, %v2097_v41  ;;  %10291 = vmatpush3.msra.mxu1 %v2466_v5 }
  0x91   : > { %10270 = vmatmul.mubr.msk.f32.gmra.mxu0 %vm17164_vm0, %v11223_v6 }
  0x92   : > { %2558 = vmatprep.mubr.f32.mxu0 %v10793_v3  ;;  %v2465_v3 = vld [vmem:[%s17086_s5 + $0x8] sm:$0xff] }
  0x93   : > { %10283 = vmatmul.mubr.msk.f32.gmra.mxu1 %vm17164_vm0, %v2098_v50  ;;  %2524 = vmatprep.subr.mxu0 %v2465_v3 }
  0x94   : > { %10285 = vmatprep.mubr.msk.f32.mxu1 %vm17164_vm0, %v2099_v52  ;;  %2525 = vmatpush1.msra.mxu0 %v2464_v2 }
  0x97   : > { %10286 = vmatmul.mubr.msk.f32.gmra.mxu1 %vm17164_vm0, %v2100_v53 }
 0x103   : > { %v10150_v17 = vpop.f32.mrf.mxu1 }
 0x105   : > { %v11519_v6 = vpop.f32.mrf.mxu0  ;;  %v973_v23 = vpop.f32.mrf.mxu1 }
 0x107   : > { %v11521_v16 = vpop.f32.mrf.mxu0 }
 0x109   : > { %v11523_v22 = vpop.f32.mrf.mxu0 }
 0x10b   : > { %v11525_v26 = vpop.f32.mrf.mxu0 }
 0x10d   : > { %v11527_v34 = vpop.f32.mrf.mxu0 }
 0x10f   : > { %v10153_v43 = vpop.f32.mrf.mxu1  ;;  %v11529_v35 = vpop.f32.mrf.mxu0 }
 0x111   : > { %v983_v36 = vpop.f32.mrf.mxu1  ;;  %v11531_v29 = vpop.f32.mrf.mxu0 }
 0x112   : > { %17551 = vst [vmem:[#allocation34_spill] sm:$0xff] %v11531_v29 }
 0x113   : > { %v11533_v42 = vpop.f32.mrf.mxu1  ;;  %v11535_v30 = vpop.f32.mrf.mxu0 }
 0x114   : > { %17552 = vst [vmem:[#allocation35_spill] sm:$0xff] %v11535_v30 }
 0x115   : > { %v11537_v44 = vpop.f32.mrf.mxu1  ;;  %v10166_v27 = vpop.f32.mrf.mxu0 }
 0x116   : > { %v1108_v14 = vadd.f32 %v10166_v27, %v10150_v17 }
 0x117   : > { %v11539_v49 = vpop.f32.mrf.mxu1  ;;  %v1102_v40 = vpop.f32.mrf.mxu0 }
 0x118   : > { %v1103_v10 = vadd.f32 %v1102_v40, %v973_v23 }
 0x119   : > { %v11541_v55 = vpop.f32.mrf.mxu1  ;;  %v10169_v58 = vpop.f32.mrf.mxu0 }
 0x11a   : > { %v1118_v9 = vadd.f32 %v10169_v58, %v10153_v43  ;;  %v11592_v43 = vadd.f32 %v11578_v8, %v11521_v16  ;;  %v11607_v16 = vadd.f32 %v11527_v34, %v11578_v8 }
 0x11b   : > { %v10182_v45 = vpop.f32.mrf.mxu1  ;;  %v1112_v47 = vpop.f32.mrf.mxu0 }
 0x11c   : > { %v1314_v32 = vadd.f32 %v10182_v45, %v1108_v14  ;;  %v775_v14 = vadd.f32 %v11519_v6, %v11578_v8  ;;  %v1113_v23 = vadd.f32 %v1112_v47, %v983_v36 }
 0x11d   : > { %v1274_v60 = vpop.f32.mrf.mxu1  ;;  %v10172_v61 = vpop.f32.mrf.mxu0 }
 0x11e   : > { %v1313_v24 = vadd.f32 %v1274_v60, %v1103_v10  ;;  %v1128_v6 = vadd.f32 %v10172_v61, %v11533_v42 }
 0x11f   : > { %v10185_v62 = vpop.f32.mrf.mxu1  ;;  %v11543_v48 = vpop.f32.mrf.mxu0 }
 0x120   : > { %v1316_v17 = vadd.f32 %v10185_v62, %v1118_v9  ;;  %v11596_v9 = vadd.f32 %v11523_v22, %v11578_v8  ;;  %v11611_v22 = vadd.f32 %v11578_v8, %v11529_v35 }
 0x121   : > { %v1284_v51 = vpop.f32.mrf.mxu1  ;;  %v11545_v19 = vpop.f32.mrf.mxu0 }
 0x122   : > { %v1315_v36 = vadd.f32 %v1284_v51, %v1113_v23 }
 0x123   : > { %v11547_v21 = vpop.f32.mrf.mxu1  ;;  %v11549_v56 = vpop.f32.mrf.mxu0 }
 0x124   : > { %v1318_v42 = vadd.f32 %v11547_v21, %v1128_v6 }
 0x125   : > { %v11551_v38 = vpop.f32.mrf.mxu1  ;;  %v10198_v25 = vpop.f32.mrf.mxu0 }
 0x126   : > { %v1470_v30 = vadd.f32 %v10198_v25, %v1314_v32  ;;  %v1138_v25 = vadd.f32 %v11545_v19, %v11539_v49 }
 0x127   : > { %v11553_v0 = vpop.f32.mrf.mxu1  ;;  %v1430_v31 = vpop.f32.mrf.mxu0 }
 0x128   : > { %v1469_v27 = vadd.f32 %v1430_v31, %v1313_v24  ;;  %v11600_v24 = vadd.f32 %v11578_v8, %v11525_v26  ;;  %v1123_v26 = vadd.f32 %v11543_v48, %v11537_v44  ;;  %v11624_v48 = vld [vmem:[%s17085_s4] ss:$0 sm:$0xff]  ;;  %v1320_v21 = vadd.f32 %v11553_v0, %v1138_v25 }
 0x129   : > { %v11555_v11 = vpop.f32.mrf.mxu1  ;;  %v10201_v4 = vpop.f32.mrf.mxu0 }
 0x12a   : > { %v1472_v10 = vadd.f32 %v10201_v4, %v1316_v17 }
 0x12b   : > { %v10214_v37 = vpop.f32.mrf.mxu1  ;;  %v1440_v41 = vpop.f32.mrf.mxu0 }
 0x12c   : > { %v1471_v61 = vadd.f32 %v1440_v41, %v1315_v36 }
 0x12d   : > { %v1578_v50 = vpop.f32.mrf.mxu1  ;;  %v10204_v52 = vpop.f32.mrf.mxu0 }
 0x12e   : > { %v1617_v32 = vadd.f32 %v1578_v50, %v1469_v27  ;;  %v1474_v35 = vadd.f32 %v10204_v52, %v1318_v42 }
 0x12f   : > { %v10217_v53 = vpop.f32.mrf.mxu1  ;;  %v11557_v54 = vpop.f32.mrf.mxu0 }
 0x130   : > { %v1620_v60 = vadd.f32 %v10217_v53, %v1472_v10 }
 0x131   : > { %v1588_v57 = vpop.f32.mrf.mxu1  ;;  %v11559_v1 = vpop.f32.mrf.mxu0 }
 0x132   : > { %v1476_v53 = vadd.f32 %v11559_v1, %v1320_v21 }
 0x133   : > { %v11561_v3 = vpop.f32.mrf.mxu1  ;;  %v11563_v2 = vpop.f32.mrf.mxu0 }
 0x135   : > { %v11565_v5 = vpop.f32.mrf.mxu1  ;;  %v10230_v12 = vpop.f32.mrf.mxu0 }
 0x137   : > { %v11567_v7 = vpop.f32.mrf.mxu1  ;;  %v1734_v59 = vpop.f32.mrf.mxu0 }
 0x138   : > { %17553 = vst [vmem:[#allocation36_spill] sm:$0xff] %v11567_v7  ;;  %v1618_v7 = vadd.f32 %v10214_v37, %v1470_v30  ;;  %v1619_v37 = vadd.f32 %v1588_v57, %v1471_v61 }
 0x139   : > { %v11569_v63 = vpop.f32.mrf.mxu1  ;;  %v10233_v46 = vpop.f32.mrf.mxu0 }
 0x13a   : > { %17554 = vst [vmem:[#allocation37_spill] sm:$0xff] %v11569_v63  ;;  %v1774_v58 = vadd.f32 %v10230_v12, %v1618_v7  ;;  %v1773_v7 = vadd.f32 %v1734_v59, %v1617_v32  ;;  %v1776_v34 = vadd.f32 %v10233_v46, %v1620_v60  ;;  %v1317_v59 = vadd.f32 %v11551_v38, %v1123_v26 }
 0x13b   : > { %v10246_v18 = vpop.f32.mrf.mxu1  ;;  %v1744_v39 = vpop.f32.mrf.mxu0 }
 0x13c   : > { %v1930_v12 = vadd.f32 %v10246_v18, %v1774_v58  ;;  %v1133_v18 = vadd.f32 %v11549_v56, %v11541_v55  ;;  %v1473_v55 = vadd.f32 %v11557_v54, %v1317_v59  ;;  %v1622_v56 = vadd.f32 %v11561_v3, %v1474_v35 }
 0x13d   : > { %v1890_v20 = vpop.f32.mrf.mxu1  ;;  %v11571_v28 = vpop.f32.mrf.mxu0  ;;  %v1775_v38 = vadd.f32 %v1744_v39, %v1619_v37 }
 0x13e   : > { %v1929_v31 = vadd.f32 %v1890_v20, %v1773_v7  ;;  %v1319_v19 = vadd.f32 %v11555_v11, %v1133_v18  ;;  %v1778_v23 = vadd.f32 %v11571_v28, %v1622_v56 }
 0x13f   : > { %v10249_v15 = vpop.f32.mrf.mxu1  ;;  %v11573_v13 = vpop.f32.mrf.mxu0  ;;  %v17556_v32 = vld [vmem:[#allocation36_spill] sm:$0xff] }
 0x140   : > { %v1932_v49 = vadd.f32 %v10249_v15, %v1776_v34  ;;  %v1475_v0 = vadd.f32 %v11563_v2, %v1319_v19  ;;  %v1621_v15 = vadd.f32 %v11565_v5, %v1473_v55  ;;  %v1624_v3 = vadd.f32 %v17556_v32, %v1476_v53  ;;  %v17558_v55 = vld [vmem:[#allocation34_spill] sm:$0xff] }
 0x141   : > { %v1900_v33 = vpop.f32.mrf.mxu1  ;;  %v11580_v29 = vpop.f32.mrf.mxu0  ;;  %v17557_v6 = vld [vmem:[#allocation37_spill] sm:$0xff]  ;;  %v805_v56 = vadd.f32 %v17558_v55, %v11578_v8 }
 0x142   : > { %v1931_v11 = vadd.f32 %v1900_v33, %v1775_v38  ;;  %v1623_v36 = vadd.f32 %v17557_v6, %v1475_v0  ;;  %v1780_v33 = vadd.f32 %v11580_v29, %v1624_v3 }
 0x143   : > { %v11582_v63 = vpop.f32.mrf.mxu1  ;;  %v11586_v40 = vpop.f32.mrf.mxu0 }
 0x144   : > { %v1934_v2 = vadd.f32 %v11582_v63, %v1778_v23  ;;  %v1779_v26 = vadd.f32 %v11586_v40, %v1623_v36  ;;  %v17559_v23 = vld [vmem:[#allocation35_spill] sm:$0xff] }
 0x145   : > { %v11588_v45 = vpop.f32.mrf.mxu1  ;;  %v10262_v47 = vpop.f32.mrf.mxu0 }
 0x146   : > { %v2078_v4 = vadd.f32 %v10262_v47, %v1930_v12  ;;  %v1777_v47 = vadd.f32 %v11573_v13, %v1621_v15 }
 0x147   : > { %v11603_v30 = vpop.f32.mrf.mxu1  ;;  %v2038_v51 = vpop.f32.mrf.mxu0 }
 0x148   : > { %v2077_v46 = vadd.f32 %v2038_v51, %v1929_v31  ;;  %v1933_v42 = vadd.f32 %v11588_v45, %v1777_v47  ;;  %v1936_v25 = vadd.f32 %v11603_v30, %v1780_v33 }
 0x149   : > { %v1920_v62 = vpop.f32.mrf.mxu1  ;;  %v10265_v50 = vpop.f32.mrf.mxu0 }
 0x14a   : > { %v2080_v57 = vadd.f32 %v10265_v50, %v1932_v49 }
 0x14b   : > { %v10278_v44 = vpop.f32.mrf.mxu1  ;;  %v2048_v41 = vpop.f32.mrf.mxu0 }
 0x14c   : > { %v2234_v20 = vadd.f32 %v10278_v44, %v2078_v4  ;;  %v2079_v60 = vadd.f32 %v2048_v41, %v1931_v11  ;;  %v800_v11 = vadd.f32 %v11578_v8, %v17559_v23  ;;  %v17568_v23 = vld [vmem:[#allocation21_spill] sm:$0xff] }
 0x14d   : > { %v2194_v52 = vpop.f32.mrf.mxu1  ;;  %v10268_v10 = vpop.f32.mrf.mxu0 }
 0x14e   : > { %v2249_v17 = vadd.f32 %v11624_v48, %v2234_v20  ;;  %v2233_v27 = vadd.f32 %v2194_v52, %v2077_v46  ;;  %v2082_v61 = vadd.f32 %v10268_v10, %v1934_v2 }
 0x14f   : > { %v10281_v54 = vpop.f32.mrf.mxu1  ;;  %v2058_v5 = vpop.f32.mrf.mxu0 }
 0x150   : > { %v11636_v39 = vsub.f32 %v775_v14, %v2249_v17  ;;  %v2248_v58 = vadd.f32 %v11624_v48, %v2233_v27  ;;  %v2236_v1 = vadd.f32 %v10281_v54, %v2080_v57  ;;  %v2081_v4 = vadd.f32 %v2058_v5, %v1933_v42 }
 0x151   : > { %v2204_v7 = vpop.f32.mrf.mxu1  ;;  %v10271_v51 = vpop.f32.mrf.mxu0 }
 0x152   : > { %v2265_v28 = vand.u32 2147483647, %v11636_v39  ;;  %v11645_v12 = vsub.f32 %v11592_v43, %v2248_v58  ;;  %v2251_v14 = vadd.f32 %v11624_v48, %v2236_v1  ;;  %v2235_v13 = vadd.f32 %v2204_v7, %v2079_v60 }
 0x153   : > { %v10284_v63 = vpop.f32.mrf.mxu1  ;;  %v1935_v43 = vadd.f32 %v1920_v62, %v1779_v26  ;;  %v2068_v40 = vpop.f32.mrf.mxu0  ;;  %v2084_v44 = vadd.f32 %v10271_v51, %v1936_v25  ;;  %vm2321_vm4 = vcmp.ge.f32.partialorder %v11636_v39, 0.0 }
 0x154   : > { %v2273_v34 = vsub.f32 0.0, %v2265_v28  ;;  %v2264_v29 = vand.u32 2147483647, %v11645_v12  ;;  %v11653_v31 = vsub.f32 %v11596_v9, %v2251_v14  ;;  %v2250_v18 = vadd.f32 %v11624_v48, %v2235_v13 }
 0x155   : > { %v2238_v59 = vadd.f32 %v10284_v63, %v2082_v61  ;;  %v2214_v35 = vpop.f32.mrf.mxu1  ;;  %v2083_v49 = vadd.f32 %v2068_v40, %v1935_v43  ;;  %vm2320_vm6 = vcmp.ge.f32.partialorder %v11645_v12, 0.0 }
 0x156   : > { %v2282_v45 = vmul.f32 1.442695, %v2273_v34  ;;  %v2272_v37 = vsub.f32 0.0, %v2264_v29  ;;  %v2267_v50 = vand.u32 2147483647, %v11653_v31  ;;  %v11658_v30 = vsub.f32 %v11600_v24, %v2250_v18 }
 0x157   : > { %v2253_v21 = vadd.f32 %v11624_v48, %v2238_v59  ;;  %v2237_v9 = vadd.f32 %v2214_v35, %v2081_v4  ;;  %v10287_v46 = vpop.f32.mrf.mxu1  ;;  %vm2323_vm7 = vcmp.ge.f32.partialorder %v11653_v31, 0.0 }
 0x158   : > { %10574 = vpow2.f32 %v2282_v45  ;;  %v2280_v62 = vmul.f32 1.442695, %v2272_v37  ;;  %v2275_v20 = vsub.f32 0.0, %v2267_v50  ;;  %v2240_v19 = vadd.f32 %v10287_v46, %v2084_v44  ;;  %v17560_v50 = vld [vmem:[#allocation26_spill] sm:$0xff] }
 0x159   : > { %v2266_v38 = vand.u32 2147483647, %v11658_v30  ;;  %v11665_v41 = vsub.f32 %v11607_v16, %v2253_v21  ;;  %v2252_v24 = vadd.f32 %v11624_v48, %v2237_v9  ;;  %v2224_v52 = vpop.f32.mrf.mxu1  ;;  %vm2918_vm5 = vcmp.ge.s32.totalorder %v17560_v50, 1  ;;  %v6606_v21 = vld [vmem:[#allocation3] sm:$0xff]  ;;  %v17561_v46 = vld [vmem:[#allocation18_spill] sm:$0xff] }
 0x15a   : > { %10576 = vpow2.f32 %v2280_v62  ;;  %v2286_v53 = vmul.f32 1.442695, %v2275_v20  ;;  %v2255_v57 = vadd.f32 %v11624_v48, %v2240_v19  ;;  %v2239_v17 = vadd.f32 %v2224_v52, %v2083_v49 }
 0x15b   : > { %v2274_v27 = vsub.f32 0.0, %v2266_v38  ;;  %v2269_v0 = vand.u32 2147483647, %v11665_v41  ;;  %v11671_v15 = vsub.f32 %v11611_v22, %v2252_v24  ;;  %v6614_v39 = vsel %vm2918_vm5, %v6606_v21, 0.0  ;;  %v17564_v38 = vld [vmem:[#allocation17_spill] sm:$0xff] }
 0x15c   : > { %10578 = vpow2.f32 %v2286_v53  ;;  %v11675_v16 = vsub.f32 %v805_v56, %v2255_v57  ;;  %v2254_v10 = vadd.f32 %v11624_v48, %v2239_v17  ;;  %v11708_v53 = vld [vmem:[%s17091_s10] ss:$0 sm:$0xff]  ;;  %v17566_v57 = vld [vmem:[#allocation28_spill] sm:$0xff]  ;;  %vm2322_vm9 = vcmp.ge.f32.partialorder %v11658_v30, 0.0  ;;  %v11806_v21 = vld [vmem:[%s17091_s10 + $0x2] ss:$0 sm:$0xff] }
 0x15d   : > { %v2284_v54 = vmul.f32 1.442695, %v2274_v27  ;;  %v2277_v32 = vsub.f32 0.0, %v2269_v0  ;;  %v2268_v3 = vand.u32 2147483647, %v11671_v15  ;;  %vm17315_vm8 = vcmp.ge.s32.totalorder %v17566_v57, 1 }
 0x15e   : > { %v2271_v58 = vand.u32 2147483647, %v11675_v16  ;;  %v11680_v1 = vsub.f32 %v800_v11, %v2254_v10  ;;  %v6664_v17 = vld [vmem:[#allocation3 + $0x1] sm:$0xff]  ;;  %v11715_v27 = vld [vmem:[%s17091_s10 + $0x1] ss:$0 sm:$0xff]  ;;  %vm3231_vm10 = vcmp.lt.s32.totalorder %v17560_v50, 7 }
 0x15f   : > { %10580 = vpow2.f32 %v2284_v54  ;;  %v2290_v6 = vmul.f32 1.442695, %v2277_v32  ;;  %v2276_v22 = vsub.f32 0.0, %v2268_v3  ;;  %vm2325_vm11 = vcmp.ge.f32.partialorder %v11665_v41, 0.0  ;;  %v11732_v3 = vld [vmem:[#allocation2 + $0xb0] sm:$0xff] }
 0x160   : > { %v2279_v36 = vsub.f32 0.0, %v2271_v58  ;;  %v2270_v47 = vand.u32 2147483647, %v11680_v1  ;;  %v11738_v58 = vld [vmem:[%s17090_s9] ss:$0 sm:$0xff]  ;;  %vm2324_vm14 = vcmp.ge.f32.partialorder %v11671_v15, 0.0 }
 0x161   : > { %10582 = vpow2.f32 %v2290_v6  ;;  %v2288_v8 = vmul.f32 1.442695, %v2276_v22  ;;  %v6648_v6 = vmul.f32 %v11708_v53, %v6614_v39  ;;  %v11744_v22 = vld [vmem:[%s17090_s9 + $0x1] ss:$0 sm:$0xff]  ;;  %vm2327_vm15 = vcmp.ge.f32.partialorder %v11675_v16, 0.0  ;;  %v17577_v16 = vld [vmem:[#allocation33_spill] sm:$0xff] }
 0x162   : > { %v2294_v2 = vmul.f32 1.442695, %v2279_v36  ;;  %v2278_v60 = vsub.f32 0.0, %v2270_v47  ;;  %v17570_v36 = vld [vmem:[#allocation27_spill] sm:$0xff]  ;;  %vm17332_vm1 = vcmp.lt.s32.totalorder %v17566_v57, 7  ;;  %vm17168_vm2 = vcmp.lt.s32.totalorder %v17577_v16, 7 }
 0x163   : > { %10584 = vpow2.f32 %v2288_v8  ;;  %vm3232_vm12 = vcmp.lt.s32.totalorder %v17570_v36, 7  ;;  %vm2919_vm13 = vcmp.ge.s32.totalorder %v17570_v36, 1  ;;  %vm2326_vm3 = vcmp.ge.f32.partialorder %v11680_v1, 0.0  ;;  %v11811_v1 = vld [vmem:[%s17091_s10 + $0x7] ss:$0 sm:$0xff] }
 0x164   : > { %10586 = vpow2.f32 %v2294_v2  ;;  %v2292_v48 = vmul.f32 1.442695, %v2278_v60  ;;  %v6698_v60 = vmul.f32 %v11715_v27, %v6664_v17 }
 0x165   : > { %v10575_v5 = vpop.eup %10574 }
 0x166   : > { %v2297_v7 = vadd.f32 1.0, %v10575_v5  ;;  %10588 = vpow2.f32 %v2292_v48  ;;  %v17572_v48 = vld [vmem:[#allocation19_spill] sm:$0xff] }
 0x167   : > { %v10577_v33 = vpop.eup %10576 }
 0x168   : > { %10590 = vrcp.f32 %v2297_v7  ;;  %v2296_v28 = vadd.f32 1.0, %v10577_v33 }
 0x169   : > { %v10579_v14 = vpop.eup %10578 }
 0x16a   : > { %10592 = vrcp.f32 %v2296_v28  ;;  %v2299_v26 = vadd.f32 1.0, %v10579_v14 }
 0x16c   : > { %v10581_v42 = vpop.eup %10580  ;;  %10594 = vrcp.f32 %v2299_v26  ;;  %v6627_v26 = vmul.f32 %v11738_v58, %v6614_v39 }
 0x16d   : > { %v2298_v61 = vadd.f32 1.0, %v10581_v42 }
 0x16e   : > { %v10583_v13 = vpop.eup %10582 }
 0x16f   : > { %10596 = vrcp.f32 %v2298_v61  ;;  %v2301_v51 = vadd.f32 1.0, %v10583_v13  ;;  %v7011_v61 = vld [vmem:[#allocation3 + $0x4a] sm:$0xff] }
 0x170   : > { %v10585_v63 = vpop.eup %10584 }
 0x171   : > { %v11683_v25 = vpop.eup %10586  ;;  %10598 = vrcp.f32 %v2301_v51  ;;  %v2300_v34 = vadd.f32 1.0, %v10585_v63 }
 0x172   : > { %v2303_v29 = vadd.f32 1.0, %v11683_v25 }
 0x173   : > { %v11686_v43 = vpop.eup %10588  ;;  %10600 = vrcp.f32 %v2300_v34 }
 0x174   : > { %10602 = vrcp.f32 %v2303_v29  ;;  %v2302_v4 = vadd.f32 1.0, %v11686_v43 }
 0x175   : > { %v10591_v18 = vpop.eup %10590 }
 0x176   : > { %v2329_v59 = vmul.f32 %v10591_v18, %v10575_v5  ;;  %10604 = vrcp.f32 %v2302_v4  ;;  %v6968_v4 = vld [vmem:[#allocation3 + $0x49] sm:$0xff] }
 0x177   : > { %v10593_v40 = vpop.eup %10592 }
 0x178   : > { %v2337_v35 = vsel %vm2321_vm4, %v10591_v18, %v2329_v59  ;;  %v2328_v45 = vmul.f32 %v10593_v40, %v10577_v33  ;;  %v17579_v59 = vld [vmem:[#allocation22_spill] sm:$0xff] }
 0x179   : > { %v10595_v37 = vpop.eup %10594  ;;  %v2345_v44 = vsub.f32 1.0, %v2337_v35  ;;  %v11796_v35 = vsel %vm17168_vm2, %v7011_v61, 0.0  ;;  %v11895_v61 = vld [vmem:[%s17090_s9 + $0x2] ss:$0 sm:$0xff] }
 0x17a   : > { %v2336_v49 = vsel %vm2320_vm6, %v10593_v40, %v2328_v45  ;;  %v2331_v9 = vmul.f32 %v10595_v37, %v10579_v14  ;;  %17581 = vst [vmem:[#allocation39_spill] sm:$0xff] %v11796_v35 }
 0x17b   : > { %v11693_v62 = vmul.f32 %v2345_v44, %v17561_v46  ;;  %v2344_v20 = vsub.f32 1.0, %v2336_v49  ;;  %v6706_v44 = vadd.f32 %v6698_v60, %v6648_v6  ;;  %v11816_v49 = vld [vmem:[%s17091_s10 + $0x8] ss:$0 sm:$0xff]  ;;  %v11866_v60 = vld [vmem:[%s17091_s10 + $0x3] ss:$0 sm:$0xff] }
 0x17c   : > { %v10597_v19 = vpop.eup %10596  ;;  %v2339_v55 = vsel %vm2323_vm7, %v10595_v37, %v2331_v9  ;;  %v17584_v9 = vld [vmem:[#allocation29_spill] sm:$0xff] }
 0x17d   : > { %17562 = vst [vmem:[#allocation36_spill] sm:$0xff] %v11693_v62  ;;  %v11700_v56 = vmul.f32 %v11693_v62, %v17561_v46  ;;  %v11703_v12 = vmul.f32 %v2344_v20, %v17564_v38  ;;  %v2347_v24 = vsub.f32 1.0, %v2339_v55  ;;  %v2330_v52 = vmul.f32 %v10597_v19, %v10581_v42 }
 0x17e   : > { %v10599_v31 = vpop.eup %10598  ;;  %v6677_v42 = vmul.f32 %v11744_v22, %v6664_v17  ;;  %vm2921_vm4 = vcmp.ge.s32.totalorder %v17584_v9, 1  ;;  %vm17331_vm6 = vcmp.lt.s32.totalorder %v17584_v9, 7 }
 0x17f   : > { %17563 = vst [vmem:[#allocation37_spill] sm:$0xff] %v11700_v56  ;;  %17565 = vst [vmem:[#allocation34_spill] sm:$0xff] %v11703_v12  ;;  %v11722_v0 = vmul.f32 %v11703_v12, %v17564_v38  ;;  %v11725_v11 = vmul.f32 %v2347_v24, %v17568_v23  ;;  %v2338_v10 = vsel %vm2322_vm9, %v10597_v19, %v2330_v52  ;;  %9672 = vmatmul.mubr.msk.f32.vlgmr.msra.gmra.mxu0 %vm17164_vm0, %v11703_v12 }
 0x180   : > { %6599 = vst.msk [vmem:[#allocation3 + $0x11] sm:$0xff] %vm17164_vm0, %v11700_v56  ;;  %v2333_v30 = vmul.f32 %v10599_v31, %v10583_v13  ;;  %v10601_v54 = vpop.eup %10600  ;;  %v2346_v32 = vsub.f32 1.0, %v2338_v10  ;;  %10292 = vmatprep.mubr.msk.f32.mxu1 %vm17164_vm0, %v11703_v12  ;;  %2564 = vmatprep.mubr.f32.mxu0 %v11732_v3  ;;  %v17575_v13 = vld [vmem:[#allocation23_spill] sm:$0xff]  ;;  %v11830_v38 = vadd.f32 %v6677_v42, %v6627_v26 }
 0x181   : > { %17567 = vst [vmem:[#allocation35_spill] sm:$0xff] %v11722_v0  ;;  %17569 = vst [vmem:[#allocation18_spill] sm:$0xff] %v11725_v11  ;;  %v10603_v41 = vpop.eup %10602  ;;  %v11751_v47 = vmul.f32 %v11725_v11, %v17568_v23  ;;  %v2332_v2 = vmul.f32 %v10601_v54, %v10585_v63  ;;  %10293 = vmatmul.mubr.msk.f32.vlgmr.msra.gmra.mxu1 %vm17164_vm0, %v11693_v62  ;;  %v11833_v24 = vmul.f32 %v11811_v1, %v6968_v4 }
 0x182   : > { %6598 = vst.msk [vmem:[#allocation3 + $0x9] sm:$0xff] %vm17164_vm0, %v11722_v0  ;;  %v2341_v8 = vsel %vm2325_vm11, %v10599_v31, %v2333_v30  ;;  %v11758_v5 = vmul.f32 %v2346_v32, %v17572_v48  ;;  %v2335_v33 = vmul.f32 %v10603_v41, %v11683_v25  ;;  %v11848_v30 = vld [vmem:[%s17090_s9 + $0x7] ss:$0 sm:$0xff]  ;;  %v17589_v32 = vld [vmem:[#allocation24_spill] sm:$0xff] }
 0x183   : > { %17571 = vst [vmem:[#allocation17_spill] sm:$0xff] %v11751_v47  ;;  %v2349_v7 = vsub.f32 1.0, %v2341_v8  ;;  %v10605_v28 = vpop.eup %10604  ;;  %6601 = vst.msk [vmem:[#allocation3 + $0x21] sm:$0xff] %vm17164_vm0, %v11751_v47  ;;  %v2340_v14 = vsel %vm2324_vm14, %v10601_v54, %v2332_v2  ;;  %9673 = vmatmul.mubr.msk.f32.gmra.mxu0 %vm17164_vm0, %v11693_v62  ;;  %v11852_v54 = vmul.f32 %v11816_v49, %v11796_v35 }
 0x184   : > { %17573 = vst [vmem:[#allocation21_spill] sm:$0xff] %v11758_v5  ;;  %v11771_v15 = vmul.f32 %v11758_v5, %v17572_v48  ;;  %v2348_v63 = vsub.f32 1.0, %v2340_v14  ;;  %v2343_v25 = vsel %vm2327_vm15, %v10603_v41, %v2335_v33  ;;  %10295 = vmatprep.mubr.msk.f32.mxu1 %vm17164_vm0, %v11758_v5  ;;  %2570 = vmatprep.mubr.f32.mxu0 %v11732_v3  ;;  %17586 = vst [vmem:[#allocation41_spill] sm:$0xff] %v11833_v24 }
 0x185   : > { %v11774_v51 = vmul.f32 %v2349_v7, %v17575_v13  ;;  %v2351_v34 = vsub.f32 1.0, %v2343_v25  ;;  %v2334_v29 = vmul.f32 %v10605_v28, %v11686_v43  ;;  %10296 = vmatmul.mubr.msk.f32.gmra.mxu1 %vm17164_vm0, %v11725_v11  ;;  %v17582_v43 = vld [vmem:[#allocation25_spill] sm:$0xff]  ;;  %17588 = vst [vmem:[#allocation43_spill] sm:$0xff] %v11852_v54  ;;  %v11881_v14 = vmul.f32 %v11848_v30, %v6968_v4 }
 0x186   : > { %17574 = vst [vmem:[#allocation19_spill] sm:$0xff] %v11771_v15  ;;  %6600 = vst.msk [vmem:[#allocation3 + $0x19] sm:$0xff] %vm17164_vm0, %v11771_v15  ;;  %v11791_v40 = vmul.f32 %v2348_v63, %v17579_v59 }
 0x187   : > { %17576 = vst [vmem:[#allocation23_spill] sm:$0xff] %v11774_v51  ;;  %v11788_v18 = vmul.f32 %v11774_v51, %v17575_v13  ;;  %v11799_v45 = vmul.f32 %v2351_v34, %v17582_v43  ;;  %v2342_v37 = vsel %vm2326_vm3, %v10605_v28, %v2334_v29  ;;  %9674 = vmatmul.mubr.msk.f32.gmra.mxu0 %vm17164_vm0, %v11758_v5  ;;  %v11828_v39 = vld [vmem:[#allocation3 + $0x11] sm:$0xff]  ;;  %17591 = vst [vmem:[#allocation44_spill] sm:$0xff] %v11881_v14  ;;  %v11900_v13 = vld [vmem:[%s17091_s10 + $0x4] ss:$0 sm:$0xff] }
 0x188   : > { %17580 = vst [vmem:[#allocation22_spill] sm:$0xff] %v11791_v40  ;;  %v11823_v46 = vmul.f32 %v11791_v40, %v17579_v59  ;;  %v2350_v20 = vsub.f32 1.0, %v2342_v37  ;;  %10298 = vmatprep.mubr.msk.f32.mxu1 %vm17164_vm0, %v11791_v40  ;;  %2576 = vmatprep.mubr.f32.mxu0 %v11732_v3  ;;  %v6679_v7 = vmul.f32 %v11744_v22, %v11828_v39  ;;  %v11922_v37 = vld [vmem:[%s17091_s10 + $0x5] ss:$0 sm:$0xff] }
 0x189   : > { %17578 = vst [vmem:[#allocation38_spill] sm:$0xff] %v11788_v18  ;;  %17583 = vst [vmem:[#allocation25_spill] sm:$0xff] %v11799_v45  ;;  %v6607_v19 = vld [vmem:[#allocation3 + $0x8] sm:$0xff]  ;;  %v6608_v55 = vld [vmem:[#allocation3 + $0x10] sm:$0xff]  ;;  %v11837_v52 = vmul.f32 %v11799_v45, %v17582_v43  ;;  %10299 = vmatmul.mubr.msk.f32.gmra.mxu1 %vm17164_vm0, %v11774_v51  ;;  %v6700_v33 = vmul.f32 %v11715_v27, %v11828_v39  ;;  %v11904_v63 = vmul.f32 %v11811_v1, %v11828_v39 }
 0x18a   : > { %6603 = vst.msk [vmem:[#allocation3 + $0x31] sm:$0xff] %vm17164_vm0, %v11788_v18  ;;  %17585 = vst [vmem:[#allocation40_spill] sm:$0xff] %v11823_v46  ;;  %v6616_v31 = vsel %vm17315_vm8, %v6608_v55, 0.0  ;;  %v6714_v17 = vld [vmem:[#allocation3 + $0x2] sm:$0xff]  ;;  %v6715_v23 = vld [vmem:[#allocation3 + $0xa] sm:$0xff]  ;;  %v6773_v10 = vsel %vm2918_vm5, %v6607_v19, 0.0  ;;  %v11857_v6 = vmul.f32 %v2350_v20, %v17589_v32  ;;  %v11908_v25 = vmul.f32 %v11848_v30, %v11828_v39 }
 0x18b   : > { %17587 = vst [vmem:[#allocation42_spill] sm:$0xff] %v11837_v52  ;;  %6602 = vst.msk [vmem:[#allocation3 + $0x29] sm:$0xff] %vm17164_vm0, %v11823_v46  ;;  %v6629_v41 = vmul.f32 %v11738_v58, %v6616_v31  ;;  %v6650_v8 = vmul.f32 %v11708_v53, %v6616_v31  ;;  %v6722_v2 = vsel %vm3231_vm10, %v6714_v17, 0.0  ;;  %9675 = vmatmul.mubr.msk.f32.gmra.mxu0 %vm17164_vm0, %v11725_v11  ;;  %v11873_v48 = vld [vmem:[#allocation3 + $0x9] sm:$0xff]  ;;  %v6723_v42 = vsel %vm3232_vm12, %v6715_v23, 0.0 }
 0x18c   : > { %17590 = vst [vmem:[#allocation24_spill] sm:$0xff] %v11857_v6  ;;  %6605 = vst.msk [vmem:[#allocation3 + $0x41] sm:$0xff] %vm17164_vm0, %v11837_v52  ;;  %v6756_v28 = vmul.f32 %v11806_v21, %v6722_v2  ;;  %v11885_v26 = vmul.f32 %v11857_v6, %v17589_v32  ;;  %10301 = vmatprep.mubr.msk.f32.mxu1 %vm17164_vm0, %v11857_v6  ;;  %2582 = vmatprep.mubr.f32.mxu0 %v11732_v3  ;;  %v11914_v4 = vsel %vm2919_vm13, %v6608_v55, 0.0  ;;  %v11970_v52 = vld [vmem:[%s17090_s9 + $0x4] ss:$0 sm:$0xff] }
 0x18d   : > { %10302 = vmatmul.mubr.msk.f32.gmra.mxu1 %vm17164_vm0, %v11799_v45  ;;  %v6716_v34 = vld [vmem:[#allocation3 + $0x12] sm:$0xff]  ;;  %v6807_v59 = vmul.f32 %v11866_v60, %v6773_v10  ;;  %v6867_v43 = vsel %vm3231_vm10, %v6715_v23, 0.0  ;;  %v6687_v20 = vadd.f32 %v6679_v7, %v6629_v41  ;;  %v6708_v31 = vadd.f32 %v6700_v33, %v6650_v8  ;;  %v11940_v41 = vld [vmem:[%s17091_s10 + $0x6] ss:$0 sm:$0xff]  ;;  %v11947_v7 = vld [vmem:[%s17090_s9 + $0x3] ss:$0 sm:$0xff] }
 0x18e   : > { %17592 = vst [vmem:[#allocation45_spill] sm:$0xff] %v11885_v26  ;;  %v6764_v29 = vadd.f32 %v6756_v28, %v6706_v44  ;;  %6604 = vst.msk [vmem:[#allocation3 + $0x39] sm:$0xff] %vm17164_vm0, %v11885_v26  ;;  %v6724_v44 = vsel %vm17332_vm1, %v6716_v34, 0.0  ;;  %v6850_v17 = vmul.f32 %v11900_v13, %v11873_v48  ;;  %v11933_v23 = vmul.f32 %v11895_v61, %v6723_v42  ;;  %v6609_v0 = vld [vmem:[#allocation3 + $0x18] sm:$0xff] }
 0x18f   : > { %9676 = vmatmul.mubr.msk.f32.gmra.mxu0 %vm17164_vm0, %v11791_v40  ;;  %v6918_v28 = vsel %vm2918_vm5, %v6608_v55, 0.0  ;;  %v7012_v8 = vsel %vm3231_vm10, %v6716_v34, 0.0  ;;  %v6757_v33 = vmul.f32 %v11806_v21, %v6723_v42  ;;  %v6615_v55 = vsel %vm2919_vm13, %v6607_v19, 0.0  ;;  %v11961_v18 = vld [vmem:[#allocation3 + $0x19] sm:$0xff] }
 0x190   : > { %v6815_v32 = vadd.f32 %v6807_v59, %v6764_v29  ;;  %2588 = vmatprep.mubr.f32.mxu0 %v11732_v3  ;;  %v6901_v29 = vmul.f32 %v11922_v37, %v6867_v43  ;;  %v6735_v59 = vmul.f32 %v11895_v61, %v6722_v2  ;;  %v6737_v56 = vmul.f32 %v11895_v61, %v6724_v44 }
 0x191   : > { %v6758_v15 = vmul.f32 %v11806_v21, %v6724_v44  ;;  %v11959_v46 = vsel %vm3232_vm12, %v6716_v34, 0.0  ;;  %v6952_v42 = vmul.f32 %v11940_v41, %v6918_v28  ;;  %v7046_v26 = vmul.f32 %v11816_v49, %v7012_v8 }
 0x192   : > { %v6858_v47 = vadd.f32 %v6850_v17, %v6815_v32  ;;  %v6743_v19 = vadd.f32 %v6735_v59, %v11830_v38  ;;  %v6786_v2 = vmul.f32 %v11947_v7, %v6773_v10  ;;  %v6829_v44 = vmul.f32 %v11970_v52, %v11873_v48  ;;  %v11979_v17 = vld [vmem:[%s17090_s9 + $0x5] ss:$0 sm:$0xff]  ;;  %v17593_v59 = vld [vmem:[#allocation30_spill] sm:$0xff] }
 0x193   : > { %9677 = vmatmul.mubr.msk.f32.gmra.mxu0 %vm17164_vm0, %v11774_v51  ;;  %v6617_v38 = vsel %vm2921_vm4, %v6609_v0, 0.0  ;;  %v6649_v10 = vmul.f32 %v11708_v53, %v6615_v55  ;;  %v6717_v32 = vld [vmem:[#allocation3 + $0x1a] sm:$0xff]  ;;  %vm2922_vm7 = vcmp.ge.s32.totalorder %v17593_v59, 1  ;;  %v6680_v11 = vmul.f32 %v11744_v22, %v11961_v18 }
 0x194   : > { %v6909_v34 = vadd.f32 %v6901_v29, %v6858_v47  ;;  %2594 = vmatprep.mubr.f32.mxu0 %v11732_v3  ;;  %v6794_v51 = vadd.f32 %v6786_v2, %v6743_v19  ;;  %v11989_v47 = vld [vmem:[%s17090_s9 + $0x6] ss:$0 sm:$0xff]  ;;  %v11994_v29 = vld [vmem:[%s17090_s9 + $0x8] ss:$0 sm:$0xff]  ;;  %v6630_v40 = vmul.f32 %v11738_v58, %v6617_v38  ;;  %v6699_v5 = vmul.f32 %v11715_v27, %v11873_v48 }
 0x195   : > { %vm17343_vm9 = vcmp.lt.s32.totalorder %v17593_v59, 7  ;;  %v12002_v19 = vadd.f32 %v6737_v56, %v6687_v20  ;;  %v6651_v62 = vmul.f32 %v11708_v53, %v6617_v38  ;;  %v6701_v12 = vmul.f32 %v11715_v27, %v11961_v18 }
 0x196   : > { %v6960_v2 = vadd.f32 %v6952_v42, %v6909_v34  ;;  %v6837_v50 = vadd.f32 %v6829_v44, %v6794_v51  ;;  %v6880_v14 = vmul.f32 %v11979_v17, %v6867_v43  ;;  %v6707_v54 = vadd.f32 %v6699_v5, %v6649_v10 }
 0x197   : > { %v6725_v35 = vsel %vm17331_vm6, %v6717_v32, 0.0  ;;  %9678 = vmatmul.mubr.msk.f32.gmra.mxu0 %vm17164_vm0, %v11857_v6  ;;  %v12012_v24 = vadd.f32 %v6758_v15, %v6708_v31  ;;  %v6931_v20 = vmul.f32 %v11989_v47, %v6918_v28  ;;  %v7025_v42 = vmul.f32 %v11994_v29, %v7012_v8 }
 0x198   : > { %v7003_v56 = vadd.f32 %v11904_v63, %v6960_v2  ;;  %2600 = vmatprep.mubr.f32.mxu0 %v11732_v3  ;;  %v6888_v51 = vadd.f32 %v6880_v14, %v6837_v50  ;;  %v6688_v34 = vadd.f32 %v6680_v11, %v6630_v40  ;;  %v6765_v43 = vadd.f32 %v6757_v33, %v6707_v54  ;;  %v6718_v2 = vld [vmem:[#allocation3 + $0x22] sm:$0xff] }
 0x199   : > { %v6808_v5 = vmul.f32 %v11866_v60, %v11914_v4  ;;  %v6709_v38 = vadd.f32 %v6701_v12, %v6651_v62  ;;  %v6738_v15 = vmul.f32 %v11895_v61, %v6725_v35  ;;  %v6775_v63 = vsel %vm17315_vm8, %v6609_v0, 0.0 }
 0x19a   : > { %v12020_v44 = vadd.f32 %v7046_v26, %v7003_v56  ;;  %v6939_v31 = vadd.f32 %v6931_v20, %v6888_v51  ;;  %v6759_v28 = vmul.f32 %v11806_v21, %v6725_v35  ;;  %v6851_v50 = vmul.f32 %v11900_v13, %v11828_v39  ;;  %v6610_v26 = vld [vmem:[#allocation3 + $0x20] sm:$0xff] }
 0x19b   : > { %v6816_v8 = vadd.f32 %v6808_v5, %v6765_v43  ;;  %9679 = vmatmul.mubr.msk.f32.gmra.mxu0 %vm17164_vm0, %v11799_v45  ;;  %v6919_v62 = vsel %vm2919_vm13, %v6609_v0, 0.0  ;;  %v7013_v12 = vsel %vm3232_vm12, %v6717_v32, 0.0  ;;  %v6628_v11 = vmul.f32 %v11738_v58, %v6615_v55 }
 0x19c   : > { %17594 = vst [vmem:[#allocation46_spill] sm:$0xff] %v12020_v44  ;;  %7111 = vxpose.xlu0.b32.start [1/8] (short) (narrow) %v12020_v44, 8  ;;  %v6678_v3 = vmul.f32 %v11744_v22, %v11873_v48  ;;  %v6982_v40 = vadd.f32 %v11908_v25, %v6939_v31  ;;  %v12039_v35 = vadd.f32 %v6738_v15, %v6688_v34  ;;  %v6869_v0 = vsel %vm17332_vm1, %v6717_v32, 0.0  ;;  %v17595_v48 = vld [vmem:[#allocation31_spill] sm:$0xff] }
 0x19d   : > { %v6859_v54 = vadd.f32 %v6851_v50, %v6816_v8  ;;  %v6902_v14 = vmul.f32 %v11922_v37, %v11959_v46  ;;  %v12043_v33 = vadd.f32 %v6759_v28, %v6709_v38  ;;  %v6996_v55 = vmul.f32 %v11811_v1, %v11961_v18  ;;  %v12061_v38 = vld [vmem:[#allocation3 + $0x21] sm:$0xff] }
 0x19e   : > { %v6686_v10 = vadd.f32 %v6678_v3, %v6628_v11  ;;  %vm17342_vm11 = vcmp.ge.s32.totalorder %v17595_v48, 1  ;;  %v12050_v25 = vadd.f32 %v7025_v42, %v6982_v40  ;;  %v6953_v20 = vmul.f32 %v11940_v41, %v6919_v62 }
 0x19f   : > { %v6910_v56 = vadd.f32 %v6902_v14, %v6859_v54  ;;  %v7047_v51 = vmul.f32 %v11816_v49, %v7013_v12  ;;  %v6787_v43 = vmul.f32 %v11947_v7, %v11914_v4  ;;  %v6830_v32 = vmul.f32 %v11970_v52, %v11828_v39 }
 0x1a0   : > { %17596 = vst [vmem:[#allocation47_spill] sm:$0xff] %v12050_v25  ;;  %v6744_v34 = vadd.f32 %v11933_v23, %v6686_v10  ;;  %v6618_v5 = vsel %vm2922_vm7, %v6610_v26, 0.0  ;;  %7079 = vxpose.xlu1.b32.start [1/8] (short) (narrow) %v12050_v25, 8  ;;  %v6881_v15 = vmul.f32 %v11979_v17, %v11959_v46  ;;  %v6932_v31 = vmul.f32 %v11989_v47, %v6919_v62 }
 0x1a1   : > { %v6961_v42 = vadd.f32 %v6953_v20, %v6910_v56  ;;  %v6726_v23 = vsel %vm17343_vm9, %v6718_v2, 0.0  ;;  %v6975_v39 = vmul.f32 %v11848_v30, %v11961_v18  ;;  %v6631_v28 = vmul.f32 %v11738_v58, %v6618_v5 }
 0x1a2   : > { %v6795_v4 = vadd.f32 %v6787_v43, %v6744_v34  ;;  %v6652_v8 = vmul.f32 %v11708_v53, %v6618_v5  ;;  %vm17341_vm14 = vcmp.lt.s32.totalorder %v17595_v48, 7  ;;  %v7026_v11 = vmul.f32 %v11994_v29, %v7013_v12 }
 0x1a3   : > { %v7004_v50 = vadd.f32 %v6996_v55, %v6961_v42  ;;  %v6681_v46 = vmul.f32 %v11744_v22, %v12061_v38  ;;  %v6809_v62 = vmul.f32 %v11866_v60, %v6775_v63  ;;  %v6702_v40 = vmul.f32 %v11715_v27, %v12061_v38 }
 0x1a4   : > { %v6838_v3 = vadd.f32 %v6830_v32, %v6795_v4  ;;  %v6739_v54 = vmul.f32 %v11895_v61, %v6726_v23  ;;  %v6760_v14 = vmul.f32 %v11806_v21, %v6726_v23  ;;  %v12086_v55 = vsel %vm2921_vm4, %v6610_v26, 0.0  ;;  %v6611_v23 = vld [vmem:[#allocation3 + $0x28] sm:$0xff] }
 0x1a5   : > { %v12082_v10 = vadd.f32 %v7047_v51, %v7004_v50  ;;  %v6817_v12 = vadd.f32 %v6809_v62, %v12012_v24  ;;  %v6852_v56 = vmul.f32 %v11900_v13, %v11961_v18  ;;  %v6689_v34 = vadd.f32 %v6681_v46, %v6631_v28  ;;  %v12106_v28 = vld [vmem:[#allocation3 + $0x29] sm:$0xff] }
 0x1a6   : > { %v6889_v20 = vadd.f32 %v6881_v15, %v6838_v3  ;;  %v6710_v43 = vadd.f32 %v6702_v40, %v6652_v8  ;;  %v6920_v32 = vsel %vm17315_vm8, %v6610_v26, 0.0  ;;  %v12096_v51 = vsel %vm17331_vm6, %v6718_v2, 0.0  ;;  %v17598_v8 = vld [vmem:[#allocation32_spill] sm:$0xff] }
 0x1a7   : > { %17597 = vst [vmem:[#allocation48_spill] sm:$0xff] %v12082_v10  ;;  %7112 = vxpose.xlu0.b32.cont [2/8] (short) (narrow) %v12082_v10, 8  ;;  %v6860_v5 = vadd.f32 %v6852_v56, %v6817_v12  ;;  %v6903_v42 = vmul.f32 %v11922_v37, %v6869_v0  ;;  %v6788_v24 = vmul.f32 %v11947_v7, %v6775_v63  ;;  %v7014_v26 = vsel %vm17332_vm1, %v6718_v2, 0.0 }
 0x1a8   : > { %v6940_v4 = vadd.f32 %v6932_v31, %v6889_v20  ;;  %v12100_v50 = vadd.f32 %v6739_v54, %v6689_v34  ;;  %v12102_v15 = vadd.f32 %v6760_v14, %v6710_v43  ;;  %vm17340_vm15 = vcmp.ge.s32.totalorder %v17598_v8, 1 }
 0x1a9   : > { %v6911_v46 = vadd.f32 %v6903_v42, %v6860_v5  ;;  %v6954_v62 = vmul.f32 %v11940_v41, %v6920_v32  ;;  %v6796_v3 = vadd.f32 %v6788_v24, %v12002_v19  ;;  %v6831_v63 = vmul.f32 %v11970_v52, %v11961_v18  ;;  %v6719_v19 = vld [vmem:[#allocation3 + $0x2a] sm:$0xff] }
 0x1aa   : > { %v6983_v31 = vadd.f32 %v6975_v39, %v6940_v4  ;;  %v6997_v40 = vmul.f32 %v11811_v1, %v12061_v38  ;;  %v6882_v54 = vmul.f32 %v11979_v17, %v6869_v0  ;;  %v6619_v2 = vsel %vm17342_vm11, %v6611_v23, 0.0 }
 0x1ab   : > { %v6962_v14 = vadd.f32 %v6954_v62, %v6911_v46  ;;  %v6839_v12 = vadd.f32 %v6831_v63, %v6796_v3  ;;  %v6632_v56 = vmul.f32 %v11738_v58, %v6619_v2  ;;  %v6682_v20 = vmul.f32 %v11744_v22, %v12106_v28 }
 0x1ac   : > { %v12121_v34 = vadd.f32 %v7026_v11, %v6983_v31  ;;  %v7048_v18 = vmul.f32 %v11816_v49, %v7014_v26  ;;  %v6933_v39 = vmul.f32 %v11989_v47, %v6920_v32  ;;  %v6810_v0 = vmul.f32 %v11866_v60, %v12086_v55 }
 0x1ad   : > { %vm17197_vm3 = vcmp.lt.s32.totalorder %v17598_v8, 7  ;;  %v7005_v43 = vadd.f32 %v6997_v40, %v6962_v14  ;;  %v6890_v5 = vadd.f32 %v6882_v54, %v6839_v12  ;;  %v6653_v42 = vmul.f32 %v11708_v53, %v6619_v2 }
 0x1ae   : > { %17599 = vst [vmem:[#allocation49_spill] sm:$0xff] %v12121_v34  ;;  %v6703_v24 = vmul.f32 %v11715_v27, %v12106_v28  ;;  %7080 = vxpose.xlu1.b32.cont [2/8] (short) (narrow) %v12121_v34, 8  ;;  %v6976_v11 = vmul.f32 %v11848_v30, %v12061_v38  ;;  %v6727_v32 = vsel %vm17341_vm14, %v6719_v19, 0.0  ;;  %v6818_v4 = vadd.f32 %v6810_v0, %v12043_v33 }
 0x1af   : > { %v6853_v46 = vmul.f32 %v11900_v13, %v12061_v38  ;;  %v12139_v62 = vadd.f32 %v7048_v18, %v7005_v43  ;;  %v6941_v3 = vadd.f32 %v6933_v39, %v6890_v5  ;;  %v7027_v63 = vmul.f32 %v11994_v29, %v7014_v26  ;;  %v6612_v26 = vld [vmem:[#allocation3 + $0x30] sm:$0xff] }
 0x1b0   : > { %v6690_v31 = vadd.f32 %v6682_v20, %v6632_v56  ;;  %v6777_v40 = vsel %vm2922_vm7, %v6611_v23, 0.0  ;;  %v6904_v2 = vmul.f32 %v11922_v37, %v12096_v51  ;;  %v6921_v14 = vsel %vm2921_vm4, %v6611_v23, 0.0 }
 0x1b1   : > { %17600 = vst [vmem:[#allocation50_spill] sm:$0xff] %v12139_v62  ;;  %v6861_v54 = vadd.f32 %v6853_v46, %v6818_v4  ;;  %7113 = vxpose.xlu0.b32.cont [3/8] (short) (narrow) %v12139_v62, 8  ;;  %v6984_v33 = vadd.f32 %v6976_v11, %v6941_v3  ;;  %v6711_v12 = vadd.f32 %v6703_v24, %v6653_v42  ;;  %v7015_v0 = vsel %vm17331_vm6, %v6719_v19, 0.0  ;;  %v6720_v11 = vld [vmem:[#allocation3 + $0x32] sm:$0xff] }
 0x1b2   : > { %v6740_v18 = vmul.f32 %v11895_v61, %v6727_v32  ;;  %v6761_v39 = vmul.f32 %v11806_v21, %v6727_v32  ;;  %v6955_v20 = vmul.f32 %v11940_v41, %v6921_v14  ;;  %v6789_v43 = vmul.f32 %v11947_v7, %v12086_v55  ;;  %v12169_v3 = vld [vmem:[#allocation3 + $0x31] sm:$0xff] }
 0x1b3   : > { %v6912_v56 = vadd.f32 %v6904_v2, %v6861_v54  ;;  %v12156_v5 = vadd.f32 %v7027_v63, %v6984_v33  ;;  %v6871_v42 = vsel %vm17343_vm9, %v6719_v19, 0.0  ;;  %v6998_v24 = vmul.f32 %v11811_v1, %v12106_v28 }
 0x1b4   : > { %v12158_v23 = vadd.f32 %v6740_v18, %v6690_v31  ;;  %v6797_v4 = vadd.f32 %v6789_v43, %v12039_v35  ;;  %v6832_v46 = vmul.f32 %v11970_v52, %v12061_v38  ;;  %v6620_v55 = vsel %vm17340_vm15, %v6612_v26, 0.0 }
 0x1b5   : > { %17601 = vst [vmem:[#allocation51_spill] sm:$0xff] %v12156_v5  ;;  %v6963_v32 = vadd.f32 %v6955_v20, %v6912_v56  ;;  %vm17191_vm0 = vcmp.ge.s32.totalorder %v17577_v16, 1  ;;  %7081 = vxpose.xlu1.b32.cont [3/8] (short) (narrow) %v12156_v5, 8  ;;  %v6769_v19 = vadd.f32 %v6761_v39, %v6711_v12  ;;  %v7049_v63 = vmul.f32 %v11816_v49, %v7015_v0 }
 0x1b6   : > { %v6633_v31 = vmul.f32 %v11738_v58, %v6620_v55  ;;  %v6654_v54 = vmul.f32 %v11708_v53, %v6620_v55  ;;  %v6840_v2 = vadd.f32 %v6832_v46, %v6797_v4  ;;  %v6883_v38 = vmul.f32 %v11979_v17, %v12096_v51 }
 0x1b7   : > { %v7006_v35 = vadd.f32 %v6998_v24, %v6963_v32  ;;  %v6728_v33 = vsel %vm17197_vm3, %v6720_v11, 0.0  ;;  %v6934_v18 = vmul.f32 %v11989_v47, %v6921_v14  ;;  %v6683_v56 = vmul.f32 %v11744_v22, %v12169_v3 }
 0x1b8   : > { %v6704_v12 = vmul.f32 %v11715_v27, %v12169_v3  ;;  %v6741_v39 = vmul.f32 %v11895_v61, %v6728_v33  ;;  %v6891_v43 = vadd.f32 %v6883_v38, %v6840_v2  ;;  %v6977_v24 = vmul.f32 %v11848_v30, %v12106_v28  ;;  %v6613_v38 = vld [vmem:[#allocation3 + $0x38] sm:$0xff] }
 0x1b9   : > { %v12186_v20 = vadd.f32 %v7049_v63, %v7006_v35  ;;  %v6811_v51 = vmul.f32 %v11866_v60, %v6777_v40  ;;  %v7028_v32 = vmul.f32 %v11994_v29, %v7015_v0  ;;  %v6691_v4 = vadd.f32 %v6683_v56, %v6633_v31 }
 0x1ba   : > { %v6712_v14 = vadd.f32 %v6704_v12, %v6654_v54  ;;  %v6778_v46 = vsel %vm17342_vm11, %v6612_v26, 0.0  ;;  %v6942_v55 = vadd.f32 %v6934_v18, %v6891_v43  ;;  %v6854_v63 = vmul.f32 %v11900_v13, %v12106_v28  ;;  %v12208_v18 = vld [vmem:[#allocation3 + $0x39] sm:$0xff] }
 0x1bb   : > { %17602 = vst [vmem:[#allocation52_spill] sm:$0xff] %v12186_v20  ;;  %7114 = vxpose.xlu0.b32.cont [4/8] (short) (narrow) %v12186_v20, 8  ;;  %v6819_v5 = vadd.f32 %v6811_v51, %v12102_v15  ;;  %v6922_v35 = vsel %vm2922_vm7, %v6612_v26, 0.0  ;;  %v12200_v2 = vadd.f32 %v6741_v39, %v6691_v4  ;;  %v6762_v0 = vmul.f32 %v11806_v21, %v6728_v33 }
 0x1bc   : > { %v12205_v31 = vsel %vm17341_vm14, %v6720_v11, 0.0  ;;  %v6790_v54 = vmul.f32 %v11947_v7, %v6777_v40  ;;  %v6985_v15 = vadd.f32 %v6977_v24, %v6942_v55  ;;  %v6905_v12 = vmul.f32 %v11922_v37, %v6871_v42  ;;  %v6721_v40 = vld [vmem:[#allocation3 + $0x3a] sm:$0xff] }
 0x1bd   : > { %v6862_v56 = vadd.f32 %v6854_v63, %v6819_v5  ;;  %v6956_v43 = vmul.f32 %v11940_v41, %v6922_v35  ;;  %v7016_v26 = vsel %vm17343_vm9, %v6720_v11, 0.0  ;;  %v6833_v39 = vmul.f32 %v11970_v52, %v12106_v28 }
 0x1be   : > { %v6798_v33 = vadd.f32 %v6790_v54, %v12100_v50  ;;  %v6884_v51 = vmul.f32 %v11979_v17, %v6871_v42  ;;  %v12218_v4 = vadd.f32 %v7028_v32, %v6985_v15  ;;  %v6621_v5 = vsel %vm17191_vm0, %v6613_v38, 0.0 }
 0x1bf   : > { %v6913_v20 = vadd.f32 %v6905_v12, %v6862_v56  ;;  %v6684_v24 = vmul.f32 %v11744_v22, %v12208_v18  ;;  %v6634_v11 = vmul.f32 %v11738_v58, %v6621_v5  ;;  %v6655_v50 = vmul.f32 %v11708_v53, %v6621_v5 }
 0x1c0   : > { %17603 = vst [vmem:[#allocation53_spill] sm:$0xff] %v12218_v4  ;;  %v6841_v55 = vadd.f32 %v6833_v39, %v6798_v33  ;;  %v6705_v28 = vmul.f32 %v11715_v27, %v12208_v18  ;;  %7082 = vxpose.xlu1.b32.cont [4/8] (short) (narrow) %v12218_v4, 8  ;;  %v6999_v32 = vmul.f32 %v11811_v1, %v12169_v3  ;;  %v6729_v63 = vsel %vm17168_vm2, %v6721_v40, 0.0 }
 0x1c1   : > { %v6964_v42 = vadd.f32 %v6956_v43, %v6913_v20  ;;  %v6812_v54 = vmul.f32 %v11866_v60, %v6778_v46  ;;  %v7050_v22 = vmul.f32 %v11816_v49, %v7016_v26  ;;  %v6935_v58 = vmul.f32 %v11989_v47, %v6922_v35 }
 0x1c2   : > { %v6892_v15 = vadd.f32 %v6884_v51, %v6841_v55  ;;  %v6713_v53 = vadd.f32 %v6705_v28, %v6655_v50  ;;  %v6763_v27 = vmul.f32 %v11806_v21, %v6729_v63  ;;  %v6855_v20 = vmul.f32 %v11900_v13, %v12169_v3 }
 0x1c3   : > { %v7007_v56 = vadd.f32 %v6999_v32, %v6964_v42  ;;  %v6820_v12 = vadd.f32 %v6812_v54, %v6769_v19  ;;  %v6978_v33 = vmul.f32 %v11848_v30, %v12169_v3  ;;  %v6692_v39 = vadd.f32 %v6684_v24, %v6634_v11  ;;  %v6772_v54 = vld [vmem:[#allocation3 + $0x40] sm:$0xff] }
 0x1c4   : > { %v6943_v43 = vadd.f32 %v6935_v58, %v6892_v15  ;;  %v6906_v5 = vmul.f32 %v11922_v37, %v12205_v31  ;;  %v6771_v51 = vadd.f32 %v6763_v27, %v6713_v53  ;;  %v6923_v55 = vsel %vm17342_vm11, %v6613_v38, 0.0 }
 0x1c5   : > { %v12243_v4 = vadd.f32 %v7050_v22, %v7007_v56  ;;  %v6863_v35 = vadd.f32 %v6855_v20, %v6820_v12  ;;  %v7029_v19 = vmul.f32 %v11994_v29, %v7016_v26  ;;  %v6742_v50 = vmul.f32 %v11895_v61, %v6729_v63  ;;  %v6866_v56 = vld [vmem:[#allocation3 + $0x42] sm:$0xff] }
 0x1c6   : > { %v6986_v21 = vadd.f32 %v6978_v33, %v6943_v43  ;;  %v6779_v28 = vsel %vm17340_vm15, %v6613_v38, 0.0  ;;  %v6957_v11 = vmul.f32 %v11940_v41, %v6923_v55  ;;  %v7017_v42 = vsel %vm17341_vm14, %v6721_v40, 0.0  ;;  %v6823_v43 = vld [vmem:[#allocation3 + $0x41] sm:$0xff] }
 0x1c7   : > { %17604 = vst [vmem:[#allocation54_spill] sm:$0xff] %v12243_v4  ;;  %7115 = vxpose.xlu0.b32.cont [5/8] (short) (narrow) %v12243_v4, 8  ;;  %v6914_v24 = vadd.f32 %v6906_v5, %v6863_v35  ;;  %v6791_v32 = vmul.f32 %v11947_v7, %v6778_v46  ;;  %v6770_v22 = vadd.f32 %v6762_v0, %v6712_v14  ;;  %v6873_v61 = vsel %vm17197_vm3, %v6721_v40, 0.0 }
 0x1c8   : > { %v12256_v15 = vadd.f32 %v7029_v19, %v6986_v21  ;;  %v6750_v26 = vadd.f32 %v6742_v50, %v6692_v39  ;;  %v7000_v38 = vmul.f32 %v11811_v1, %v12208_v18  ;;  %v6834_v53 = vmul.f32 %v11970_v52, %v12169_v3 }
 0x1c9   : > { %v6965_v63 = vadd.f32 %v6957_v11, %v6914_v24  ;;  %v6799_v58 = vadd.f32 %v6791_v32, %v12158_v23  ;;  %v7051_v14 = vmul.f32 %v11816_v49, %v7017_v42  ;;  %v6885_v46 = vmul.f32 %v11979_v17, %v12205_v31 }
 0x1ca   : > { %17605 = vst [vmem:[#allocation55_spill] sm:$0xff] %v12256_v15  ;;  %7083 = vxpose.xlu1.b32.cont [5/8] (short) (narrow) %v12256_v15, 8  ;;  %v6780_v0 = vsel %vm17191_vm0, %v6772_v54, 0.0  ;;  %v6813_v40 = vmul.f32 %v11866_v60, %v6779_v28  ;;  %v6936_v23 = vmul.f32 %v11989_v47, %v6923_v55  ;;  %v6979_v3 = vmul.f32 %v11848_v30, %v12208_v18 }
 0x1cb   : > { %v7008_v27 = vadd.f32 %v7000_v38, %v6965_v63  ;;  %v6842_v12 = vadd.f32 %v6834_v53, %v6799_v58  ;;  %v6856_v33 = vmul.f32 %v11900_v13, %v12208_v18  ;;  %v6874_v31 = vsel %vm17168_vm2, %v6866_v56, 0.0  ;;  %v6917_v38 = vld [vmem:[#allocation3 + $0x48] sm:$0xff] }
 0x1cc   : > { %v6821_v20 = vadd.f32 %v6813_v40, %v6770_v22  ;;  %v6924_v39 = vsel %vm17340_vm15, %v6772_v54, 0.0  ;;  %v7030_v21 = vmul.f32 %v11994_v29, %v7017_v42  ;;  %v6793_v55 = vmul.f32 %v11947_v7, %v6780_v0 }
 0x1cd   : > { %v12281_v5 = vadd.f32 %v7051_v14, %v7008_v27  ;;  %v6893_v35 = vadd.f32 %v6885_v46, %v6842_v12  ;;  %v6814_v19 = vmul.f32 %v11866_v60, %v6780_v0  ;;  %v6907_v24 = vmul.f32 %v11922_v37, %v6873_v61 }
 0x1ce   : > { %v6864_v50 = vadd.f32 %v6856_v33, %v6821_v20  ;;  %v6792_v11 = vmul.f32 %v11947_v7, %v6779_v28  ;;  %v6887_v22 = vmul.f32 %v11979_v17, %v6874_v31  ;;  %v6958_v54 = vmul.f32 %v11940_v41, %v6924_v39  ;;  %v4306_v20 = vld [vmem:[%s17089_s8 + $0xf0] sm:$0xff] }
 0x1cf   : > { %17606 = vst [vmem:[#allocation56_spill] sm:$0xff] %v12281_v5  ;;  %7116 = vxpose.xlu0.b32.cont [6/8] (short) (narrow) %v12281_v5, 8  ;;  %v6944_v32 = vadd.f32 %v6936_v23, %v6893_v35  ;;  %v7001_v63 = vmul.f32 %v11811_v1, %v6823_v43  ;;  %v7018_v58 = vsel %vm17197_vm3, %v6866_v56, 0.0  ;;  %v6835_v53 = vmul.f32 %v11970_v52, %v12208_v18  ;;  %v4290_v33 = vld [vmem:[%s17089_s8 + $0x70] sm:$0xff] }
 0x1d0   : > { %v6915_v42 = vadd.f32 %v6907_v24, %v6864_v50  ;;  %v6800_v60 = vadd.f32 %v6792_v11, %v12200_v2  ;;  %v6886_v28 = vmul.f32 %v11979_v17, %v6873_v61  ;;  %v6822_v14 = vadd.f32 %v6814_v19, %v6771_v51  ;;  %v4321_v11 = vld [vmem:[%s17089_s8 + $0x168] sm:$0xff] }
 0x1d1   : > { %v6987_v7 = vadd.f32 %v6979_v3, %v6944_v32  ;;  %v6857_v46 = vmul.f32 %v11900_v13, %v6823_v43  ;;  %v6925_v1 = vsel %vm17191_vm0, %v6917_v38, 0.0  ;;  %v6801_v27 = vadd.f32 %v6793_v55, %v6750_v26  ;;  %v4307_v13 = vld [vmem:[%s17089_s8 + $0xf8] sm:$0xff]  ;;  %v17609_v32 = vld [vmem:[#allocation41_spill] sm:$0xff]  ;;  %v17611_v38 = vld [vmem:[#allocation39_spill] sm:$0xff] }
 0x1d2   : > { %v6966_v0 = vadd.f32 %v6958_v54, %v6915_v42  ;;  %v6843_v40 = vadd.f32 %v6835_v53, %v6800_v60  ;;  %v6908_v56 = vmul.f32 %v11922_v37, %v6874_v31  ;;  %v6836_v23 = vmul.f32 %v11970_v52, %v6823_v43  ;;  %v4291_v26 = vld [vmem:[%s17089_s8 + $0x78] sm:$0xff]  ;;  %9908 = vmatprep.subr.mxu0 %v4307_v13  ;;  %v17612_v60 = vld [vmem:[#allocation43_spill] sm:$0xff] }
 0x1d3   : > { %v12301_v12 = vadd.f32 %v7030_v21, %v6987_v7  ;;  %v6865_v2 = vadd.f32 %v6857_v46, %v6822_v14  ;;  %v7052_v3 = vmul.f32 %v11816_v49, %v7018_v58  ;;  %v6937_v51 = vmul.f32 %v11989_v47, %v6924_v39  ;;  %v4323_v37 = vld [vmem:[%s17089_s8 + $0x178] sm:$0xff]  ;;  %9909 = vmatpush3.msra.mxu0 %v4291_v26  ;;  %v4305_v21 = vld [vmem:[%s17089_s8 + $0xe8] sm:$0xff]  ;;  %v4320_v14 = vld [vmem:[%s17089_s8 + $0x160] sm:$0xff] }
 0x1d4   : > { %v7009_v18 = vadd.f32 %v7001_v63, %v6966_v0  ;;  %v6894_v17 = vadd.f32 %v6886_v28, %v6843_v40  ;;  %v6959_v49 = vmul.f32 %v11940_v41, %v6925_v1  ;;  %v6844_v61 = vadd.f32 %v6836_v23, %v6801_v27  ;;  %10304 = vmatprep.subr.mxu1 %v4323_v37  ;;  %v4322_v41 = vld [vmem:[%s17089_s8 + $0x170] sm:$0xff]  ;;  %v17614_v7 = vld [vmem:[#allocation44_spill] sm:$0xff]  ;;  %v4287_v46 = vld [vmem:[%s17089_s8 + $0x58] sm:$0xff] }
 0x1d5   : > { %17607 = vst [vmem:[#allocation57_spill] sm:$0xff] %v12301_v12  ;;  %7084 = vxpose.xlu1.b32.cont [6/8] (short) (narrow) %v12301_v12, 8  ;;  %v6916_v52 = vadd.f32 %v6908_v56, %v6865_v2  ;;  %v6980_v35 = vmul.f32 %v11848_v30, %v6823_v43  ;;  %v6938_v50 = vmul.f32 %v11989_v47, %v6925_v1  ;;  %v4289_v30 = vld [vmem:[%s17089_s8 + $0x68] sm:$0xff]  ;;  %v4304_v47 = vld [vmem:[%s17089_s8 + $0xe0] sm:$0xff]  ;;  %v4319_v0 = vld [vmem:[%s17089_s8 + $0x158] sm:$0xff]  ;;  %vm2794_vm2 = vcmask 1040384  }
 0x1d6   : > { %v12324_v31 = vadd.f32 %v7052_v3, %v7009_v18  ;;  %v6945_v39 = vadd.f32 %v6937_v51, %v6894_v17  ;;  %v6895_v19 = vadd.f32 %v6887_v22, %v6844_v61  ;;  %9910 = vmatprep.subr.mxu0 %v4306_v20  ;;  %10305 = vmatpush3.msra.mxu1 %v4323_v37  ;;  %v4302_v1 = vld [vmem:[%s17089_s8 + $0xd0] sm:$0xff]  ;;  %v4301_v2 = vld [vmem:[%s17089_s8 + $0xc8] sm:$0xff]  ;;  %v4300_v3 = vld [vmem:[%s17089_s8 + $0xc0] sm:$0xff]  ;;  %vm3125_vm0 = vcmask 1046528  }
 0x1d7   : > { %v6967_v55 = vadd.f32 %v6959_v49, %v6916_v52  ;;  %v7031_v24 = vmul.f32 %v11994_v29, %v7018_v58  ;;  %9911 = vmatpush3.msra.mxu0 %v4290_v33  ;;  %10306 = vmatprep.subr.mxu1 %v4322_v41  ;;  %v7032_v42 = vmul.f32 %v11994_v29, %v17611_v38  ;;  %v4288_v58 = vld [vmem:[%s17089_s8 + $0x60] sm:$0xff]  ;;  %v4303_v29 = vld [vmem:[%s17089_s8 + $0xd8] sm:$0xff]  ;;  %v4286_v27 = vld [vmem:[%s17089_s8 + $0x50] sm:$0xff]  ;;  %vm3282_vm3 = vcmask 1045504  }
 0x1d8   : > { %17608 = vst [vmem:[#allocation58_spill] sm:$0xff] %v12324_v31  ;;  %7117 = vxpose.xlu0.b32.cont [7/8] (short) (narrow) %v12324_v31, 8  ;;  %v6988_v43 = vadd.f32 %v6980_v35, %v6945_v39  ;;  %v6946_v54 = vadd.f32 %v6938_v50, %v6895_v19  ;;  %9912 = vmatprep.subr.mxu0 %v4305_v21  ;;  %v4318_v56 = vld [vmem:[%s17089_s8 + $0x150] sm:$0xff]  ;;  %v4285_v23 = vld [vmem:[%s17089_s8 + $0x48] sm:$0xff]  ;;  %v4284_v17 = vld [vmem:[%s17089_s8 + $0x40] sm:$0xff] }
 0x1d9   : > { %v7010_v22 = vadd.f32 %v17609_v32, %v6967_v55  ;;  %10307 = vmatpush3.msra.mxu1 %v4322_v41  ;;  %9913 = vmatpush3.msra.mxu0 %v4289_v30  ;;  %v4317_v18 = vld [vmem:[%s17089_s8 + $0x148] sm:$0xff]  ;;  %v4316_v51 = vld [vmem:[%s17089_s8 + $0x140] sm:$0xff]  ;;  %v4299_v13 = vld [vmem:[%s17089_s8 + $0xb8] sm:$0xff] }
 0x1da   : > { %v12346_v63 = vadd.f32 %v7031_v24, %v6988_v43  ;;  %v6989_v28 = vadd.f32 %v17614_v7, %v6946_v54  ;;  %10308 = vmatprep.subr.mxu1 %v4321_v11  ;;  %9914 = vmatprep.subr.mxu0 %v4304_v47  ;;  %v4283_v26 = vld [vmem:[%s17089_s8 + $0x38] sm:$0xff]  ;;  %v4298_v52 = vld [vmem:[%s17089_s8 + $0xb0] sm:$0xff]  ;;  %v4297_v20 = vld [vmem:[%s17089_s8 + $0xa8] sm:$0xff] }
 0x1db   : > { %v12354_v53 = vadd.f32 %v17612_v60, %v7010_v22  ;;  %10309 = vmatpush3.msra.mxu1 %v4321_v11  ;;  %9915 = vmatpush3.msra.mxu0 %v4288_v58  ;;  %v4315_v37 = vld [vmem:[%s17089_s8 + $0x138] sm:$0xff]  ;;  %v4282_v49 = vld [vmem:[%s17089_s8 + $0x30] sm:$0xff]  ;;  %v4281_v33 = vld [vmem:[%s17089_s8 + $0x28] sm:$0xff] }
 0x1dc   : > { %17610 = vst [vmem:[#allocation41_spill] sm:$0xff] %v12346_v63  ;;  %7085 = vxpose.xlu1.b32.cont [7/8] (short) (narrow) %v12346_v63, 8  ;;  %v12371_v40 = vadd.f32 %v7032_v42, %v6989_v28  ;;  %10310 = vmatprep.subr.mxu1 %v4320_v14  ;;  %v4314_v61 = vld [vmem:[%s17089_s8 + $0x130] sm:$0xff]  ;;  %v4313_v39 = vld [vmem:[%s17089_s8 + $0x128] sm:$0xff]  ;;  %v4296_v35 = vld [vmem:[%s17089_s8 + $0xa0] sm:$0xff] }
 0x1dd   : > { %17613 = vst [vmem:[#allocation39_spill] sm:$0xff] %v12354_v53  ;;  %7118 = vxpose.xlu0.b32.end [8/8] (short) (narrow) %v12354_v53, 8  ;;  %9916 = vmatprep.subr.mxu0 %v4303_v29  ;;  %v3048_v41 = vld [vmem:[#allocation2] sm:$0xfe]  ;;  %v12439_v50 = vld [vmem:[#allocation2 + $0xb0] sm:$0xff]  ;;  %v4295_v30 = vld [vmem:[%s17089_s8 + $0x98] sm:$0xff] }
 0x1de   : > { %17615 = vst [vmem:[#allocation43_spill] sm:$0xff] %v12371_v40  ;;  %10311 = vmatpush3.msra.mxu1 %v4320_v14  ;;  %9917 = vmatpush3.msra.mxu0 %v4287_v46  ;;  %v12431_v21 = vld [vmem:[#allocation2] sm:$0xfc]  ;;  %17616 = vst [vmem:[#allocation44_spill] sm:$0xff] %v12439_v50  ;;  %v4279_v43 = vld [vmem:[%s17089_s8 + $0x18] sm:$0xff] }
 0x1df   : > { %10312 = vmatprep.subr.mxu1 %v4319_v0  ;;  %9918 = vmatprep.subr.mxu0 %v4302_v1  ;;  %v4280_v55 = vld [vmem:[%s17089_s8 + $0x20] sm:$0xff]  ;;  %4824 = vst [vmem:[#allocation2] sm:$0xff] %v12439_v50  ;;  %v4311_v24 = vld [vmem:[%s17089_s8 + $0x118] sm:$0xff]  ;;  %v4294_v11 = vld [vmem:[%s17089_s8 + $0x90] sm:$0xff] }
 0x1e0   : > { %7086 = vxpose.xlu1.b32.end [8/8] (short) (narrow) %v12371_v40, 8  ;;  %10313 = vmatpush3.msra.mxu1 %v4319_v0  ;;  %v4312_v19 = vld [vmem:[%s17089_s8 + $0x120] sm:$0xff]  ;;  %v4278_v47 = vld [vmem:[%s17089_s8 + $0x10] sm:$0xff]  ;;  %v4293_v22 = vld [vmem:[%s17089_s8 + $0x88] sm:$0xff] }
 0x1e1   : > { %9919 = vmatpush3.msra.mxu0 %v4286_v27  ;;  %10314 = vmatprep.subr.mxu1 %v4318_v56  ;;  %v4310_v32 = vld [vmem:[%s17089_s8 + $0x110] sm:$0xff]  ;;  %v4277_v42 = vld [vmem:[%s17089_s8 + $0x8] sm:$0xff]  ;;  %v4292_v60 = vld [vmem:[%s17089_s8 + $0x80] sm:$0xff] }
 0x1e2   : > { %9920 = vmatprep.subr.mxu0 %v4301_v2  ;;  %10315 = vmatpush3.msra.mxu1 %v4318_v56  ;;  %v3047_v54 = vld [vmem:[#allocation2 + $0xb0] sm:$0xfe]  ;;  %v4309_v58 = vld [vmem:[%s17089_s8 + $0x108] sm:$0xff]  ;;  %v4276_v7 = vld [vmem:[%s17089_s8] sm:$0xff] }
 0x1e3   : > { %9921 = vmatpush3.msra.mxu0 %v4285_v23  ;;  %10316 = vmatprep.subr.mxu1 %v4317_v18  ;;  %v12463_v38 = vld [vmem:[#allocation2 + $0xb0] sm:$0xfc]  ;;  %v4308_v28 = vld [vmem:[%s17089_s8 + $0x100] sm:$0xff]  ;;  %v12481_v14 = vld [vmem:[#allocation2 + $0xd8] sm:$0xfe] }
 0x1e4   : > { %9922 = vmatprep.subr.mxu0 %v4300_v3  ;;  %10317 = vmatpush3.msra.mxu1 %v4317_v18  ;;  %4823 = vst [vmem:[#allocation2 + $0xb0] sm:$0xff] %v12439_v50  ;;  %v12483_v29 = vld [vmem:[#allocation2 + $0xd8] sm:$0xfc]  ;;  %v17617_v46 = vld [vmem:[#allocation20_spill] sm:$0xff] }
 0x1e5   : > { %9923 = vmatpush3.msra.mxu0 %v4284_v17  ;;  %10318 = vmatprep.subr.mxu1 %v4316_v51  ;;  %4825 = vst [vmem:[#allocation2 + $0xd8] sm:$0xff] %v12439_v50  ;;  %v12487_v0 = vsub.s32 1, %v17617_v46  ;;  %v12490_v1 = vsub.s32 0, %v17617_v46  ;;  %v9688_v27 = vld [vmem:[%s17087_s6 + $0x1] ss:$8 sm:$0x7] }
 0x1e6   : > { %9924 = vmatprep.subr.mxu0 %v4299_v13  ;;  %10319 = vmatpush3.msra.mxu1 %v4316_v51  ;;  %v2966_v56 = vld [vmem:[%s17087_s6] ss:$8 sm:$0x7]  ;;  %v12499_v2 = vsub.s32 2, %v17617_v46  ;;  %v12518_v13 = vsel %vm2918_vm5, %v12439_v50, 0.0 }
 0x1e7   : > { %9925 = vmatpush3.msra.mxu0 %v4283_v26  ;;  %10320 = vmatprep.subr.mxu1 %v4315_v37  ;;  %17618 = vst [vmem:[#allocation59_spill] sm:$0xff] %v12487_v0  ;;  %17619 = vst [vmem:[#allocation60_spill] sm:$0xff] %v12490_v1  ;;  %v12504_v23 = vld [vmem:[%s17087_s6 + $0x4] ss:$8 sm:$0x7]  ;;  %v12507_v18 = vrot.slane %v2966_v56, %v12487_v0  ;;  %v12510_v3 = vrot.slane %v9688_v27, %v12487_v0 }
 0x1e8   : > { %9926 = vmatprep.subr.mxu0 %v4298_v52  ;;  %10321 = vmatpush3.msra.mxu1 %v4315_v37  ;;  %17620 = vst [vmem:[#allocation61_spill] sm:$0xff] %v12499_v2  ;;  %v2736_v17 = vld [vmem:[%s17088_s7] sm:$0x7]  ;;  %17624 = vst [vmem:[#allocation64_spill] sm:$0xff] %v12518_v13  ;;  %v12619_v10 = vrot.slane %v9688_v27, %v12499_v2 }
 0x1e9   : > { %9927 = vmatpush3.msra.mxu0 %v4282_v49  ;;  %10322 = vmatprep.subr.mxu1 %v4314_v61  ;;  %17621 = vst [vmem:[#allocation62_spill] sm:$0xff] %v12507_v18  ;;  %17622 = vst [vmem:[#allocation63_spill] sm:$0xff] %v12510_v3  ;;  %v2984_v26 = vmul.f32 %v12507_v18, %v12518_v13  ;;  %v12523_v37 = vmul.f32 %v12510_v3, %v3048_v41  ;;  %v9689_v52 = vld [vmem:[%s17087_s6 + $0x2] ss:$8 sm:$0x7] }
 0x1ea   : > { %9928 = vmatprep.subr.mxu0 %v4297_v20  ;;  %10323 = vmatpush3.msra.mxu1 %v4314_v61  ;;  %v12529_v49 = vrot.slane %v9688_v27, %v12490_v1  ;;  %v12533_v61 = vrot.slane %v12504_v23, %v12490_v1  ;;  %v12546_v41 = vrot.slane %v2736_v17, %v12487_v0  ;;  %v12606_v53 = vld [vmem:[%s17087_s6 + $0x18] ss:$8 sm:$0x7] }
 0x1eb   : > { %9929 = vmatpush3.msra.mxu0 %v4281_v33  ;;  %10324 = vmatprep.subr.mxu1 %v4313_v39  ;;  %v9690_v33 = vld [vmem:[%s17087_s6 + $0x3] ss:$8 sm:$0x7]  ;;  %v12610_v15 = vrot.slane %v12606_v53, %v12490_v1  ;;  %17642 = vst [vmem:[#allocation82_spill] sm:$0xff] %v12619_v10  ;;  %v12630_v5 = vrot.slane %v9689_v52, %v12499_v2 }
 0x1ec   : > { %9930 = vmatprep.subr.mxu0 %v4296_v35  ;;  %10325 = vmatpush3.msra.mxu1 %v4313_v39  ;;  %17625 = vst [vmem:[#allocation65_spill] sm:$0xff] %v12529_v49  ;;  %17626 = vst [vmem:[#allocation66_spill] sm:$0xff] %v12533_v61  ;;  %v12540_v39 = vrot.slane %v2966_v56, %v12499_v2  ;;  %v12543_v35 = vrot.slane %v2736_v17, %v12490_v1 }
 0x1ed   : > { %9931 = vmatpush3.msra.mxu0 %v4280_v55  ;;  %10326 = vmatprep.subr.mxu1 %v4312_v19  ;;  %17629 = vst [vmem:[#allocation69_spill] sm:$0xff] %v12546_v41  ;;  %v12550_v55 = vrot.slane %v12504_v23, %v12487_v0  ;;  %17640 = vst [vmem:[#allocation80_spill] sm:$0xff] %v12610_v15  ;;  %v12634_v27 = vmul.f32 %v12619_v10, %v12481_v14 }
 0x1ee   : > { %9932 = vmatprep.subr.mxu0 %v4295_v30  ;;  %10327 = vmatpush3.msra.mxu1 %v4312_v19  ;;  %17627 = vst [vmem:[#allocation67_spill] sm:$0xff] %v12540_v39  ;;  %17628 = vst [vmem:[#allocation68_spill] sm:$0xff] %v12543_v35  ;;  %v9692_v19 = vld [vmem:[%s17087_s6 + $0x5] ss:$8 sm:$0x7] }
 0x1ef   : > { %9933 = vmatpush3.msra.mxu0 %v4279_v43  ;;  %10328 = vmatprep.subr.mxu1 %v4311_v24  ;;  %17630 = vst [vmem:[#allocation70_spill] sm:$0xff] %v12550_v55  ;;  %v9693_v30 = vld [vmem:[%s17087_s6 + $0x6] ss:$8 sm:$0x7]  ;;  %v12559_v43 = vrot.slane %v9689_v52, %v12490_v1  ;;  %17644 = vst [vmem:[#allocation84_spill] sm:$0xff] %v12630_v5  ;;  %v12648_v48 = vrot.slane %v9692_v19, %v12499_v2 }
 0x1f0   : > { %9934 = vmatprep.subr.mxu0 %v4294_v11  ;;  %10329 = vmatpush3.msra.mxu1 %v4311_v24  ;;  %v12562_v24 = vrot.slane %v9689_v52, %v12487_v0  ;;  %v9694_v11 = vld [vmem:[%s17087_s6 + $0x7] ss:$8 sm:$0x7]  ;;  %v12642_v52 = vrot.slane %v12504_v23, %v12499_v2 }
 0x1f1   : > { %9935 = vmatpush3.msra.mxu0 %v4278_v47  ;;  %10330 = vmatprep.subr.mxu1 %v4310_v32  ;;  %17631 = vst [vmem:[#allocation71_spill] sm:$0xff] %v12559_v43  ;;  %v12568_v47 = vrot.slane %v2966_v56, %v12490_v1  ;;  %v12587_v56 = vrot.slane %v9692_v19, %v12487_v0  ;;  %17647 = vst [vmem:[#allocation87_spill] sm:$0xff] %v12648_v48  ;;  %v17696_v51 = vld [vmem:[#allocation63_spill] sm:$0xff] }
 0x1f2   : > { %9936 = vmatprep.subr.mxu0 %v4293_v22  ;;  %10331 = vmatpush3.msra.mxu1 %v4310_v32  ;;  %v12571_v32 = vmul.f32 %v12529_v49, %v3047_v54  ;;  %v12574_v22 = vadd.f32 %v12546_v41, %v2984_v26  ;;  %v12590_v54 = vrot.slane %v9693_v30, %v12490_v1 }
 0x1f3   : > { %9937 = vmatpush3.msra.mxu0 %v4277_v42  ;;  %10332 = vmatprep.subr.mxu1 %v4309_v58  ;;  %17632 = vst [vmem:[#allocation72_spill] sm:$0xff] %v12568_v47  ;;  %17635 = vst [vmem:[#allocation75_spill] sm:$0xff] %v12587_v56  ;;  %v2983_v26 = vmul.f32 %v12568_v47, %v12518_v13  ;;  %v12595_v42 = vrot.slane %v9693_v30, %v12487_v0 }
 0x1f4   : > { %9938 = vmatprep.subr.mxu0 %v4292_v60  ;;  %10333 = vmatpush3.msra.mxu1 %v4309_v58  ;;  %v12578_v58 = vrot.slane %v9690_v33, %v12490_v1  ;;  %v12581_v60 = vrot.slane %v9690_v33, %v12487_v0  ;;  %17636 = vst [vmem:[#allocation76_spill] sm:$0xff] %v12590_v54  ;;  %17646 = vst [vmem:[#allocation86_spill] sm:$0xff] %v12642_v52 }
 0x1f5   : > { %9939 = vmatpush3.msra.mxu0 %v4276_v7  ;;  %10334 = vmatprep.subr.mxu1 %v4308_v28  ;;  %17637 = vst [vmem:[#allocation77_spill] sm:$0xff] %v12595_v42  ;;  %v12598_v40 = vrot.slane %v9694_v11, %v12490_v1  ;;  %v12601_v63 = vrot.slane %v9694_v11, %v12487_v0 }
 0x1f6   : > { %10335 = vmatpush3.msra.mxu1 %v4308_v28  ;;  %17633 = vst [vmem:[#allocation73_spill] sm:$0xff] %v12578_v58  ;;  %v12584_v28 = vrot.slane %v9692_v19, %v12490_v1  ;;  %v12622_v45 = vadd.f32 %v12543_v35, %v2983_v26  ;;  %v2985_v1 = vmul.f32 %v12540_v39, %v12518_v13 }
 0x1f7   : > { %17638 = vst [vmem:[#allocation78_spill] sm:$0xff] %v12598_v40  ;;  %17639 = vst [vmem:[#allocation79_spill] sm:$0xff] %v12601_v63  ;;  %v12654_v13 = vrot.slane %v9694_v11, %v12499_v2 }
 0x1f8   : > { %17634 = vst [vmem:[#allocation74_spill] sm:$0xff] %v12584_v28 }
 0x1f9   : > { %17649 = vst [vmem:[#allocation89_spill] sm:$0xff] %v12654_v13 }
 0x23f   : > { %v2560_v7 = vpop.f32.mrf.mxu0 }
 0x240   : > { %v2712_v20 = vmax.f32 %v2560_v7, 0.0  ;;  %v12614_v7 = vrot.slane %v12606_v53, %v12487_v0  ;;  %v12627_v0 = vrot.slane %v2736_v17, %v12499_v2  ;;  %v12638_v17 = vrot.slane %v9690_v33, %v12499_v2 }
 0x241   : > { %v10294_v12 = vpop.f32.mrf.mxu1  ;;  %v2562_v31 = vpop.f32.mrf.mxu0  ;;  %v12651_v33 = vrot.slane %v9693_v30, %v12499_v2 }
 0x242   : > { %17641 = vst [vmem:[#allocation81_spill] sm:$0xff] %v12614_v7  ;;  %v2795_v34 = vrot.slane %v2712_v20, 7  ;;  %v2717_v62 = vmax.f32 %v10294_v12, 0.0  ;;  %v2713_v25 = vmax.f32 %v2562_v31, 0.0  ;;  %17643 = vst [vmem:[#allocation83_spill] sm:$0xff] %v12627_v0 }
 0x243   : > { %v2673_v44 = vpop.f32.mrf.mxu1  ;;  %v2566_v46 = vpop.f32.mrf.mxu0  ;;  %17645 = vst [vmem:[#allocation85_spill] sm:$0xff] %v12638_v17  ;;  %17648 = vst [vmem:[#allocation88_spill] sm:$0xff] %v12651_v33 }
 0x244   : > { %2867 = vst [vmem:[#allocation2 + $0x18] sm:$0xfe] %v2795_v34  ;;  %v2796_v12 = vrot.slane %v2713_v25, 7  ;;  %v2714_v31 = vmax.f32 %v2673_v44, 0.0  ;;  %v2715_v20 = vmax.f32 %v2566_v46, 0.0  ;;  %v2802_v4 = vrot.slane %v2717_v62, 7 }
 0x245   : > { %v10297_v26 = vpop.f32.mrf.mxu1  ;;  %v2568_v6 = vpop.f32.mrf.mxu0  ;;  %v12645_v62 = vadd.f32 %v12627_v0, %v2985_v1 }
 0x246   : > { %2868 = vst [vmem:[#allocation2 + $0x50] sm:$0xfe] %v2796_v12  ;;  %v2797_v44 = vrot.slane %v2714_v31, 7  ;;  %v2798_v25 = vrot.slane %v2715_v20, 7  ;;  %v2723_v46 = vmax.f32 %v10297_v26, 0.0  ;;  %v2716_v16 = vmax.f32 %v2568_v6, 0.0 }
 0x247   : > { %v2683_v14 = vpop.f32.mrf.mxu1  ;;  %v2572_v8 = vpop.f32.mrf.mxu0 }
 0x248   : > { %v12657_v23 = vsel %vm2794_vm2, %v2797_v44, %v2802_v4  ;;  %2869 = vst [vmem:[#allocation2 + $0x68] sm:$0xfe] %v2797_v44  ;;  %v12660_v6 = vsel %vm2794_vm2, %v2795_v34, %v2798_v25  ;;  %v2800_v31 = vrot.slane %v2716_v16, 7  ;;  %v12665_v19 = vrot.slane %v2723_v46, 7 }
 0x249   : > { %17650 = vst [vmem:[#allocation90_spill] sm:$0xff] %v12660_v6  ;;  %2872 = vst [vmem:[#allocation2 + $0x80] sm:$0xff] %v12657_v23  ;;  %v2720_v30 = vmax.f32 %v2683_v14, 0.0  ;;  %v2718_v20 = vmax.f32 %v2572_v8, 0.0  ;;  %v10300_v11 = vpop.f32.mrf.mxu1  ;;  %v2574_v26 = vpop.f32.mrf.mxu0  ;;  %v12668_v59 = vrot.slane %v12660_v6, 2  ;;  %v3853_v1 = vsel %vm2918_vm5, %v12660_v6, 0.0 }
 0x24a   : > { %2870 = vst [vmem:[#allocation2 + $0x30] sm:$0xff] %v12660_v6  ;;  %v12671_v34 = vsel %vm2794_vm2, %v2796_v12, %v2800_v31  ;;  %v2729_v16 = vmax.f32 %v10300_v11, 0.0  ;;  %v2719_v44 = vmax.f32 %v2574_v26, 0.0  ;;  %v12687_v11 = vmul.f32 %v12533_v61, %v12660_v6 }
 0x24b   : > { %v12676_v35 = vld [vmem:[#allocation2 + $0x18] sm:$0xff]  ;;  %2871 = vst [vmem:[#allocation2 + $0x48] sm:$0xff] %v12671_v34  ;;  %v2808_v8 = vrot.slane %v2720_v30, 7  ;;  %v2693_v47 = vpop.f32.mrf.mxu1  ;;  %v2578_v41 = vpop.f32.mrf.mxu0  ;;  %v12683_v12 = vmul.f32 %v12550_v55, %v12671_v34  ;;  %v12691_v26 = vrot.slane %v12606_v53, %v12499_v2  ;;  %v12710_v2 = vrot.slane %v2718_v20, 7 }
 0x24c   : > { %v3541_v46 = vld [vmem:[#allocation2 + $0x18] sm:$0xfe]  ;;  %v12695_v18 = vmul.f32 %v12529_v49, %v12676_v35  ;;  %v12713_v30 = vmul.f32 %v12590_v54, %v3853_v1  ;;  %v2826_v13 = vrot.slane %v2729_v16, 7  ;;  %v12740_v16 = vmul.f32 %v12619_v10, %v12657_v23 }
 0x24d   : > { %v12678_v14 = vld [vmem:[#allocation2 + $0x18] sm:$0xfc]  ;;  %17651 = vst [vmem:[#allocation91_spill] sm:$0xff] %v12691_v26  ;;  %v12699_v9 = vmul.f32 %v12533_v61, %v3541_v46  ;;  %v12703_v0 = vld [vmem:[#allocation2 + $0x50] sm:$0xff]  ;;  %v12708_v53 = vsel %vm2794_vm2, %v2802_v4, %v2808_v8  ;;  %v10303_v49 = vpop.f32.mrf.mxu1  ;;  %v2580_v26 = vpop.f32.mrf.mxu0  ;;  %v12717_v46 = vmul.f32 %v12642_v52, %v12657_v23  ;;  %v12722_v4 = vrot.slane %v2719_v44, 7 }
 0x24e   : > { %17652 = vst [vmem:[#allocation92_spill] sm:$0xff] %v12695_v18  ;;  %4826 = vst [vmem:[#allocation2 + $0x18] sm:$0xff] %v12439_v50  ;;  %v3542_v6 = vld [vmem:[#allocation2 + $0x50] sm:$0xfe]  ;;  %v12732_v1 = vsel %vm2794_vm2, %v2808_v8, %v12665_v19  ;;  %v12736_v33 = vsel %vm2794_vm2, %v2798_v25, %v12710_v2  ;;  %v2726_v61 = vmax.f32 %v2693_v47, 0.0  ;;  %v17659_v25 = vrot.slane %v12695_v18, 1 }
 0x24f   : > { %v12705_v48 = vld [vmem:[#allocation2 + $0x50] sm:$0xfc]  ;;  %17653 = vst [vmem:[#allocation93_spill] sm:$0xff] %v12713_v30  ;;  %17654 = vst [vmem:[#allocation94_spill] sm:$0xff] %v12717_v46  ;;  %v12724_v20 = vld [vmem:[#allocation2 + $0x68] sm:$0xff]  ;;  %v2584_v54 = vpop.f32.mrf.mxu0  ;;  %v12748_v8 = vsel %vm2794_vm2, %v2800_v31, %v12722_v4  ;;  %v2703_v46 = vpop.f32.mrf.mxu1  ;;  %v17660_v47 = vrot.slane %v12571_v32, 1  ;;  %v12757_v15 = vmul.f32 %v12510_v3, %v12703_v0  ;;  %v12760_v36 = vmul.f32 %v12550_v55, %v3542_v6 }
 0x250   : > { %4827 = vst [vmem:[#allocation2 + $0x50] sm:$0xff] %v12439_v50  ;;  %v12726_v17 = vld [vmem:[#allocation2 + $0x68] sm:$0xfe]  ;;  %17657 = vst [vmem:[#allocation97_spill] sm:$0xff] %v12736_v33  ;;  %v2947_v44 = vsel %vm2919_vm13, %v12724_v20, 0.0  ;;  %v2722_v30 = vmax.f32 %v2580_v26, 0.0  ;;  %v12767_v32 = vmul.f32 %v12601_v63, %v12748_v8 }
 0x251   : > { %17655 = vst [vmem:[#allocation95_spill] sm:$0xff] %v12726_v17  ;;  %v12728_v5 = vld [vmem:[#allocation2 + $0x68] sm:$0xfc]  ;;  %17658 = vst [vmem:[#allocation98_spill] sm:$0xff] %v12740_v16  ;;  %v3128_v52 = vsel %vm3125_vm0, %v17660_v47, %v17659_v25  ;;  %v2820_v17 = vrot.slane %v2726_v61, 7  ;;  %v2735_v16 = vmax.f32 %v10303_v49, 0.0  ;;  %v2586_v57 = vpop.f32.mrf.mxu0  ;;  %v12763_v31 = vmul.f32 %v12540_v39, %v2947_v44 }
 0x252   : > { %17656 = vst [vmem:[#allocation96_spill] sm:$0xff] %v12728_v5  ;;  %4828 = vst [vmem:[#allocation2 + $0x68] sm:$0xff] %v12439_v50  ;;  %v2721_v5 = vmax.f32 %v2578_v41, 0.0  ;;  %v2732_v25 = vmax.f32 %v2703_v46, 0.0  ;;  %v12771_v18 = vadd.f32 %v3128_v52, %v12622_v45  ;;  %v2724_v44 = vmax.f32 %v2584_v54, 0.0 }
 0x253   : > { %v2827_v61 = vsel %vm2794_vm2, %v2820_v17, %v2826_v13  ;;  %v2838_v49 = vrot.slane %v2735_v16, 7  ;;  %v2590_v47 = vpop.f32.mrf.mxu0  ;;  %v12775_v6 = vsel %vm2794_vm2, %v12665_v19, %v2820_v17  ;;  %v17662_v26 = vrot.slane %v12676_v35, 2 }
 0x254   : > { %v2810_v41 = vrot.slane %v2721_v5, 7  ;;  %17661 = vst [vmem:[#allocation99_spill] sm:$0xff] %v12775_v6  ;;  %2884 = vst [vmem:[#allocation2 + $0xd0] sm:$0xff] %v2827_v61  ;;  %v2725_v5 = vmax.f32 %v2586_v57, 0.0  ;;  %v17663_v39 = vrot.slane %v12463_v38, 2  ;;  %v2832_v46 = vrot.slane %v2732_v25, 7 }
 0x255   : > { %2893 = vst [vmem:[#allocation2 + $0xa8] sm:$0x1] %v2838_v49  ;;  %v2727_v16 = vmax.f32 %v2590_v47, 0.0  ;;  %v2592_v3 = vpop.f32.mrf.mxu0  ;;  %v17240_v45 = vrot.slane %v12757_v15, 1  ;;  %v17241_v52 = vrot.slane %v12703_v0, 2  ;;  %v12786_v17 = vrot.slane %v2722_v30, 7 }
 0x256   : > { %v12782_v55 = vsel %vm3282_vm3, %v17663_v39, %v17662_v26  ;;  %v2816_v19 = vrot.slane %v2724_v44, 7  ;;  %v2818_v54 = vrot.slane %v2725_v5, 7  ;;  %v2728_v57 = vmax.f32 %v2592_v3, 0.0 }
 0x257   : > { %v2833_v61 = vsel %vm2794_vm2, %v2826_v13, %v2832_v46  ;;  %v2839_v38 = vsel %vm2794_vm2, %v2832_v46, %v2838_v49  ;;  %v2822_v6 = vrot.slane %v2727_v16, 7  ;;  %v2596_v39 = vpop.f32.mrf.mxu0  ;;  %v17664_v25 = vrot.slane %v12523_v37, 1 }
 0x258   : > { %2887 = vst [vmem:[#allocation2 + $0x78] sm:$0xff] %v2833_v61  ;;  %2890 = vst [vmem:[#allocation2 + $0x10] sm:$0xff] %v2839_v38  ;;  %v2817_v30 = vsel %vm2794_vm2, %v2810_v41, %v2816_v19  ;;  %v2819_v44 = vsel %vm2794_vm2, %v12786_v17, %v2818_v54  ;;  %v2824_v3 = vrot.slane %v2728_v57, 7  ;;  %v2730_v5 = vmax.f32 %v2596_v39, 0.0 }
 0x259   : > { %v3131_v47 = vsel %vm3125_vm0, %v17664_v25, %v17240_v45  ;;  %v12800_v13 = vsel %vm2794_vm2, %v12710_v2, %v2810_v41  ;;  %2879 = vst [vmem:[#allocation2 + $0xb8] sm:$0xff] %v2817_v30  ;;  %2880 = vst [vmem:[#allocation2 + $0x40] sm:$0xff] %v2819_v44  ;;  %v2823_v49 = vsel %vm2794_vm2, %v2816_v19, %v2822_v6  ;;  %v2598_v37 = vpop.f32.mrf.mxu0  ;;  %v17666_v46 = vrot.slane %v12431_v21, 2 }
 0x25a   : > { %17665 = vst [vmem:[#allocation100_spill] sm:$0xff] %v12800_v13  ;;  %v3202_v26 = vadd.f32 %v3131_v47, %v12574_v22  ;;  %2882 = vst [vmem:[#allocation2 + $0x60] sm:$0xff] %v2823_v49  ;;  %v2825_v57 = vsel %vm2794_vm2, %v2818_v54, %v2824_v3  ;;  %v2828_v61 = vrot.slane %v2730_v5, 7  ;;  %v2731_v38 = vmax.f32 %v2598_v37, 0.0  ;;  %v3944_v54 = vld [vmem:[#allocation2 + $0x48] sm:$0xfe] }
 0x25b   : > { %v3288_v16 = vsel %vm3282_vm3, %v17666_v46, %v17241_v52  ;;  %v12811_v2 = vrot.slane %v12671_v34, 2  ;;  %2883 = vst [vmem:[#allocation2 + $0x38] sm:$0xff] %v2825_v57  ;;  %v2602_v41 = vpop.f32.mrf.mxu0  ;;  %v12814_v19 = vrot.slane %v12748_v8, 2  ;;  %v3452_v21 = vsel %vm2918_vm5, %v12703_v0, 0.0 }
 0x25c   : > { %v3359_v22 = vsel %vm3231_vm10, %v3288_v16, 0.0  ;;  %v3622_v39 = vrot.slane %v12760_v36, 1  ;;  %v2829_v25 = vsel %vm2794_vm2, %v2822_v6, %v2828_v61  ;;  %v2830_v47 = vrot.slane %v2731_v38, 7  ;;  %v4121_v36 = vld [vmem:[#allocation2 + $0x48] sm:$0xfc] }
 0x25d   : > { %v2733_v30 = vmax.f32 %v2602_v41, 0.0  ;;  %v3401_v44 = vmul.f32 %v12562_v24, %v3359_v22  ;;  %2885 = vst [vmem:[#allocation2 + $0x20] sm:$0xff] %v2829_v25  ;;  %v2604_v5 = vpop.f32.mrf.mxu0  ;;  %v3494_v49 = vmul.f32 %v12581_v60, %v3452_v21  ;;  %v17244_v37 = vrot.slane %v12683_v12, 1 }
 0x25e   : > { %v3735_v46 = vrot.slane %v12705_v48, 2  ;;  %v3854_v16 = vsel %vm2918_vm5, %v12671_v34, 0.0  ;;  %v2831_v57 = vsel %vm2794_vm2, %v2824_v3, %v2830_v47  ;;  %v2734_v38 = vmax.f32 %v2604_v5, 0.0 }
 0x25f   : > { %v2834_v6 = vrot.slane %v2733_v30, 7  ;;  %v3425_v41 = vadd.f32 %v3401_v44, %v3202_v26  ;;  %2886 = vst [vmem:[#allocation2 + $0x98] sm:$0xff] %v2831_v57  ;;  %v3624_v22 = vsel %vm3125_vm0, %v3622_v39, %v17244_v37  ;;  %v3896_v48 = vmul.f32 %v12595_v42, %v3854_v16  ;;  %v12859_v57 = vld [vmem:[#allocation2 + $0xa8] sm:$0xff] }
 0x260   : > { %v3736_v21 = vsel %vm3282_vm3, %v3735_v46, %v12811_v2  ;;  %v3968_v25 = vmul.f32 %v12601_v63, %v3944_v54  ;;  %v2836_v52 = vrot.slane %v2734_v38, 7  ;;  %v17243_v39 = vrot.slane %v12767_v32, 1  ;;  %v3943_v46 = vld [vmem:[#allocation2 + $0x30] sm:$0xfe]  ;;  %17667 = vst [vmem:[#allocation101_spill] sm:$0xff] %v12859_v57 }
 0x261   : > { %v2835_v45 = vsel %vm2794_vm2, %v2828_v61, %v2834_v6  ;;  %2891 = vst [vmem:[#allocation2 + $0xe0] sm:$0x1] %v2834_v6  ;;  %v3518_v3 = vadd.f32 %v3494_v49, %v3425_v41  ;;  %v3761_v26 = vsel %vm3231_vm10, %v3736_v21, 0.0  ;;  %v4137_v5 = vrot.slane %v4121_v36, 2  ;;  %v12863_v6 = vld [vmem:[#allocation2 + $0xa8] sm:$0x3] }
 0x262   : > { %2888 = vst [vmem:[#allocation2 + $0xc8] sm:$0xff] %v2835_v45  ;;  %v3803_v30 = vmul.f32 %v12587_v56, %v3761_v26  ;;  %v4024_v44 = vrot.slane %v3968_v25, 1  ;;  %v2837_v16 = vsel %vm2794_vm2, %v2830_v47, %v2836_v52  ;;  %2892 = vst [vmem:[#allocation2 + $0x70] sm:$0x1] %v2836_v52  ;;  %v3358_v61 = vsel %vm3231_vm10, %v12782_v55, 0.0 }
 0x263   : > { %v3695_v54 = vadd.f32 %v3624_v22, %v3518_v3  ;;  %v3451_v49 = vsel %vm2918_vm5, %v12676_v35, 0.0  ;;  %2889 = vst [vmem:[#allocation2 + $0x8] sm:$0xff] %v2837_v16  ;;  %v4138_v36 = vsel %vm3282_vm3, %v4137_v5, %v12814_v19  ;;  %v12856_v47 = vrot.slane %v12736_v33, 2  ;;  %v12861_v55 = vld [vmem:[#allocation2 + $0xa8] sm:$0x1]  ;;  %17669 = vst [vmem:[#allocation103_spill] sm:$0xff] %v12863_v6 }
 0x264   : > { %v4026_v45 = vsel %vm3125_vm0, %v4024_v44, %v17243_v39  ;;  %v3400_v52 = vmul.f32 %v12559_v43, %v3358_v61  ;;  %17668 = vst [vmem:[#allocation102_spill] sm:$0xff] %v12861_v55  ;;  %v4120_v38 = vld [vmem:[#allocation2 + $0x30] sm:$0xfc]  ;;  %v4163_v22 = vsel %vm3231_vm10, %v4138_v36, 0.0  ;;  %v17242_v21 = vrot.slane %v12687_v11, 1  ;;  %4852 = vst [vmem:[#allocation2 + $0xa8] sm:$0xff] %v12439_v50 }
 0x265   : > { %v3827_v41 = vadd.f32 %v3803_v30, %v3695_v54  ;;  %v17670_v25 = vrot.slane %v12678_v14, 2  ;;  %v3493_v44 = vmul.f32 %v12578_v58, %v3451_v49  ;;  %v3967_v30 = vmul.f32 %v12598_v40, %v3943_v46  ;;  %v12878_v16 = vld [vmem:[#allocation2 + $0xa0] sm:$0x1]  ;;  %v17685_v6 = vld [vmem:[#allocation85_spill] sm:$0xff]  ;;  %v17686_v55 = vld [vmem:[#allocation94_spill] sm:$0xff] }
 0x266   : > { %v3424_v26 = vadd.f32 %v3400_v52, %v12771_v18  ;;  %17671 = vst [vmem:[#allocation104_spill] sm:$0xff] %v12878_v16  ;;  %v12880_v54 = vld [vmem:[#allocation2 + $0xa0] sm:$0x3]  ;;  %v4205_v14 = vmul.f32 %v12614_v7, %v4163_v22  ;;  %v17673_v36 = vrot.slane %v12699_v9, 1  ;;  %v12890_v49 = vmul.f32 %v12598_v40, %v12736_v33 }
 0x267   : > { %v3734_v3 = vsel %vm3282_vm3, %v17670_v25, %v12668_v59  ;;  %17672 = vst [vmem:[#allocation105_spill] sm:$0xff] %v12880_v54  ;;  %v3920_v61 = vadd.f32 %v3896_v48, %v3827_v41  ;;  %4855 = vst [vmem:[#allocation2 + $0xa0] sm:$0x3] %v12439_v50  ;;  %v4135_v25 = vrot.slane %v4120_v38, 2  ;;  %v12896_v48 = vmul.f32 %v12619_v10, %v12724_v20  ;;  %v4122_v54 = vld [vmem:[#allocation2 + $0x80] sm:$0xfc] }
 0x268   : > { %v3760_v5 = vsel %vm3231_vm10, %v3734_v3, 0.0  ;;  %v3621_v18 = vsel %vm3125_vm0, %v17673_v36, %v17242_v21  ;;  %17674 = vst [vmem:[#allocation106_spill] sm:$0xff] %v12890_v49  ;;  %v3517_v46 = vadd.f32 %v3493_v44, %v3424_v26  ;;  %v4021_v22 = vrot.slane %v3967_v30, 1 }
 0x269   : > { %v3802_v52 = vmul.f32 %v12584_v28, %v3760_v5  ;;  %v4097_v41 = vadd.f32 %v4026_v45, %v3920_v61  ;;  %v3290_v9 = vrot.slane %v12724_v20, 2  ;;  %v3296_v3 = vrot.slane %v12657_v23, 2 }
 0x26a   : > { %v3694_v36 = vadd.f32 %v3621_v18, %v3517_v46  ;;  %v4136_v21 = vsel %vm3282_vm3, %v4135_v25, %v12856_v47  ;;  %v3133_v39 = vrot.slane %v12896_v48, 1  ;;  %v3302_v26 = vrot.slane %v12708_v53, 2 }
 0x26b   : > { %v12907_v38 = vsel %vm2794_vm2, %v12722_v4, %v12786_v17  ;;  %v4229_v44 = vadd.f32 %v4205_v14, %v4097_v41  ;;  %v17245_v45 = vrot.slane %v12890_v49, 1  ;;  %v17675_v5 = vrot.slane %v12483_v29, 2  ;;  %v17677_v29 = vld [vmem:[#allocation93_spill] sm:$0xff] }
 0x26c   : > { %v3826_v61 = vadd.f32 %v3802_v52, %v3694_v36  ;;  %v4162_v18 = vsel %vm3231_vm10, %v4136_v21, 0.0  ;;  %v17676_v46 = vrot.slane %v12634_v27, 1  ;;  %v3297_v48 = vsel %vm3282_vm3, %v3290_v9, %v3296_v3 }
 0x26d   : > { %v3291_v30 = vsel %vm3282_vm3, %v17675_v5, %v3290_v9  ;;  %v4253_v37 = vmax.f32 %v4229_v44, 0.0  ;;  %v3303_v17 = vsel %vm3282_vm3, %v3296_v3, %v3302_v26  ;;  %v17248_v14 = vrot.slane %v12732_v1, 2  ;;  %v17679_v9 = vld [vmem:[#allocation80_spill] sm:$0xff] }
 0x26e   : > { %v3134_v25 = vsel %vm3125_vm0, %v17676_v46, %v3133_v39  ;;  %v3919_v41 = vadd.f32 %v17677_v29, %v3826_v61  ;;  %v4023_v52 = vsel %vm3125_vm0, %v4021_v22, %v17245_v45  ;;  %v3360_v27 = vsel %vm3231_vm10, %v3291_v30, 0.0  ;;  %v17682_v46 = vld [vmem:[#allocation84_spill] sm:$0xff]  ;;  %v3945_v22 = vld [vmem:[#allocation2 + $0x80] sm:$0xfe] }
 0x26f   : > { %v3203_v4 = vadd.f32 %v3134_v25, %v12645_v62  ;;  %v3363_v36 = vsel %vm3232_vm12, %v3297_v48, 0.0  ;;  %4388 = vmatprep.mubr.f32.mxu0 %v4253_v37  ;;  %v4204_v44 = vmul.f32 %v17679_v9, %v4162_v18  ;;  %v12933_v5 = vsel %vm17332_vm1, %v3303_v17, 0.0  ;;  %v17683_v18 = vld [vmem:[#allocation95_spill] sm:$0xff]  ;;  %v17684_v48 = vld [vmem:[#allocation86_spill] sm:$0xff] }
 0x270   : > { %17681 = vst [vmem:[#allocation93_spill] sm:$0xff] %v12933_v5  ;;  %v3402_v25 = vmul.f32 %v17682_v46, %v3360_v27  ;;  %v3453_v61 = vsel %vm2918_vm5, %v12724_v20, 0.0  ;;  %v4096_v29 = vadd.f32 %v4023_v52, %v3919_v41  ;;  %v12942_v30 = vsel %vm3282_vm3, %v3302_v26, %v17248_v14  ;;  %v17687_v5 = vld [vmem:[#allocation96_spill] sm:$0xff] }
 0x271   : > { %v3405_v37 = vmul.f32 %v17682_v46, %v3363_v36  ;;  %v3567_v45 = vmul.f32 %v17684_v48, %v17683_v18  ;;  %v3495_v27 = vmul.f32 %v17685_v6, %v3453_v61  ;;  %v3626_v57 = vrot.slane %v17686_v55, 1  ;;  %v17688_v46 = vld [vmem:[#allocation89_spill] sm:$0xff]  ;;  %v17689_v61 = vld [vmem:[#allocation87_spill] sm:$0xff] }
 0x272   : > { %v3426_v16 = vadd.f32 %v3402_v25, %v3203_v4  ;;  %v3737_v20 = vrot.slane %v17687_v5, 2  ;;  %v4228_v49 = vadd.f32 %v4204_v44, %v4096_v29  ;;  %v3765_v52 = vsel %vm3232_vm12, %v3303_v17, 0.0 }
 0x273   : > { %v3625_v41 = vrot.slane %v3567_v45, 1  ;;  %v3855_v36 = vsel %vm2918_vm5, %v12657_v23, 0.0  ;;  %v3969_v4 = vmul.f32 %v17688_v46, %v3945_v22  ;;  %v3972_v25 = vmul.f32 %v17688_v46, %v12708_v53 }
 0x274   : > { %v3519_v14 = vadd.f32 %v3495_v27, %v3426_v16  ;;  %v3738_v18 = vsel %vm3282_vm3, %v3737_v20, %v3296_v3  ;;  %v4252_v55 = vmax.f32 %v4228_v49, 0.0  ;;  %v4139_v44 = vrot.slane %v4122_v54, 2  ;;  %v17690_v3 = vld [vmem:[#allocation83_spill] sm:$0xff]  ;;  %v17691_v27 = vld [vmem:[#allocation98_spill] sm:$0xff] }
 0x275   : > { %v3627_v5 = vsel %vm3125_vm0, %v3625_v41, %v3626_v57  ;;  %v3762_v45 = vsel %vm3231_vm10, %v3738_v18, 0.0  ;;  %v4027_v50 = vrot.slane %v3969_v4, 1  ;;  %v4028_v10 = vrot.slane %v3972_v25, 1 }
 0x276   : > { %v3696_v17 = vadd.f32 %v3627_v5, %v3519_v14  ;;  %v3804_v29 = vmul.f32 %v17689_v61, %v3762_v45  ;;  %4389 = vmatmul.mubr.f32.vlgmr.msra.gmra.mxu0 %v4252_v55  ;;  %v4140_v16 = vsel %vm3282_vm3, %v4139_v44, %v3302_v26  ;;  %v3028_v22 = vadd.f32 %v17690_v3, %v12763_v31  ;;  %v17692_v14 = vld [vmem:[#allocation88_spill] sm:$0xff] }
 0x277   : > { %v17254_v20 = vrot.slane %v17691_v27, 1  ;;  %v3456_v49 = vsel %vm2919_vm13, %v12657_v23, 0.0  ;;  %v3807_v41 = vmul.f32 %v17689_v61, %v3765_v52  ;;  %v3897_v18 = vmul.f32 %v17692_v14, %v3855_v36 }
 0x278   : > { %v3828_v54 = vadd.f32 %v3804_v29, %v3696_v17  ;;  %v4164_v4 = vsel %vm3231_vm10, %v4140_v16, 0.0  ;;  %v4029_v25 = vsel %vm3125_vm0, %v4027_v50, %v4028_v10  ;;  %v12980_v26 = vmul.f32 %v17684_v48, %v12708_v53  ;;  %v17693_v50 = vld [vmem:[#allocation91_spill] sm:$0xff] }
 0x279   : > { %v3140_v31 = vsel %vm3125_vm0, %v3133_v39, %v17254_v20  ;;  %v3858_v52 = vsel %vm2919_vm13, %v12708_v53, 0.0  ;;  %v3498_v36 = vmul.f32 %v17685_v6, %v3456_v49  ;;  %v12988_v45 = vmul.f32 %v17688_v46, %v12732_v1  ;;  %v17695_v20 = vld [vmem:[#allocation62_spill] sm:$0xff] }
 0x27a   : > { %v3921_v55 = vadd.f32 %v3897_v18, %v3828_v54  ;;  %v3206_v5 = vadd.f32 %v3140_v31, %v3028_v22  ;;  %v4206_v44 = vmul.f32 %v17693_v50, %v4164_v4  ;;  %v4167_v17 = vsel %vm3232_vm12, %v12942_v30, 0.0 }
 0x27b   : > { %v2946_v29 = vsel %vm2919_vm13, %v12703_v0, 0.0  ;;  %v3900_v49 = vmul.f32 %v17692_v14, %v3858_v52  ;;  %v2952_v18 = vsel %vm2921_vm4, %v12748_v8, 0.0  ;;  %v4209_v31 = vmul.f32 %v17693_v50, %v4167_v17 }
 0x27c   : > { %v4098_v16 = vadd.f32 %v4029_v25, %v3921_v55  ;;  %v3429_v22 = vadd.f32 %v3405_v37, %v3206_v5  ;;  %v2987_v39 = vmul.f32 %v17695_v20, %v2946_v29  ;;  %v13007_v61 = vmul.f32 %v17696_v51, %v12671_v34  ;;  %v17698_v5 = vld [vmem:[#allocation69_spill] sm:$0xff] }
 0x27d   : > { %v17697_v37 = vrot.slane %v12980_v26, 1  ;;  %v13014_v52 = vmul.f32 %v17696_v51, %v12748_v8  ;;  %v2993_v55 = vmul.f32 %v17695_v20, %v2952_v18  ;;  %v13020_v29 = vmul.f32 %v17696_v51, %v12907_v38 }
 0x27e   : > { %v4230_v46 = vadd.f32 %v4206_v44, %v4098_v16  ;;  %v3522_v6 = vadd.f32 %v3498_v36, %v3429_v22  ;;  %v3027_v17 = vadd.f32 %v17698_v5, %v2987_v39  ;;  %v17259_v4 = vrot.slane %v13007_v61, 1 }
 0x27f   : > { %v3633_v25 = vsel %vm3125_vm0, %v3626_v57, %v17697_v37  ;;  %v17699_v57 = vrot.slane %v12703_v0, 2  ;;  %v17700_v18 = vrot.slane %v12757_v15, 1  ;;  %v17260_v37 = vrot.slane %v13020_v29, 1 }
 0x280   : > { %v4254_v44 = vmax.f32 %v4230_v46, 0.0  ;;  %v3699_v36 = vadd.f32 %v3633_v25, %v3522_v6  ;;  %v3301_v46 = vsel %vm3282_vm3, %v12811_v2, %v12814_v19  ;;  %v17261_v6 = vrot.slane %v12907_v38, 2 }
 0x281   : > { %v3295_v22 = vsel %vm3282_vm3, %v17699_v57, %v12811_v2  ;;  %v3138_v39 = vsel %vm3125_vm0, %v17700_v18, %v17259_v4  ;;  %v3365_v57 = vsel %vm17332_vm1, %v3301_v46, 0.0  ;;  %v17701_v15 = vrot.slane %v12988_v45, 1 }
 0x282   : > { %10336 = vmatprep.mubr.f32.mxu1 %v4254_v44  ;;  %v3831_v25 = vadd.f32 %v3807_v41, %v3699_v36  ;;  %v3205_v16 = vadd.f32 %v3138_v39, %v3027_v17  ;;  %v3362_v0 = vsel %vm3232_vm12, %v3295_v22, 0.0  ;;  %v17702_v4 = vrot.slane %v13014_v52, 1 }
 0x283   : > { %v4035_v18 = vsel %vm3125_vm0, %v4028_v10, %v17701_v15  ;;  %v3307_v41 = vsel %vm3282_vm3, %v12814_v19, %v17261_v6  ;;  %v3404_v17 = vmul.f32 %v12562_v24, %v3362_v0  ;;  %v3033_v36 = vadd.f32 %v17698_v5, %v2993_v55  ;;  %v17703_v19 = vld [vmem:[#allocation70_spill] sm:$0xff] }
 0x284   : > { %v3150_v2 = vsel %vm3125_vm0, %v17702_v4, %v17260_v37  ;;  %v3924_v44 = vadd.f32 %v3900_v49, %v3831_v25  ;;  %v3368_v22 = vsel %vm17331_vm6, %v3307_v41, 0.0  ;;  %v3455_v10 = vsel %vm2919_vm13, %v12671_v34, 0.0 }
 0x285   : > { %v13062_v39 = vmul.f32 %v12562_v24, %v3365_v57  ;;  %v3428_v4 = vadd.f32 %v3404_v17, %v3205_v16  ;;  %v3497_v15 = vmul.f32 %v12581_v60, %v3455_v10  ;;  %v13067_v37 = vmul.f32 %v17703_v19, %v12748_v8 }
 0x286   : > { %v4101_v49 = vadd.f32 %v4035_v18, %v3924_v44  ;;  %v3211_v25 = vadd.f32 %v3150_v2, %v3033_v36  ;;  %v3764_v55 = vsel %vm3232_vm12, %v3301_v46, 0.0  ;;  %v3857_v0 = vsel %vm2919_vm13, %v12748_v8, 0.0 }
 0x287   : > { %17704 = vst [vmem:[#allocation95_spill] sm:$0xff] %v13067_v37  ;;  %v3410_v6 = vmul.f32 %v12562_v24, %v3368_v22  ;;  %v3521_v57 = vadd.f32 %v3497_v15, %v3428_v4  ;;  %v17264_v16 = vrot.slane %v13067_v37, 1  ;;  %v13078_v17 = vsel %vm17332_vm1, %v3307_v41, 0.0 }
 0x288   : > { %17705 = vst [vmem:[#allocation86_spill] sm:$0xff] %v13078_v17  ;;  %v4233_v10 = vadd.f32 %v4209_v31, %v4101_v49  ;;  %v3806_v18 = vmul.f32 %v12587_v56, %v3764_v55  ;;  %v3899_v2 = vmul.f32 %v12595_v42, %v3857_v0  ;;  %v13084_v46 = vmul.f32 %v12601_v63, %v12907_v38  ;;  %v17708_v0 = vld [vmem:[#allocation72_spill] sm:$0xff] }
 0x289   : > { %v17707_v44 = vrot.slane %v12683_v12, 1  ;;  %v4166_v22 = vsel %vm3232_vm12, %v3307_v41, 0.0  ;;  %v2945_v31 = vsel %vm2919_vm13, %v12676_v35, 0.0  ;;  %v2951_v4 = vsel %vm2921_vm4, %v12736_v33, 0.0 }
 0x28a   : > { %17706 = vst [vmem:[#allocation94_spill] sm:$0xff] %v13084_v46  ;;  %v4257_v15 = vmax.f32 %v4233_v10, 0.0  ;;  %v2986_v42 = vmul.f32 %v17708_v0, %v2945_v31  ;;  %v2992_v12 = vmul.f32 %v17708_v0, %v2951_v4  ;;  %v4208_v10 = vmul.f32 %v12614_v7, %v4166_v22 }
 0x28b   : > { %v3631_v36 = vsel %vm3125_vm0, %v17707_v44, %v17264_v16  ;;  %v17709_v44 = vld [vmem:[#allocation90_spill] sm:$0xff]  ;;  %v17710_v16 = vld [vmem:[#allocation65_spill] sm:$0xff]  ;;  %v17713_v4 = vrot.slane %v12676_v35, 2  ;;  %v17714_v0 = vrot.slane %v13084_v46, 1  ;;  %v17715_v17 = vrot.slane %v12767_v32, 1 }
 0x28c   : > { %v3698_v49 = vadd.f32 %v3631_v36, %v3521_v57  ;;  %v13104_v63 = vmul.f32 %v17710_v16, %v17709_v44  ;;  %v13108_v41 = vmul.f32 %v17710_v16, %v12736_v33  ;;  %v13112_v56 = vmul.f32 %v17710_v16, %v12800_v13  ;;  %10337 = vmatmul.mubr.f32.vlgmr.msra.gmra.mxu1 %v4257_v15  ;;  %v17712_v36 = vld [vmem:[#allocation68_spill] sm:$0xff] }
 0x28d   : > { %v3026_v31 = vadd.f32 %v17712_v36, %v2986_v42  ;;  %v3293_v55 = vsel %vm3282_vm3, %v17713_v4, %v12668_v59  ;;  %v4033_v37 = vsel %vm3125_vm0, %v17715_v17, %v17714_v0  ;;  %v3299_v42 = vsel %vm3282_vm3, %v12668_v59, %v12856_v47  ;;  %v17716_v17 = vld [vmem:[#allocation92_spill] sm:$0xff] }
 0x28e   : > { %17711 = vst [vmem:[#allocation96_spill] sm:$0xff] %v13112_v56  ;;  %v3830_v57 = vadd.f32 %v3806_v18, %v3698_v49  ;;  %v17274_v16 = vrot.slane %v13104_v63, 1  ;;  %v17275_v15 = vrot.slane %v13108_v41, 1  ;;  %v17273_v18 = vrot.slane %v13112_v56, 1 }
 0x28f   : > { %v3361_v49 = vsel %vm3232_vm12, %v3293_v55, 0.0  ;;  %v3032_v32 = vadd.f32 %v17712_v36, %v2992_v12  ;;  %v17717_v0 = vrot.slane %v17716_v17, 1  ;;  %v17718_v55 = vrot.slane %v12800_v13, 2 }
 0x290   : > { %v3923_v22 = vadd.f32 %v3899_v2, %v3830_v57  ;;  %v3148_v2 = vsel %vm3125_vm0, %v17275_v15, %v17273_v18  ;;  %v3403_v59 = vmul.f32 %v12559_v43, %v3361_v49  ;;  %v3364_v17 = vsel %vm17332_vm1, %v3299_v42, 0.0 }
 0x291   : > { %v3136_v4 = vsel %vm3125_vm0, %v17717_v0, %v17274_v16  ;;  %v3305_v12 = vsel %vm3282_vm3, %v12856_v47, %v17718_v55  ;;  %v13152_v46 = vadd.f32 %v3410_v6, %v3211_v25  ;;  %v3454_v18 = vsel %vm2919_vm13, %v17709_v44, 0.0 }
 0x292   : > { %v4100_v57 = vadd.f32 %v4033_v37, %v3923_v22  ;;  %v3204_v35 = vadd.f32 %v3136_v4, %v3026_v31  ;;  %v3367_v0 = vsel %vm17331_vm6, %v3305_v12, 0.0  ;;  %v17720_v37 = vld [vmem:[#allocation66_spill] sm:$0xff]  ;;  %v3210_v49 = vadd.f32 %v3148_v2, %v3032_v32  ;;  %v17724_v2 = vld [vmem:[#allocation76_spill] sm:$0xff] }
 0x293   : > { %17719 = vst [vmem:[#allocation83_spill] sm:$0xff] %v13152_v46  ;;  %v13161_v31 = vmul.f32 %v17720_v37, %v12736_v33  ;;  %v3496_v47 = vmul.f32 %v12578_v58, %v3454_v18  ;;  %v13165_v55 = vmul.f32 %v12559_v43, %v3364_v17  ;;  %v3763_v25 = vsel %vm3232_vm12, %v3299_v42, 0.0  ;;  %v13187_v17 = vld [vmem:[#allocation2 + $0x70] sm:$0xff] }
 0x294   : > { %v4232_v22 = vadd.f32 %v4208_v10, %v4100_v57  ;;  %v3427_v4 = vadd.f32 %v3403_v59, %v3204_v35  ;;  %v3856_v16 = vsel %vm2919_vm13, %v12736_v33, 0.0  ;;  %v3409_v46 = vmul.f32 %v12559_v43, %v3367_v0  ;;  %17726 = vst [vmem:[#allocation62_spill] sm:$0xff] %v13187_v17 }
 0x295   : > { %17721 = vst [vmem:[#allocation98_spill] sm:$0xff] %v13161_v31  ;;  %17722 = vst [vmem:[#allocation88_spill] sm:$0xff] %v13165_v55  ;;  %v17276_v6 = vrot.slane %v13161_v31, 1  ;;  %v3805_v35 = vmul.f32 %v12584_v28, %v3763_v25  ;;  %v17723_v18 = vrot.slane %v12687_v11, 1  ;;  %v3898_v59 = vmul.f32 %v17724_v2, %v3856_v16  ;;  %v13198_v25 = vld [vmem:[#allocation2 + $0x70] sm:$0x3] }
 0x296   : > { %v4256_v15 = vmax.f32 %v4232_v22, 0.0  ;;  %v3520_v10 = vadd.f32 %v3496_v47, %v3427_v4  ;;  %v13183_v42 = vmul.f32 %v12598_v40, %v12800_v13  ;;  %v4165_v57 = vsel %vm3232_vm12, %v3305_v12, 0.0  ;;  %v13196_v47 = vld [vmem:[#allocation2 + $0x70] sm:$0x1]  ;;  %17729 = vst [vmem:[#allocation69_spill] sm:$0xff] %v13198_v25 }
 0x297   : > { %v3629_v32 = vsel %vm3125_vm0, %v17723_v18, %v17276_v6  ;;  %v4207_v22 = vmul.f32 %v17679_v9, %v4165_v57  ;;  %v2950_v11 = vsel %vm17315_vm8, %v12657_v23, 0.0  ;;  %v2956_v16 = vsel %vm2922_vm7, %v12732_v1, 0.0  ;;  %17728 = vst [vmem:[#allocation63_spill] sm:$0xff] %v13196_v47  ;;  %v17730_v6 = vld [vmem:[#allocation67_spill] sm:$0xff]  ;;  %v17732_v57 = vld [vmem:[#allocation44_spill] sm:$0xff] }
 0x298   : > { %17725 = vst [vmem:[#allocation91_spill] sm:$0xff] %v13183_v42  ;;  %4393 = vmatprep.mubr.f32.mxu0 %v4256_v15  ;;  %v3697_v0 = vadd.f32 %v3629_v32, %v3520_v10  ;;  %v17290_v18 = vrot.slane %v13183_v42, 1  ;;  %v2991_v21 = vmul.f32 %v17730_v6, %v2950_v11  ;;  %v2997_v15 = vmul.f32 %v17730_v6, %v2956_v16  ;;  %v17731_v10 = vld [vmem:[#allocation82_spill] sm:$0xff]  ;;  %v17733_v9 = vld [vmem:[#allocation99_spill] sm:$0xff]  ;;  %v13222_v31 = vld [vmem:[#allocation2 + $0xf0] sm:$0x3] }
 0x299   : > { %v3082_v32 = vmul.f32 %v17731_v10, %v12708_v53  ;;  %4851 = vst [vmem:[#allocation2 + $0x70] sm:$0xff] %v17732_v57  ;;  %v3085_v17 = vmul.f32 %v17731_v10, %v12732_v1  ;;  %v13210_v47 = vmul.f32 %v17731_v10, %v17733_v9  ;;  %v17291_v25 = vrot.slane %v17733_v9, 2  ;;  %v17734_v11 = vld [vmem:[#allocation106_spill] sm:$0xff]  ;;  %17737 = vst [vmem:[#allocation92_spill] sm:$0xff] %v13222_v31 }
 0x29a   : > { %v3829_v23 = vadd.f32 %v3805_v35, %v3697_v0  ;;  %v17735_v2 = vrot.slane %v17734_v11, 1  ;;  %v3031_v40 = vadd.f32 %v17690_v3, %v2991_v21  ;;  %v3037_v28 = vadd.f32 %v17690_v3, %v2997_v15  ;;  %v13220_v0 = vld [vmem:[#allocation2 + $0xf0] sm:$0x1] }
 0x29b   : > { %v3145_v35 = vrot.slane %v3082_v32, 1  ;;  %17736 = vst [vmem:[#allocation90_spill] sm:$0xff] %v13220_v0  ;;  %v3151_v43 = vrot.slane %v3085_v17, 1  ;;  %v3157_v58 = vrot.slane %v13210_v47, 1  ;;  %v17738_v42 = vrot.slane %v12732_v1, 2  ;;  %v17740_v32 = vld [vmem:[#allocation93_spill] sm:$0xff] }
 0x29c   : > { %v4031_v16 = vsel %vm3125_vm0, %v17735_v2, %v17290_v18  ;;  %v3922_v55 = vadd.f32 %v3898_v59, %v3829_v23  ;;  %4854 = vst [vmem:[#allocation2 + $0xf0] sm:$0x3] %v17732_v57  ;;  %v17739_v21 = vrot.slane %v17691_v27, 1  ;;  %v17741_v59 = vld [vmem:[#allocation84_spill] sm:$0xff]  ;;  %v3459_v47 = vsel %vm17315_vm8, %v12708_v53, 0.0 }
 0x29d   : > { %v3315_v11 = vsel %vm3282_vm3, %v17738_v42, %v17291_v25  ;;  %v3408_v17 = vmul.f32 %v17741_v59, %v17740_v32  ;;  %v3158_v18 = vsel %vm3125_vm0, %v3151_v43, %v3157_v58  ;;  %v13245_v27 = vsel %vm17332_vm1, %v3305_v12, 0.0  ;;  %v13259_v12 = vld [vmem:[#allocation2 + $0xe0] sm:$0xff] }
 0x29e   : > { %v3146_v2 = vsel %vm3125_vm0, %v17739_v21, %v3145_v35  ;;  %v3372_v15 = vsel %vm17343_vm9, %v3315_v11, 0.0  ;;  %v4099_v23 = vadd.f32 %v4031_v16, %v3922_v55  ;;  %17742 = vst [vmem:[#allocation67_spill] sm:$0xff] %v13245_v27  ;;  %v3215_v21 = vadd.f32 %v3158_v18, %v3037_v28  ;;  %v17743_v16 = vld [vmem:[#allocation85_spill] sm:$0xff]  ;;  %17744 = vst [vmem:[#allocation99_spill] sm:$0xff] %v13259_v12 }
 0x29f   : > { %v3209_v42 = vadd.f32 %v3146_v2, %v3031_v40  ;;  %v3414_v25 = vmul.f32 %v17741_v59, %v3372_v15  ;;  %v13249_v31 = vmul.f32 %v17684_v48, %v12732_v1  ;;  %v3768_v32 = vsel %vm17332_vm1, %v12942_v30, 0.0  ;;  %v13257_v2 = vld [vmem:[#allocation2 + $0xd0] sm:$0xff] }
 0x2a0   : > { %v4231_v0 = vadd.f32 %v4207_v22, %v4099_v23  ;;  %v3501_v56 = vmul.f32 %v17743_v16, %v3459_v47  ;;  %v3771_v40 = vsel %vm17331_vm6, %v3315_v11, 0.0  ;;  %v13261_v28 = vadd.f32 %v3409_v46, %v3210_v49  ;;  %v17746_v22 = vld [vmem:[#allocation89_spill] sm:$0xff]  ;;  %v13271_v47 = vld [vmem:[#allocation2 + $0xe0] sm:$0x1] }
 0x2a1   : > { %v3432_v55 = vadd.f32 %v3408_v17, %v3209_v42  ;;  %v3638_v18 = vrot.slane %v13249_v31, 1  ;;  %v3861_v15 = vsel %vm17315_vm8, %v12732_v1, 0.0  ;;  %v13269_v17 = vmul.f32 %v17746_v22, %v17733_v9  ;;  %17747 = vst [vmem:[#allocation93_spill] sm:$0xff] %v13271_v47  ;;  %v13273_v23 = vld [vmem:[#allocation2 + $0xe0] sm:$0x3] }
 0x2a2   : > { %17745 = vst [vmem:[#allocation106_spill] sm:$0xff] %v13261_v28  ;;  %17748 = vst [vmem:[#allocation84_spill] sm:$0xff] %v13273_v23  ;;  %v4255_v42 = vmax.f32 %v4231_v0, 0.0  ;;  %v13275_v27 = vadd.f32 %v3414_v25, %v3215_v21  ;;  %v17749_v46 = vld [vmem:[#allocation87_spill] sm:$0xff]  ;;  %v17750_v31 = vrot.slane %v12980_v26, 1  ;;  %v3903_v37 = vmul.f32 %v17692_v14, %v3861_v15 }
 0x2a3   : > { %v3525_v12 = vadd.f32 %v3501_v56, %v3432_v55  ;;  %v3810_v49 = vmul.f32 %v17749_v46, %v3768_v32  ;;  %4850 = vst [vmem:[#allocation2 + $0xe0] sm:$0xff] %v17732_v57  ;;  %v4170_v33 = vsel %vm17332_vm1, %v3315_v11, 0.0  ;;  %v2953_v0 = vsel %vm2921_vm4, %v12708_v53, 0.0  ;;  %v13288_v25 = vld [vmem:[#allocation2 + $0x58] sm:$0x1] }
 0x2a4   : > { %v3639_v28 = vsel %vm3125_vm0, %v17750_v31, %v3638_v18  ;;  %17751 = vst [vmem:[#allocation85_spill] sm:$0xff] %v13288_v25  ;;  %v13290_v56 = vld [vmem:[#allocation2 + $0x58] sm:$0x3]  ;;  %4394 = vmatmul.mubr.f32.gmra.mxu0 %v4255_v42  ;;  %v2959_v26 = vsel %vm17342_vm11, %v17733_v9, 0.0  ;;  %v2994_v55 = vmul.f32 %v17730_v6, %v2953_v0  ;;  %v13298_v15 = vmul.f32 %v17731_v10, %v13257_v2 }
 0x2a5   : > { %17752 = vst [vmem:[#allocation89_spill] sm:$0xff] %v13290_v56  ;;  %v3702_v21 = vadd.f32 %v3639_v28, %v3525_v12  ;;  %4853 = vst [vmem:[#allocation2 + $0x58] sm:$0x3] %v17732_v57  ;;  %v4040_v53 = vrot.slane %v13269_v17, 1  ;;  %v3000_v11 = vmul.f32 %v17730_v6, %v2959_v26  ;;  %v3152_v31 = vsel %vm3125_vm0, %v3145_v35, %v3151_v43 }
 0x2a6   : > { %v17295_v12 = vrot.slane %v13257_v2, 2  ;;  %v3034_v42 = vadd.f32 %v17690_v3, %v2994_v55  ;;  %v17301_v56 = vrot.slane %v13298_v15, 1  ;;  %v3369_v0 = vsel %vm17331_vm6, %v12942_v30, 0.0 }
 0x2a7   : > { %v3834_v28 = vadd.f32 %v3810_v49, %v3702_v21  ;;  %v3040_v25 = vadd.f32 %v17690_v3, %v3000_v11  ;;  %v17754_v17 = vrot.slane %v17733_v9, 2  ;;  %v3411_v43 = vmul.f32 %v17741_v59, %v3369_v0 }
 0x2a8   : > { %v3462_v35 = vsel %vm2921_vm4, %v12732_v1, 0.0  ;;  %v3164_v21 = vsel %vm3125_vm0, %v3157_v58, %v17301_v56  ;;  %v3212_v30 = vadd.f32 %v3152_v31, %v3034_v42  ;;  %v17755_v11 = vrot.slane %v12988_v45, 1  ;;  %v17769_v56 = vld [vmem:[#allocation65_spill] sm:$0xff] }
 0x2a9   : > { %v3321_v26 = vsel %vm3282_vm3, %v17754_v17, %v17295_v12  ;;  %v3927_v49 = vadd.f32 %v3903_v37, %v3834_v28  ;;  %v3218_v17 = vadd.f32 %v3164_v21, %v3040_v25  ;;  %v13331_v12 = vmul.f32 %v17684_v48, %v17733_v9 }
 0x2aa   : > { %v3375_v55 = vsel %vm17341_vm14, %v3321_v26, 0.0  ;;  %v4041_v23 = vsel %vm3125_vm0, %v17755_v11, %v4040_v53  ;;  %v4212_v37 = vmul.f32 %v17693_v50, %v4170_v33  ;;  %v3435_v28 = vadd.f32 %v3411_v43, %v3212_v30  ;;  %v13350_v43 = vld [vmem:[#allocation2 + $0x40] sm:$0xff] }
 0x2ab   : > { %v3417_v0 = vmul.f32 %v17741_v59, %v3375_v55  ;;  %v4104_v1 = vadd.f32 %v4041_v23, %v3927_v49  ;;  %v3504_v58 = vmul.f32 %v17743_v16, %v3462_v35  ;;  %v17300_v31 = vrot.slane %v13331_v12, 1 }
 0x2ac   : > { %v13338_v45 = vsel %vm17343_vm9, %v3321_v26, 0.0  ;;  %v3813_v25 = vmul.f32 %v17749_v46, %v3771_v40  ;;  %v13343_v42 = vmul.f32 %v17746_v22, %v13257_v2  ;;  %v3864_v33 = vsel %vm2921_vm4, %v17733_v9, 0.0 }
 0x2ad   : > { %v4236_v21 = vadd.f32 %v4212_v37, %v4104_v1  ;;  %v13345_v55 = vadd.f32 %v3417_v0, %v3218_v17  ;;  %v3528_v23 = vadd.f32 %v3504_v58, %v3435_v28  ;;  %v3645_v35 = vsel %vm3125_vm0, %v3638_v18, %v17300_v31 }
 0x2ae   : > { %v17298_v40 = vrot.slane %v13343_v42, 1  ;;  %v4173_v49 = vsel %vm17331_vm6, %v3321_v26, 0.0  ;;  %v2949_v30 = vsel %vm17315_vm8, %v12671_v34, 0.0  ;;  %v2955_v0 = vsel %vm2922_vm7, %v12907_v38, 0.0 }
 0x2af   : > { %v4260_v11 = vmax.f32 %v4236_v21, 0.0  ;;  %v3705_v17 = vadd.f32 %v3645_v35, %v3528_v23  ;;  %v2990_v1 = vmul.f32 %v17695_v20, %v2949_v30  ;;  %v3906_v37 = vmul.f32 %v17692_v14, %v3864_v33 }
 0x2b0   : > { %v2996_v18 = vmul.f32 %v17695_v20, %v2955_v0  ;;  %v13369_v28 = vmul.f32 %v17696_v51, %v13350_v43  ;;  %v17756_v26 = vrot.slane %v13014_v52, 1  ;;  %v17757_v34 = vrot.slane %v13007_v61, 1 }
 0x2b1   : > { %10339 = vmatprep.mubr.f32.mxu1 %v4260_v11  ;;  %v3837_v21 = vadd.f32 %v3813_v25, %v3705_v17  ;;  %v3030_v23 = vadd.f32 %v17698_v5, %v2990_v1  ;;  %v17296_v35 = vrot.slane %v13350_v43, 2  ;;  %v3458_v33 = vsel %vm17315_vm8, %v12748_v8, 0.0 }
 0x2b2   : > { %v3144_v58 = vsel %vm3125_vm0, %v17757_v34, %v17756_v26  ;;  %v4047_v30 = vsel %vm3125_vm0, %v4040_v53, %v17298_v40  ;;  %v4215_v52 = vmul.f32 %v17693_v50, %v4173_v49  ;;  %v17297_v61 = vrot.slane %v13369_v28, 1 }
 0x2b3   : > { %v13388_v11 = vmul.f32 %v17703_v19, %v12907_v38  ;;  %v3930_v25 = vadd.f32 %v3906_v37, %v3837_v21  ;;  %v3036_v17 = vadd.f32 %v17698_v5, %v2996_v18  ;;  %v3208_v0 = vadd.f32 %v3144_v58, %v3030_v23 }
 0x2b4   : > { %v17758_v8 = vrot.slane %v12907_v38, 2  ;;  %v17759_v53 = vrot.slane %v13020_v29, 1  ;;  %v3500_v37 = vmul.f32 %v12581_v60, %v3458_v33  ;;  %v17763_v33 = vld [vmem:[#allocation75_spill] sm:$0xff]  ;;  %v17772_v47 = vrot.slane %v13104_v63, 1 }
 0x2b5   : > { %v17299_v18 = vrot.slane %v13388_v11, 1  ;;  %v4107_v34 = vadd.f32 %v4047_v30, %v3930_v25  ;;  %v3431_v23 = vadd.f32 %v13062_v39, %v3208_v0  ;;  %v17764_v30 = vld [vmem:[#allocation79_spill] sm:$0xff]  ;;  %v3860_v39 = vsel %vm17315_vm8, %v12907_v38, 0.0  ;;  %v13427_v0 = vld [vmem:[#allocation2 + $0xb8] sm:$0xff] }
 0x2b6   : > { %v3313_v1 = vsel %vm3282_vm3, %v17758_v8, %v17296_v35  ;;  %v3156_v49 = vsel %vm3125_vm0, %v17759_v53, %v17297_v61  ;;  %v17760_v8 = vld [vmem:[#allocation95_spill] sm:$0xff]  ;;  %v17762_v61 = vld [vmem:[#allocation86_spill] sm:$0xff]  ;;  %v13420_v25 = vmul.f32 %v17764_v30, %v13350_v43  ;;  %v3465_v62 = vsel %vm2922_vm7, %v17733_v9, 0.0 }
 0x2b7   : > { %v3371_v26 = vsel %vm17343_vm9, %v3313_v1, 0.0  ;;  %v3214_v58 = vadd.f32 %v3156_v49, %v3036_v17  ;;  %v17761_v35 = vrot.slane %v17760_v8, 1  ;;  %v13414_v53 = vsel %vm17331_vm6, %v3313_v1, 0.0 }
 0x2b8   : > { %v3413_v21 = vmul.f32 %v12562_v24, %v3371_v26  ;;  %v3809_v40 = vmul.f32 %v17763_v33, %v17762_v61  ;;  %17765 = vst [vmem:[#allocation87_spill] sm:$0xff] %v13420_v25  ;;  %v4239_v17 = vadd.f32 %v4215_v52, %v4107_v34  ;;  %v3524_v49 = vadd.f32 %v3500_v37, %v3431_v23  ;;  %v4555_v26 = vld [vmem:[%s17086_s5 + $0x28] sm:$0xff] }
 0x2b9   : > { %v3637_v29 = vsel %vm3125_vm0, %v17761_v35, %v17299_v18  ;;  %v4169_v35 = vsel %vm17332_vm1, %v3313_v1, 0.0  ;;  %v2948_v52 = vsel %vm17315_vm8, %v17709_v44, 0.0  ;;  %v2954_v37 = vsel %vm2922_vm7, %v12800_v13, 0.0  ;;  %10348 = vmatprep.subr.mxu0 %v4555_v26  ;;  %v17767_v23 = vld [vmem:[#allocation72_spill] sm:$0xff] }
 0x2ba   : > { %v13432_v61 = vadd.f32 %v3413_v21, %v3214_v58  ;;  %v4263_v1 = vmax.f32 %v4239_v17, 0.0  ;;  %v3701_v34 = vadd.f32 %v3637_v29, %v3524_v49  ;;  %v2989_v18 = vmul.f32 %v17767_v23, %v2948_v52  ;;  %10349 = vmatpush3.msra.mxu0 %v4555_v26  ;;  %v17768_v58 = vld [vmem:[#allocation77_spill] sm:$0xff] }
 0x2bb   : > { %v2995_v31 = vmul.f32 %v17767_v23, %v2954_v37  ;;  %v3902_v21 = vmul.f32 %v17768_v58, %v3860_v39  ;;  %v13446_v8 = vmul.f32 %v17769_v56, %v13427_v0  ;;  %v17771_v44 = vrot.slane %v13108_v41, 1  ;;  %v17773_v52 = vld [vmem:[#allocation97_spill] sm:$0xff] }
 0x2bc   : > { %17766 = vst [vmem:[#allocation95_spill] sm:$0xff] %v13432_v61  ;;  %v17307_v17 = vrot.slane %v13427_v0, 2  ;;  %10340 = vmatmul.mubr.f32.gmra.mxu1 %v4263_v1  ;;  %v3833_v29 = vadd.f32 %v3809_v40, %v3701_v34  ;;  %v4211_v49 = vmul.f32 %v12614_v7, %v4169_v35  ;;  %v3029_v26 = vadd.f32 %v17712_v36, %v2989_v18  ;;  %v17775_v61 = vld [vmem:[#allocation94_spill] sm:$0xff]  ;;  %v17781_v7 = vld [vmem:[#allocation73_spill] sm:$0xff] }
 0x2bd   : > { %17770 = vst [vmem:[#allocation86_spill] sm:$0xff] %v13446_v8  ;;  %v3142_v57 = vsel %vm3125_vm0, %v17772_v47, %v17771_v44  ;;  %v3457_v39 = vsel %vm17315_vm8, %v17773_v52, 0.0  ;;  %v17774_v37 = vrot.slane %v13420_v25, 1  ;;  %v17776_v41 = vrot.slane %v17775_v61, 1  ;;  %v17778_v18 = vld [vmem:[#allocation66_spill] sm:$0xff] }
 0x2be   : > { %v17309_v47 = vrot.slane %v13446_v8, 1  ;;  %v17777_v40 = vrot.slane %v12800_v13, 2  ;;  %v13472_v1 = vmul.f32 %v17778_v18, %v12800_v13  ;;  %v3926_v34 = vadd.f32 %v3902_v21, %v3833_v29  ;;  %v17784_v29 = vld [vmem:[#allocation88_spill] sm:$0xff] }
 0x2bf   : > { %v4039_v63 = vsel %vm3125_vm0, %v17776_v41, %v17774_v37  ;;  %v3035_v44 = vadd.f32 %v17712_v36, %v2995_v31  ;;  %v3207_v52 = vadd.f32 %v3142_v57, %v3029_v26  ;;  %v17779_v37 = vld [vmem:[#allocation96_spill] sm:$0xff]  ;;  %v3499_v23 = vmul.f32 %v17781_v7, %v3457_v39  ;;  %v17783_v31 = vld [vmem:[#allocation71_spill] sm:$0xff]  ;;  %v17785_v39 = vld [vmem:[#allocation98_spill] sm:$0xff] }
 0x2c0   : > { %v3311_v35 = vsel %vm3282_vm3, %v17777_v40, %v17307_v17  ;;  %v17780_v41 = vrot.slane %v17779_v37, 1  ;;  %v17312_v40 = vrot.slane %v13472_v1, 1  ;;  %v4103_v21 = vadd.f32 %v4039_v63, %v3926_v34  ;;  %v13493_v37 = vld [vmem:[#allocation2 + $0x78] sm:$0xff]  ;;  %v17787_v36 = vld [vmem:[#allocation67_spill] sm:$0xff]  ;;  %v17790_v18 = vld [vmem:[#allocation76_spill] sm:$0xff] }
 0x2c1   : > { %v3370_v61 = vsel %vm17343_vm9, %v3311_v35, 0.0  ;;  %v13486_v17 = vsel %vm17331_vm6, %v3311_v35, 0.0  ;;  %v3430_v26 = vadd.f32 %v17784_v29, %v3207_v52  ;;  %v3859_v8 = vsel %vm17315_vm8, %v12800_v13, 0.0  ;;  %v17789_v34 = vld [vmem:[#allocation78_spill] sm:$0xff]  ;;  %v3230_v52 = vld [vmem:[#allocation2 + $0x10] sm:$0x3] }
 0x2c2   : > { %v3154_v25 = vsel %vm3125_vm0, %v17780_v41, %v17309_v47  ;;  %17782 = vst [vmem:[#allocation75_spill] sm:$0xff] %v13486_v17  ;;  %v3412_v57 = vmul.f32 %v17783_v31, %v3370_v61  ;;  %v17786_v47 = vrot.slane %v17785_v39, 1  ;;  %v17788_v17 = vld [vmem:[#allocation74_spill] sm:$0xff]  ;;  %v13504_v61 = vmul.f32 %v17789_v34, %v13427_v0  ;;  %v17791_v39 = vld [vmem:[#allocation32_spill] sm:$0xff] }
 0x2c3   : > { %v3213_v41 = vadd.f32 %v3154_v25, %v3035_v44  ;;  %v3808_v63 = vmul.f32 %v17788_v17, %v17787_v36  ;;  %v4235_v29 = vadd.f32 %v4211_v49, %v4103_v21  ;;  %v3523_v31 = vadd.f32 %v3499_v23, %v3430_v26 }
 0x2c4   : > { %v3635_v7 = vsel %vm3125_vm0, %v17786_v47, %v17312_v40  ;;  %v3901_v13 = vmul.f32 %v17790_v18, %v3859_v8  ;;  %v4168_v25 = vsel %vm17332_vm1, %v3311_v35, 0.0  ;;  %v2962_v47 = vsel %vm17340_vm15, %v13257_v2, 0.0  ;;  %v17794_v18 = vld [vmem:[#allocation80_spill] sm:$0xff] }
 0x2c5   : > { %v13515_v36 = vmul.f32 %v17731_v10, %v13493_v37  ;;  %v3326_v40 = vrot.slane %v13493_v37, 2  ;;  %v4259_v34 = vmax.f32 %v4235_v29, 0.0  ;;  %v3700_v49 = vadd.f32 %v3635_v7, %v3523_v31 }
 0x2c6   : > { %v3003_v23 = vmul.f32 %v17730_v6, %v2962_v47  ;;  %v3332_v8 = vrot.slane %v3230_v52, 2  ;;  %v13519_v21 = vadd.f32 %v3412_v57, %v3213_v41  ;;  %v17793_v26 = vrot.slane %v13257_v2, 2  ;;  %v17797_v41 = vld [vmem:[#allocation91_spill] sm:$0xff] }
 0x2c7   : > { %v17316_v35 = vrot.slane %v13515_v36, 1  ;;  %4398 = vmatprep.mubr.f32.mxu0 %v4259_v34  ;;  %v3832_v10 = vadd.f32 %v3808_v63, %v3700_v49  ;;  %v4210_v29 = vmul.f32 %v17794_v18, %v4168_v25  ;;  %vm17795_vm8 = vcmp.lt.s32.totalorder %v17791_v39, 7 }
 0x2c8   : > { %17792 = vst [vmem:[#allocation79_spill] sm:$0xff] %v13519_v21  ;;  %v3327_v44 = vsel %vm3282_vm3, %v17793_v26, %v3326_v40  ;;  %v3043_v7 = vadd.f32 %v17690_v3, %v3003_v23  ;;  %v17796_v57 = vrot.slane %v13504_v61, 1  ;;  %v17798_v52 = vrot.slane %v17797_v41, 1 }
 0x2c9   : > { %v3378_v31 = vsel %vm17795_vm8, %v3327_v44, 0.0  ;;  %v17799_v26 = vrot.slane %v13298_v15, 1  ;;  %v3582_v34 = vmul.f32 %v17684_v48, %v13257_v2  ;;  %v3925_v25 = vadd.f32 %v3901_v13, %v3832_v10  ;;  %v13561_v10 = vld [vmem:[#allocation2 + $0x10] sm:$0xff] }
 0x2ca   : > { %v4037_v47 = vsel %vm3125_vm0, %v17798_v52, %v17796_v57  ;;  %v3420_v63 = vmul.f32 %v17741_v59, %v3378_v31  ;;  %v13546_v23 = vsel %vm3282_vm3, %v3326_v40, %v3332_v8  ;;  %v3507_v41 = vmul.f32 %v17743_v16, %v3465_v62 }
 0x2cb   : > { %v3170_v9 = vsel %vm3125_vm0, %v17799_v26, %v17316_v35  ;;  %v3650_v21 = vrot.slane %v3582_v34, 1  ;;  %v3777_v57 = vsel %vm17341_vm14, %v3327_v44, 0.0  ;;  %v3816_v15 = vmul.f32 %v17749_v46, %v13338_v45 }
 0x2cc   : > { %v3221_v49 = vadd.f32 %v3170_v9, %v3043_v7  ;;  %v3984_v31 = vmul.f32 %v17746_v22, %v13493_v37  ;;  %v4102_v52 = vadd.f32 %v4037_v47, %v3925_v25  ;;  %v3531_v26 = vadd.f32 %v3507_v41, %v13275_v27 }
 0x2cd   : > { %v3867_v13 = vsel %vm2922_vm7, %v13257_v2, 0.0  ;;  %v4176_v62 = vsel %vm17343_vm9, %v3327_v44, 0.0  ;;  %v17800_v7 = vrot.slane %v13331_v12, 1  ;;  %v3468_v27 = vsel %vm17342_vm11, %v13257_v2, 0.0 }
 0x2ce   : > { %v13563_v8 = vadd.f32 %v3420_v63, %v3221_v49  ;;  %v4052_v9 = vrot.slane %v3984_v31, 1  ;;  %v4234_v47 = vadd.f32 %v4210_v29, %v4102_v52  ;;  %v3510_v25 = vmul.f32 %v17743_v16, %v3468_v27 }
 0x2cf   : > { %v3651_v45 = vsel %vm3125_vm0, %v17800_v7, %v3650_v21  ;;  %v13574_v44 = vmul.f32 %v17684_v48, %v13493_v37  ;;  %v3909_v63 = vmul.f32 %v17692_v14, %v3867_v13  ;;  %v4218_v49 = vmul.f32 %v17693_v50, %v4176_v62 }
 0x2d0   : > { %v3708_v34 = vadd.f32 %v3651_v45, %v3531_v26  ;;  %v13579_v12 = vrot.slane %v13561_v10, 2  ;;  %v3870_v41 = vsel %vm17342_vm11, %v13493_v37, 0.0  ;;  %v4258_v2 = vmax.f32 %v4234_v47, 0.0  ;;  %v13595_v45 = vld [vmem:[#allocation2 + $0x38] sm:$0xff] }
 0x2d1   : > { %v3534_v31 = vadd.f32 %v3510_v25, %v13345_v55  ;;  %v17317_v52 = vrot.slane %v13574_v44, 1  ;;  %v17801_v26 = vrot.slane %v13343_v42, 1  ;;  %v13593_v62 = vmul.f32 %v17746_v22, %v13561_v10 }
 0x2d2   : > { %v3840_v29 = vadd.f32 %v3816_v15, %v3708_v34  ;;  %v3744_v13 = vsel %vm3282_vm3, %v3326_v40, %v13579_v12  ;;  %v2958_v15 = vsel %vm17342_vm11, %v13350_v43, 0.0  ;;  %4399 = vmatmul.mubr.f32.gmra.mxu0 %v4258_v2  ;;  %v3819_v40 = vmul.f32 %v17749_v46, %v3777_v57 }
 0x2d3   : > { %v4053_v7 = vsel %vm3125_vm0, %v17801_v26, %v4052_v9  ;;  %v3657_v42 = vsel %vm3125_vm0, %v3650_v21, %v17317_v52  ;;  %v3780_v27 = vsel %vm17795_vm8, %v3744_v13, 0.0  ;;  %v3912_v34 = vmul.f32 %v17692_v14, %v3870_v41 }
 0x2d4   : > { %v3933_v55 = vadd.f32 %v3909_v63, %v3840_v29  ;;  %v3711_v47 = vadd.f32 %v3657_v42, %v3534_v31  ;;  %v17322_v25 = vrot.slane %v13593_v62, 1  ;;  %v4179_v26 = vsel %vm17341_vm14, %v3744_v13, 0.0 }
 0x2d5   : > { %v2999_v63 = vmul.f32 %v17695_v20, %v2958_v15  ;;  %v13613_v2 = vmul.f32 %v17696_v51, %v13595_v45  ;;  %v17318_v21 = vrot.slane %v13595_v45, 2  ;;  %v13617_v29 = vmul.f32 %v17749_v46, %v3780_v27 }
 0x2d6   : > { %v4110_v35 = vadd.f32 %v4053_v7, %v3933_v55  ;;  %v3843_v57 = vadd.f32 %v3819_v40, %v3711_v47  ;;  %v3461_v41 = vsel %vm2921_vm4, %v12907_v38, 0.0  ;;  %v13624_v31 = vmul.f32 %v17703_v19, %v13350_v43 }
 0x2d7   : > { %v4221_v13 = vmul.f32 %v17693_v50, %v4179_v26  ;;  %v17321_v15 = vrot.slane %v13613_v2, 1  ;;  %v17803_v55 = vrot.slane %v13350_v43, 2  ;;  %v3503_v38 = vmul.f32 %v12581_v60, %v3461_v41 }
 0x2d8   : > { %17802 = vst [vmem:[#allocation97_spill] sm:$0xff] %v13624_v31  ;;  %v4242_v7 = vadd.f32 %v4218_v49, %v4110_v35  ;;  %v3936_v27 = vadd.f32 %v3912_v34, %v3843_v57  ;;  %v17320_v47 = vrot.slane %v13624_v31, 1  ;;  %v4059_v35 = vsel %vm3125_vm0, %v4052_v9, %v17322_v25  ;;  %v13653_v9 = vld [vmem:[#allocation2 + $0x60] sm:$0xff]  ;;  %v17811_v25 = vld [vmem:[#allocation66_spill] sm:$0xff] }
 0x2d9   : > { %v3319_v42 = vsel %vm3282_vm3, %v17803_v55, %v17318_v21  ;;  %v3039_v49 = vadd.f32 %v17698_v5, %v2999_v63  ;;  %v17804_v26 = vrot.slane %v13369_v28, 1  ;;  %v17805_v21 = vld [vmem:[#allocation83_spill] sm:$0xff]  ;;  %v3812_v28 = vmul.f32 %v17763_v33, %v13414_v53 }
 0x2da   : > { %v3374_v40 = vsel %vm17341_vm14, %v3319_v42, 0.0  ;;  %v4266_v52 = vmax.f32 %v4242_v7, 0.0  ;;  %v4113_v57 = vadd.f32 %v4059_v35, %v3936_v27  ;;  %v3527_v41 = vadd.f32 %v3503_v38, %v17805_v21 }
 0x2db   : > { %v3162_v34 = vsel %vm3125_vm0, %v17804_v26, %v17321_v15  ;;  %v3416_v55 = vmul.f32 %v12562_v24, %v3374_v40  ;;  %v17806_v7 = vrot.slane %v13388_v11, 1  ;;  %v13657_v63 = vsel %vm17343_vm9, %v3319_v42, 0.0 }
 0x2dc   : > { %10342 = vmatprep.mubr.f32.mxu1 %v4266_v52  ;;  %v3863_v21 = vsel %vm2921_vm4, %v13350_v43, 0.0  ;;  %v13666_v27 = vmul.f32 %v17764_v30, %v13595_v45  ;;  %v4245_v11 = vadd.f32 %v4221_v13, %v4113_v57  ;;  %v3217_v40 = vadd.f32 %v3162_v34, %v3039_v49  ;;  %v17808_v13 = vld [vmem:[#allocation72_spill] sm:$0xff]  ;;  %v17809_v34 = vld [vmem:[#allocation81_spill] sm:$0xff] }
 0x2dd   : > { %v3643_v19 = vsel %vm3125_vm0, %v17806_v7, %v17320_v47  ;;  %v4172_v52 = vsel %vm17331_vm6, %v3319_v42, 0.0  ;;  %v3905_v35 = vmul.f32 %v17768_v58, %v3863_v21  ;;  %v2957_v53 = vsel %vm17342_vm11, %v13427_v0, 0.0 }
 0x2de   : > { %17807 = vst [vmem:[#allocation94_spill] sm:$0xff] %v13666_v27  ;;  %v3704_v38 = vadd.f32 %v3643_v19, %v3527_v41  ;;  %v13677_v7 = vmul.f32 %v17769_v56, %v13653_v9  ;;  %v4269_v47 = vmax.f32 %v4245_v11, 0.0  ;;  %v2998_v49 = vmul.f32 %v17808_v13, %v2957_v53  ;;  %v17810_v41 = vld [vmem:[#allocation100_spill] sm:$0xff]  ;;  %v17814_v53 = vld [vmem:[#allocation73_spill] sm:$0xff]  ;;  %v17816_v13 = vld [vmem:[#allocation87_spill] sm:$0xff] }
 0x2df   : > { %v17325_v19 = vrot.slane %v13653_v9, 2  ;;  %v4214_v42 = vmul.f32 %v17809_v34, %v4172_v52  ;;  %v3460_v21 = vsel %vm2921_vm4, %v17810_v41, 0.0  ;;  %v13688_v26 = vmul.f32 %v17811_v25, %v13427_v0  ;;  %v17812_v11 = vld [vmem:[#allocation68_spill] sm:$0xff] }
 0x2e0   : > { %v3836_v15 = vadd.f32 %v3812_v28, %v3704_v38  ;;  %10343 = vmatmul.mubr.f32.gmra.mxu1 %v4269_v47  ;;  %v3038_v28 = vadd.f32 %v17812_v11, %v2998_v49  ;;  %v17813_v38 = vrot.slane %v13427_v0, 2  ;;  %v3502_v57 = vmul.f32 %v17814_v53, %v3460_v21  ;;  %v17819_v47 = vld [vmem:[#allocation86_spill] sm:$0xff]  ;;  %v17821_v21 = vld [vmem:[#allocation71_spill] sm:$0xff] }
 0x2e1   : > { %v17815_v34 = vrot.slane %v13666_v27, 1  ;;  %v17817_v41 = vrot.slane %v17816_v13, 1  ;;  %v17818_v25 = vrot.slane %v13677_v7, 1  ;;  %v17328_v11 = vrot.slane %v13688_v26, 1  ;;  %v17822_v27 = vld [vmem:[#allocation106_spill] sm:$0xff] }
 0x2e2   : > { %v3929_v56 = vadd.f32 %v3905_v35, %v3836_v15  ;;  %v3317_v52 = vsel %vm3282_vm3, %v17813_v38, %v17325_v19  ;;  %v17820_v15 = vrot.slane %v17819_v47, 1  ;;  %v3526_v31 = vadd.f32 %v3502_v57, %v17822_v27 }
 0x2e3   : > { %v4045_v58 = vsel %vm3125_vm0, %v17817_v41, %v17815_v34  ;;  %v3373_v49 = vsel %vm17341_vm14, %v3317_v52, 0.0  ;;  %v17823_v13 = vrot.slane %v13472_v1, 1  ;;  %v17824_v41 = vld [vmem:[#allocation75_spill] sm:$0xff]  ;;  %v3862_v47 = vsel %vm2921_vm4, %v13427_v0, 0.0 }
 0x2e4   : > { %v3160_v35 = vsel %vm3125_vm0, %v17820_v15, %v17818_v25  ;;  %v4106_v38 = vadd.f32 %v4045_v58, %v3929_v56  ;;  %v3415_v53 = vmul.f32 %v17821_v21, %v3373_v49  ;;  %v3811_v25 = vmul.f32 %v17788_v17, %v17824_v41  ;;  %v17825_v56 = vld [vmem:[#allocation78_spill] sm:$0xff] }
 0x2e5   : > { %v3216_v19 = vadd.f32 %v3160_v35, %v3038_v28  ;;  %v3641_v34 = vsel %vm3125_vm0, %v17823_v13, %v17328_v11  ;;  %v13724_v58 = vmul.f32 %v17825_v56, %v13653_v9  ;;  %v13726_v28 = vadd.f32 %v3416_v55, %v3217_v40 }
 0x2e6   : > { %v4238_v27 = vadd.f32 %v4214_v42, %v4106_v38  ;;  %v3703_v57 = vadd.f32 %v3641_v34, %v3526_v31  ;;  %v13730_v1 = vsel %vm17343_vm9, %v3317_v52, 0.0  ;;  %v4171_v35 = vsel %vm17331_vm6, %v3317_v52, 0.0  ;;  %v17827_v42 = vld [vmem:[#allocation76_spill] sm:$0xff]  ;;  %v3052_v34 = vld [vmem:[#allocation2 + $0x10] sm:$0x1] }
 0x2e7   : > { %17826 = vst [vmem:[#allocation96_spill] sm:$0xff] %v13726_v28  ;;  %v3471_v49 = vsel %vm17340_vm15, %v13493_v37, 0.0  ;;  %v3588_v13 = vmul.f32 %v17684_v48, %v13561_v10  ;;  %v3904_v31 = vmul.f32 %v17827_v42, %v3862_v47  ;;  %v13742_v41 = vadd.f32 %v3415_v53, %v3216_v19  ;;  %v17829_v52 = vld [vmem:[#allocation101_spill] sm:$0xff] }
 0x2e8   : > { %v4262_v55 = vmax.f32 %v4238_v27, 0.0  ;;  %v3835_v40 = vadd.f32 %v3811_v25, %v3703_v57  ;;  %v3513_v38 = vmul.f32 %v17743_v16, %v3471_v49  ;;  %v4213_v11 = vmul.f32 %v17794_v18, %v4171_v35  ;;  %v17833_v49 = vld [vmem:[#allocation33_spill] sm:$0xff] }
 0x2e9   : > { %17828 = vst [vmem:[#allocation88_spill] sm:$0xff] %v13742_v41  ;;  %v3662_v15 = vrot.slane %v3588_v13, 1  ;;  %v3990_v54 = vmul.f32 %v17746_v22, %v17829_v52  ;;  %v3873_v25 = vsel %vm17340_vm15, %v13561_v10, 0.0  ;;  %v4145_v47 = vrot.slane %v17829_v52, 2  ;;  %v17835_v13 = vld [vmem:[#allocation82_spill] sm:$0xff] }
 0x2ea   : > { %4403 = vmatprep.mubr.f32.mxu0 %v4262_v55  ;;  %v3928_v28 = vadd.f32 %v3904_v31, %v3835_v40  ;;  %v3537_v17 = vadd.f32 %v3513_v38, %v13563_v8  ;;  %v17830_v27 = vrot.slane %v13724_v58, 1  ;;  %v17831_v19 = vrot.slane %v13504_v61, 1 }
 0x2eb   : > { %v17832_v57 = vrot.slane %v13574_v44, 1  ;;  %vm17834_vm8 = vcmp.ge.s32.totalorder %v17833_v49, 1  ;;  %v3097_v55 = vmul.f32 %v17835_v13, %v3052_v34  ;;  %v4146_v38 = vsel %vm3282_vm3, %v13579_v12, %v4145_v47  ;;  %v17842_v13 = vld [vmem:[#allocation103_spill] sm:$0xff] }
 0x2ec   : > { %v4043_v53 = vsel %vm3125_vm0, %v17831_v19, %v17830_v27  ;;  %v2965_v8 = vsel %vm17834_vm8, %v13493_v37, 0.0  ;;  %v3915_v61 = vmul.f32 %v17692_v14, %v3873_v25  ;;  %v4064_v27 = vrot.slane %v3990_v54, 1 }
 0x2ed   : > { %v3663_v35 = vsel %vm3125_vm0, %v17832_v57, %v3662_v15  ;;  %v4105_v40 = vadd.f32 %v4043_v53, %v3928_v28  ;;  %v3006_v41 = vmul.f32 %v17730_v6, %v2965_v8  ;;  %v3175_v19 = vrot.slane %v3097_v55, 1  ;;  %v17840_v53 = vld [vmem:[#allocation102_spill] sm:$0xff]  ;;  %v17843_v55 = vld [vmem:[#allocation104_spill] sm:$0xff] }
 0x2ee   : > { %v3714_v31 = vadd.f32 %v3663_v35, %v3537_v17  ;;  %vm17836_vm6 = vcmp.lt.s32.totalorder %v17833_v49, 7  ;;  %vm17837_vm8 = vcmp.lt.s32.totalorder %v17791_v39, 7  ;;  %v17838_v34 = vrot.slane %v13515_v36, 1 }
 0x2ef   : > { %v3381_v44 = vsel %vm17836_vm6, %v13546_v23, 0.0  ;;  %v4237_v57 = vadd.f32 %v4213_v11, %v4105_v40  ;;  %v4182_v28 = vsel %vm17837_vm8, %v4146_v38, 0.0  ;;  %v3046_v17 = vadd.f32 %v17690_v3, %v3006_v41  ;;  %vm17845_vm8 = vmmov %vm17836_vm6 }
 0x2f0   : > { %v3846_v37 = vadd.f32 %v13617_v29, %v3714_v31  ;;  %v3176_v6 = vsel %vm3125_vm0, %v17838_v34, %v3175_v19  ;;  %v3423_v25 = vmul.f32 %v17741_v59, %v3381_v44  ;;  %vm17839_vm1 = vcmp.ge.s32.totalorder %v17833_v49, 1 }
 0x2f1   : > { %v3474_v54 = vsel %vm17839_vm1, %v13561_v10, 0.0  ;;  %v3591_v23 = vmul.f32 %v17684_v48, %v17840_v53  ;;  %v4261_v11 = vmax.f32 %v4237_v57, 0.0  ;;  %v17841_v35 = vrot.slane %v13593_v62, 1  ;;  %v17844_v62 = vld [vmem:[#allocation105_spill] sm:$0xff] }
 0x2f2   : > { %v3939_v29 = vadd.f32 %v3915_v61, %v3846_v37  ;;  %v3224_v3 = vadd.f32 %v3176_v6, %v3046_v17  ;;  %v4224_v36 = vmul.f32 %v17693_v50, %v4182_v28  ;;  %v3516_v41 = vmul.f32 %v17743_v16, %v3474_v54  ;;  %v13798_v16 = vld [vmem:[#allocation2 + $0x98] sm:$0xff]  ;;  %v3229_v17 = vld [vmem:[#allocation2 + $0x8] sm:$0x3] }
 0x2f3   : > { %v4065_v8 = vsel %vm3125_vm0, %v17841_v35, %v4064_v27  ;;  %v3749_v59 = vrot.slane %v17842_v13, 2  ;;  %v3993_v40 = vmul.f32 %v17746_v22, %v17843_v55  ;;  %4404 = vmatmul.mubr.f32.gmra.mxu0 %v4261_v11  ;;  %v3876_v48 = vsel %vm17839_vm1, %v17829_v52, 0.0 }
 0x2f4   : > { %v4116_v10 = vadd.f32 %v4065_v8, %v3939_v29  ;;  %v3447_v31 = vadd.f32 %v3423_v25, %v3224_v3  ;;  %v4151_v38 = vrot.slane %v17844_v62, 2  ;;  %v3668_v61 = vrot.slane %v3591_v23, 1  ;;  %v17846_v3 = vld [vmem:[#allocation70_spill] sm:$0xff] }
 0x2f5   : > { %v3750_v19 = vsel %vm3282_vm3, %v13579_v12, %v3749_v59  ;;  %v4070_v44 = vrot.slane %v3993_v40, 1  ;;  %v2961_v22 = vsel %vm17340_vm15, %v13595_v45, 0.0  ;;  %v3918_v12 = vmul.f32 %v17692_v14, %v3876_v48 }
 0x2f6   : > { %v4248_v57 = vadd.f32 %v4224_v36, %v4116_v10  ;;  %v3540_v37 = vadd.f32 %v3516_v41, %v3447_v31  ;;  %v3783_v28 = vsel %vm17836_vm6, %v3750_v19, 0.0  ;;  %v4152_v52 = vsel %vm3282_vm3, %v4145_v47, %v4151_v38  ;;  %v17850_v31 = vld [vmem:[#allocation95_spill] sm:$0xff] }
 0x2f7   : > { %v3669_v34 = vsel %vm3125_vm0, %v3662_v15, %v3668_v61  ;;  %v3825_v6 = vmul.f32 %v17749_v46, %v3783_v28  ;;  %v3002_v25 = vmul.f32 %v17695_v20, %v2961_v22  ;;  %v4185_v23 = vsel %vm17845_vm8, %v4152_v52, 0.0  ;;  %v3228_v28 = vld [vmem:[#allocation2 + $0xc8] sm:$0x3]  ;;  %v17851_v52 = vld [vmem:[#allocation97_spill] sm:$0xff] }
 0x2f8   : > { %v4272_v54 = vmax.f32 %v4248_v57, 0.0  ;;  %v3717_v53 = vadd.f32 %v3669_v34, %v3540_v37  ;;  %v13814_v11 = vmul.f32 %v17696_v51, %v13798_v16  ;;  %v4071_v47 = vsel %vm3125_vm0, %v4064_v27, %v4070_v44  ;;  %v13862_v37 = vld [vmem:[#allocation2 + $0x20] sm:$0xff]  ;;  %v17853_v34 = vld [vmem:[#allocation77_spill] sm:$0xff] }
 0x2f9   : > { %v13818_v29 = vrot.slane %v13798_v16, 2  ;;  %v3330_v15 = vrot.slane %v3229_v17, 2  ;;  %v3464_v14 = vsel %vm2922_vm7, %v13350_v43, 0.0  ;;  %v13827_v36 = vmul.f32 %v17846_v3, %v13595_v45 }
 0x2fa   : > { %10345 = vmatprep.mubr.f32.mxu1 %v4272_v54  ;;  %v3849_v46 = vadd.f32 %v3825_v6, %v3717_v53  ;;  %v17334_v35 = vrot.slane %v13814_v11, 1  ;;  %v3506_v8 = vmul.f32 %v12581_v60, %v3464_v14  ;;  %v4227_v27 = vmul.f32 %v17693_v50, %v4185_v23  ;;  %v17855_v14 = vld [vmem:[#allocation65_spill] sm:$0xff] }
 0x2fb   : > { %v3042_v41 = vadd.f32 %v17698_v5, %v3002_v25  ;;  %v17847_v13 = vrot.slane %v13595_v45, 2  ;;  %v3866_v43 = vsel %vm2922_vm7, %v13595_v45, 0.0  ;;  %v17848_v40 = vrot.slane %v13613_v2, 1 }
 0x2fc   : > { %v3942_v55 = vadd.f32 %v3918_v12, %v3849_v46  ;;  %vm17849_vm1 = vcmp.lt.s32.totalorder %v17791_v39, 7  ;;  %v3530_v48 = vadd.f32 %v3506_v8, %v17850_v31  ;;  %v13848_v38 = vsel %vm3282_vm3, %v13818_v29, %v3330_v15 }
 0x2fd   : > { %v3325_v59 = vsel %vm3282_vm3, %v17847_v13, %v13818_v29  ;;  %v3168_v10 = vsel %vm3125_vm0, %v17848_v40, %v17334_v35  ;;  %v3648_v61 = vrot.slane %v13827_v36, 1  ;;  %v3815_v19 = vmul.f32 %v17763_v33, %v13657_v63  ;;  %vm17862_vm6 = vmmov %vm17849_vm1 }
 0x2fe   : > { %v3377_v50 = vsel %vm17849_vm1, %v3325_v59, 0.0  ;;  %v3220_v62 = vadd.f32 %v3168_v10, %v3042_v41  ;;  %v4119_v44 = vadd.f32 %v4071_v47, %v3942_v55  ;;  %v13856_v22 = vsel %vm17341_vm14, %v3325_v59, 0.0  ;;  %v17854_v47 = vld [vmem:[#allocation72_spill] sm:$0xff]  ;;  %v17856_v55 = vld [vmem:[#allocation81_spill] sm:$0xff]  ;;  %v17857_v10 = vld [vmem:[#allocation94_spill] sm:$0xff] }
 0x2ff   : > { %v3419_v2 = vmul.f32 %v12562_v24, %v3377_v50  ;;  %v13860_v57 = vmul.f32 %v17764_v30, %v13798_v16  ;;  %v17852_v17 = vrot.slane %v17851_v52, 1  ;;  %v3908_v6 = vmul.f32 %v17853_v34, %v3866_v43  ;;  %vm17870_vm8 = vmmov %vm17849_vm1 }
 0x300   : > { %v4175_v12 = vsel %vm17343_vm9, %v3325_v59, 0.0  ;;  %v2960_v25 = vsel %vm17340_vm15, %v13653_v9, 0.0  ;;  %v4251_v54 = vadd.f32 %v4227_v27, %v4119_v44  ;;  %v13879_v46 = vmul.f32 %v17855_v14, %v13862_v37 }
 0x301   : > { %v3649_v63 = vsel %vm3125_vm0, %v17852_v17, %v3648_v61  ;;  %v17335_v23 = vrot.slane %v13860_v57, 1  ;;  %v3001_v15 = vmul.f32 %v17854_v47, %v2960_v25  ;;  %v13882_v8 = vrot.slane %v13862_v37, 2 }
 0x302   : > { %v3707_v53 = vadd.f32 %v3649_v63, %v3530_v48  ;;  %v3328_v41 = vrot.slane %v3228_v28, 2  ;;  %v3463_v13 = vsel %vm2922_vm7, %v13427_v0, 0.0  ;;  %v4275_v59 = vmax.f32 %v4251_v54, 0.0  ;;  %v17860_v0 = vld [vmem:[#allocation73_spill] sm:$0xff] }
 0x303   : > { %v13887_v43 = vadd.f32 %v3419_v2, %v3220_v62  ;;  %v4217_v40 = vmul.f32 %v17856_v55, %v4175_v12  ;;  %v17858_v50 = vrot.slane %v17857_v10, 1  ;;  %v17333_v48 = vrot.slane %v13879_v46, 1  ;;  %v4554_v62 = vld [vmem:[%s17086_s5 + $0x20] sm:$0xff]  ;;  %v17861_v2 = vld [vmem:[#allocation68_spill] sm:$0xff]  ;;  %v17863_v12 = vld [vmem:[#allocation66_spill] sm:$0xff] }
 0x304   : > { %v3839_v27 = vadd.f32 %v3815_v19, %v3707_v53  ;;  %v17859_v44 = vrot.slane %v13653_v9, 2  ;;  %v3505_v52 = vmul.f32 %v17860_v0, %v3463_v13  ;;  %10346 = vmatmul.mubr.f32.gmra.mxu1 %v4275_v59  ;;  %v3041_v17 = vadd.f32 %v17861_v2, %v3001_v15  ;;  %4608 = vmatprep.subr.mxu1 %v4554_v62  ;;  %v17865_v15 = vld [vmem:[#allocation79_spill] sm:$0xff]  ;;  %v17866_v10 = vld [vmem:[#allocation44_spill] sm:$0xff] }
 0x305   : > { %v4051_v31 = vsel %vm3125_vm0, %v17858_v50, %v17335_v23  ;;  %v13909_v25 = vmul.f32 %v17863_v12, %v13653_v9  ;;  %v17864_v54 = vrot.slane %v13677_v7, 1  ;;  %v13918_v13 = vsel %vm3282_vm3, %v13882_v8, %v3328_v41  ;;  %4644 = vmatprep.mubr.f32.mxu1 %v17866_v10 }
 0x306   : > { %v3323_v28 = vsel %vm3282_vm3, %v17859_v44, %v13882_v8  ;;  %v3932_v19 = vadd.f32 %v3908_v6, %v3839_v27  ;;  %v3529_v59 = vadd.f32 %v3505_v52, %v17865_v15  ;;  %v4553_v27 = vld [vmem:[%s17086_s5 + $0x18] sm:$0xff]  ;;  %v3865_v62 = vsel %vm2922_vm7, %v13653_v9, 0.0 }
 0x307   : > { %v3376_v63 = vsel %vm17862_vm6, %v3323_v28, 0.0  ;;  %v3166_v53 = vsel %vm3125_vm0, %v17864_v54, %v17333_v48  ;;  %v3646_v7 = vrot.slane %v13909_v25, 1  ;;  %4609 = vmatpush1.msra.mxu1 %v4553_v27  ;;  %v3775_v41 = vsel %vm17341_vm14, %v3323_v28, 0.0  ;;  %v13938_v54 = vld [vmem:[#allocation2 + $0x8] sm:$0xff]  ;;  %vm17876_vm6 = vmmov %vm17849_vm1 }
 0x308   : > { %v3418_v6 = vmul.f32 %v17821_v21, %v3376_v63  ;;  %v4109_v50 = vadd.f32 %v4051_v31, %v3932_v19  ;;  %v3219_v44 = vadd.f32 %v3166_v53, %v3041_v17  ;;  %v13934_v52 = vmul.f32 %v17825_v56, %v13862_v37  ;;  %v17868_v53 = vld [vmem:[#allocation74_spill] sm:$0xff] }
 0x309   : > { %v4174_v63 = vsel %vm17343_vm9, %v3323_v28, 0.0  ;;  %v3467_v31 = vsel %vm17342_vm11, %v13595_v45, 0.0  ;;  %v17867_v17 = vrot.slane %v13688_v26, 1  ;;  %v3814_v15 = vmul.f32 %v17868_v53, %v13730_v1 }
 0x30a   : > { %v4241_v19 = vadd.f32 %v4217_v40, %v4109_v50  ;;  %v3907_v27 = vmul.f32 %v17827_v42, %v3865_v62  ;;  %v13949_v48 = vadd.f32 %v3418_v6, %v3219_v44  ;;  %v3509_v28 = vmul.f32 %v12581_v60, %v3467_v31 }
 0x30b   : > { %v3647_v25 = vsel %vm3125_vm0, %v17867_v17, %v3646_v7  ;;  %v13954_v23 = vmul.f32 %v17846_v3, %v13798_v16  ;;  %v17336_v40 = vrot.slane %v13934_v52, 1  ;;  %v4216_v26 = vmul.f32 %v17794_v18, %v4174_v63  ;;  %v17869_v17 = vld [vmem:[#allocation96_spill] sm:$0xff] }
 0x30c   : > { %v3706_v35 = vadd.f32 %v3647_v25, %v3529_v59  ;;  %v4265_v45 = vmax.f32 %v4241_v19, 0.0  ;;  %v13959_v50 = vrot.slane %v13938_v54, 2  ;;  %v3533_v62 = vadd.f32 %v3509_v28, %v17869_v17 }
 0x30d   : > { %v3654_v6 = vrot.slane %v13954_v23, 1  ;;  %v3869_v59 = vsel %vm17342_vm11, %v13798_v16, 0.0  ;;  %v3818_v63 = vmul.f32 %v17763_v33, %v13856_v22  ;;  %v13973_v31 = vmul.f32 %v17764_v30, %v13938_v54 }
 0x30e   : > { %v3838_v1 = vadd.f32 %v3814_v15, %v3706_v35  ;;  %4408 = vmatprep.mubr.f32.mxu0 %v4265_v45  ;;  %v3742_v44 = vsel %vm3282_vm3, %v13818_v29, %v13959_v50  ;;  %v13975_v35 = vld [vmem:[#allocation2 + $0xc8] sm:$0xff]  ;;  %v3466_v23 = vsel %vm17342_vm11, %v13653_v9, 0.0  ;;  %v17871_v15 = vrot.slane %v13724_v58, 1 }
 0x30f   : > { %v3655_v25 = vsel %vm3125_vm0, %v3648_v61, %v3654_v6  ;;  %v3779_v29 = vsel %vm17870_vm8, %v3742_v44, 0.0  ;;  %v4178_v22 = vsel %vm17341_vm14, %v3742_v44, 0.0  ;;  %v3911_v9 = vmul.f32 %v17853_v34, %v3869_v59 }
 0x310   : > { %v3931_v19 = vadd.f32 %v3907_v27, %v3838_v1  ;;  %v4049_v28 = vsel %vm3125_vm0, %v17871_v15, %v17336_v40  ;;  %v3710_v45 = vadd.f32 %v3655_v25, %v3533_v62  ;;  %v4056_v27 = vrot.slane %v13973_v31, 1  ;;  %v17872_v31 = vld [vmem:[#allocation88_spill] sm:$0xff] }
 0x311   : > { %v3508_v61 = vmul.f32 %v17860_v0, %v3466_v23  ;;  %v13997_v1 = vmul.f32 %v17863_v12, %v13862_v37  ;;  %v14000_v17 = vrot.slane %v13975_v35, 2  ;;  %v3821_v44 = vmul.f32 %v17763_v33, %v3779_v29 }
 0x312   : > { %v4108_v36 = vadd.f32 %v4049_v28, %v3931_v19  ;;  %v3842_v58 = vadd.f32 %v3818_v63, %v3710_v45  ;;  %v4220_v15 = vmul.f32 %v17856_v55, %v4178_v22  ;;  %v3868_v62 = vsel %vm17342_vm11, %v13862_v37, 0.0 }
 0x313   : > { %v3532_v19 = vadd.f32 %v3508_v61, %v17872_v31  ;;  %v3652_v23 = vrot.slane %v13997_v1, 1  ;;  %v3740_v25 = vsel %vm3282_vm3, %v13882_v8, %v14000_v17  ;;  %v17873_v40 = vrot.slane %v13860_v57, 1 }
 0x314   : > { %v4240_v59 = vadd.f32 %v4216_v26, %v4108_v36  ;;  %v3935_v28 = vadd.f32 %v3911_v9, %v3842_v58  ;;  %v3778_v29 = vsel %vm17849_vm1, %v3740_v25, 0.0  ;;  %v14019_v22 = vmul.f32 %v17825_v56, %v13975_v35 }
 0x315   : > { %v4057_v63 = vsel %vm3125_vm0, %v17873_v40, %v4056_v27  ;;  %v3653_v45 = vsel %vm3125_vm0, %v3646_v7, %v3652_v23  ;;  %v3817_v36 = vmul.f32 %v17868_v53, %v3775_v41  ;;  %v4177_v8 = vsel %vm17341_vm14, %v3740_v25, 0.0  ;;  %v17874_v41 = vld [vmem:[#allocation62_spill] sm:$0xff] }
 0x316   : > { %v4264_v26 = vmax.f32 %v4240_v59, 0.0  ;;  %v4112_v9 = vadd.f32 %v4057_v63, %v3935_v28  ;;  %v3709_v61 = vadd.f32 %v3653_v45, %v3532_v19  ;;  %v3820_v57 = vmul.f32 %v17868_v53, %v3778_v29  ;;  %v4551_v45 = vld [vmem:[%s17086_s5 + $0x8] sm:$0xff] }
 0x317   : > { %v3910_v40 = vmul.f32 %v17827_v42, %v3868_v62  ;;  %v17339_v1 = vrot.slane %v14019_v22, 1  ;;  %v3470_v58 = vsel %vm17340_vm15, %v13798_v16, 0.0  ;;  %v14033_v7 = vmul.f32 %v17846_v3, %v13938_v54  ;;  %4610 = vmatprep.subr.mxu1 %v4551_v45  ;;  %v3051_v45 = vld [vmem:[#allocation2 + $0x8] sm:$0x1] }
 0x318   : > { %4409 = vmatmul.mubr.f32.gmra.mxu0 %v4264_v26  ;;  %v14037_v59 = vmul.f32 %v17764_v30, %v17874_v41  ;;  %v4244_v31 = vadd.f32 %v4220_v15, %v4112_v9  ;;  %v3841_v19 = vadd.f32 %v3817_v36, %v3709_v61  ;;  %v4219_v25 = vmul.f32 %v17794_v18, %v4177_v8 }
 0x319   : > { %v3512_v62 = vmul.f32 %v12581_v60, %v3470_v58  ;;  %v17337_v28 = vrot.slane %v14033_v7, 1  ;;  %v3872_v63 = vsel %vm17340_vm15, %v13938_v54, 0.0  ;;  %v17338_v26 = vrot.slane %v17874_v41, 2 }
 0x31a   : > { %v4268_v15 = vmax.f32 %v4244_v31, 0.0  ;;  %v3934_v36 = vadd.f32 %v3910_v40, %v3841_v19  ;;  %v3469_v9 = vsel %vm17340_vm15, %v13862_v37, 0.0  ;;  %v17875_v61 = vrot.slane %v13934_v52, 1 }
 0x31b   : > { %v3536_v8 = vadd.f32 %v3512_v62, %v13887_v43  ;;  %v3661_v29 = vsel %vm3125_vm0, %v3654_v6, %v17337_v28  ;;  %v4144_v43 = vsel %vm3282_vm3, %v13959_v50, %v17338_v26  ;;  %v3511_v40 = vmul.f32 %v17860_v0, %v3469_v9  ;;  %v17878_v9 = vld [vmem:[#allocation99_spill] sm:$0xff] }
 0x31c   : > { %v4055_v58 = vsel %vm3125_vm0, %v17875_v61, %v17339_v1  ;;  %4413 = vmatprep.mubr.f32.mxu0 %v4268_v15  ;;  %v4181_v62 = vsel %vm17876_vm6, %v4144_v43, 0.0  ;;  %v14071_v52 = vmul.f32 %v17863_v12, %v13975_v35  ;;  %v3914_v6 = vmul.f32 %v17853_v34, %v3872_v63 }
 0x31d   : > { %v4111_v31 = vadd.f32 %v4055_v58, %v3934_v36  ;;  %v3713_v19 = vadd.f32 %v3661_v29, %v3536_v8  ;;  %v17877_v61 = vrot.slane %v14037_v59, 1  ;;  %v3535_v26 = vadd.f32 %v3511_v40, %v13949_v48 }
 0x31e   : > { %v14080_v15 = vmul.f32 %v17825_v56, %v17878_v9  ;;  %v4223_v8 = vmul.f32 %v17856_v55, %v4181_v62  ;;  %v3658_v58 = vrot.slane %v14071_v52, 1  ;;  %v3871_v63 = vsel %vm17340_vm15, %v13975_v35, 0.0 }
 0x31f   : > { %v4063_v28 = vsel %vm3125_vm0, %v4056_v27, %v17877_v61  ;;  %v4243_v29 = vadd.f32 %v4219_v25, %v4111_v31  ;;  %v3845_v36 = vadd.f32 %v3821_v44, %v3713_v19  ;;  %v4141_v43 = vrot.slane %v17878_v9, 2 }
 0x320   : > { %vm17879_vm8 = vcmp.ge.s32.totalorder %v17833_v49, 1  ;;  %v3096_v27 = vmul.f32 %v17696_v51, %v3051_v45  ;;  %v3659_v44 = vsel %vm3125_vm0, %v3652_v23, %v3658_v58  ;;  %v4060_v19 = vrot.slane %v14080_v15, 1 }
 0x321   : > { %v2964_v48 = vsel %vm17879_vm8, %v13798_v16, 0.0  ;;  %v4267_v40 = vmax.f32 %v4243_v29, 0.0  ;;  %v3938_v61 = vadd.f32 %v3914_v6, %v3845_v36  ;;  %v3712_v31 = vadd.f32 %v3659_v44, %v3535_v26 }
 0x322   : > { %v3005_v25 = vmul.f32 %v17695_v20, %v2964_v48  ;;  %v4142_v62 = vsel %vm3282_vm3, %v14000_v17, %v4141_v43  ;;  %v3173_v1 = vrot.slane %v3096_v27, 1  ;;  %vm17880_vm6 = vcmp.lt.s32.totalorder %v17833_v49, 7 }
 0x323   : > { %4414 = vmatmul.mubr.f32.gmra.mxu0 %v4267_v40  ;;  %v4115_v16 = vadd.f32 %v4063_v28, %v3938_v61  ;;  %v4180_v51 = vsel %vm17849_vm1, %v4142_v62, 0.0  ;;  %v3380_v20 = vsel %vm17880_vm6, %v13848_v38, 0.0  ;;  %v3844_v23 = vadd.f32 %v3820_v57, %v3712_v31  ;;  %v17885_v62 = vld [vmem:[#allocation90_spill] sm:$0xff]  ;;  %vm17887_vm1 = vmmov %vm17880_vm6 }
 0x324   : > { %v3045_v45 = vadd.f32 %v17698_v5, %v3005_v25  ;;  %v3913_v26 = vmul.f32 %v17827_v42, %v3871_v63  ;;  %v17881_v6 = vrot.slane %v13814_v11, 1  ;;  %v3422_v36 = vmul.f32 %v12562_v24, %v3380_v20  ;;  %v17882_v5 = vld [vmem:[#allocation63_spill] sm:$0xff]  ;;  %v3050_v20 = vld [vmem:[#allocation2 + $0xc8] sm:$0x1]  ;;  %vm17888_vm6 = vmmov %vm17879_vm8 }
 0x325   : > { %v4247_v48 = vadd.f32 %v4223_v8, %v4115_v16  ;;  %v3473_v27 = vsel %vm17879_vm8, %v13938_v54, 0.0  ;;  %v3590_v40 = vmul.f32 %v17846_v3, %v17882_v5  ;;  %v17883_v38 = vrot.slane %v14019_v22, 1  ;;  %v4550_v3 = vld [vmem:[%s17086_s5] sm:$0xff]  ;;  %v4552_v54 = vld [vmem:[%s17086_s5 + $0x10] sm:$0xff]  ;;  %vm17889_vm8 = vmmov %vm17888_vm6 }
 0x326   : > { %v3174_v29 = vsel %vm3125_vm0, %v17881_v6, %v3173_v1  ;;  %v3937_v61 = vadd.f32 %v3913_v26, %v3844_v23  ;;  %v4222_v57 = vmul.f32 %v17794_v18, %v4180_v51  ;;  %v17884_v1 = vld [vmem:[#allocation69_spill] sm:$0xff]  ;;  %v3515_v44 = vmul.f32 %v12581_v60, %v3473_v27  ;;  %v17886_v51 = vld [vmem:[#allocation92_spill] sm:$0xff]  ;;  %4611 = vmatpush1.msra.mxu1 %v4550_v3 }
 0x327   : > { %v3223_v28 = vadd.f32 %v3174_v29, %v3045_v45  ;;  %v4061_v11 = vsel %vm3125_vm0, %v17883_v38, %v4060_v19  ;;  %v3747_v24 = vrot.slane %v17884_v1, 2  ;;  %v4271_v8 = vmax.f32 %v4247_v48, 0.0  ;;  %10350 = vmatprep.subr.mxu0 %v4552_v54 }
 0x328   : > { %v3666_v25 = vrot.slane %v3590_v40, 1  ;;  %v4114_v22 = vadd.f32 %v4061_v11, %v3937_v61  ;;  %v3992_v16 = vmul.f32 %v17764_v30, %v17885_v62  ;;  %v4149_v45 = vrot.slane %v17886_v51, 2  ;;  %10351 = vmatpush3.msra.mxu0 %v4552_v54  ;;  %v14175_v54 = vpop.trf.xlu0  ;;  %v17899_v51 = vld [vmem:[#allocation89_spill] sm:$0xff] }
 0x329   : > { %v3446_v63 = vadd.f32 %v3422_v36, %v3223_v28  ;;  %v3748_v31 = vsel %vm3282_vm3, %v13959_v50, %v3747_v24  ;;  %4418 = vmatprep.mubr.f32.mxu0 %v4271_v8  ;;  %v3875_v26 = vsel %vm17888_vm6, %v17874_v41, 0.0  ;;  %v2963_v50 = vsel %vm17889_vm8, %v13862_v37, 0.0  ;;  %vm17892_vm6 = vmmov %vm17887_vm1  ;;  %v17894_v24 = vld [vmem:[#allocation84_spill] sm:$0xff] }
 0x32a   : > { %v3782_v23 = vsel %vm17887_vm1, %v3748_v31, 0.0  ;;  %v4246_v30 = vadd.f32 %v4222_v57, %v4114_v22  ;;  %v17890_v6 = vrot.slane %v14033_v7, 1  ;;  %v17891_v36 = vrot.slane %v17874_v41, 2 }
 0x32b   : > { %v3539_v60 = vadd.f32 %v3515_v44, %v3446_v63  ;;  %v3824_v27 = vmul.f32 %v17763_v33, %v3782_v23  ;;  %v3004_v5 = vmul.f32 %v17854_v47, %v2963_v50  ;;  %v3095_v40 = vmul.f32 %v17855_v14, %v3050_v20 }
 0x32c   : > { %v3667_v29 = vsel %vm3125_vm0, %v17890_v6, %v3666_v25  ;;  %v4150_v48 = vsel %vm3282_vm3, %v17891_v36, %v4149_v45  ;;  %v4270_v61 = vmax.f32 %v4246_v30, 0.0  ;;  %v3917_v37 = vmul.f32 %v17853_v34, %v3875_v26  ;;  %v17893_v34 = vld [vmem:[#allocation93_spill] sm:$0xff] }
 0x32d   : > { %v3716_v28 = vadd.f32 %v3667_v29, %v3539_v60  ;;  %v4068_v38 = vrot.slane %v3992_v16, 1  ;;  %v3379_v7 = vsel %vm17887_vm1, %v13918_v13, 0.0  ;;  %v4184_v41 = vsel %vm17892_vm6, %v4150_v48, 0.0  ;;  %v17898_v16 = vld [vmem:[#allocation85_spill] sm:$0xff] }
 0x32e   : > { %v3044_v57 = vadd.f32 %v17861_v2, %v3004_v5  ;;  %v3171_v1 = vrot.slane %v3095_v40, 1  ;;  %4419 = vmatmul.mubr.f32.gmra.mxu0 %v4270_v61  ;;  %v3421_v33 = vmul.f32 %v17821_v21, %v3379_v7  ;;  %v3472_v47 = vsel %vm17889_vm8, %v13975_v35, 0.0  ;;  %v14177_v35 = vpop.trf.xlu1 }
 0x32f   : > { %v3848_v11 = vadd.f32 %v3824_v27, %v3716_v28  ;;  %v3589_v14 = vmul.f32 %v17863_v12, %v17893_v34  ;;  %v3745_v8 = vrot.slane %v17894_v24, 2  ;;  %v17895_v63 = vrot.slane %v13879_v46, 1  ;;  %17897 = vst [vmem:[#allocation98_spill] sm:$0xff] %v14177_v35  ;;  %v17904_v34 = vld [vmem:[#allocation36_spill] sm:$0xff] }
 0x330   : > { %v17896_v2 = vrot.slane %v14037_v59, 1  ;;  %v4226_v22 = vmul.f32 %v17856_v55, %v4184_v41  ;;  %v3514_v31 = vmul.f32 %v17860_v0, %v3472_v47  ;;  %v3991_v59 = vmul.f32 %v17825_v56, %v17898_v16  ;;  %v17912_v16 = vld [vmem:[#allocation18_spill] sm:$0xff] }
 0x331   : > { %v3941_v13 = vadd.f32 %v3917_v37, %v3848_v11  ;;  %v3172_v44 = vsel %vm3125_vm0, %v17895_v63, %v3171_v1  ;;  %v3746_v21 = vsel %vm3282_vm3, %v14000_v17, %v3745_v8  ;;  %v3664_v46 = vrot.slane %v3589_v14, 1 }
 0x332   : > { %v4069_v25 = vsel %vm3125_vm0, %v17896_v2, %v4068_v38  ;;  %v3222_v3 = vadd.f32 %v3172_v44, %v3044_v57  ;;  %v4147_v45 = vrot.slane %v17899_v51, 2  ;;  %vm7144_vm1 = vcmask 523264   ;;  %v17900_v57 = vld [vmem:[#allocation34_spill] sm:$0xff] }
 0x333   : > { %v4118_v12 = vadd.f32 %v4069_v25, %v3941_v13  ;;  %v3781_v17 = vsel %vm17892_vm6, %v3746_v21, 0.0  ;;  %v7151_v60 = vmul.f32 %v14175_v54, %v14175_v54  ;;  %v7143_v55 = vmul.f32 %v14177_v35, %v14177_v35  ;;  %v6334_v51 = vld [vmem:[%s17089_s8 + $0xf8] sm:$0xff]  ;;  %v14627_v35 = vld [vmem:[%s17087_s6 + $0x5] ss:$8 sm:$0x7] }
 0x334   : > { %v3445_v62 = vadd.f32 %v3421_v33, %v3222_v3  ;;  %v3874_v0 = vsel %vm17889_vm8, %v17878_v9, 0.0  ;;  %v3665_v56 = vsel %vm3125_vm0, %v3658_v58, %v3664_v46  ;;  %v3823_v29 = vmul.f32 %v17868_v53, %v3781_v17  ;;  %v17908_v3 = vld [vmem:[#allocation21_spill] sm:$0xff]  ;;  %9998 = vmatprep.subr.mxu1 %v6334_v51 }
 0x335   : > { %v4250_v20 = vadd.f32 %v4226_v22, %v4118_v12  ;;  %v7152_v50 = vsel %vm7144_vm1, %v7151_v60, 0.0  ;;  %v7145_v30 = vsel %vm7144_vm1, %v7143_v55, 0.0  ;;  %v4148_v36 = vsel %vm3282_vm3, %v4141_v43, %v4147_v45  ;;  %v6318_v45 = vld [vmem:[%s17089_s8 + $0x78] sm:$0xff] }
 0x336   : > { %v3538_v23 = vadd.f32 %v3514_v31, %v3445_v62  ;;  %7153 = vadd.xlane.f32.xlu0 %v7152_v50  ;;  %7146 = vadd.xlane.f32.xlu1 %v7145_v30  ;;  %v4066_v48 = vrot.slane %v3991_v59, 1  ;;  %v3916_v52 = vmul.f32 %v17827_v42, %v3874_v0  ;;  %v4183_v58 = vsel %vm17892_vm6, %v4148_v36, 0.0  ;;  %v9940_v61 = vpop.f32.mrf.mxu0  ;;  %v17915_v50 = vld [vmem:[#allocation22_spill] sm:$0xff] }
 0x337   : > { %v4274_v26 = vmax.f32 %v4250_v20, 0.0  ;;  %v4225_v9 = vmul.f32 %v17794_v18, %v4183_v58  ;;  %vm17902_vm8 = vcmask 130048   ;;  %v6333_v20 = vld [vmem:[%s17089_s8 + $0xf0] sm:$0xff]  ;;  %v6332_v58 = vld [vmem:[%s17089_s8 + $0xe8] sm:$0xff]  ;;  %v2371_v51 = vand.u32 2147483647, %v17912_v16 }
 0x338   : > { %v3715_v6 = vadd.f32 %v3665_v56, %v3538_v23  ;;  %v4067_v5 = vsel %vm3125_vm0, %v4060_v19, %v4066_v48  ;;  %v9941_v37 = vpop.f32.mrf.mxu0  ;;  %vm17903_vm6 = vmmov %vm17902_vm8  ;;  %vm2426_vm11 = vcmp.ge.f32.partialorder %v17908_v3, 0.0  ;;  %vm2425_vm9 = vcmp.ge.f32.partialorder %v17904_v34, 0.0 }
 0x339   : > { %4423 = vmatprep.mubr.f32.mxu0 %v4274_v26  ;;  %v9942_v38 = vadd.f32 %v9941_v37, %v9940_v61  ;;  %vm17906_vm15 = vmmov %vm17903_vm6 }
 0x33a   : > { %v3847_v28 = vadd.f32 %v3823_v29, %v3715_v6  ;;  %vm17907_vm14 = vmmov %vm17903_vm6 }
 0x33c   : > { %v3940_v27 = vadd.f32 %v3916_v52, %v3847_v28  ;;  %v6317_v52 = vld [vmem:[%s17089_s8 + $0x70] sm:$0xff] }
 0x33e   : > { %v4117_v53 = vadd.f32 %v4067_v5, %v3940_v27  ;;  %v17919_v27 = vld [vmem:[#allocation23_spill] sm:$0xff] }
 0x340   : > { %v4249_v40 = vadd.f32 %v4225_v9, %v4117_v53  ;;  %v6316_v53 = vld [vmem:[%s17089_s8 + $0x68] sm:$0xff]  ;;  %v6331_v9 = vld [vmem:[%s17089_s8 + $0xe0] sm:$0xff] }
 0x342   : > { %v4273_v43 = vmax.f32 %v4249_v40, 0.0 }
 0x344   : > { %4424 = vmatmul.mubr.f32.gmra.mxu0 %v4273_v43 }
 0x34c   : > { %v10338_v7 = vpop.f32.mrf.mxu1 }
 0x34e   : > { %v4495_v11 = vpop.f32.mrf.mxu1 }
 0x34f   : > { %v4496_v42 = vadd.f32 %v9942_v38, %v4495_v11 }
 0x351   : > { %v4534_v41 = vmax.f32 %v4496_v42, 0.0  ;;  %v17922_v42 = vld [vmem:[#allocation24_spill] sm:$0xff] }
 0x353   : > { %v14210_v1 = vadd.f32 %v4534_v41, %v17900_v57 }
 0x355   : > { %17901 = vst [vmem:[#allocation67_spill] sm:$0xff] %v14210_v1  ;;  %9696 = vmatmul.mubr.msk.f32.vlgmr.msra.gmra.mxu1 %vm17902_vm8, %v14210_v1  ;;  %10352 = vmatprep.mubr.msk.f32.mxu0 %vm17903_vm6, %v14210_v1  ;;  %vm17910_vm8 = vmmov %vm17903_vm6 }
 0x356   : > { %4650 = vmatprep.mubr.f32.mxu1 %v17866_v10  ;;  %9999 = vmatpush3.msra.mxu1 %v6318_v45 }
 0x357   : > { %10000 = vmatprep.subr.mxu1 %v6333_v20 }
 0x358   : > { %10001 = vmatpush3.msra.mxu1 %v6317_v52 }
 0x359   : > { %10002 = vmatprep.subr.mxu1 %v6332_v58 }
 0x35a   : > { %10003 = vmatpush3.msra.mxu1 %v6316_v53 }
 0x35b   : > { %10004 = vmatprep.subr.mxu1 %v6331_v9 }
 0x364   : > { %v9943_v18 = vpop.f32.mrf.mxu0 }
 0x366   : > { %v9944_v15 = vpop.f32.mrf.mxu0 }
 0x367   : > { %v9945_v19 = vadd.f32 %v9944_v15, %v9943_v18 }
 0x369   : > { %v4501_v33 = vadd.f32 %v10338_v7, %v9945_v19 }
 0x36b   : > { %v4535_v47 = vmax.f32 %v4501_v33, 0.0  ;;  %v17926_v33 = vld [vmem:[#allocation25_spill] sm:$0xff] }
 0x36d   : > { %v14218_v14 = vadd.f32 %v4535_v47, %v17904_v34  ;;  %v2375_v47 = vand.u32 2147483647, %v17926_v33 }
 0x36f   : > { %17905 = vst [vmem:[#allocation80_spill] sm:$0xff] %v14218_v14  ;;  %9697 = vmatmul.mubr.msk.f32.gmra.mxu1 %vm17906_vm15, %v14218_v14  ;;  %10353 = vmatmul.mubr.msk.f32.vlgmr.msra.gmra.mxu0 %vm17907_vm14, %v14218_v14  ;;  %vm17911_vm15 = vmmov %vm17903_vm6 }
 0x370   : > { %4656 = vmatprep.mubr.f32.mxu1 %v17866_v10  ;;  %vm17914_vm14 = vmmov %vm17903_vm6 }
 0x37c   : > { %v10341_v24 = vpop.f32.mrf.mxu1 }
 0x37e   : > { %v4505_v44 = vpop.f32.mrf.mxu1 }
 0x392   : > { %v9946_v8 = vpop.f32.mrf.mxu0 }
 0x394   : > { %v9947_v13 = vpop.f32.mrf.mxu0 }
 0x395   : > { %v9948_v63 = vadd.f32 %v9947_v13, %v9946_v8  ;;  %v2374_v8 = vand.u32 2147483647, %v17922_v42  ;;  %v6315_v13 = vld [vmem:[%s17089_s8 + $0x60] sm:$0xff] }
 0x396   : > { %10005 = vmatpush3.msra.mxu1 %v6315_v13 }
 0x397   : > { %v4506_v2 = vadd.f32 %v9948_v63, %v4505_v44  ;;  %v6350_v63 = vld [vmem:[%s17089_s8 + $0x178] sm:$0xff]  ;;  %v2382_v20 = vsub.f32 0.0, %v2374_v8 }
 0x398   : > { %v6330_v44 = vld [vmem:[%s17089_s8 + $0xd8] sm:$0xff]  ;;  %10364 = vmatprep.subr.mxu0 %v6350_v63 }
 0x399   : > { %v4536_v25 = vmax.f32 %v4506_v2, 0.0  ;;  %v2373_v2 = vand.u32 2147483647, %v17919_v27  ;;  %10006 = vmatprep.subr.mxu1 %v6330_v44  ;;  %10365 = vmatpush3.msra.mxu0 %v6350_v63 }
 0x39b   : > { %v14226_v21 = vadd.f32 %v4536_v25, %v17908_v3 }
 0x39d   : > { %17909 = vst [vmem:[#allocation91_spill] sm:$0xff] %v14226_v21  ;;  %9698 = vmatmul.mubr.msk.f32.gmra.mxu1 %vm17910_vm8, %v14226_v21  ;;  %10355 = vmatprep.mubr.msk.f32.mxu0 %vm17911_vm15, %v14226_v21  ;;  %vm17917_vm8 = vmmov %vm17903_vm6 }
 0x39e   : > { %4662 = vmatprep.mubr.f32.mxu1 %v17866_v10  ;;  %vm17918_vm15 = vmmov %vm17903_vm6 }
 0x3a0   : > { %v10344_v17 = vpop.f32.mrf.mxu1 }
 0x3a2   : > { %v4515_v0 = vpop.f32.mrf.mxu1 }
 0x3b3   : > { %v9949_v12 = vpop.f32.mrf.mxu0 }
 0x3b5   : > { %v9950_v22 = vpop.f32.mrf.mxu0 }
 0x3b6   : > { %v9951_v31 = vadd.f32 %v9950_v22, %v9949_v12  ;;  %v2372_v12 = vand.u32 2147483647, %v17915_v50  ;;  %v6314_v22 = vld [vmem:[%s17089_s8 + $0x58] sm:$0xff] }
 0x3b7   : > { %10007 = vmatpush3.msra.mxu1 %v6314_v22 }
 0x3b8   : > { %v4511_v46 = vadd.f32 %v10341_v24, %v9951_v31  ;;  %v6349_v31 = vld [vmem:[%s17089_s8 + $0x170] sm:$0xff] }
 0x3b9   : > { %10366 = vmatprep.subr.mxu0 %v6349_v31 }
 0x3ba   : > { %v4537_v62 = vmax.f32 %v4511_v46, 0.0  ;;  %v6329_v46 = vld [vmem:[%s17089_s8 + $0xd0] sm:$0xff]  ;;  %10367 = vmatpush3.msra.mxu0 %v6349_v31 }
 0x3bb   : > { %10008 = vmatprep.subr.mxu1 %v6329_v46  ;;  %v6313_v31 = vld [vmem:[%s17089_s8 + $0x50] sm:$0xff]  ;;  %v6348_v46 = vld [vmem:[%s17089_s8 + $0x168] sm:$0xff] }
 0x3bc   : > { %v14234_v59 = vadd.f32 %v4537_v62, %v17912_v16  ;;  %v2383_v62 = vsub.f32 0.0, %v2375_v47  ;;  %10009 = vmatpush3.msra.mxu1 %v6313_v31  ;;  %10368 = vmatprep.subr.mxu0 %v6348_v46 }
 0x3bd   : > { %10369 = vmatpush3.msra.mxu0 %v6348_v46 }
 0x3be   : > { %17913 = vst [vmem:[#allocation83_spill] sm:$0xff] %v14234_v59  ;;  %9699 = vmatmul.mubr.msk.f32.gmra.mxu1 %vm17914_vm14, %v14234_v59  ;;  %10356 = vmatmul.mubr.msk.f32.gmra.mxu0 %vm17903_vm6, %v14234_v59  ;;  %vm17921_vm14 = vmmov %vm17903_vm6  ;;  %v6322_v59 = vld [vmem:[%s17089_s8 + $0x98] sm:$0xff] }
 0x3bf   : > { %4668 = vmatprep.mubr.f32.mxu1 %v17866_v10 }
 0x3c4   : > { %v10347_v40 = vpop.f32.mrf.mxu1 }
 0x3c6   : > { %v4525_v38 = vpop.f32.mrf.mxu1 }
 0x3d8   : > { %v9952_v60 = vpop.f32.mrf.mxu0 }
 0x3da   : > { %v9953_v55 = vpop.f32.mrf.mxu0 }
 0x3db   : > { %v9954_v23 = vadd.f32 %v9953_v55, %v9952_v60  ;;  %v2381_v60 = vsub.f32 0.0, %v2373_v2  ;;  %v2380_v55 = vsub.f32 0.0, %v2372_v12 }
 0x3dd   : > { %v4516_v26 = vadd.f32 %v9954_v23, %v4515_v0  ;;  %v2369_v23 = vand.u32 2147483647, %v17904_v34  ;;  %v2398_v0 = vmul.f32 1.442695, %v2383_v62  ;;  %v6328_v62 = vld [vmem:[%s17089_s8 + $0xc8] sm:$0xff] }
 0x3de   : > { %10010 = vmatprep.subr.mxu1 %v6328_v62 }
 0x3df   : > { %v4538_v56 = vmax.f32 %v4516_v26, 0.0  ;;  %v2379_v26 = vsub.f32 0.0, %v2371_v51  ;;  %10606 = vpow2.f32 %v2398_v0 }
 0x3e1   : > { %v14251_v30 = vadd.f32 %v4538_v56, %v17915_v50  ;;  %v2396_v56 = vmul.f32 1.442695, %v2382_v20  ;;  %v2390_v52 = vmul.f32 1.442695, %v2379_v26 }
 0x3e3   : > { %17916 = vst [vmem:[#allocation100_spill] sm:$0xff] %v14251_v30  ;;  %v9955_v6 = vpop.f32.mrf.mxu0  ;;  %9700 = vmatmul.mubr.msk.f32.gmra.mxu1 %vm17917_vm8, %v14251_v30  ;;  %10358 = vmatprep.mubr.msk.f32.mxu0 %vm17918_vm15, %v14251_v30  ;;  %vm17924_vm8 = vmmov %vm17903_vm6  ;;  %10608 = vpow2.f32 %v2396_v56  ;;  %v6311_v56 = vld [vmem:[%s17089_s8 + $0x40] sm:$0xff] }
 0x3e4   : > { %4674 = vmatprep.mubr.f32.mxu1 %v17866_v10  ;;  %vm17925_vm15 = vmmov %vm17903_vm6 }
 0x3e5   : > { %v9956_v29 = vpop.f32.mrf.mxu0 }
 0x3e6   : > { %v9957_v36 = vadd.f32 %v9956_v29, %v9955_v6  ;;  %v2394_v29 = vmul.f32 1.442695, %v2381_v60  ;;  %v6347_v60 = vld [vmem:[%s17089_s8 + $0x160] sm:$0xff] }
 0x3e7   : > { %10370 = vmatprep.subr.mxu0 %v6347_v60 }
 0x3e8   : > { %v4521_v48 = vadd.f32 %v10344_v17, %v9957_v36  ;;  %v2370_v17 = vand.u32 2147483647, %v17908_v3  ;;  %v2392_v36 = vmul.f32 1.442695, %v2380_v55  ;;  %10610 = vpow2.f32 %v2394_v29  ;;  %v6327_v55 = vld [vmem:[%s17089_s8 + $0xc0] sm:$0xff]  ;;  %10371 = vmatpush3.msra.mxu0 %v6347_v60  ;;  %v6326_v29 = vld [vmem:[%s17089_s8 + $0xb8] sm:$0xff] }
 0x3ea   : > { %v4539_v28 = vmax.f32 %v4521_v48, 0.0  ;;  %v2378_v6 = vsub.f32 0.0, %v2370_v17  ;;  %v2377_v48 = vsub.f32 0.0, %v2369_v23  ;;  %10612 = vpow2.f32 %v2392_v36  ;;  %v6312_v17 = vld [vmem:[%s17089_s8 + $0x48] sm:$0xff] }
 0x3eb   : > { %10614 = vpow2.f32 %v2390_v52  ;;  %10011 = vmatpush3.msra.mxu1 %v6312_v17  ;;  %v6310_v52 = vld [vmem:[%s17089_s8 + $0x38] sm:$0xff] }
 0x3ec   : > { %v14265_v5 = vadd.f32 %v4539_v28, %v17919_v27  ;;  %v2368_v28 = vand.u32 2147483647, %v17900_v57  ;;  %v2388_v58 = vmul.f32 1.442695, %v2378_v6  ;;  %v2386_v53 = vmul.f32 1.442695, %v2377_v48  ;;  %10012 = vmatprep.subr.mxu1 %v6327_v55 }
 0x3ed   : > { %v6346_v6 = vld [vmem:[%s17089_s8 + $0x158] sm:$0xff]  ;;  %10013 = vmatpush3.msra.mxu1 %v6311_v56 }
 0x3ee   : > { %17920 = vst [vmem:[#allocation87_spill] sm:$0xff] %v14265_v5  ;;  %v9958_v43 = vpop.f32.mrf.mxu0  ;;  %9701 = vmatmul.mubr.msk.f32.gmra.mxu1 %vm17921_vm14, %v14265_v5  ;;  %10359 = vmatmul.mubr.msk.f32.gmra.mxu0 %vm17903_vm6, %v14265_v5  ;;  %vm17928_vm14 = vmmov %vm17903_vm6  ;;  %v2376_v9 = vsub.f32 0.0, %v2368_v28  ;;  %10616 = vpow2.f32 %v2388_v58  ;;  %v7154_v28 = vpop.xlane.xlu0 %7153  ;;  %v6345_v58 = vld [vmem:[%s17089_s8 + $0x150] sm:$0xff] }
 0x3ef   : > { %4680 = vmatprep.mubr.f32.mxu1 %v17866_v10  ;;  %10618 = vpow2.f32 %v2386_v53  ;;  %10372 = vmatprep.subr.mxu0 %v6346_v6  ;;  %v6325_v53 = vld [vmem:[%s17089_s8 + $0xb0] sm:$0xff] }
 0x3f0   : > { %v9959_v61 = vpop.f32.mrf.mxu0  ;;  %10014 = vmatprep.subr.mxu1 %v6326_v29  ;;  %10373 = vmatpush3.msra.mxu0 %v6346_v6 }
 0x3f1   : > { %v9960_v37 = vadd.f32 %v9959_v61, %v9958_v43  ;;  %v10607_v43 = vpop.eup %10606  ;;  %10015 = vmatpush3.msra.mxu1 %v6310_v52  ;;  %10374 = vmatprep.subr.mxu0 %v6345_v58 }
 0x3f2   : > { %v14319_v61 = vpop.eup %10608  ;;  %10016 = vmatprep.subr.mxu1 %v6325_v53  ;;  %10375 = vmatpush3.msra.mxu0 %v6345_v58 }
 0x3f3   : > { %v4526_v7 = vadd.f32 %v9960_v37, %v4525_v38 }
 0x3f5   : > { %v4540_v11 = vmax.f32 %v4526_v7, 0.0  ;;  %v14321_v37 = vpop.eup %10610  ;;  %v2407_v7 = vadd.f32 1.0, %v10607_v43 }
 0x3f7   : > { %v14279_v41 = vadd.f32 %v4540_v11, %v17922_v42  ;;  %v14323_v38 = vpop.eup %10612 }
 0x3f8   : > { %v14325_v11 = vpop.eup %10614  ;;  %v2404_v13 = vadd.f32 1.0, %v14323_v38 }
 0x3f9   : > { %17923 = vst [vmem:[#allocation86_spill] sm:$0xff] %v14279_v41  ;;  %9702 = vmatmul.mubr.msk.f32.gmra.mxu1 %vm17924_vm8, %v14279_v41  ;;  %10361 = vmatprep.mubr.msk.f32.mxu0 %vm17925_vm15, %v14279_v41  ;;  %vm2431_vm8 = vcmp.ge.f32.partialorder %v17926_v33, 0.0  ;;  %vm2430_vm15 = vcmp.ge.f32.partialorder %v17922_v42, 0.0 }
 0x3fa   : > { %4686 = vmatprep.mubr.f32.mxu1 %v17866_v10 }
 0x404   : > { %v9961_v18 = vpop.f32.mrf.mxu0 }
 0x406   : > { %v9962_v15 = vpop.f32.mrf.mxu0 }
 0x407   : > { %v9963_v19 = vadd.f32 %v9962_v15, %v9961_v18  ;;  %v2406_v15 = vadd.f32 1.0, %v14319_v61 }
 0x409   : > { %v4531_v24 = vadd.f32 %v10347_v40, %v9963_v19  ;;  %v2384_v40 = vmul.f32 1.442695, %v2376_v9  ;;  %v14328_v19 = vpop.eup %10616 }
 0x40a   : > { %v14332_v63 = vpop.eup %10618  ;;  %v2402_v12 = vadd.f32 1.0, %v14328_v19 }
 0x40b   : > { %v4541_v25 = vmax.f32 %v4531_v24, 0.0  ;;  %10620 = vpow2.f32 %v2384_v40  ;;  %v2405_v24 = vadd.f32 1.0, %v14321_v37  ;;  %v2401_v51 = vadd.f32 1.0, %v14332_v63 }
 0x40c   : > { %10622 = vrcp.f32 %v2407_v7 }
 0x40d   : > { %v14310_v45 = vadd.f32 %v4541_v25, %v17926_v33  ;;  %v2403_v25 = vadd.f32 1.0, %v14325_v11  ;;  %10624 = vrcp.f32 %v2406_v15 }
 0x40e   : > { %10626 = vrcp.f32 %v2405_v24 }
 0x40f   : > { %17927 = vst [vmem:[#allocation71_spill] sm:$0xff] %v14310_v45  ;;  %9703 = vmatmul.mubr.msk.f32.gmra.mxu1 %vm17928_vm14, %v14310_v45  ;;  %10362 = vmatmul.mubr.msk.f32.gmra.mxu0 %vm17903_vm6, %v14310_v45  ;;  %10628 = vrcp.f32 %v2404_v13  ;;  %vm2429_vm14 = vcmp.ge.f32.partialorder %v17919_v27, 0.0  ;;  %vm2428_vm6 = vcmp.ge.f32.partialorder %v17915_v50, 0.0  ;;  %v5284_v45 = vld [vmem:[#allocation2 + $0xb0] sm:$0xfc] }
 0x410   : > { %10630 = vrcp.f32 %v2403_v25  ;;  %v5317_v49 = vrot.slane %v5284_v45, 2 }
 0x411   : > { %10632 = vrcp.f32 %v2402_v12 }
 0x412   : > { %10634 = vrcp.f32 %v2401_v51  ;;  %v17929_v51 = vld [vmem:[#allocation42_spill] sm:$0xff] }
 0x415   : > { %v4646_v18 = vpop.f32.mrf.mxu1 }
 0x416   : > { %v4798_v47 = vmax.f32 %v4646_v18, 0.0  ;;  %v7155_v18 = vmax.f32 %v7154_v28, 1e-24 }
 0x417   : > { %v4648_v8 = vpop.f32.mrf.mxu1 }
 0x418   : > { %v14334_v44 = vrot.slane %v4798_v47, 7  ;;  %v4799_v2 = vmax.f32 %v4648_v8, 0.0  ;;  %v14351_v20 = vpop.eup %10620 }
 0x419   : > { %v2400_v23 = vadd.f32 1.0, %v14351_v20  ;;  %v10623_v0 = vpop.eup %10622 }
 0x41a   : > { %4952 = vst [vmem:[#allocation2 + $0x18] sm:$0xfe] %v14334_v44  ;;  %v14339_v22 = vrot.slane %v4799_v2, 7  ;;  %v10625_v26 = vpop.eup %10624  ;;  %v2439_v9 = vmul.f32 %v10623_v0, %v10607_v43 }
 0x41b   : > { %10636 = vrcp.f32 %v2400_v23  ;;  %v10627_v36 = vpop.eup %10626  ;;  %v2438_v24 = vmul.f32 %v10625_v26, %v14319_v61  ;;  %v6309_v23 = vld [vmem:[%s17089_s8 + $0x30] sm:$0xff] }
 0x41c   : > { %4953 = vst [vmem:[#allocation2 + $0x50] sm:$0xfe] %v14339_v22  ;;  %v10629_v48 = vpop.eup %10628  ;;  %v2447_v47 = vsel %vm2431_vm8, %v10623_v0, %v2439_v9  ;;  %v2437_v13 = vmul.f32 %v10627_v36, %v14321_v37  ;;  %vm2427_vm8 = vcmp.ge.f32.partialorder %v17912_v16, 0.0  ;;  %10638 = vrsqrt.f32 %v7155_v18  ;;  %v6344_v0 = vld [vmem:[%s17089_s8 + $0x148] sm:$0xff]  ;;  %10017 = vmatpush3.msra.mxu1 %v6309_v23  ;;  %v17931_v9 = vld [vmem:[#allocation45_spill] sm:$0xff] }
 0x41d   : > { %v10631_v40 = vpop.eup %10630  ;;  %v2436_v2 = vmul.f32 %v10629_v48, %v14323_v38  ;;  %v2455_v17 = vmul.f32 %v2447_v47, %v17929_v51  ;;  %v2446_v55 = vsel %vm2430_vm15, %v10625_v26, %v2438_v24  ;;  %10376 = vmatprep.subr.mxu0 %v6344_v0 }
 0x41e   : > { %v10633_v7 = vpop.eup %10632  ;;  %v2435_v25 = vmul.f32 %v10631_v40, %v14325_v11  ;;  %v2445_v56 = vsel %vm2429_vm14, %v10627_v36, %v2437_v13  ;;  %10377 = vmatpush3.msra.mxu0 %v6344_v0  ;;  %v6308_v36 = vld [vmem:[%s17089_s8 + $0x28] sm:$0xff]  ;;  %v17934_v13 = vld [vmem:[#allocation17_spill] sm:$0xff]  ;;  %v5109_v0 = vld [vmem:[#allocation2] sm:$0xfe] }
 0x41f   : > { %v10635_v15 = vpop.eup %10634  ;;  %v2434_v12 = vmul.f32 %v10633_v7, %v14328_v19  ;;  %v2444_v6 = vsel %vm2428_vm6, %v10629_v48, %v2436_v2  ;;  %v6323_v48 = vld [vmem:[%s17089_s8 + $0xa0] sm:$0xff] }
 0x420   : > { %v2433_v37 = vmul.f32 %v10635_v15, %v14332_v63  ;;  %v6324_v63 = vld [vmem:[%s17089_s8 + $0xa8] sm:$0xff]  ;;  %v2443_v26 = vsel %vm2427_vm8, %v10631_v40, %v2435_v25  ;;  %v2454_v40 = vmul.f32 %v2446_v55, %v17931_v9  ;;  %v17935_v2 = vld [vmem:[#allocation19_spill] sm:$0xff] }
 0x421   : > { %v2442_v29 = vsel %vm2426_vm11, %v10633_v7, %v2434_v12  ;;  %10018 = vmatprep.subr.mxu1 %v6324_v63  ;;  %v17936_v12 = vld [vmem:[#allocation37_spill] sm:$0xff]  ;;  %v5285_v63 = vld [vmem:[#allocation2] sm:$0xfc] }
 0x422   : > { %v2441_v7 = vsel %vm2425_vm9, %v10635_v15, %v2433_v37  ;;  %10019 = vmatpush3.msra.mxu1 %v6308_v36  ;;  %v2450_v25 = vmul.f32 %v2442_v29, %v17935_v2  ;;  %vm2424_vm9 = vcmp.ge.f32.partialorder %v17900_v57, 0.0  ;;  %v14466_v37 = vadd.f32 %v2454_v40, %v17922_v42  ;;  %v17950_v40 = vld [vmem:[#allocation64_spill] sm:$0xff] }
 0x423   : > { %10020 = vmatprep.subr.mxu1 %v6323_v48  ;;  %v5320_v29 = vrot.slane %v5285_v63, 2  ;;  %v14545_v63 = vld [vmem:[%s17087_s6 + $0x4] ss:$8 sm:$0x7] }
 0x424   : > { %17938 = vst [vmem:[#allocation78_spill] sm:$0xff] %v14466_v37  ;;  %v14487_v42 = vadd.f32 %v2450_v25, %v17908_v3  ;;  %v5574_v2 = vld [vmem:[#allocation2 + $0x50] sm:$0xfe] }
 0x426   : > { %17944 = vst [vmem:[#allocation103_spill] sm:$0xff] %v14487_v42 }
 0x428   : > { %v10637_v38 = vpop.eup %10636 }
 0x429   : > { %v2432_v18 = vmul.f32 %v10637_v38, %v14351_v20  ;;  %v17933_v20 = vld [vmem:[#allocation40_spill] sm:$0xff]  ;;  %v10639_v36 = vpop.eup %10638 }
 0x42a   : > { %v2452_v15 = vmul.f32 %v2444_v6, %v17933_v20  ;;  %v17947_v6 = vld [vmem:[#allocation35_spill] sm:$0xff] }
 0x42c   : > { %v14481_v23 = vadd.f32 %v2452_v15, %v17915_v50  ;;  %v14532_v15 = vld [vmem:[%s17087_s6 + $0x2] ss:$8 sm:$0x7] }
 0x42e   : > { %17942 = vst [vmem:[#allocation82_spill] sm:$0xff] %v14481_v23 }
 0x42f   : > { %v4652_v43 = vpop.f32.mrf.mxu1  ;;  %v10354_v8 = vpop.f32.mrf.mxu0 }
 0x430   : > { %v4801_v31 = vmax.f32 %v4652_v43, 0.0  ;;  %v4803_v46 = vmax.f32 %v10354_v8, 0.0  ;;  %v17932_v43 = vld [vmem:[#allocation38_spill] sm:$0xff] }
 0x431   : > { %v4654_v61 = vpop.f32.mrf.mxu1  ;;  %v4759_v62 = vpop.f32.mrf.mxu0  ;;  %v2453_v8 = vmul.f32 %v2445_v56, %v17932_v43  ;;  %v5750_v43 = vld [vmem:[#allocation2 + $0x50] sm:$0xfc] }
 0x432   : > { %v14396_v60 = vrot.slane %v4801_v31, 7  ;;  %v4802_v11 = vmax.f32 %v4654_v61, 0.0  ;;  %v4800_v19 = vmax.f32 %v4759_v62, 0.0  ;;  %v14422_v52 = vrot.slane %v4803_v46, 7 }
 0x433   : > { %v2449_v31 = vmul.f32 %v2441_v7, %v17936_v12  ;;  %v2440_v46 = vsel %vm2424_vm9, %v10637_v38, %v2432_v18  ;;  %v14460_v61 = vld [vmem:[%s17087_s6 + $0x1] ss:$8 sm:$0x7]  ;;  %v14463_v62 = vadd.f32 %v2455_v17, %v17926_v33 }
 0x434   : > { %v14420_v28 = vsel %vm2794_vm2, %v14334_v44, %v14396_v60  ;;  %17930 = vst [vmem:[#allocation106_spill] sm:$0xff] %v14422_v52  ;;  %v14424_v58 = vrot.slane %v4802_v11, 7  ;;  %v4882_v53 = vrot.slane %v4800_v19, 7  ;;  %v6343_v44 = vld [vmem:[%s17089_s8 + $0x140] sm:$0xff]  ;;  %v14469_v11 = vadd.f32 %v2453_v8, %v17919_v27  ;;  %v14489_v27 = vld [vmem:[#allocation2 + $0x50] sm:$0xff] }
 0x435   : > { %4955 = vst [vmem:[#allocation2 + $0x30] sm:$0xff] %v14420_v28  ;;  %10378 = vmatprep.subr.mxu0 %v6343_v44  ;;  %17937 = vst [vmem:[#allocation75_spill] sm:$0xff] %v14463_v62  ;;  %v14474_v19 = vld [vmem:[%s17087_s6] ss:$8 sm:$0x7]  ;;  %v14496_v56 = vadd.f32 %v2449_v31, %v17904_v34  ;;  %v2448_v50 = vmul.f32 %v2440_v46, %v17947_v6  ;;  %v14571_v6 = vmul.f32 %v10639_v36, %v14175_v54 }
 0x436   : > { %v14443_v47 = vsel %vm2794_vm2, %v14339_v22, %v14424_v58  ;;  %v14447_v24 = vsel %vm2794_vm2, %v4882_v53, %v14422_v52  ;;  %4954 = vst [vmem:[#allocation2 + $0x68] sm:$0xfe] %v4882_v53  ;;  %10379 = vmatpush3.msra.mxu0 %v6343_v44  ;;  %v2451_v22 = vmul.f32 %v2443_v26, %v17934_v13  ;;  %17939 = vst [vmem:[#allocation76_spill] sm:$0xff] %v14469_v11  ;;  %v17940_v38 = vld [vmem:[#allocation59_spill] sm:$0xff]  ;;  %v17948_v44 = vld [vmem:[#allocation60_spill] sm:$0xff] }
 0x437   : > { %4956 = vst [vmem:[#allocation2 + $0x48] sm:$0xff] %v14443_v47  ;;  %4957 = vst [vmem:[#allocation2 + $0x80] sm:$0xff] %v14447_v24  ;;  %v14478_v55 = vrot.slane %v14460_v61, %v17940_v38  ;;  %v14493_v17 = vrot.slane %v14474_v19, %v17940_v38  ;;  %v17344_v53 = vrot.slane %v14489_v27, 2  ;;  %v14513_v34 = vld [vmem:[%s17087_s6 + $0x3] ss:$8 sm:$0x7]  ;;  %v14517_v48 = vrot.slane %v14474_v19, %v17948_v44 }
 0x438   : > { %v14484_v33 = vadd.f32 %v2451_v22, %v17912_v16  ;;  %17946 = vst [vmem:[#allocation105_spill] sm:$0xff] %v14496_v56  ;;  %v14502_v16 = vld [vmem:[%s17088_s7] sm:$0x7]  ;;  %v14527_v8 = vrot.slane %v14460_v61, %v17948_v44  ;;  %v5108_v22 = vld [vmem:[#allocation2 + $0xb0] sm:$0xfe]  ;;  %v14552_v31 = vrot.slane %v14545_v63, %v17940_v38  ;;  %17958 = vst [vmem:[#allocation81_spill] sm:$0xff] %v14571_v6 }
 0x439   : > { %17941 = vst [vmem:[#allocation101_spill] sm:$0xff] %v14478_v55  ;;  %17945 = vst [vmem:[#allocation104_spill] sm:$0xff] %v14493_v17  ;;  %v5132_v3 = vmul.f32 %v14478_v55, %v5109_v0  ;;  %v14507_v26 = vmul.f32 %v14478_v55, %v14489_v27  ;;  %v5045_v7 = vmul.f32 %v14493_v17, %v17950_v40  ;;  %v5766_v36 = vrot.slane %v5750_v43, 2  ;;  %v5573_v56 = vld [vmem:[#allocation2 + $0x18] sm:$0xfe]  ;;  %v6321_v52 = vld [vmem:[%s17089_s8 + $0x90] sm:$0xff] }
 0x43a   : > { %17943 = vst [vmem:[#allocation102_spill] sm:$0xff] %v14484_v33  ;;  %17949 = vst [vmem:[#allocation70_spill] sm:$0xff] %v14517_v48  ;;  %v14523_v18 = vrot.slane %v14502_v16, %v17940_v38  ;;  %v5322_v46 = vsel %vm3282_vm3, %v5320_v29, %v17344_v53  ;;  %v14540_v0 = vrot.slane %v14532_v15, %v17940_v38  ;;  %v14554_v29 = vld [vmem:[#allocation2 + $0x18] sm:$0xff]  ;;  %v14595_v30 = vrot.slane %v14443_v47, 2  ;;  %v6340_v11 = vld [vmem:[%s17089_s8 + $0x128] sm:$0xff] }
 0x43b   : > { %17952 = vst [vmem:[#allocation97_spill] sm:$0xff] %v14527_v8  ;;  %v5188_v25 = vrot.slane %v5132_v3, 1  ;;  %v5393_v3 = vsel %vm3231_vm10, %v5322_v46, 0.0  ;;  %17955 = vst [vmem:[#allocation72_spill] sm:$0xff] %v14552_v31  ;;  %v14557_v53 = vadd.f32 %v2448_v50, %v17900_v57  ;;  %v17957_v20 = vrot.slane %v14507_v26, 1  ;;  %v6339_v62 = vld [vmem:[%s17089_s8 + $0x120] sm:$0xff] }
 0x43c   : > { %17951 = vst [vmem:[#allocation95_spill] sm:$0xff] %v14523_v18  ;;  %17953 = vst [vmem:[#allocation77_spill] sm:$0xff] %v14540_v0  ;;  %v5085_v51 = vadd.f32 %v14523_v18, %v5045_v7  ;;  %v14565_v7 = vld [vmem:[%s17087_s6 + $0x6] ss:$8 sm:$0x7]  ;;  %v5044_v46 = vmul.f32 %v14517_v48, %v17950_v40  ;;  %v5131_v12 = vmul.f32 %v14527_v8, %v5108_v22  ;;  %v5485_v14 = vsel %vm2918_vm5, %v14489_v27, 0.0 }
 0x43d   : > { %17956 = vst [vmem:[#allocation65_spill] sm:$0xff] %v14557_v53  ;;  %v5190_v13 = vsel %vm3125_vm0, %v5188_v25, %v17957_v20  ;;  %v14575_v57 = vrot.slane %v14502_v16, %v17948_v44  ;;  %v14579_v20 = vrot.slane %v14513_v34, %v17948_v44  ;;  %v14583_v50 = vrot.slane %v14513_v34, %v17940_v38 }
 0x43e   : > { %v14587_v25 = vrot.slane %v14545_v63, %v17948_v44  ;;  %v5261_v22 = vadd.f32 %v5190_v13, %v5085_v51  ;;  %v5434_v54 = vmul.f32 %v14540_v0, %v5393_v3  ;;  %v14592_v41 = vmul.f32 %v14527_v8, %v14554_v29  ;;  %v14613_v13 = vld [vmem:[%s17087_s6 + $0x7] ss:$8 sm:$0x7] }
 0x43f   : > { %17959 = vst [vmem:[#allocation94_spill] sm:$0xff] %v14575_v57  ;;  %17960 = vst [vmem:[#allocation73_spill] sm:$0xff] %v14579_v20  ;;  %v5597_v5 = vmul.f32 %v14552_v31, %v5574_v2  ;;  %v14600_v21 = vmul.f32 %v14552_v31, %v14443_v47  ;;  %v14604_v51 = vrot.slane %v14565_v7, %v17948_v44  ;;  %v5185_v2 = vrot.slane %v5131_v12, 1  ;;  %v6307_v12 = vld [vmem:[%s17089_s8 + $0x20] sm:$0xff]  ;;  %v5973_v42 = vld [vmem:[#allocation2 + $0x48] sm:$0xfe] }
 0x440   : > { %17961 = vst [vmem:[#allocation68_spill] sm:$0xff] %v14583_v50  ;;  %17962 = vst [vmem:[#allocation66_spill] sm:$0xff] %v14587_v25  ;;  %v14608_v43 = vrot.slane %v14565_v7, %v17940_v38  ;;  %v5084_v3 = vadd.f32 %v14575_v57, %v5044_v46  ;;  %v14619_v1 = vrot.slane %v14532_v15, %v17948_v44  ;;  %v6342_v46 = vld [vmem:[%s17089_s8 + $0x138] sm:$0xff]  ;;  %v5884_v45 = vsel %vm2918_vm5, %v14443_v47, 0.0 }
 0x441   : > { %17963 = vst [vmem:[#allocation79_spill] sm:$0xff] %v14592_v41  ;;  %17964 = vst [vmem:[#allocation74_spill] sm:$0xff] %v14600_v21  ;;  %v5458_v32 = vadd.f32 %v5434_v54, %v5261_v22  ;;  %v5767_v6 = vsel %vm3282_vm3, %v5766_v36, %v14595_v30  ;;  %v17968_v39 = vrot.slane %v14592_v41, 1  ;;  %10021 = vmatpush3.msra.mxu1 %v6307_v12  ;;  %10380 = vmatprep.subr.mxu0 %v6342_v46  ;;  %v14658_v54 = vld [vmem:[%s17087_s6 + $0x18] ss:$8 sm:$0x7] }
 0x442   : > { %17965 = vst [vmem:[#allocation96_spill] sm:$0xff] %v14604_v51  ;;  %17966 = vst [vmem:[#allocation88_spill] sm:$0xff] %v14608_v43  ;;  %v5653_v4 = vrot.slane %v5597_v5, 1  ;;  %v14649_v33 = vrot.slane %v14613_v13, %v17948_v44  ;;  %v14653_v22 = vrot.slane %v14613_v13, %v17940_v38  ;;  %10022 = vmatprep.subr.mxu1 %v6322_v59  ;;  %10381 = vmatpush3.msra.mxu0 %v6342_v46  ;;  %v6306_v5 = vld [vmem:[%s17089_s8 + $0x18] sm:$0xff]  ;;  %v6341_v12 = vld [vmem:[%s17089_s8 + $0x130] sm:$0xff] }
 0x443   : > { %17967 = vst [vmem:[#allocation62_spill] sm:$0xff] %v14619_v1  ;;  %v5187_v53 = vsel %vm3125_vm0, %v5185_v2, %v17968_v39  ;;  %v17970_v39 = vrot.slane %v14554_v29, 2  ;;  %v14663_v2 = vld [vmem:[#allocation2 + $0x18] sm:$0xfc]  ;;  %v5526_v23 = vmul.f32 %v14583_v50, %v5485_v14  ;;  %10023 = vmatpush3.msra.mxu1 %v6306_v5  ;;  %10382 = vmatprep.subr.mxu0 %v6341_v12  ;;  %v6320_v14 = vld [vmem:[%s17089_s8 + $0x88] sm:$0xff] }
 0x444   : > { %17969 = vst [vmem:[#allocation99_spill] sm:$0xff] %v14649_v33  ;;  %v5260_v59 = vadd.f32 %v5187_v53, %v5084_v3  ;;  %v5792_v53 = vsel %vm3231_vm10, %v5767_v6, 0.0  ;;  %v14694_v3 = vmul.f32 %v14608_v43, %v5884_v45  ;;  %10024 = vmatprep.subr.mxu1 %v6321_v52  ;;  %10383 = vmatpush3.msra.mxu0 %v6341_v12  ;;  %v6304_v5 = vld [vmem:[%s17089_s8 + $0x8] sm:$0xff]  ;;  %v5286_v45 = vld [vmem:[#allocation2 + $0xd8] sm:$0xfc]  ;;  %v6319_v52 = vld [vmem:[%s17089_s8 + $0x80] sm:$0xff] }
 0x445   : > { %v5319_v36 = vsel %vm3282_vm3, %v5317_v49, %v17970_v39  ;;  %v14677_v49 = vrot.slane %v14627_v35, %v17940_v38  ;;  %v6305_v39 = vld [vmem:[%s17089_s8 + $0x10] sm:$0xff]  ;;  %v5550_v41 = vadd.f32 %v5526_v23, %v5458_v32  ;;  %v14705_v37 = vrot.slane %v14627_v35, %v17948_v44  ;;  %10384 = vmatprep.subr.mxu0 %v6340_v11  ;;  %v6303_v43 = vld [vmem:[%s17089_s8] sm:$0xff]  ;;  %v5110_v50 = vld [vmem:[#allocation2 + $0xd8] sm:$0xfe] }
 0x446   : > { %v5392_v46 = vsel %vm3231_vm10, %v5319_v36, 0.0  ;;  %v14708_v6 = vmul.f32 %v14653_v22, %v5973_v42  ;;  %10025 = vmatpush3.msra.mxu1 %v6305_v39  ;;  %v17973_v12 = vrot.slane %v14600_v21, 1  ;;  %v14718_v32 = vrot.slane %v14658_v54, %v17948_v44  ;;  %v14724_v39 = vld [vmem:[#allocation2 + $0x68] sm:$0xff]  ;;  %10385 = vmatpush3.msra.mxu0 %v6340_v11 }
 0x447   : > { %17971 = vst [vmem:[#allocation63_spill] sm:$0xff] %v14677_v49  ;;  %v5433_v36 = vmul.f32 %v14619_v1, %v5392_v46  ;;  %17972 = vst [vmem:[#allocation69_spill] sm:$0xff] %v14705_v37  ;;  %v5484_v23 = vsel %vm2918_vm5, %v14554_v29, 0.0  ;;  %v5596_v42 = vmul.f32 %v14587_v25, %v5573_v56  ;;  %10026 = vmatprep.subr.mxu1 %v6320_v14  ;;  %v5764_v21 = vrot.slane %v14663_v2, 2  ;;  %v17975_v1 = vld [vmem:[#allocation61_spill] sm:$0xff] }
 0x448   : > { %v5655_v46 = vsel %vm3125_vm0, %v5653_v4, %v17973_v12  ;;  %17974 = vst [vmem:[#allocation90_spill] sm:$0xff] %v14718_v32  ;;  %v6338_v4 = vld [vmem:[%s17089_s8 + $0x118] sm:$0xff]  ;;  %v5833_v12 = vmul.f32 %v14677_v49, %v5792_v53  ;;  %v14736_v56 = vrot.slane %v14474_v19, %v17975_v1  ;;  %10027 = vmatpush3.msra.mxu1 %v6304_v5  ;;  %v14738_v11 = vld [vmem:[#allocation2 + $0x48] sm:$0xfc]  ;;  %v14741_v14 = vrot.slane %v14420_v28, 2 }
 0x449   : > { %v5457_v44 = vadd.f32 %v5433_v36, %v5260_v59  ;;  %10386 = vmatprep.subr.mxu0 %v6339_v62  ;;  %v14745_v57 = vmul.f32 %v14587_v25, %v14420_v28  ;;  %v14749_v59 = vrot.slane %v14460_v61, %v17975_v1  ;;  %v5323_v2 = vrot.slane %v5286_v45, 2  ;;  %10028 = vmatprep.subr.mxu1 %v6319_v52  ;;  %v6337_v36 = vld [vmem:[%s17089_s8 + $0x110] sm:$0xff] }
 0x44a   : > { %17976 = vst [vmem:[#allocation92_spill] sm:$0xff] %v14736_v56  ;;  %10387 = vmatpush3.msra.mxu0 %v6339_v62  ;;  %v5726_v19 = vadd.f32 %v5655_v46, %v5550_v41  ;;  %v5525_v53 = vmul.f32 %v14579_v20, %v5484_v23  ;;  %v5046_v5 = vmul.f32 %v14736_v56, %v17950_v40  ;;  %v5324_v25 = vrot.slane %v14724_v39, 2  ;;  %v5972_v46 = vld [vmem:[#allocation2 + $0x30] sm:$0xfe] }
 0x44b   : > { %17977 = vst [vmem:[#allocation93_spill] sm:$0xff] %v14745_v57  ;;  %17978 = vst [vmem:[#allocation84_spill] sm:$0xff] %v14749_v59  ;;  %10029 = vmatpush3.msra.mxu1 %v6303_v43  ;;  %10388 = vmatprep.subr.mxu0 %v6338_v4  ;;  %v5650_v49 = vrot.slane %v5596_v42, 1  ;;  %v14760_v61 = vrot.slane %v14502_v16, %v17975_v1  ;;  %v5133_v41 = vmul.f32 %v14749_v59, %v5110_v50  ;;  %v6336_v16 = vld [vmem:[%s17089_s8 + $0x108] sm:$0xff] }
 0x44c   : > { %v14765_v62 = vmul.f32 %v14749_v59, %v14724_v39  ;;  %10389 = vmatpush3.msra.mxu0 %v6338_v4  ;;  %10413 = vmatprep.subr.mxu1 %v17866_v10  ;;  %v5549_v40 = vadd.f32 %v5525_v53, %v5457_v44  ;;  %v5765_v43 = vsel %vm3282_vm3, %v5764_v21, %v14741_v14  ;;  %v6335_v21 = vld [vmem:[%s17089_s8 + $0x100] sm:$0xff]  ;;  %v5751_v50 = vld [vmem:[#allocation2 + $0x68] sm:$0xfc] }
 0x44d   : > { %17979 = vst [vmem:[#allocation85_spill] sm:$0xff] %v14760_v61  ;;  %v5325_v52 = vsel %vm3282_vm3, %v5323_v2, %v5324_v25  ;;  %10390 = vmatprep.subr.mxu0 %v6337_v36  ;;  %v5086_v23 = vadd.f32 %v14760_v61, %v5046_v5  ;;  %v5191_v42 = vrot.slane %v5133_v41, 1  ;;  %v5857_v45 = vadd.f32 %v5833_v12, %v5726_v19 }
 0x44e   : > { %17980 = vst [vmem:[#allocation89_spill] sm:$0xff] %v14765_v62  ;;  %v17384_v4 = vrot.slane %v14765_v62, 1  ;;  %10391 = vmatpush3.msra.mxu0 %v6337_v36  ;;  %v5394_v2 = vsel %vm3231_vm10, %v5325_v52, 0.0  ;;  %v14786_v53 = vrot.slane %v14532_v15, %v17975_v1  ;;  %v17982_v5 = vrot.slane %v14745_v57, 1 }
 0x44f   : > { %v5791_v12 = vsel %vm3231_vm10, %v5765_v43, 0.0  ;;  %v5883_v19 = vsel %vm2918_vm5, %v14420_v28, 0.0  ;;  %10392 = vmatprep.subr.mxu0 %v6336_v16  ;;  %v14801_v15 = vrot.slane %v14658_v54, %v17940_v38  ;;  %v14804_v44 = vmul.f32 %v14649_v33, %v5972_v46 }
 0x450   : > { %17981 = vst [vmem:[#allocation34_spill] sm:$0xff] %v14786_v53  ;;  %v5652_v41 = vsel %vm3125_vm0, %v5650_v49, %v17982_v5  ;;  %v5193_v36 = vsel %vm3125_vm0, %v5191_v42, %v17384_v4  ;;  %10393 = vmatpush3.msra.mxu0 %v6336_v16  ;;  %v5575_v49 = vld [vmem:[#allocation2 + $0x68] sm:$0xfe]  ;;  %v14808_v43 = vrot.slane %v14545_v63, %v17975_v1  ;;  %v6148_v5 = vld [vmem:[#allocation2 + $0x30] sm:$0xfc]  ;;  %v14811_v62 = vrot.slane %v14447_v24, 2 }
 0x451   : > { %17983 = vst [vmem:[#allocation36_spill] sm:$0xff] %v14801_v15  ;;  %v5725_v52 = vadd.f32 %v5652_v41, %v5549_v40  ;;  %10394 = vmatprep.subr.mxu0 %v6335_v21  ;;  %v5262_v57 = vadd.f32 %v5193_v36, %v5086_v23  ;;  %v5435_v42 = vmul.f32 %v14786_v53, %v5394_v2  ;;  %v5768_v4 = vrot.slane %v5751_v50, 2 }
 0x452   : > { %17984 = vst [vmem:[#allocation21_spill] sm:$0xff] %v14808_v43  ;;  %17985 = vst [vmem:[#allocation18_spill] sm:$0xff] %v14811_v62  ;;  %v14815_v40 = vadd.f32 %v14694_v3, %v5857_v45  ;;  %v5832_v46 = vmul.f32 %v14705_v37, %v5791_v12  ;;  %v5924_v16 = vmul.f32 %v14604_v51, %v5883_v19  ;;  %10395 = vmatpush3.msra.mxu0 %v6335_v21 }
 0x453   : > { %v14821_v63 = vmul.f32 %v14749_v59, %v14447_v24  ;;  %v5008_v41 = vsel %vm2919_vm13, %v14724_v39, 0.0  ;;  %v5331_v2 = vsel %vm3282_vm3, %v5324_v25, %v14811_v62  ;;  %v5486_v3 = vsel %vm2918_vm5, %v14724_v39, 0.0  ;;  %10408 = vmatprep.subr.mxu0 %v17866_v10 }
 0x454   : > { %v5598_v45 = vmul.f32 %v14808_v43, %v5575_v49  ;;  %v5856_v12 = vadd.f32 %v5832_v46, %v5725_v52  ;;  %v6163_v19 = vrot.slane %v6148_v5, 2  ;;  %v14835_v21 = vrot.slane %v14513_v34, %v17975_v1 }
 0x455   : > { %v14839_v36 = vmul.f32 %v14808_v43, %v14447_v24  ;;  %v6049_v38 = vrot.slane %v14804_v44, 1  ;;  %v5459_v59 = vadd.f32 %v5435_v42, %v5262_v57  ;;  %v5769_v39 = vsel %vm3282_vm3, %v5768_v4, %v14811_v62 }
 0x456   : > { %17987 = vst [vmem:[#allocation22_spill] sm:$0xff] %v14835_v21  ;;  %v14845_v51 = vmul.f32 %v14736_v56, %v5008_v41  ;;  %v5397_v34 = vsel %vm3232_vm12, %v5331_v2, 0.0  ;;  %v5527_v5 = vmul.f32 %v14835_v21, %v5486_v3  ;;  %v5656_v43 = vrot.slane %v5598_v45, 1 }
 0x457   : > { %17988 = vst [vmem:[#allocation23_spill] sm:$0xff] %v14839_v36  ;;  %v5007_v57 = vsel %vm2919_vm13, %v14489_v27, 0.0  ;;  %v5948_v4 = vadd.f32 %v5924_v16, %v5856_v12  ;;  %v17392_v44 = vrot.slane %v14839_v36, 1  ;;  %v5793_v42 = vsel %vm3231_vm10, %v5769_v39, 0.0 }
 0x458   : > { %v14861_v41 = vrot.slane %v14627_v35, %v17975_v1  ;;  %v5551_v45 = vadd.f32 %v5527_v5, %v5459_v59  ;;  %v14872_v16 = vmul.f32 %v14478_v55, %v14443_v47  ;;  %v5885_v35 = vsel %vm2918_vm5, %v14447_v24, 0.0 }
 0x459   : > { %v5658_v39 = vsel %vm3125_vm0, %v5656_v43, %v17392_v44  ;;  %v17992_v5 = vrot.slane %v14489_v27, 2  ;;  %v14915_v27 = vrot.slane %v14613_v13, %v17975_v1  ;;  %v17994_v52 = vrot.slane %v14738_v11, 2 }
 0x45a   : > { %17989 = vst [vmem:[#allocation24_spill] sm:$0xff] %v14861_v41  ;;  %v5727_v44 = vadd.f32 %v5658_v39, %v5551_v45  ;;  %v17399_v36 = vrot.slane %v14872_v16, 1  ;;  %vm7399_vm5 = vcmask 64512   ;;  %v17996_v62 = vrot.slane %v14507_v26, 1 }
 0x45b   : > { %17993 = vst [vmem:[#allocation26_spill] sm:$0xff] %v14915_v27 }
 0x45d   : > { %v4658_v50 = vpop.f32.mrf.mxu1 }
 0x45e   : > { %v4804_v25 = vmax.f32 %v4658_v50, 0.0 }
 0x45f   : > { %v4660_v49 = vpop.f32.mrf.mxu1 }
 0x460   : > { %v14851_v46 = vrot.slane %v4804_v25, 7  ;;  %v4805_v50 = vmax.f32 %v4660_v49, 0.0  ;;  %v14895_v49 = vrot.slane %v14565_v7, %v17975_v1 }
 0x462   : > { %v14866_v2 = vsel %vm2794_vm2, %v14396_v60, %v14851_v46  ;;  %v14868_v3 = vrot.slane %v4805_v50, 7  ;;  %v5048_v60 = vmul.f32 %v14493_v17, %v5007_v57  ;;  %17991 = vst [vmem:[#allocation64_spill] sm:$0xff] %v14895_v49  ;;  %v5329_v50 = vsel %vm3282_vm3, %v17992_v5, %v14595_v30  ;;  %v14917_v5 = vld [vmem:[#allocation2 + $0x80] sm:$0xfc] }
 0x463   : > { %v14875_v12 = vrot.slane %v14866_v2, 2  ;;  %v14879_v25 = vmul.f32 %v14649_v33, %v14866_v2  ;;  %v5197_v33 = vsel %vm3125_vm0, %v17996_v62, %v17399_v36  ;;  %v5396_v11 = vsel %vm3232_vm12, %v5329_v50, 0.0 }
 0x464   : > { %v14888_v59 = vsel %vm2794_vm2, %v14424_v58, %v14868_v3  ;;  %v5088_v45 = vadd.f32 %v14523_v18, %v5048_v60  ;;  %v5834_v50 = vmul.f32 %v14861_v41, %v5793_v42  ;;  %v17999_v42 = vld [vmem:[#allocation29_spill] sm:$0xff] }
 0x465   : > { %17990 = vst [vmem:[#allocation25_spill] sm:$0xff] %v14879_v25  ;;  %v14902_v57 = vrot.slane %v14888_v59, 2  ;;  %v14906_v58 = vmul.f32 %v14653_v22, %v14888_v59  ;;  %v6164_v43 = vsel %vm3282_vm3, %v6163_v19, %v14875_v12  ;;  %v17995_v19 = vrot.slane %v14879_v25, 1 }
 0x466   : > { %v6190_v7 = vsel %vm3231_vm10, %v6164_v43, 0.0 }
 0x467   : > { %v6166_v56 = vsel %vm3282_vm3, %v17994_v52, %v14902_v57  ;;  %v6051_v43 = vsel %vm3125_vm0, %v6049_v38, %v17995_v19  ;;  %v17997_v52 = vrot.slane %v14906_v58, 1  ;;  %v17998_v38 = vrot.slane %v14708_v6, 1 }
 0x468   : > { %v6191_v13 = vsel %vm3231_vm10, %v6166_v56, 0.0  ;;  %v6124_v39 = vadd.f32 %v6051_v43, %v5948_v4  ;;  %v6231_v60 = vmul.f32 %v14718_v32, %v6190_v7  ;;  %v14945_v56 = vmul.f32 %v14786_v53, %v5397_v34  ;;  %v5974_v4 = vld [vmem:[#allocation2 + $0x80] sm:$0xfe] }
 0x469   : > { %v6054_v19 = vsel %vm3125_vm0, %v17998_v38, %v17997_v52  ;;  %v6232_v62 = vmul.f32 %v14801_v15, %v6191_v13  ;;  %v5006_v6 = vsel %vm2919_vm13, %v14554_v29, 0.0  ;;  %v5926_v52 = vmul.f32 %v14895_v49, %v5885_v35  ;;  %v18003_v49 = vld [vmem:[#allocation68_spill] sm:$0xff] }
 0x46a   : > { %v6125_v26 = vadd.f32 %v6054_v19, %v14815_v40  ;;  %v6255_v36 = vadd.f32 %v6231_v60, %v6124_v39  ;;  %v5264_v7 = vadd.f32 %v5197_v33, %v5088_v45  ;;  %v5437_v34 = vmul.f32 %v14540_v0, %v5396_v11 }
 0x46b   : > { %v5858_v53 = vadd.f32 %v5834_v50, %v5727_v44  ;;  %v14957_v43 = vmul.f32 %v14915_v27, %v5974_v4  ;;  %v5488_v40 = vsel %vm2919_vm13, %v14443_v47, 0.0  ;;  %v5013_v13 = vsel %vm2921_vm4, %v14888_v59, 0.0 }
 0x46c   : > { %v6256_v38 = vadd.f32 %v6232_v62, %v6125_v26  ;;  %v14967_v39 = vmul.f32 %v14478_v55, %v14888_v59  ;;  %v5047_v33 = vmul.f32 %v14517_v48, %v5006_v6  ;;  %v5137_v44 = vmul.f32 %v14527_v8, %v14420_v28  ;;  %v18002_v62 = vld [vmem:[#allocation94_spill] sm:$0xff] }
 0x46d   : > { %v5335_v45 = vsel %vm3282_vm3, %v14595_v30, %v14902_v57  ;;  %v14977_v11 = vmul.f32 %v14552_v31, %v14888_v59  ;;  %v18001_v19 = vrot.slane %v14554_v29, 2  ;;  %v6279_v4 = vmax.f32 %v6255_v36, 0.0  ;;  %v18004_v29 = vld [vmem:[#allocation28_spill] sm:$0xff] }
 0x46e   : > { %v6280_v35 = vmax.f32 %v6256_v38, 0.0  ;;  %v5461_v26 = vadd.f32 %v5437_v34, %v5264_v7  ;;  %v5087_v50 = vadd.f32 %v18002_v62, %v5047_v33  ;;  %v5194_v6 = vrot.slane %v5137_v44, 1  ;;  %v18008_v44 = vld [vmem:[#allocation75_spill] sm:$0xff] }
 0x46f   : > { %18000 = vst [vmem:[#allocation27_spill] sm:$0xff] %v14977_v11  ;;  %v5327_v60 = vsel %vm3282_vm3, %v18001_v19, %v14741_v14  ;;  %v14986_v38 = vrot.slane %v14658_v54, %v17975_v1  ;;  %v5054_v30 = vmul.f32 %v14493_v17, %v5013_v13  ;;  %v5529_v31 = vmul.f32 %v18003_v49, %v5488_v40  ;;  %v18006_v54 = vld [vmem:[#allocation79_spill] sm:$0xff] }
 0x470   : > { %6415 = vmatprep.mubr.f32.mxu1 %v6280_v35  ;;  %v5395_v41 = vsel %vm3232_vm12, %v5327_v60, 0.0  ;;  %vm18005_vm11 = vcmp.lt.s32.totalorder %v18004_v29, 7  ;;  %v5795_v7 = vsel %vm3232_vm12, %v5335_v45, 0.0  ;;  %v14998_v34 = vmul.f32 %v14527_v8, %v14866_v2  ;;  %v18009_v60 = vld [vmem:[#allocation62_spill] sm:$0xff]  ;;  %v18011_v35 = vld [vmem:[#allocation63_spill] sm:$0xff] }
 0x471   : > { %6416 = vmatmul.mubr.f32.vlgmr.msra.gmra.mxu1 %v6279_v4  ;;  %v5399_v36 = vsel %vm18005_vm11, %v5335_v45, 0.0  ;;  %v18007_v33 = vrot.slane %v18006_v54, 1  ;;  %v5436_v4 = vmul.f32 %v18009_v60, %v5395_v41  ;;  %v15009_v45 = vadd.f32 %v5926_v52, %v5858_v53  ;;  %v18012_v52 = vld [vmem:[#allocation66_spill] sm:$0xff]  ;;  %vm18022_vm6 = vmmov %vm18005_vm11 }
 0x472   : > { %10414 = vmatpush3.xpose.msk.msra.mxu1 %vm7399_vm5, %v18008_v44  ;;  %v5553_v32 = vadd.f32 %v5529_v31, %v5461_v26  ;;  %v5012_v54 = vsel %vm2921_vm4, %v14866_v2, 0.0  ;;  %v5440_v40 = vmul.f32 %v14540_v0, %v5399_v36  ;;  %v5887_v41 = vsel %vm2919_vm13, %v14888_v59, 0.0  ;;  %v18014_v36 = vld [vmem:[#allocation78_spill] sm:$0xff] }
 0x473   : > { %v5195_v13 = vsel %vm3125_vm0, %v18007_v33, %v5194_v6  ;;  %10415 = vmatprep.subr.mxu1 %v17866_v10  ;;  %v15016_v33 = vadd.f32 %v14523_v18, %v5054_v30  ;;  %v5487_v31 = vsel %vm2919_vm13, %v14420_v28, 0.0  ;;  %v15029_v26 = vmul.f32 %v18012_v52, %v14866_v2 }
 0x474   : > { %v5263_v19 = vadd.f32 %v5195_v13, %v5087_v50  ;;  %v5836_v50 = vmul.f32 %v18011_v35, %v5795_v7  ;;  %vm18013_vm15 = vcmp.ge.s32.totalorder %v18004_v29, 1  ;;  %v18015_v7 = vrot.slane %v14977_v11, 1  ;;  %v18016_v13 = vld [vmem:[#allocation74_spill] sm:$0xff]  ;;  %v18027_v11 = vld [vmem:[#allocation89_spill] sm:$0xff] }
 0x475   : > { %18010 = vst [vmem:[#allocation29_spill] sm:$0xff] %v15016_v33  ;;  %v5010_v30 = vsel %vm18013_vm15, %v14443_v47, 0.0  ;;  %v18017_v1 = vrot.slane %v18016_v13, 1  ;;  %v5333_v44 = vsel %vm3282_vm3, %v14741_v14, %v14875_v12  ;;  %v18018_v33 = vld [vmem:[#allocation88_spill] sm:$0xff]  ;;  %v18019_v47 = vrot.slane %v14967_v39, 1  ;;  %vm18021_vm14 = vmmov %vm18013_vm15 }
 0x476   : > { %10416 = vmatpush3.xpose.msk.msra.mxu1 %vm7399_vm5, %v18014_v36  ;;  %v5460_v35 = vadd.f32 %v5436_v4, %v5263_v19  ;;  %v5051_v52 = vmul.f32 %v14493_v17, %v5010_v30  ;;  %v5928_v25 = vmul.f32 %v18018_v33, %v5887_v41  ;;  %v18020_v36 = vrot.slane %v14872_v16, 1  ;;  %vm18023_vm8 = vmmov %vm18021_vm14 }
 0x477   : > { %v5662_v53 = vsel %vm3125_vm0, %v18017_v1, %v18015_v7  ;;  %10417 = vmatprep.subr.mxu1 %v17866_v10  ;;  %v5009_v1 = vsel %vm18021_vm14, %v14420_v28, 0.0  ;;  %v5053_v14 = vmul.f32 %v14517_v48, %v5012_v54  ;;  %v5528_v19 = vmul.f32 %v14579_v20, %v5487_v31  ;;  %v18025_v7 = vld [vmem:[#allocation76_spill] sm:$0xff]  ;;  %vm18036_vm9 = vmmov %vm18023_vm8 }
 0x478   : > { %v5729_v0 = vadd.f32 %v5662_v53, %v5553_v32  ;;  %v5203_v13 = vsel %vm3125_vm0, %v18020_v36, %v18019_v47  ;;  %v5091_v32 = vadd.f32 %v14523_v18, %v5051_v52  ;;  %v5050_v4 = vmul.f32 %v14517_v48, %v5009_v1  ;;  %vm18037_vm11 = vmmov %vm18023_vm8 }
 0x479   : > { %v5398_v41 = vsel %vm18022_vm6, %v5333_v44, 0.0  ;;  %v5491_v16 = vsel %vm18023_vm8, %v14888_v59, 0.0  ;;  %v18024_v30 = vrot.slane %v14998_v34, 1  ;;  %v5552_v31 = vadd.f32 %v5528_v19, %v5460_v35  ;;  %vm18076_vm14 = vmmov %vm18022_vm6 }
 0x47a   : > { %v5089_v52 = vadd.f32 %v14760_v61, %v14845_v51  ;;  %10418 = vmatpush3.xpose.msk.msra.mxu1 %vm7399_vm5, %v18025_v7  ;;  %v5267_v47 = vadd.f32 %v5203_v13, %v5091_v32  ;;  %v5090_v1 = vadd.f32 %v18002_v62, %v5050_v4  ;;  %v5860_v18 = vadd.f32 %v5836_v50, %v5729_v0 }
 0x47b   : > { %v5201_v28 = vsel %vm3125_vm0, %v5194_v6, %v18024_v30  ;;  %v18026_v59 = vrot.slane %v14821_v63, 1  ;;  %v18028_v48 = vrot.slane %v18027_v11, 1  ;;  %10419 = vmatprep.subr.mxu1 %v17866_v10  ;;  %v5794_v51 = vsel %vm3232_vm12, %v5333_v44, 0.0  ;;  %v18030_v11 = vld [vmem:[#allocation93_spill] sm:$0xff] }
 0x47c   : > { %v5464_v30 = vadd.f32 %v5440_v40, %v5267_v47  ;;  %v5532_v13 = vmul.f32 %v18003_v49, %v5491_v16  ;;  %v5266_v32 = vadd.f32 %v5201_v28, %v5090_v1  ;;  %v5489_v44 = vsel %vm2919_vm13, %v14447_v24, 0.0  ;;  %v18032_v16 = vld [vmem:[#allocation82_spill] sm:$0xff] }
 0x47d   : > { %v5199_v6 = vsel %vm3125_vm0, %v18028_v48, %v18026_v59  ;;  %v15107_v1 = vadd.f32 %v18002_v62, %v5053_v14 }
 0x47e   : > { %v4664_v54 = vpop.f32.mrf.mxu1  ;;  %v10357_v36 = vpop.f32.mrf.mxu0  ;;  %v5265_v7 = vadd.f32 %v5199_v6, %v5089_v52  ;;  %v15092_v40 = vadd.f32 %v5532_v13, %v5464_v30  ;;  %10420 = vmatpush3.xpose.msk.msra.mxu1 %vm7399_vm5, %v18032_v16  ;;  %v5952_v52 = vadd.f32 %v5928_v25, %v5860_v18  ;;  %v5439_v6 = vmul.f32 %v18009_v60, %v5398_v41  ;;  %v18035_v13 = vld [vmem:[#allocation102_spill] sm:$0xff] }
 0x47f   : > { %v4807_v53 = vmax.f32 %v4664_v54, 0.0  ;;  %v4809_v33 = vmax.f32 %v10357_v36, 0.0  ;;  %v18029_v54 = vrot.slane %v15029_v26, 1  ;;  %v18031_v36 = vrot.slane %v18030_v11, 1  ;;  %10421 = vmatprep.subr.mxu1 %v17866_v10 }
 0x480   : > { %v4666_v35 = vpop.f32.mrf.mxu1  ;;  %v4769_v19 = vpop.f32.mrf.mxu0  ;;  %v5835_v25 = vmul.f32 %v14705_v37, %v5794_v51  ;;  %v5462_v30 = vadd.f32 %v14945_v56, %v5265_v7  ;;  %v5490_v51 = vsel %vm18036_vm9, %v14866_v2, 0.0  ;;  %v18038_v7 = vrot.slane %v14917_v5, 2  ;;  %v18042_v5 = vld [vmem:[#allocation96_spill] sm:$0xff] }
 0x481   : > { %v15082_v4 = vrot.slane %v4807_v53, 7  ;;  %v4808_v0 = vmax.f32 %v4666_v35, 0.0  ;;  %v4806_v50 = vmax.f32 %v4769_v19, 0.0  ;;  %v5660_v48 = vsel %vm3125_vm0, %v18031_v36, %v18029_v54 }
 0x482   : > { %v5728_v59 = vadd.f32 %v5660_v48, %v5552_v31  ;;  %v15101_v28 = vrot.slane %v4809_v33, 7  ;;  %v5886_v35 = vsel %vm2919_vm13, %v14866_v2, 0.0  ;;  %v18034_v33 = vld [vmem:[#allocation106_spill] sm:$0xff]  ;;  %10422 = vmatpush3.xpose.msk.msra.mxu1 %vm7399_vm5, %v18035_v13  ;;  %v5011_v54 = vsel %vm18037_vm11, %v14447_v24, 0.0  ;;  %v18045_v13 = vld [vmem:[#allocation99_spill] sm:$0xff] }
 0x483   : > { %v15099_v53 = vsel %vm2794_vm2, %v14851_v46, %v15082_v4  ;;  %v15103_v47 = vrot.slane %v4808_v0, 7  ;;  %v4893_v31 = vrot.slane %v4806_v50, 7  ;;  %10423 = vmatprep.subr.mxu1 %v17866_v10 }
 0x484   : > { %18033 = vst [vmem:[#allocation28_spill] sm:$0xff] %v15101_v28  ;;  %v5859_v50 = vadd.f32 %v5835_v25, %v5728_v59  ;;  %v15160_v24 = vmul.f32 %v14527_v8, %v15099_v53 }
 0x485   : > { %v15116_v46 = vsel %vm2794_vm2, %v14868_v3, %v15103_v47  ;;  %v15120_v19 = vsel %vm2794_vm2, %v18034_v33, %v4893_v31  ;;  %v15124_v18 = vsel %vm2794_vm2, %v4893_v31, %v15101_v28  ;;  %v5530_v3 = vmul.f32 %v14835_v21, %v5489_v44 }
 0x486   : > { %v5336_v14 = vrot.slane %v15120_v19, 2  ;;  %v15130_v41 = vmul.f32 %v14915_v27, %v15120_v19  ;;  %v17420_v0 = vrot.slane %v15116_v46, 2  ;;  %v15150_v36 = vmul.f32 %v14478_v55, %v15116_v46  ;;  %18041 = vst [vmem:[#allocation89_spill] sm:$0xff] %v15160_v24 }
 0x487   : > { %v15154_v48 = vmul.f32 %v14653_v22, %v15116_v46  ;;  %v5927_v44 = vmul.f32 %v18042_v5, %v5886_v35  ;;  %v18043_v31 = vrot.slane %v14957_v43, 1  ;;  %v5554_v25 = vadd.f32 %v5530_v3, %v5462_v30 }
 0x488   : > { %v17419_v56 = vrot.slane %v15130_v41, 1  ;;  %v6168_v11 = vsel %vm3282_vm3, %v18038_v7, %v5336_v14  ;;  %18039 = vst [vmem:[#allocation79_spill] sm:$0xff] %v15150_v36  ;;  %v5341_v9 = vsel %vm3282_vm3, %v14902_v57, %v17420_v0  ;;  %v5531_v7 = vmul.f32 %v14579_v20, %v5490_v51  ;;  %v18048_v0 = vld [vmem:[#allocation18_spill] sm:$0xff] }
 0x489   : > { %18040 = vst [vmem:[#allocation74_spill] sm:$0xff] %v15154_v48  ;;  %v6192_v2 = vsel %vm3231_vm10, %v6168_v11, 0.0  ;;  %v18044_v11 = vld [vmem:[#allocation103_spill] sm:$0xff]  ;;  %v15180_v43 = vmul.f32 %v18045_v13, %v15099_v53  ;;  %v17421_v30 = vrot.slane %v15154_v48, 1  ;;  %v6194_v3 = vsel %vm3232_vm12, %v5341_v9, 0.0  ;;  %v18062_v48 = vld [vmem:[#allocation90_spill] sm:$0xff] }
 0x48a   : > { %v6057_v33 = vsel %vm3125_vm0, %v18043_v31, %v17419_v56  ;;  %10424 = vmatpush3.xpose.msk.msra.mxu1 %vm7399_vm5, %v18044_v11  ;;  %v6233_v35 = vmul.f32 %v14986_v38, %v6192_v2  ;;  %v18047_v31 = vld [vmem:[#allocation92_spill] sm:$0xff]  ;;  %v5951_v51 = vadd.f32 %v5927_v44, %v5859_v50  ;;  %v18049_v11 = vrot.slane %v15099_v53, 2  ;;  %v18051_v50 = vld [vmem:[#allocation30_spill] sm:$0xff]  ;;  %v18052_v44 = vld [vmem:[#allocation105_spill] sm:$0xff] }
 0x48b   : > { %v6126_v59 = vadd.f32 %v6057_v33, %v15009_v45  ;;  %18046 = vst [vmem:[#allocation93_spill] sm:$0xff] %v15180_v43  ;;  %v5052_v56 = vmul.f32 %v18047_v31, %v5011_v54  ;;  %10425 = vmatprep.subr.mxu1 %v17866_v10  ;;  %v5337_v45 = vsel %vm3282_vm3, %v18048_v0, %v5336_v14  ;;  %v18050_v57 = vrot.slane %v14906_v58, 1 }
 0x48c   : > { %v5339_v54 = vsel %vm3282_vm3, %v14875_v12, %v18049_v11  ;;  %v5015_v0 = vsel %vm2922_vm7, %v15099_v53, 0.0  ;;  %v6235_v12 = vmul.f32 %v14801_v15, %v6194_v3  ;;  %v5796_v58 = vsel %vm3232_vm12, %v5337_v45, 0.0 }
 0x48d   : > { %v6257_v2 = vadd.f32 %v6233_v35, %v6126_v59  ;;  %v6061_v13 = vsel %vm3125_vm0, %v18050_v57, %v17421_v30  ;;  %v5463_v59 = vadd.f32 %v5439_v6, %v5266_v32  ;;  %v18053_v57 = vrot.slane %v15150_v36, 1 }
 0x48e   : > { %10426 = vmatpush3.xpose.msk.msra.mxu1 %vm7399_vm5, %v18052_v44  ;;  %v6128_v33 = vadd.f32 %v6061_v13, %v5952_v52  ;;  %v18054_v30 = vrot.slane %v14967_v39, 1  ;;  %v6193_v6 = vsel %vm3232_vm12, %v5339_v54, 0.0  ;;  %v18055_v52 = vld [vmem:[#allocation21_spill] sm:$0xff]  ;;  %vm18056_vm10 = vcmp.lt.s32.totalorder %v17999_v42, 7 }
 0x48f   : > { %v6281_v35 = vmax.f32 %v6257_v2, 0.0  ;;  %10427 = vmatprep.subr.mxu1 %v17866_v10  ;;  %v15220_v13 = vmul.f32 %v18055_v52, %v15120_v19  ;;  %v5402_v3 = vsel %vm18056_vm10, %v5341_v9, 0.0  ;;  %v18057_v16 = vrot.slane %v15160_v24, 1  ;;  %vm18066_vm15 = vmmov %vm18056_vm10 }
 0x490   : > { %v5209_v32 = vsel %vm3125_vm0, %v18054_v30, %v18053_v57  ;;  %v6259_v2 = vadd.f32 %v6235_v12, %v6128_v33  ;;  %v18058_v11 = vrot.slane %v14998_v34, 1  ;;  %v18059_v30 = vrot.slane %v15180_v43, 1  ;;  %v18060_v57 = vld [vmem:[#allocation25_spill] sm:$0xff]  ;;  %vm18093_vm11 = vmmov %vm18056_vm10 }
 0x491   : > { %10396 = vmatprep.mubr.f32.mxu0 %v6281_v35  ;;  %v18061_v44 = vrot.slane %v18060_v57, 1  ;;  %v6234_v36 = vmul.f32 %v18062_v48, %v6193_v6  ;;  %v17431_v35 = vrot.slane %v15220_v13, 1  ;;  %v15238_v33 = vmul.f32 %v14915_v27, %v15124_v18  ;;  %v18063_v12 = vld [vmem:[#allocation65_spill] sm:$0xff]  ;;  %v18067_v6 = vld [vmem:[#allocation23_spill] sm:$0xff] }
 0x492   : > { %v5207_v39 = vsel %vm3125_vm0, %v18058_v11, %v18057_v16  ;;  %10428 = vmatpush3.xpose.msk.msra.mxu1 %vm7399_vm5, %v18063_v12  ;;  %v18064_v34 = vrot.slane %v15124_v18, 2  ;;  %v18065_v11 = vld [vmem:[#allocation24_spill] sm:$0xff]  ;;  %v5888_v12 = vsel %vm2919_vm13, %v15120_v19, 0.0  ;;  %v18071_v43 = vld [vmem:[#allocation77_spill] sm:$0xff]  ;;  %v5555_v8 = vadd.f32 %v5531_v7, %v5463_v59  ;;  %vm18073_vm13 = vmmov %vm18022_vm6 }
 0x493   : > { %v6059_v10 = vsel %vm3125_vm0, %v18061_v44, %v18059_v30  ;;  %v5837_v57 = vmul.f32 %v18065_v11, %v5796_v58  ;;  %v6283_v44 = vmax.f32 %v6259_v2, 0.0  ;;  %v18068_v30 = vrot.slane %v18067_v6, 1  ;;  %v18070_v58 = vld [vmem:[#allocation29_spill] sm:$0xff]  ;;  %v18077_v59 = vld [vmem:[#allocation70_spill] sm:$0xff] }
 0x494   : > { %v6127_v15 = vadd.f32 %v6059_v10, %v5951_v51  ;;  %v15245_v16 = vsel %vm3282_vm3, %v5336_v14, %v18064_v34  ;;  %v5401_v10 = vsel %vm18066_vm15, %v5339_v54, 0.0  ;;  %v18069_v14 = vld [vmem:[#allocation72_spill] sm:$0xff]  ;;  %v5270_v2 = vadd.f32 %v5209_v32, %v18070_v58 }
 0x495   : > { %v5664_v27 = vsel %vm3125_vm0, %v18068_v30, %v17431_v35  ;;  %v15260_v34 = vmul.f32 %v18069_v14, %v15116_v46  ;;  %v5443_v48 = vmul.f32 %v18071_v43, %v5402_v3  ;;  %6420 = vmatprep.mubr.f32.mxu1 %v6283_v44  ;;  %v5442_v6 = vmul.f32 %v18009_v60, %v5401_v10  ;;  %v18072_v14 = vld [vmem:[#allocation64_spill] sm:$0xff] }
 0x496   : > { %v6258_v51 = vadd.f32 %v6234_v36, %v6127_v15  ;;  %v5269_v15 = vadd.f32 %v5207_v39, %v15107_v1  ;;  %v5730_v36 = vadd.f32 %v5664_v27, %v5554_v25  ;;  %v17437_v30 = vrot.slane %v15238_v33, 1  ;;  %v18074_v25 = vld [vmem:[#allocation66_spill] sm:$0xff] }
 0x497   : > { %v5016_v35 = vsel %vm2922_vm7, %v15116_v46, 0.0  ;;  %v5929_v55 = vmul.f32 %v18072_v14, %v5888_v12  ;;  %v5092_v32 = vadd.f32 %v14760_v61, %v5052_v56  ;;  %v5798_v3 = vsel %vm18073_vm13, %v5341_v9, 0.0 }
 0x498   : > { %v6282_v24 = vmax.f32 %v6258_v51, 0.0  ;;  %v5861_v28 = vadd.f32 %v5837_v57, %v5730_v36  ;;  %v6195_v27 = vsel %vm3232_vm12, %v15245_v16, 0.0  ;;  %v17438_v1 = vrot.slane %v15260_v34, 1  ;;  %vm18078_vm12 = vmmov %vm18022_vm6 }
 0x499   : > { %v15280_v39 = vmul.f32 %v18074_v25, %v15099_v53  ;;  %v5400_v12 = vsel %vm18076_vm14, %v5337_v45, 0.0  ;;  %v5057_v56 = vmul.f32 %v14493_v17, %v5016_v35  ;;  %v15286_v57 = vmul.f32 %v18077_v59, %v5015_v0  ;;  %v18081_v0 = vld [vmem:[#allocation84_spill] sm:$0xff]  ;;  %vm18084_vm6 = vmmov %vm18023_vm8 }
 0x49a   : > { %6421 = vmatmul.mubr.f32.gmra.mxu1 %v6282_v24  ;;  %v5953_v7 = vadd.f32 %v5929_v55, %v5861_v28  ;;  %v15288_v24 = vadd.f32 %v5443_v48, %v5270_v2  ;;  %v5466_v9 = vadd.f32 %v5442_v6, %v5269_v15  ;;  %v5797_v23 = vsel %vm18078_vm12, %v5339_v54, 0.0  ;;  %v18080_v28 = vld [vmem:[#allocation63_spill] sm:$0xff]  ;;  %vm18089_vm8 = vmmov %vm18084_vm6 }
 0x49b   : > { %18075 = vst [vmem:[#allocation106_spill] sm:$0xff] %v15280_v39  ;;  %v18079_v44 = vrot.slane %v15130_v41, 1  ;;  %v6236_v55 = vmul.f32 %v14986_v38, %v6195_v27  ;;  %v5839_v45 = vmul.f32 %v18080_v28, %v5798_v3  ;;  %v5142_v35 = vmul.f32 %v18081_v0, %v15120_v19  ;;  %v18082_v48 = vld [vmem:[#allocation27_spill] sm:$0xff]  ;;  %vm18092_vm9 = vmmov %vm18078_vm12 }
 0x49c   : > { %v18083_v58 = vrot.slane %v18082_v48, 1  ;;  %v5890_v41 = vsel %vm18084_vm6, %v15116_v46, 0.0  ;;  %v17444_v2 = vrot.slane %v15280_v39, 1  ;;  %v15312_v15 = vmul.f32 %v18081_v0, %v15124_v18  ;;  %v18085_v6 = vld [vmem:[#allocation95_spill] sm:$0xff]  ;;  %v18086_v48 = vld [vmem:[#allocation34_spill] sm:$0xff]  ;;  %vm18096_vm10 = vmmov %vm18084_vm6 }
 0x49d   : > { %v6063_v10 = vsel %vm3125_vm0, %v18079_v44, %v17437_v30  ;;  %v15315_v3 = vadd.f32 %v18085_v6, %v5057_v56  ;;  %v5838_v44 = vmul.f32 %v14705_v37, %v5797_v23  ;;  %v15325_v30 = vmul.f32 %v18055_v52, %v15124_v18  ;;  %vm18098_vm15 = vmmov %vm18084_vm6 }
 0x49e   : > { %v6129_v51 = vadd.f32 %v6063_v10, %v5953_v7  ;;  %v5668_v54 = vsel %vm3125_vm0, %v18083_v58, %v17438_v1  ;;  %v5204_v7 = vrot.slane %v5142_v35, 1  ;;  %v5494_v10 = vsel %vm2921_vm4, %v15116_v46, 0.0  ;;  %vm18114_vm14 = vmmov %vm18092_vm9 }
 0x49f   : > { %v5732_v27 = vadd.f32 %v5668_v54, %v15092_v40  ;;  %v5441_v58 = vmul.f32 %v18086_v48, %v5400_v12  ;;  %18087 = vst [vmem:[#allocation18_spill] sm:$0xff] %v15325_v30  ;;  %v5017_v56 = vsel %vm2922_vm7, %v15124_v18, 0.0  ;;  %v18088_v40 = vrot.slane %v14821_v63, 1  ;;  %vm18116_vm6 = vmmov %vm18093_vm11 }
 0x4a0   : > { %v6260_v36 = vadd.f32 %v6236_v55, %v6129_v51  ;;  %v5492_v55 = vsel %vm18089_vm8, %v15120_v19, 0.0  ;;  %v18090_v12 = vrot.slane %v15029_v26, 1  ;;  %v17443_v63 = vrot.slane %v15325_v30, 1 }
 0x4a1   : > { %v5205_v23 = vsel %vm3125_vm0, %v18088_v40, %v5204_v7  ;;  %v5493_v40 = vsel %vm2921_vm4, %v15099_v53, 0.0  ;;  %vm18113_vm13 = vcmp.lt.s32.totalorder %v18051_v50, 7 }
 0x4a2   : > { %v6284_v51 = vmax.f32 %v6260_v36, 0.0  ;;  %v5666_v54 = vsel %vm3125_vm0, %v18090_v12, %v17444_v2  ;;  %v17445_v36 = vrot.slane %v15312_v15, 1  ;;  %v5268_v52 = vadd.f32 %v5205_v23, %v5092_v32  ;;  %v18091_v12 = vld [vmem:[#allocation81_spill] sm:$0xff]  ;;  %vm18115_vm12 = vmmov %vm18113_vm13 }
 0x4a3   : > { %v4670_v1 = vpop.f32.mrf.mxu1  ;;  %v5731_v25 = vadd.f32 %v5666_v54, %v5555_v8  ;;  %v5799_v8 = vsel %vm18092_vm9, %v15245_v16, 0.0  ;;  %v5534_v23 = vmul.f32 %v14579_v20, %v5493_v40 }
 0x4a4   : > { %v4810_v35 = vmax.f32 %v4670_v1, 0.0  ;;  %10397 = vmatmul.mubr.f32.vlgmr.msra.gmra.mxu0 %v6284_v51  ;;  %v5014_v1 = vsel %vm2921_vm4, %v15120_v19, 0.0  ;;  %v5465_v32 = vadd.f32 %v5441_v58, %v5268_v52  ;;  %v5533_v51 = vmul.f32 %v14835_v21, %v5492_v55 }
 0x4a5   : > { %v4672_v37 = vpop.f32.mrf.mxu1  ;;  %10409 = vmatpush3.xpose.msk.msra.mxu0 %vm7144_vm1, %v18091_v12  ;;  %v5055_v54 = vmul.f32 %v18047_v31, %v5014_v1  ;;  %v5403_v19 = vsel %vm18093_vm11, %v15245_v16, 0.0  ;;  %v5211_v58 = vsel %vm3125_vm0, %v5204_v7, %v17445_v36  ;;  %v18094_v55 = vrot.slane %v15220_v13, 1  ;;  %v18095_v13 = vld [vmem:[#allocation88_spill] sm:$0xff]  ;;  %vm18122_vm11 = vmmov %vm18116_vm6 }
 0x4a6   : > { %v15349_v39 = vrot.slane %v4810_v35, 7  ;;  %v4811_v26 = vmax.f32 %v4672_v37, 0.0  ;;  %v5557_v52 = vadd.f32 %v5533_v51, %v5465_v32  ;;  %v15375_v1 = vadd.f32 %v5534_v23, %v5466_v9 }
 0x4a7   : > { %v5670_v40 = vsel %vm3125_vm0, %v18094_v55, %v17443_v63  ;;  %v5095_v16 = vadd.f32 %v14760_v61, %v5055_v54  ;;  %v5863_v32 = vadd.f32 %v5839_v45, %v5732_v27  ;;  %v5495_v51 = vsel %vm2921_vm4, %v15124_v18, 0.0 }
 0x4a8   : > { %v4902_v37 = vsel %vm2794_vm2, %v15082_v4, %v15349_v39  ;;  %v15365_v35 = vrot.slane %v4811_v26, 7  ;;  %v5444_v4 = vmul.f32 %v18086_v48, %v5403_v19  ;;  %v5976_v26 = vld [vmem:[#allocation2 + $0xf0] sm:$0x1]  ;;  %v5733_v7 = vadd.f32 %v5670_v40, %v5557_v52 }
 0x4a9   : > { %4964 = vst [vmem:[#allocation2 + $0xb8] sm:$0xff] %v4902_v37  ;;  %v5931_v37 = vmul.f32 %v18095_v13, %v5890_v41  ;;  %v5889_v9 = vsel %vm18096_vm10, %v15099_v53, 0.0  ;;  %v5058_v23 = vmul.f32 %v18047_v31, %v5017_v56  ;;  %v5271_v54 = vadd.f32 %v5211_v58, %v5095_v16  ;;  %v15403_v58 = vld [vmem:[#allocation2 + $0xf0] sm:$0x3] }
 0x4aa   : > { %v4904_v12 = vsel %vm2794_vm2, %v15103_v47, %v15365_v35  ;;  %v5862_v19 = vadd.f32 %v5838_v44, %v5731_v25  ;;  %v5535_v55 = vmul.f32 %v18003_v49, %v5494_v10  ;;  %v5840_v47 = vmul.f32 %v18065_v11, %v5799_v8  ;;  %18099 = vst [vmem:[#allocation25_spill] sm:$0xff] %v15403_v58  ;;  %v18119_v58 = vld [vmem:[#allocation36_spill] sm:$0xff] }
 0x4ab   : > { %4965 = vst [vmem:[#allocation2 + $0x40] sm:$0xff] %v4904_v12  ;;  %v15393_v45 = vmul.f32 %v14653_v22, %v5976_v26  ;;  %v15397_v27 = vadd.f32 %v18002_v62, %v15286_v57  ;;  %v5891_v41 = vsel %vm18098_vm15, %v15124_v18, 0.0  ;;  %v5468_v52 = vadd.f32 %v5444_v4, %v5271_v54  ;;  %v15409_v57 = vld [vmem:[#allocation2 + $0x58] sm:$0x3] }
 0x4ac   : > { %v5536_v56 = vmul.f32 %v14835_v21, %v5495_v51  ;;  %v5955_v10 = vadd.f32 %v5931_v37, %v5863_v32  ;;  %v5930_v8 = vmul.f32 %v18042_v5, %v5889_v9  ;;  %v15407_v40 = vadd.f32 %v5535_v55, %v15288_v24  ;;  %18100 = vst [vmem:[#allocation23_spill] sm:$0xff] %v15409_v57 }
 0x4ad   : > { %18097 = vst [vmem:[#allocation30_spill] sm:$0xff] %v15393_v45  ;;  %v5864_v16 = vadd.f32 %v5840_v47, %v5733_v7  ;;  %v15412_v63 = vadd.f32 %v14760_v61, %v5058_v23  ;;  %v5932_v37 = vmul.f32 %v18072_v14, %v5891_v41  ;;  %v18120_v45 = vld [vmem:[#allocation31_spill] sm:$0xff] }
 0x4ae   : > { %v4676_v25 = vpop.f32.mrf.mxu1  ;;  %v10360_v44 = vpop.f32.mrf.mxu0  ;;  %v15414_v4 = vadd.f32 %v5536_v56, %v5468_v52  ;;  %v5954_v32 = vadd.f32 %v5930_v8, %v5862_v19  ;;  %v18103_v56 = vld [vmem:[#allocation97_spill] sm:$0xff]  ;;  %vm18121_vm8 = vcmp.ge.s32.totalorder %v18120_v45, 1  ;;  %vm18131_vm15 = vcmp.lt.s32.totalorder %v18120_v45, 7 }
 0x4af   : > { %v4813_v26 = vmax.f32 %v4676_v25, 0.0  ;;  %v4815_v12 = vmax.f32 %v10360_v44, 0.0  ;;  %v15431_v41 = vadd.f32 %v5932_v37, %v5864_v16  ;;  %v18105_v16 = vrot.slane %v15099_v53, 2  ;;  %vm18124_vm10 = vmmov %vm18121_vm8 }
 0x4b0   : > { %18101 = vst [vmem:[#allocation29_spill] sm:$0xff] %v15414_v4  ;;  %v4678_v51 = vpop.f32.mrf.mxu1  ;;  %v4779_v54 = vpop.f32.mrf.mxu0  ;;  %v15416_v2 = vld [vmem:[#allocation2 + $0xb8] sm:$0xff]  ;;  %v18107_v53 = vrot.slane %v15116_v46, 2 }
 0x4b1   : > { %v4907_v9 = vrot.slane %v4813_v26, 7  ;;  %v4814_v55 = vmax.f32 %v4678_v51, 0.0  ;;  %v4812_v47 = vmax.f32 %v4779_v54, 0.0  ;;  %v15422_v23 = vrot.slane %v4815_v12, 7  ;;  %v18104_v54 = vld [vmem:[#allocation101_spill] sm:$0xff] }
 0x4b2   : > { %v15424_v52 = vld [vmem:[#allocation2 + $0x40] sm:$0xff]  ;;  %v15428_v44 = vmul.f32 %v18103_v56, %v15416_v2  ;;  %v17446_v19 = vrot.slane %v15416_v2, 2  ;;  %v15492_v21 = vsel %vm18121_vm8, %v15416_v2, 0.0  ;;  %vm18141_vm8 = vmmov %vm18122_vm11 }
 0x4b3   : > { %18102 = vst [vmem:[#allocation63_spill] sm:$0xff] %v15422_v23  ;;  %v4908_v8 = vsel %vm2794_vm2, %v15349_v39, %v4907_v9  ;;  %v4909_v26 = vrot.slane %v4814_v55, 7  ;;  %v4905_v51 = vrot.slane %v4812_v47, 7  ;;  %v15437_v25 = vmul.f32 %v18104_v54, %v15424_v52  ;;  %v18106_v55 = vld [vmem:[#allocation28_spill] sm:$0xff] }
 0x4b4   : > { %4967 = vst [vmem:[#allocation2 + $0x60] sm:$0xff] %v4908_v8  ;;  %v17448_v12 = vrot.slane %v15424_v52, 2  ;;  %v15442_v7 = vmul.f32 %v14653_v22, %v15424_v52  ;;  %v17449_v24 = vrot.slane %v15428_v44, 1  ;;  %v5345_v39 = vsel %vm3282_vm3, %v18105_v16, %v17446_v19 }
 0x4b5   : > { %v4910_v37 = vsel %vm2794_vm2, %v15365_v35, %v4909_v26  ;;  %v4906_v47 = vsel %vm2794_vm2, %v18106_v55, %v4905_v51  ;;  %v4912_v8 = vsel %vm2794_vm2, %v4905_v51, %v15422_v23  ;;  %v5214_v36 = vrot.slane %v15437_v25, 1  ;;  %v18108_v35 = vld [vmem:[#allocation89_spill] sm:$0xff]  ;;  %v18110_v51 = vld [vmem:[#allocation99_spill] sm:$0xff] }
 0x4b6   : > { %4968 = vst [vmem:[#allocation2 + $0x38] sm:$0xff] %v4910_v37  ;;  %4966 = vst [vmem:[#allocation2 + $0x90] sm:$0xff] %v4906_v47  ;;  %v5347_v16 = vsel %vm3282_vm3, %v18107_v53, %v17448_v12  ;;  %v17459_v19 = vrot.slane %v15442_v7, 1  ;;  %v18109_v55 = vrot.slane %v18108_v35, 1  ;;  %v15470_v25 = vmul.f32 %v18110_v51, %v15416_v2  ;;  %v18111_v37 = vld [vmem:[#allocation79_spill] sm:$0xff] }
 0x4b7   : > { %4969 = vst [vmem:[#allocation2 + $0xd0] sm:$0xff] %v4912_v8  ;;  %v18112_v47 = vrot.slane %v18111_v37, 1  ;;  %v5405_v46 = vsel %vm18113_vm13, %v5347_v16, 0.0  ;;  %v6197_v53 = vsel %vm18114_vm14, %v5347_v16, 0.0  ;;  %v5404_v12 = vsel %vm18115_vm12, %v5345_v39, 0.0  ;;  %vm18132_vm13 = vmmov %vm18116_vm6 }
 0x4b8   : > { %v5213_v57 = vsel %vm3125_vm0, %v18109_v55, %v17449_v24  ;;  %v5801_v35 = vsel %vm18116_vm6, %v5347_v16, 0.0  ;;  %v18117_v55 = vld [vmem:[#allocation74_spill] sm:$0xff]  ;;  %v5446_v4 = vmul.f32 %v18071_v43, %v5405_v46  ;;  %v15503_v23 = vsel %vm18122_vm11, %v5345_v39, 0.0  ;;  %vm18133_vm14 = vmmov %vm18115_vm12 }
 0x4b9   : > { %v5215_v8 = vsel %vm3125_vm0, %v18112_v47, %v5214_v36  ;;  %v18118_v24 = vrot.slane %v18117_v55, 1  ;;  %v6238_v47 = vmul.f32 %v18119_v58, %v6197_v53  ;;  %v4682_v20 = vpop.f32.mrf.mxu1  ;;  %v5272_v16 = vadd.f32 %v5213_v57, %v15397_v27  ;;  %v18125_v57 = vld [vmem:[#allocation93_spill] sm:$0xff]  ;;  %vm18139_vm6 = vmmov %vm18092_vm9 }
 0x4ba   : > { %v5273_v49 = vadd.f32 %v5215_v8, %v15315_v3  ;;  %v4816_v30 = vmax.f32 %v4682_v20, 0.0  ;;  %v5445_v55 = vmul.f32 %v18009_v60, %v5404_v12  ;;  %v6196_v53 = vsel %vm18092_vm9, %v5345_v39, 0.0  ;;  %v18123_v3 = vld [vmem:[#allocation90_spill] sm:$0xff]  ;;  %vm18147_vm9 = vmmov %vm18131_vm15 }
 0x4bb   : > { %v6067_v37 = vsel %vm3125_vm0, %v18118_v24, %v17459_v19  ;;  %v17464_v24 = vrot.slane %v15470_v25, 1  ;;  %v4684_v19 = vpop.f32.mrf.mxu1  ;;  %v6237_v8 = vmul.f32 %v18123_v3, %v6196_v53  ;;  %v5019_v27 = vsel %vm18124_vm10, %v15424_v52, 0.0  ;;  %v18127_v3 = vld [vmem:[#allocation72_spill] sm:$0xff]  ;;  %vm18151_vm11 = vmmov %vm18115_vm12 }
 0x4bc   : > { %v6131_v14 = vadd.f32 %v6067_v37, %v5955_v10  ;;  %v15509_v20 = vrot.slane %v4816_v30, 7  ;;  %v4817_v10 = vmax.f32 %v4684_v19, 0.0  ;;  %v18126_v12 = vrot.slane %v18125_v57, 1 }
 0x4bd   : > { %v15517_v37 = vadd.f32 %v5446_v4, %v5273_v49  ;;  %v15519_v53 = vld [vmem:[#allocation2 + $0x38] sm:$0xff]  ;;  %v15523_v61 = vmul.f32 %v18127_v3, %v15424_v52  ;;  %v5842_v49 = vmul.f32 %v18080_v28, %v5801_v35  ;;  %v15534_v4 = vld [vmem:[#allocation2 + $0x90] sm:$0xff]  ;;  %v5893_v35 = vsel %vm2921_vm4, %v15424_v52, 0.0 }
 0x4be   : > { %v6262_v11 = vadd.f32 %v6238_v47, %v6131_v14  ;;  %v6065_v46 = vsel %vm3125_vm0, %v18126_v12, %v17464_v24  ;;  %v5060_v14 = vmul.f32 %v14493_v17, %v5019_v27  ;;  %v4914_v30 = vsel %vm2794_vm2, %v4907_v9, %v15509_v20 }
 0x4bf   : > { %v6130_v47 = vadd.f32 %v6065_v46, %v5954_v32  ;;  %v15527_v19 = vrot.slane %v4817_v10, 7  ;;  %v15531_v57 = vmul.f32 %v18104_v54, %v15519_v53  ;;  %4970 = vst [vmem:[#allocation2 + $0x20] sm:$0xff] %v4914_v30  ;;  %v17465_v27 = vrot.slane %v15519_v53, 2 }
 0x4c0   : > { %v6286_v39 = vmax.f32 %v6262_v11, 0.0  ;;  %v5100_v32 = vadd.f32 %v18085_v6, %v5060_v14  ;;  %v17466_v12 = vrot.slane %v15523_v61, 1  ;;  %v15547_v46 = vmul.f32 %v14653_v22, %v15519_v53 }
 0x4c1   : > { %v6261_v11 = vadd.f32 %v6237_v8, %v6130_v47  ;;  %v4916_v9 = vsel %vm2794_vm2, %v4909_v26, %v15527_v19  ;;  %v17467_v10 = vrot.slane %v15531_v57, 1  ;;  %v18128_v14 = vrot.slane %v15424_v52, 2 }
 0x4c2   : > { %6425 = vmatprep.mubr.f32.mxu1 %v6286_v39  ;;  %4971 = vst [vmem:[#allocation2 + $0x98] sm:$0xff] %v4916_v9  ;;  %v18129_v26 = vrot.slane %v15260_v34, 1  ;;  %v15561_v30 = vmul.f32 %v18081_v0, %v15534_v4  ;;  %v15563_v24 = vadd.f32 %v5445_v55, %v5272_v16  ;;  %v5934_v34 = vmul.f32 %v18095_v13, %v5893_v35  ;;  %v15575_v16 = vld [vmem:[#allocation2 + $0x60] sm:$0xff] }
 0x4c3   : > { %v6285_v8 = vmax.f32 %v6261_v11, 0.0  ;;  %v5353_v39 = vsel %vm3282_vm3, %v18128_v14, %v17465_v27  ;;  %v5221_v11 = vsel %vm3125_vm0, %v5214_v36, %v17467_v10  ;;  %v17470_v10 = vrot.slane %v15534_v4, 2 }
 0x4c4   : > { %v5674_v47 = vsel %vm3125_vm0, %v18129_v26, %v17466_v12  ;;  %18130 = vst [vmem:[#allocation84_spill] sm:$0xff] %v15563_v24  ;;  %v5408_v9 = vsel %vm18131_vm15, %v5353_v39, 0.0  ;;  %v5276_v27 = vadd.f32 %v5221_v11, %v5100_v32  ;;  %v17468_v26 = vrot.slane %v15547_v46, 1  ;;  %vm18153_vm15 = vmmov %vm18141_vm8 }
 0x4c5   : > { %v5735_v14 = vadd.f32 %v5674_v47, %v15407_v40  ;;  %6426 = vmatmul.mubr.f32.gmra.mxu1 %v6285_v8  ;;  %v6200_v12 = vsel %vm18132_vm13, %v5353_v39, 0.0  ;;  %v5449_v55 = vmul.f32 %v18071_v43, %v5408_v9  ;;  %v17469_v36 = vrot.slane %v15561_v30, 1  ;;  %v18135_v47 = vld [vmem:[#allocation26_spill] sm:$0xff]  ;;  %vm18163_vm13 = vmmov %vm18151_vm11 }
 0x4c6   : > { %v15582_v40 = vsel %vm18133_vm14, %v5353_v39, 0.0  ;;  %v18134_v32 = vrot.slane %v15442_v7, 1  ;;  %v6241_v8 = vmul.f32 %v18119_v58, %v6200_v12  ;;  %v15592_v11 = vmul.f32 %v18135_v47, %v15534_v4  ;;  %vm18171_vm14 = vmmov %vm18141_vm8 }
 0x4c7   : > { %v5866_v24 = vadd.f32 %v5842_v49, %v5735_v14  ;;  %v18136_v9 = vrot.slane %v15312_v15, 1  ;;  %v18137_v14 = vrot.slane %v15124_v18, 2  ;;  %v15606_v12 = vmul.f32 %v18103_v56, %v15575_v16 }
 0x4c8   : > { %v6073_v35 = vsel %vm3125_vm0, %v18134_v32, %v17468_v26  ;;  %v5059_v15 = vmul.f32 %v18077_v59, %v15492_v21  ;;  %v17473_v21 = vrot.slane %v15575_v16, 2  ;;  %v15763_v42 = vmul.f32 %v18127_v3, %v15519_v53 }
 0x4c9   : > { %v5958_v49 = vadd.f32 %v5934_v34, %v5866_v24  ;;  %v5217_v39 = vsel %vm3125_vm0, %v18136_v9, %v17469_v36  ;;  %v5349_v7 = vsel %vm3282_vm3, %v18137_v14, %v17470_v10  ;;  %v17472_v34 = vrot.slane %v15592_v11, 1 }
 0x4ca   : > { %v5274_v32 = vadd.f32 %v5217_v39, %v15412_v63  ;;  %v5406_v24 = vsel %vm18115_vm12, %v5349_v7, 0.0  ;;  %v15614_v9 = vadd.f32 %v5449_v55, %v5276_v27  ;;  %v6198_v14 = vsel %vm18139_vm6, %v5349_v7, 0.0 }
 0x4cb   : > { %v6134_v26 = vadd.f32 %v6073_v35, %v5958_v49  ;;  %v5447_v18 = vmul.f32 %v18086_v48, %v5406_v24  ;;  %v18140_v63 = vrot.slane %v15238_v33, 1  ;;  %v6239_v36 = vmul.f32 %v14986_v38, %v6198_v14  ;;  %v18142_v35 = vld [vmem:[#allocation66_spill] sm:$0xff] }
 0x4cc   : > { %18138 = vst [vmem:[#allocation27_spill] sm:$0xff] %v15614_v9  ;;  %v17471_v10 = vrot.slane %v15606_v12, 1  ;;  %v15629_v55 = vsel %vm18141_vm8, %v5349_v7, 0.0  ;;  %v15634_v49 = vmul.f32 %v18142_v35, %v15416_v2  ;;  %v5099_v24 = vadd.f32 %v18002_v62, %v5059_v15  ;;  %vm18183_vm8 = vmmov %vm18151_vm11 }
 0x4cd   : > { %v6069_v39 = vsel %vm3125_vm0, %v18140_v63, %v17472_v34  ;;  %v6265_v27 = vadd.f32 %v6241_v8, %v6134_v26  ;;  %v15636_v33 = vadd.f32 %v5447_v18, %v5274_v32  ;;  %v18145_v14 = vrot.slane %v15428_v44, 1  ;;  %v18148_v34 = vld [vmem:[#allocation69_spill] sm:$0xff] }
 0x4ce   : > { %v6132_v29 = vadd.f32 %v6069_v39, %v15431_v41  ;;  %18143 = vst [vmem:[#allocation81_spill] sm:$0xff] %v15634_v49  ;;  %v18146_v8 = vrot.slane %v15416_v2, 2  ;;  %v5892_v15 = vsel %vm2921_vm4, %v15416_v2, 0.0 }
 0x4cf   : > { %18144 = vst [vmem:[#allocation88_spill] sm:$0xff] %v15636_v33  ;;  %v5219_v26 = vsel %vm3125_vm0, %v18145_v14, %v17471_v10  ;;  %v6289_v7 = vmax.f32 %v6265_v27, 0.0  ;;  %v4688_v18 = vpop.f32.mrf.mxu1  ;;  %v10363_v39 = vpop.f32.mrf.mxu0  ;;  %v17476_v10 = vrot.slane %v15634_v49, 1  ;;  %v5841_v33 = vmul.f32 %v18148_v34, %v15503_v23 }
 0x4d0   : > { %v5351_v41 = vsel %vm3282_vm3, %v18146_v8, %v17473_v21  ;;  %v6263_v63 = vadd.f32 %v6239_v36, %v6132_v29  ;;  %v5275_v44 = vadd.f32 %v5219_v26, %v5099_v24  ;;  %v4819_v8 = vmax.f32 %v4688_v18, 0.0  ;;  %v18149_v24 = vld [vmem:[#allocation106_spill] sm:$0xff] }
 0x4d1   : > { %v5407_v32 = vsel %vm18147_vm9, %v5351_v41, 0.0  ;;  %v4821_v27 = vmax.f32 %v10363_v39, 0.0  ;;  %6430 = vmatprep.mubr.f32.mxu1 %v6289_v7  ;;  %v15660_v29 = vmul.f32 %v18110_v51, %v15575_v16  ;;  %v4690_v21 = vpop.f32.mrf.mxu1  ;;  %v4789_v9 = vpop.f32.mrf.mxu0  ;;  %v18150_v26 = vrot.slane %v18149_v24, 1  ;;  %v15672_v7 = vld [vmem:[#allocation2 + $0xd0] sm:$0xff] }
 0x4d2   : > { %v5448_v14 = vmul.f32 %v18009_v60, %v5407_v32  ;;  %v6287_v36 = vmax.f32 %v6263_v63, 0.0  ;;  %v15669_v60 = vsel %vm18151_vm11, %v5351_v41, 0.0  ;;  %v5933_v23 = vmul.f32 %v18042_v5, %v5892_v15 }
 0x4d3   : > { %v5672_v32 = vsel %vm3125_vm0, %v18150_v26, %v17476_v10  ;;  %18152 = vst [vmem:[#allocation28_spill] sm:$0xff] %v15669_v60  ;;  %v5020_v63 = vsel %vm18124_vm10, %v15534_v4, 0.0  ;;  %v4919_v18 = vrot.slane %v4819_v8, 7  ;;  %v4923_v39 = vrot.slane %v4821_v27, 7  ;;  %v18155_v27 = vld [vmem:[#allocation85_spill] sm:$0xff] }
 0x4d4   : > { %v4820_v34 = vmax.f32 %v4690_v21, 0.0  ;;  %v4818_v49 = vmax.f32 %v4789_v9, 0.0  ;;  %10399 = vmatprep.mubr.f32.mxu0 %v6287_v36  ;;  %v5734_v24 = vadd.f32 %v5672_v32, %v15375_v1  ;;  %v17480_v26 = vrot.slane %v15660_v29, 1 }
 0x4d5   : > { %v6199_v10 = vsel %vm18153_vm15, %v5351_v41, 0.0  ;;  %v5061_v15 = vmul.f32 %v18047_v31, %v5020_v63  ;;  %v4920_v5 = vsel %vm2794_vm2, %v15509_v20, %v4919_v18  ;;  %4976 = vst [vmem:[#allocation2 + $0xe0] sm:$0x1] %v4919_v18  ;;  %4978 = vst [vmem:[#allocation2 + $0xa8] sm:$0x1] %v4923_v39  ;;  %v15686_v9 = vmul.f32 %v18081_v0, %v15672_v7  ;;  %v18156_v20 = vld [vmem:[#allocation63_spill] sm:$0xff] }
 0x4d6   : > { %v4921_v60 = vrot.slane %v4820_v34, 7  ;;  %v4917_v8 = vrot.slane %v4818_v49, 7  ;;  %4973 = vst [vmem:[#allocation2 + $0xc8] sm:$0xff] %v4920_v5  ;;  %v15688_v1 = vadd.f32 %v5448_v14, %v5275_v44  ;;  %v5865_v21 = vadd.f32 %v5841_v33, %v5734_v24  ;;  %v18157_v33 = vld [vmem:[#allocation90_spill] sm:$0xff]  ;;  %vm18197_vm15 = vmmov %vm18183_vm8 }
 0x4d7   : > { %v5101_v36 = vadd.f32 %v18155_v27, %v5061_v15  ;;  %v17479_v41 = vrot.slane %v15672_v7, 2  ;;  %v17478_v63 = vrot.slane %v15686_v9, 1  ;;  %v6240_v44 = vmul.f32 %v18157_v33, %v6199_v10 }
 0x4d8   : > { %18154 = vst [vmem:[#allocation89_spill] sm:$0xff] %v15688_v1  ;;  %v4922_v32 = vsel %vm2794_vm2, %v15527_v19, %v4921_v60  ;;  %4977 = vst [vmem:[#allocation2 + $0x70] sm:$0x1] %v4921_v60  ;;  %v4918_v34 = vsel %vm2794_vm2, %v18156_v20, %v4917_v8  ;;  %v4924_v49 = vsel %vm2794_vm2, %v4917_v8, %v4923_v39  ;;  %v18158_v14 = vrot.slane %v15534_v4, 2  ;;  %v18159_v60 = vld [vmem:[#allocation21_spill] sm:$0xff]  ;;  %v18165_v20 = vld [vmem:[#allocation24_spill] sm:$0xff] }
 0x4d9   : > { %4974 = vst [vmem:[#allocation2 + $0x8] sm:$0xff] %v4922_v32  ;;  %4972 = vst [vmem:[#allocation2 + $0x78] sm:$0xff] %v4918_v34  ;;  %v5957_v5 = vadd.f32 %v5933_v23, %v5865_v21  ;;  %v15706_v18 = vmul.f32 %v18159_v60, %v15534_v4  ;;  %v18160_v39 = vrot.slane %v15470_v25, 1  ;;  %v18161_v10 = vrot.slane %v15561_v30, 1  ;;  %v15730_v30 = vld [vmem:[#allocation2 + $0x98] sm:$0xff] }
 0x4da   : > { %4975 = vst [vmem:[#allocation2 + $0x10] sm:$0xff] %v4924_v49  ;;  %v5355_v19 = vsel %vm3282_vm3, %v18158_v14, %v17479_v41  ;;  %vm18162_vm2 = vmmov %vm18147_vm9  ;;  %v5894_v8 = vsel %vm2921_vm4, %v15534_v4, 0.0  ;;  %v5843_v34 = vmul.f32 %v18165_v20, %v15629_v55 }
 0x4db   : > { %v6071_v24 = vsel %vm3125_vm0, %v18160_v39, %v17480_v26  ;;  %v5223_v23 = vsel %vm3125_vm0, %v18161_v10, %v17478_v63  ;;  %v5409_v15 = vsel %vm18162_vm2, %v5355_v19, 0.0  ;;  %v17481_v32 = vrot.slane %v15706_v18, 1  ;;  %v18168_v63 = vld [vmem:[#allocation18_spill] sm:$0xff]  ;;  %v18170_v26 = vld [vmem:[#allocation64_spill] sm:$0xff]  ;;  %vm18180_vm6 = vmmov %vm18162_vm2 }
 0x4dc   : > { %v6133_v21 = vadd.f32 %v6071_v24, %v5957_v5  ;;  %v15726_v25 = vsel %vm18163_vm13, %v5355_v19, 0.0  ;;  %v5277_v49 = vadd.f32 %v5223_v23, %v5101_v36  ;;  %v5450_v14 = vmul.f32 %v18086_v48, %v5409_v15  ;;  %v18166_v5 = vld [vmem:[#allocation32_spill] sm:$0xff]  ;;  %v18172_v23 = vld [vmem:[#allocation29_spill] sm:$0xff]  ;;  %vm18194_vm10 = vmmov %vm18162_vm2 }
 0x4dd   : > { %18164 = vst [vmem:[#allocation99_spill] sm:$0xff] %v15726_v25  ;;  %v15735_v39 = vmul.f32 %v18135_v47, %v15672_v7  ;;  %vm18167_vm4 = vcmp.ge.s32.totalorder %v18166_v5, 1  ;;  %v18169_v41 = vrot.slane %v18168_v63, 1  ;;  %v5935_v1 = vmul.f32 %v18170_v26, %v5894_v8 }
 0x4de   : > { %v5022_v24 = vsel %vm18167_vm4, %v15519_v53, 0.0  ;;  %v6264_v10 = vadd.f32 %v6240_v44, %v6133_v21  ;;  %v6201_v36 = vsel %vm18171_vm14, %v5355_v19, 0.0  ;;  %v15753_v44 = vmul.f32 %v18104_v54, %v15730_v30  ;;  %vm18184_vm9 = vmmov %vm18167_vm4 }
 0x4df   : > { %v5676_v55 = vsel %vm3125_vm0, %v18169_v41, %v17481_v32  ;;  %v5063_v25 = vmul.f32 %v14493_v17, %v5022_v24  ;;  %v15756_v63 = vrot.slane %v15730_v30, 2  ;;  %v5497_v41 = vsel %vm2922_vm7, %v15424_v52, 0.0  ;;  %v18175_v52 = vld [vmem:[#allocation68_spill] sm:$0xff]  ;;  %vm18207_vm14 = vmmov %vm18180_vm6 }
 0x4e0   : > { %v5736_v15 = vadd.f32 %v5676_v55, %v18172_v23  ;;  %18173 = vst [vmem:[#allocation79_spill] sm:$0xff] %v15753_v44  ;;  %v6288_v21 = vmax.f32 %v6264_v10, 0.0  ;;  %v15765_v19 = vadd.f32 %v5450_v14, %v5277_v49  ;;  %v17484_v55 = vrot.slane %v15753_v44, 1  ;;  %v5288_v23 = vld [vmem:[#allocation2 + $0x8] sm:$0x3] }
 0x4e1   : > { %v5103_v24 = vadd.f32 %v18085_v6, %v5063_v25  ;;  %v18174_v10 = vrot.slane %v15519_v53, 2  ;;  %v5364_v20 = vrot.slane %v5288_v23, 2  ;;  %v5538_v54 = vmul.f32 %v18175_v52, %v5497_v41 }
 0x4e2   : > { %v5867_v8 = vadd.f32 %v5843_v34, %v5736_v15  ;;  %6431 = vmatmul.mubr.f32.gmra.mxu1 %v6288_v21  ;;  %v17485_v17 = vrot.slane %v15763_v42, 1  ;;  %v6242_v49 = vmul.f32 %v14986_v38, %v6201_v36  ;;  %v18176_v25 = vrot.slane %v15531_v57, 1 }
 0x4e3   : > { %v5359_v32 = vsel %vm3282_vm3, %v18174_v10, %v15756_v63  ;;  %vm18177_vm12 = vcmp.lt.s32.totalorder %v18166_v5, 7  ;;  %v18178_v15 = vrot.slane %v15735_v39, 1  ;;  %v18179_v21 = vrot.slane %v15592_v11, 1 }
 0x4e4   : > { %v5959_v26 = vadd.f32 %v5935_v1, %v5867_v8  ;;  %v5227_v34 = vsel %vm3125_vm0, %v18176_v25, %v17484_v55  ;;  %v5411_v14 = vsel %vm18177_vm12, %v5359_v32, 0.0  ;;  %v5562_v1 = vadd.f32 %v5538_v54, %v15517_v37  ;;  %v15793_v8 = vld [vmem:[#allocation2 + $0x20] sm:$0xff]  ;;  %vm18190_vm11 = vmmov %vm18177_vm12 }
 0x4e5   : > { %v6075_v41 = vsel %vm3125_vm0, %v18179_v21, %v18178_v15  ;;  %v5279_v23 = vadd.f32 %v5227_v34, %v5103_v24  ;;  %v15791_v36 = vsel %vm18180_vm6, %v5359_v32, 0.0  ;;  %v15797_v10 = vsel %vm3282_vm3, %v15756_v63, %v5364_v20  ;;  %v5287_v34 = vld [vmem:[#allocation2 + $0xc8] sm:$0x3]  ;;  %vm18205_vm4 = vmmov %vm18190_vm11 }
 0x4e6   : > { %v6135_v57 = vadd.f32 %v6075_v41, %v5959_v26  ;;  %18181 = vst [vmem:[#allocation74_spill] sm:$0xff] %v15797_v10  ;;  %v18182_v11 = vrot.slane %v15523_v61, 1  ;;  %v5896_v54 = vsel %vm2922_vm7, %v15519_v53, 0.0  ;;  %v5452_v37 = vmul.f32 %v18071_v43, %v5411_v14  ;;  %vm18208_vm12 = vmmov %vm18184_vm9 }
 0x4e7   : > { %v5845_v26 = vmul.f32 %v18080_v28, %v15582_v40  ;;  %v15812_v20 = vmul.f32 %v14653_v22, %v15730_v30  ;;  %v6203_v61 = vsel %vm18183_vm8, %v5359_v32, 0.0  ;;  %v5021_v21 = vsel %vm18184_vm9, %v15575_v16, 0.0  ;;  %vm18212_vm6 = vmmov %vm18205_vm4 }
 0x4e8   : > { %v5680_v25 = vsel %vm3125_vm0, %v18182_v11, %v17485_v17  ;;  %v6266_v15 = vadd.f32 %v6242_v49, %v6135_v57  ;;  %v15821_v14 = vmul.f32 %v18103_v56, %v15793_v8  ;;  %v5937_v40 = vmul.f32 %v18095_v13, %v5896_v54  ;;  %vm18218_vm8 = vmmov %vm18194_vm10 }
 0x4e9   : > { %v5738_v24 = vadd.f32 %v5680_v25, %v5562_v1  ;;  %v17488_v1 = vrot.slane %v15812_v20, 1  ;;  %v5062_v11 = vmul.f32 %v18077_v59, %v5021_v21  ;;  %v15828_v32 = vrot.slane %v15793_v8, 2  ;;  %vm18221_vm9 = vmmov %vm18197_vm15 }
 0x4ea   : > { %18185 = vst [vmem:[#allocation36_spill] sm:$0xff] %v15821_v14  ;;  %v6290_v25 = vmax.f32 %v6266_v15, 0.0  ;;  %v17487_v49 = vrot.slane %v15821_v14, 1  ;;  %v5362_v57 = vrot.slane %v5287_v34, 2  ;;  %v6244_v17 = vmul.f32 %v18119_v58, %v6203_v61  ;;  %v18199_v14 = vld [vmem:[#allocation81_spill] sm:$0xff] }
 0x4eb   : > { %v5869_v41 = vadd.f32 %v5845_v26, %v5738_v24  ;;  %v5102_v56 = vadd.f32 %v18002_v62, %v5062_v11  ;;  %v5496_v54 = vsel %vm2922_vm7, %v15416_v2, 0.0  ;;  %v18186_v24 = vrot.slane %v15547_v46, 1 }
 0x4ec   : > { %10400 = vmatmul.mubr.f32.gmra.mxu0 %v6290_v25  ;;  %v18187_v34 = vrot.slane %v15606_v12, 1  ;;  %v18188_v61 = vrot.slane %v15575_v16, 2  ;;  %v15854_v25 = vmul.f32 %v18142_v35, %v15575_v16  ;;  %v15860_v12 = vsel %vm3282_vm3, %v15828_v32, %v5362_v57  ;;  %v18196_v57 = vld [vmem:[#allocation69_spill] sm:$0xff] }
 0x4ed   : > { %v5961_v55 = vadd.f32 %v5937_v40, %v5869_v41  ;;  %v6079_v26 = vsel %vm3125_vm0, %v18186_v24, %v17488_v1  ;;  %v18189_v41 = vld [vmem:[#allocation73_spill] sm:$0xff]  ;;  %v15856_v24 = vadd.f32 %v5452_v37, %v5279_v23  ;;  %18191 = vst [vmem:[#allocation31_spill] sm:$0xff] %v15860_v12  ;;  %v15873_v23 = vld [vmem:[#allocation2 + $0x8] sm:$0xff]  ;;  %vm18198_vm2 = vcmp.ge.s32.totalorder %v18120_v45, 1 }
 0x4ee   : > { %v5225_v15 = vsel %vm3125_vm0, %v18187_v34, %v17487_v49  ;;  %v5357_v21 = vsel %vm3282_vm3, %v18188_v61, %v15828_v32  ;;  %v5537_v2 = vmul.f32 %v18189_v41, %v5496_v54  ;;  %v18192_v34 = vld [vmem:[#allocation62_spill] sm:$0xff]  ;;  %v18193_v61 = vld [vmem:[#allocation84_spill] sm:$0xff]  ;;  %vm18202_vm13 = vmmov %vm18198_vm2 }
 0x4ef   : > { %v6137_v40 = vadd.f32 %v6079_v26, %v5961_v55  ;;  %v5278_v11 = vadd.f32 %v5225_v15, %v5102_v56  ;;  %v5410_v46 = vsel %vm18190_vm11, %v5357_v21, 0.0  ;;  %v17492_v56 = vrot.slane %v15854_v25, 1  ;;  %v18195_v37 = vld [vmem:[#allocation28_spill] sm:$0xff]  ;;  %vm18224_vm11 = vmmov %vm18198_vm2 }
 0x4f0   : > { %v5451_v49 = vmul.f32 %v18192_v34, %v5410_v46  ;;  %v5561_v1 = vadd.f32 %v5537_v2, %v18193_v61  ;;  %v15867_v55 = vsel %vm18194_vm10, %v5357_v21, 0.0  ;;  %v15871_v26 = vmul.f32 %v18110_v51, %v15793_v8  ;;  %vm18228_vm10 = vmmov %vm18205_vm4 }
 0x4f1   : > { %v6268_v54 = vadd.f32 %v6244_v17, %v6137_v40  ;;  %v5844_v15 = vmul.f32 %v18196_v57, %v18195_v37  ;;  %v5895_v2 = vsel %vm2922_vm7, %v15575_v16, 0.0  ;;  %v6202_v17 = vsel %vm18197_vm15, %v5357_v21, 0.0  ;;  %vm18229_vm15 = vmmov %vm18218_vm8 }
 0x4f2   : > { %v5500_v40 = vsel %vm18198_vm2, %v15519_v53, 0.0  ;;  %v15885_v61 = vadd.f32 %v5451_v49, %v5278_v11  ;;  %v18200_v34 = vrot.slane %v18199_v14, 1  ;;  %v17496_v62 = vrot.slane %v15871_v26, 1  ;;  %v18201_v49 = vld [vmem:[#allocation96_spill] sm:$0xff] }
 0x4f3   : > { %v6292_v46 = vmax.f32 %v6268_v54, 0.0  ;;  %v5541_v59 = vmul.f32 %v18175_v52, %v5500_v40  ;;  %v15896_v21 = vmul.f32 %v18127_v3, %v15730_v30  ;;  %v15899_v53 = vrot.slane %v15873_v23, 2  ;;  %v18203_v40 = vld [vmem:[#allocation27_spill] sm:$0xff] }
 0x4f4   : > { %v5678_v37 = vsel %vm3125_vm0, %v18200_v34, %v17492_v56  ;;  %v5936_v11 = vmul.f32 %v18201_v49, %v5895_v2  ;;  %v6243_v54 = vmul.f32 %v18157_v33, %v6202_v17  ;;  %v5899_v14 = vsel %vm18202_vm13, %v15730_v30, 0.0  ;;  %v15915_v2 = vld [vmem:[#allocation2 + $0x78] sm:$0xff]  ;;  %vm18230_vm13 = vmmov %vm18205_vm4 }
 0x4f5   : > { %v5737_v12 = vadd.f32 %v5678_v37, %v5561_v1  ;;  %6435 = vmatprep.mubr.f32.mxu1 %v6292_v46  ;;  %v15908_v1 = vmul.f32 %v14653_v22, %v15873_v23  ;;  %v5565_v37 = vadd.f32 %v5541_v59, %v18203_v40  ;;  %v17497_v56 = vrot.slane %v15896_v21, 1 }
 0x4f6   : > { %v5773_v46 = vsel %vm3282_vm3, %v15756_v63, %v15899_v53  ;;  %v18204_v17 = vrot.slane %v15660_v29, 1  ;;  %v5848_v59 = vmul.f32 %v18080_v28, %v15791_v36  ;;  %v18206_v63 = vrot.slane %v15763_v42, 1 }
 0x4f7   : > { %v5868_v34 = vadd.f32 %v5844_v15, %v5737_v12  ;;  %v5810_v43 = vsel %vm18205_vm4, %v5773_v46, 0.0  ;;  %v5940_v12 = vmul.f32 %v18095_v13, %v5899_v14  ;;  %v5289_v15 = vld [vmem:[#allocation2 + $0x10] sm:$0x3]  ;;  %v5023_v36 = vsel %vm18208_vm12, %v15672_v7, 0.0  ;;  %vm18233_vm4 = vmmov %vm18198_vm2 }
 0x4f8   : > { %v6077_v44 = vsel %vm3125_vm0, %v18204_v17, %v17496_v62  ;;  %v5686_v6 = vsel %vm3125_vm0, %v18206_v63, %v17497_v56  ;;  %v6206_v17 = vsel %vm18207_vm14, %v5773_v46, 0.0  ;;  %v15936_v10 = vmul.f32 %v18080_v28, %v5810_v43  ;;  %vm18234_vm14 = vmmov %vm18218_vm8 }
 0x4f9   : > { %v5960_v40 = vadd.f32 %v5936_v11, %v5868_v34  ;;  %v5741_v62 = vadd.f32 %v5686_v6, %v5565_v37  ;;  %v15943_v11 = vmul.f32 %v18081_v0, %v15915_v2  ;;  %v5064_v14 = vmul.f32 %v18047_v31, %v5023_v36 }
 0x4fa   : > { %v15947_v34 = vrot.slane %v15915_v2, 2  ;;  %v5366_v63 = vrot.slane %v5289_v15, 2  ;;  %v5498_v43 = vsel %vm2922_vm7, %v15534_v4, 0.0  ;;  %v15955_v37 = vmul.f32 %v18159_v60, %v15672_v7 }
 0x4fb   : > { %18209 = vst [vmem:[#allocation93_spill] sm:$0xff] %v15943_v11  ;;  %v6136_v42 = vadd.f32 %v6077_v44, %v5960_v40  ;;  %v5872_v46 = vadd.f32 %v5848_v59, %v5741_v62  ;;  %v17500_v6 = vrot.slane %v15943_v11, 1  ;;  %v6247_v44 = vmul.f32 %v18119_v58, %v6206_v17 }
 0x4fc   : > { %v5104_v40 = vadd.f32 %v18155_v27, %v5064_v14  ;;  %v18210_v36 = vrot.slane %v15672_v7, 2  ;;  %v18211_v15 = vrot.slane %v15686_v9, 1  ;;  %v18214_v14 = vrot.slane %v15908_v1, 1 }
 0x4fd   : > { %v6267_v56 = vadd.f32 %v6243_v54, %v6136_v42  ;;  %v5964_v59 = vadd.f32 %v5940_v12, %v5872_v46  ;;  %v18213_v54 = vld [vmem:[#allocation22_spill] sm:$0xff]  ;;  %v18215_v27 = vrot.slane %v15812_v20, 1  ;;  %v15978_v12 = vsel %vm3282_vm3, %v15947_v34, %v5366_v63  ;;  %v15995_v63 = vld [vmem:[#allocation2 + $0xc8] sm:$0xff] }
 0x4fe   : > { %v5361_v62 = vsel %vm3282_vm3, %v18210_v36, %v15947_v34  ;;  %v5229_v4 = vsel %vm3125_vm0, %v18211_v15, %v17500_v6  ;;  %v5539_v42 = vmul.f32 %v18213_v54, %v5498_v43  ;;  %v5681_v9 = vrot.slane %v15955_v37, 1  ;;  %v18216_v6 = vld [vmem:[#allocation88_spill] sm:$0xff]  ;;  %v18219_v37 = vld [vmem:[#allocation99_spill] sm:$0xff] }
 0x4ff   : > { %v5412_v29 = vsel %vm18212_vm6, %v5361_v62, 0.0  ;;  %v6291_v17 = vmax.f32 %v6267_v56, 0.0  ;;  %v6085_v31 = vsel %vm3125_vm0, %v18215_v27, %v18214_v14  ;;  %v5280_v36 = vadd.f32 %v5229_v4, %v5104_v40  ;;  %v18220_v40 = vld [vmem:[#allocation24_spill] sm:$0xff]  ;;  %vm18235_vm6 = vmmov %vm18208_vm12 }
 0x500   : > { %v6140_v46 = vadd.f32 %v6085_v31, %v5964_v59  ;;  %v5453_v15 = vmul.f32 %v18086_v48, %v5412_v29  ;;  %v5563_v11 = vadd.f32 %v5539_v42, %v18216_v6  ;;  %v18217_v56 = vrot.slane %v15706_v18, 1  ;;  %v18222_v4 = vld [vmem:[#allocation64_spill] sm:$0xff] }
 0x501   : > { %6436 = vmatmul.mubr.f32.gmra.mxu1 %v6291_v17  ;;  %v5808_v27 = vsel %vm18218_vm8, %v5361_v62, 0.0  ;;  %v5897_v20 = vsel %vm2922_vm7, %v15672_v7, 0.0  ;;  %v15993_v31 = vmul.f32 %v18135_v47, %v15915_v2  ;;  %v5846_v18 = vmul.f32 %v18220_v40, %v18219_v37  ;;  %vm18223_vm7 = vmmov %vm18198_vm2 }
 0x502   : > { %v5682_v43 = vsel %vm3125_vm0, %v18217_v56, %v5681_v9  ;;  %v6271_v29 = vadd.f32 %v6247_v44, %v6140_v46  ;;  %v6204_v59 = vsel %vm18221_vm9, %v5361_v62, 0.0  ;;  %v5938_v42 = vmul.f32 %v18222_v4, %v5897_v20  ;;  %vm18238_vm8 = vmmov %vm18235_vm6 }
 0x503   : > { %v5739_v6 = vadd.f32 %v5682_v43, %v5563_v11  ;;  %v17503_v17 = vrot.slane %v15993_v31, 1  ;;  %v5499_v14 = vsel %vm18223_vm7, %v15575_v16, 0.0  ;;  %v16008_v56 = vmul.f32 %v18142_v35, %v15793_v8  ;;  %vm18240_vm9 = vmmov %vm18235_vm6 }
 0x504   : > { %v6295_v44 = vmax.f32 %v6271_v29, 0.0  ;;  %v5540_v46 = vmul.f32 %v18189_v41, %v5499_v14  ;;  %v16012_v43 = vrot.slane %v15995_v63, 2  ;;  %v16014_v50 = vadd.f32 %v5453_v15, %v5280_v36  ;;  %v16030_v15 = vld [vmem:[#allocation2 + $0x10] sm:$0xff]  ;;  %vm18241_vm7 = vmmov %vm18228_vm10 }
 0x505   : > { %v5870_v11 = vadd.f32 %v5846_v18, %v5739_v6  ;;  %v6245_v62 = vmul.f32 %v14986_v38, %v6204_v59  ;;  %v17502_v20 = vrot.slane %v16008_v56, 1  ;;  %v5898_v16 = vsel %vm18224_vm11, %v15793_v8, 0.0  ;;  %v18226_v18 = vld [vmem:[#allocation89_spill] sm:$0xff] }
 0x506   : > { %6440 = vmatprep.mubr.f32.mxu1 %v6295_v44  ;;  %v18225_v29 = vrot.slane %v15735_v39, 1  ;;  %v5564_v14 = vadd.f32 %v5540_v46, %v18226_v18  ;;  %v5771_v36 = vsel %vm3282_vm3, %v15828_v32, %v16012_v43  ;;  %v18227_v59 = vrot.slane %v15854_v25, 1 }
 0x507   : > { %v5962_v37 = vadd.f32 %v5938_v42, %v5870_v11  ;;  %v5809_v44 = vsel %vm18228_vm10, %v5771_v36, 0.0  ;;  %v5847_v39 = vmul.f32 %v18196_v57, %v15867_v55  ;;  %v16043_v11 = vmul.f32 %v18110_v51, %v15995_v63 }
 0x508   : > { %v6081_v6 = vsel %vm3125_vm0, %v18225_v29, %v17503_v17  ;;  %v5684_v42 = vsel %vm3125_vm0, %v18227_v59, %v17502_v20  ;;  %v5939_v29 = vmul.f32 %v18201_v49, %v5898_v16  ;;  %v6205_v18 = vsel %vm18229_vm15, %v5771_v36, 0.0  ;;  %vm18249_vm15 = vmmov %vm18241_vm7 }
 0x509   : > { %v6138_v46 = vadd.f32 %v6081_v6, %v5962_v37  ;;  %v5740_v32 = vadd.f32 %v5684_v42, %v5564_v14  ;;  %v5501_v59 = vsel %vm18198_vm2, %v15672_v7, 0.0  ;;  %v16054_v55 = vmul.f32 %v18159_v60, %v15915_v2 }
 0x50a   : > { %v16057_v20 = vrot.slane %v16030_v15, 2  ;;  %v16060_v6 = vmul.f32 %v18196_v57, %v5809_v44  ;;  %v5542_v14 = vmul.f32 %v18213_v54, %v5501_v59  ;;  %v6246_v36 = vmul.f32 %v18157_v33, %v6205_v18 }
 0x50b   : > { %v6269_v37 = vadd.f32 %v6245_v62, %v6138_v46  ;;  %v5871_v16 = vadd.f32 %v5847_v39, %v5740_v32  ;;  %v17506_v42 = vrot.slane %v16054_v55, 1  ;;  %v5849_v17 = vmul.f32 %v18220_v40, %v5808_v27  ;;  %v16087_v27 = vld [vmem:[#allocation2 + $0x70] sm:$0xff] }
 0x50c   : > { %v5775_v7 = vsel %vm3282_vm3, %v15947_v34, %v16057_v20  ;;  %v5566_v62 = vadd.f32 %v5542_v14, %v15765_v19  ;;  %v18231_v39 = vrot.slane %v16043_v11, 1  ;;  %v18232_v46 = vrot.slane %v15871_v26, 1 }
 0x50d   : > { %v6293_v25 = vmax.f32 %v6269_v37, 0.0  ;;  %v5963_v48 = vadd.f32 %v5939_v29, %v5871_v16  ;;  %v5811_v44 = vsel %vm18230_vm13, %v5775_v7, 0.0  ;;  %v5688_v18 = vsel %vm3125_vm0, %v5681_v9, %v17506_v42 }
 0x50e   : > { %v6083_v32 = vsel %vm3125_vm0, %v18232_v46, %v18231_v39  ;;  %v5900_v34 = vsel %vm18233_vm4, %v15915_v2, 0.0  ;;  %v16085_v19 = vmul.f32 %v18135_v47, %v16030_v15  ;;  %v5742_v59 = vadd.f32 %v5688_v18, %v5566_v62 }
 0x50f   : > { %10402 = vmatprep.mubr.f32.mxu0 %v6293_v25  ;;  %v6139_v29 = vadd.f32 %v6083_v32, %v5963_v48  ;;  %v6207_v26 = vsel %vm18234_vm14, %v5775_v7, 0.0  ;;  %v5503_v9 = vsel %vm18208_vm12, %v15730_v30, 0.0  ;;  %v16095_v37 = vmul.f32 %v18220_v40, %v5811_v44  ;;  %v5577_v40 = vld [vmem:[#allocation2 + $0x70] sm:$0x1]  ;;  %vm18266_vm14 = vmmov %vm18235_vm6 }
 0x510   : > { %v17505_v16 = vrot.slane %v16085_v19, 1  ;;  %v5544_v14 = vmul.f32 %v18175_v52, %v5503_v9  ;;  %v16101_v39 = vmul.f32 %v18127_v3, %v15873_v23  ;;  %v5873_v25 = vadd.f32 %v5849_v17, %v5742_v59 }
 0x511   : > { %v6270_v48 = vadd.f32 %v6246_v36, %v6139_v29  ;;  %v5941_v45 = vmul.f32 %v18222_v4, %v5900_v34  ;;  %v16106_v7 = vmul.f32 %v14653_v22, %v16087_v27  ;;  %v6248_v62 = vmul.f32 %v14986_v38, %v6207_v26 }
 0x512   : > { %v5568_v44 = vadd.f32 %v5544_v14, %v15856_v24  ;;  %v17507_v46 = vrot.slane %v16101_v39, 1  ;;  %v5902_v32 = vsel %vm18235_vm6, %v15873_v23, 0.0  ;;  %v17508_v36 = vrot.slane %v16087_v27, 2  ;;  %v16133_v14 = vld [vmem:[#allocation2 + $0xe0] sm:$0xff] }
 0x513   : > { %v6294_v18 = vmax.f32 %v6270_v48, 0.0  ;;  %v5965_v9 = vadd.f32 %v5941_v45, %v5873_v25  ;;  %v17509_v17 = vrot.slane %v16106_v7, 1  ;;  %v18236_v22 = vrot.slane %v15993_v31, 1 }
 0x514   : > { %v18237_v24 = vrot.slane %v15896_v21, 1  ;;  %v5502_v59 = vsel %vm18238_vm8, %v15793_v8, 0.0  ;;  %v16131_v26 = vmul.f32 %v18142_v35, %v15995_v63  ;;  %v5943_v25 = vmul.f32 %v18095_v13, %v5902_v32 }
 0x515   : > { %v6087_v34 = vsel %vm3125_vm0, %v18236_v22, %v17505_v16  ;;  %6441 = vmatmul.mubr.f32.gmra.mxu1 %v6294_v18  ;;  %v6172_v21 = vsel %vm3282_vm3, %v15899_v53, %v17508_v36  ;;  %v18239_v45 = vrot.slane %v15908_v1, 1  ;;  %v5112_v1 = vld [vmem:[#allocation2 + $0x8] sm:$0x1] }
 0x516   : > { %v5692_v29 = vsel %vm3125_vm0, %v18237_v24, %v17507_v46  ;;  %v6141_v31 = vadd.f32 %v6087_v34, %v5965_v9  ;;  %v5543_v24 = vmul.f32 %v18189_v41, %v5502_v59  ;;  %v17510_v16 = vrot.slane %v16131_v26, 1  ;;  %v18245_v46 = vld [vmem:[#allocation104_spill] sm:$0xff] }
 0x517   : > { %v5744_v48 = vadd.f32 %v5692_v29, %v5568_v44  ;;  %v6091_v22 = vsel %vm3125_vm0, %v18239_v45, %v17509_v17  ;;  %v5901_v44 = vsel %vm18240_vm9, %v15995_v63, 0.0  ;;  %v6209_v9 = vsel %vm18241_vm7, %v6172_v21, 0.0 }
 0x518   : > { %v6272_v32 = vadd.f32 %v6248_v62, %v6141_v31  ;;  %v16155_v34 = vmul.f32 %v18110_v51, %v16133_v14  ;;  %v5567_v29 = vadd.f32 %v5543_v24, %v15885_v61  ;;  %v18242_v59 = vrot.slane %v16008_v56, 1  ;;  %v18246_v56 = vld [vmem:[#allocation101_spill] sm:$0xff] }
 0x519   : > { %v5875_v18 = vadd.f32 %v15936_v10, %v5744_v48  ;;  %v17512_v62 = vrot.slane %v16133_v14, 2  ;;  %v18243_v10 = vld [vmem:[#allocation33_spill] sm:$0xff]  ;;  %v5156_v24 = vmul.f32 %v18246_v56, %v5112_v1 }
 0x51a   : > { %v5690_v45 = vsel %vm3125_vm0, %v18242_v59, %v17510_v16  ;;  %vm18244_vm11 = vcmp.ge.s32.totalorder %v18243_v10, 1  ;;  %v6296_v48 = vmax.f32 %v6272_v32, 0.0  ;;  %v18247_v59 = vld [vmem:[#allocation74_spill] sm:$0xff]  ;;  %vm18248_vm10 = vcmp.lt.s32.totalorder %v18243_v10, 7  ;;  %v18251_v56 = vld [vmem:[#allocation77_spill] sm:$0xff] }
 0x51b   : > { %v5025_v31 = vsel %vm18244_vm11, %v15730_v30, 0.0  ;;  %v5967_v21 = vadd.f32 %v5943_v25, %v5875_v18  ;;  %v5743_v17 = vadd.f32 %v5690_v45, %v5567_v29  ;;  %v6170_v61 = vsel %vm3282_vm3, %v16012_v43, %v17512_v62  ;;  %v5753_v30 = vld [vmem:[#allocation2 + $0x70] sm:$0x3]  ;;  %v18250_v45 = vld [vmem:[#allocation95_spill] sm:$0xff]  ;;  %vm18252_vm2 = vmmov %vm18244_vm11 }
 0x51c   : > { %v5066_v36 = vmul.f32 %v18245_v46, %v5025_v31  ;;  %v5414_v16 = vsel %vm18248_vm10, %v18247_v59, 0.0  ;;  %10403 = vmatmul.mubr.f32.gmra.mxu0 %v6296_v48  ;;  %v6250_v32 = vmul.f32 %v18119_v58, %v6209_v9  ;;  %v5942_v46 = vmul.f32 %v18201_v49, %v5901_v44  ;;  %vm18257_vm13 = vmmov %vm18252_vm2 }
 0x51d   : > { %v6143_v25 = vadd.f32 %v6091_v22, %v5967_v21  ;;  %v6208_v18 = vsel %vm18249_vm15, %v6170_v61, 0.0  ;;  %v5874_v29 = vadd.f32 %v16060_v6, %v5743_v17  ;;  %v5232_v1 = vrot.slane %v5156_v24, 1  ;;  %v18255_v17 = vld [vmem:[#allocation79_spill] sm:$0xff]  ;;  %vm18258_vm4 = vmmov %vm18248_vm10 }
 0x51e   : > { %v5106_v31 = vadd.f32 %v18250_v45, %v5066_v36  ;;  %v5455_v62 = vmul.f32 %v18251_v56, %v5414_v16  ;;  %v5506_v48 = vsel %vm18252_vm2, %v15873_v23, 0.0  ;;  %v5621_v22 = vmul.f32 %v18127_v3, %v5577_v40  ;;  %v18259_v45 = vld [vmem:[#allocation30_spill] sm:$0xff]  ;;  %v18262_v56 = vld [vmem:[#allocation25_spill] sm:$0xff]  ;;  %vm18267_vm12 = vmmov %vm18258_vm4 }
 0x51f   : > { %v6274_v42 = vadd.f32 %v6250_v32, %v6143_v25  ;;  %v5778_v9 = vrot.slane %v5753_v30, 2  ;;  %v5966_v21 = vadd.f32 %v5942_v46, %v5874_v29  ;;  %v18253_v44 = vrot.slane %v16155_v34, 1  ;;  %vm18268_vm8 = vmmov %vm18252_vm2 }
 0x520   : > { %v18254_v61 = vrot.slane %v16043_v11, 1  ;;  %v18256_v36 = vrot.slane %v18255_v17, 1  ;;  %v5905_v16 = vsel %vm18257_vm13, %v16087_v27, 0.0  ;;  %v5697_v25 = vrot.slane %v5621_v22, 1  ;;  %vm18273_vm9 = vmmov %vm18258_vm4 }
 0x521   : > { %v6298_v59 = vmax.f32 %v6274_v42, 0.0  ;;  %v5779_v3 = vsel %vm3282_vm3, %v15899_v53, %v5778_v9  ;;  %v6249_v30 = vmul.f32 %v18157_v33, %v6208_v18  ;;  %v5547_v11 = vmul.f32 %v18175_v52, %v5506_v48  ;;  %v16216_v52 = vld [vmem:[#allocation2 + $0xa8] sm:$0xff]  ;;  %vm18278_vm11 = vmmov %vm18252_vm2 }
 0x522   : > { %v6089_v6 = vsel %vm3125_vm0, %v18254_v61, %v18253_v44  ;;  %v5233_v24 = vsel %vm3125_vm0, %v18256_v36, %v5232_v1  ;;  %v5813_v32 = vsel %vm18258_vm4, %v5779_v3, 0.0  ;;  %v5946_v29 = vmul.f32 %v18095_v13, %v5905_v16  ;;  %vm18280_vm10 = vmmov %vm18258_vm4 }
 0x523   : > { %v5282_v23 = vadd.f32 %v5233_v24, %v5106_v31  ;;  %v6142_v40 = vadd.f32 %v6089_v6, %v5966_v21  ;;  %6445 = vmatprep.mubr.f32.mxu1 %v6298_v59  ;;  %v18260_v1 = vrot.slane %v18259_v45, 1  ;;  %v18261_v42 = vrot.slane %v16106_v7, 1  ;;  %v5111_v6 = vld [vmem:[#allocation2 + $0xc8] sm:$0x1]  ;;  %vm18281_vm15 = vmmov %vm18252_vm2 }
 0x524   : > { %v18263_v53 = vrot.slane %v18262_v56, 2  ;;  %v18264_v22 = vrot.slane %v16087_v27, 2  ;;  %v18265_v9 = vrot.slane %v16101_v39, 1  ;;  %v5504_v13 = vsel %vm18266_vm14, %v15915_v2, 0.0  ;;  %v5752_v56 = vld [vmem:[#allocation2 + $0xe0] sm:$0x3]  ;;  %vm18283_vm13 = vmmov %vm18258_vm4 }
 0x525   : > { %v5479_v46 = vadd.f32 %v5455_v62, %v5282_v23  ;;  %v6097_v31 = vsel %vm3125_vm0, %v18261_v42, %v18260_v1  ;;  %v6273_v48 = vadd.f32 %v6249_v30, %v6142_v40  ;;  %v16226_v7 = vmul.f32 %v18159_v60, %v16030_v15  ;;  %v18270_v30 = vld [vmem:[#allocation70_spill] sm:$0xff]  ;;  %v18272_v1 = vld [vmem:[#allocation31_spill] sm:$0xff]  ;;  %vm18292_vm14 = vmmov %vm18252_vm2 }
 0x526   : > { %v6178_v18 = vsel %vm3282_vm3, %v18264_v22, %v18263_v53  ;;  %v5698_v62 = vsel %vm3125_vm0, %v18265_v9, %v5697_v25  ;;  %v5854_v27 = vmul.f32 %v18080_v28, %v5813_v32  ;;  %v5545_v61 = vmul.f32 %v18213_v54, %v5504_v13  ;;  %v18271_v32 = vld [vmem:[#allocation97_spill] sm:$0xff]  ;;  %v5576_v42 = vld [vmem:[#allocation2 + $0xe0] sm:$0x1] }
 0x527   : > { %v5571_v21 = vadd.f32 %v5547_v11, %v5479_v46  ;;  %v6212_v44 = vsel %vm18267_vm12, %v6178_v18, 0.0  ;;  %v6297_v39 = vmax.f32 %v6273_v48, 0.0  ;;  %v5693_v17 = vrot.slane %v16226_v7, 1  ;;  %vm18294_vm12 = vmmov %vm18258_vm4 }
 0x528   : > { %v5903_v36 = vsel %vm18235_vm6, %v16030_v15, 0.0  ;;  %v16238_v24 = vmul.f32 %v18135_v47, %v16216_v52  ;;  %v5569_v28 = vadd.f32 %v5545_v61, %v16014_v50  ;;  %v6173_v59 = vrot.slane %v16216_v52, 2  ;;  %vm18295_vm6 = vmmov %vm18252_vm2 }
 0x529   : > { %v5747_v16 = vadd.f32 %v5698_v62, %v5571_v21  ;;  %v5024_v23 = vsel %vm18268_vm8, %v15793_v8, 0.0  ;;  %6446 = vmatmul.mubr.f32.gmra.mxu1 %v6297_v39  ;;  %v6253_v25 = vmul.f32 %v18119_v58, %v6212_v44  ;;  %v18269_v3 = vrot.slane %v16054_v55, 1  ;;  %v18274_v62 = vld [vmem:[#allocation94_spill] sm:$0xff]  ;;  %v18276_v44 = vld [vmem:[#allocation36_spill] sm:$0xff]  ;;  %vm18297_vm8 = vmmov %vm18258_vm4 }
 0x52a   : > { %v5065_v11 = vmul.f32 %v18270_v30, %v5024_v23  ;;  %v5155_v46 = vmul.f32 %v18271_v32, %v5111_v6  ;;  %v6174_v8 = vsel %vm3282_vm3, %v16057_v20, %v6173_v59  ;;  %v5413_v58 = vsel %vm18273_vm9, %v18272_v1, 0.0  ;;  %v18275_v21 = vld [vmem:[#allocation62_spill] sm:$0xff] }
 0x52b   : > { %v5694_v40 = vsel %vm3125_vm0, %v18269_v3, %v5693_v17  ;;  %v5878_v50 = vadd.f32 %v5854_v27, %v5747_v16  ;;  %v5944_v55 = vmul.f32 %v18222_v4, %v5903_v36  ;;  %v6092_v53 = vrot.slane %v16238_v24, 1  ;;  %v5975_v3 = vld [vmem:[#allocation2 + $0x58] sm:$0x1] }
 0x52c   : > { %v5745_v45 = vadd.f32 %v5694_v40, %v5569_v28  ;;  %v6210_v22 = vsel %vm18241_vm7, %v6174_v8, 0.0  ;;  %v5230_v18 = vrot.slane %v5155_v46, 1  ;;  %v5105_v13 = vadd.f32 %v18274_v62, %v5065_v11  ;;  %v18287_v62 = vld [vmem:[#allocation92_spill] sm:$0xff] }
 0x52d   : > { %v5970_v48 = vadd.f32 %v5946_v29, %v5878_v50  ;;  %v5454_v27 = vmul.f32 %v18275_v21, %v5413_v58  ;;  %v18277_v61 = vrot.slane %v18276_v44, 1  ;;  %v5505_v39 = vsel %vm18278_vm11, %v15995_v63, 0.0  ;;  %v5113_v50 = vld [vmem:[#allocation2 + $0x10] sm:$0x1]  ;;  %v5578_v21 = vld [vmem:[#allocation2 + $0xa8] sm:$0x1] }
 0x52e   : > { %v5876_v9 = vadd.f32 %v16095_v37, %v5745_v45  ;;  %v5620_v36 = vmul.f32 %v18142_v35, %v5576_v42  ;;  %v5776_v5 = vrot.slane %v5752_v56, 2  ;;  %v18279_v37 = vrot.slane %v16085_v19, 1 }
 0x52f   : > { %v5231_v6 = vsel %vm3125_vm0, %v18277_v61, %v5230_v18  ;;  %v6146_v16 = vadd.f32 %v6097_v31, %v5970_v48  ;;  %v6251_v40 = vmul.f32 %v14986_v38, %v6210_v22  ;;  %v5546_v30 = vmul.f32 %v18189_v41, %v5505_v39  ;;  %v18284_v48 = vld [vmem:[#allocation23_spill] sm:$0xff]  ;;  %v18288_v61 = vld [vmem:[#allocation85_spill] sm:$0xff]  ;;  %v18289_v39 = vld [vmem:[#allocation34_spill] sm:$0xff] }
 0x530   : > { %v5968_v28 = vadd.f32 %v5944_v55, %v5876_v9  ;;  %v6093_v29 = vsel %vm3125_vm0, %v18279_v37, %v6092_v53  ;;  %v5281_v23 = vadd.f32 %v5231_v6, %v5105_v13  ;;  %v5695_v11 = vrot.slane %v5620_v36, 1 }
 0x531   : > { %v5777_v63 = vsel %vm3282_vm3, %v16012_v43, %v5776_v5  ;;  %v6277_v35 = vadd.f32 %v6253_v25, %v6146_v16  ;;  %v5904_v19 = vsel %vm18281_vm15, %v16133_v14, 0.0  ;;  %v6019_v45 = vmul.f32 %v18110_v51, %v5975_v3  ;;  %v5754_v51 = vld [vmem:[#allocation2 + $0xa8] sm:$0x3]  ;;  %v6153_v16 = vld [vmem:[#allocation2 + $0xa0] sm:$0x3] }
 0x532   : > { %v6144_v32 = vadd.f32 %v6093_v29, %v5968_v28  ;;  %v5478_v31 = vadd.f32 %v5454_v27, %v5281_v23  ;;  %v5812_v46 = vsel %vm18280_vm10, %v5777_v63, 0.0  ;;  %v18282_v58 = vrot.slane %v16131_v26, 1  ;;  %v18290_v28 = vld [vmem:[#allocation93_spill] sm:$0xff]  ;;  %v5977_v63 = vld [vmem:[#allocation2 + $0xa0] sm:$0x1] }
 0x533   : > { %v6301_v8 = vmax.f32 %v6277_v35, 0.0  ;;  %v5853_v25 = vmul.f32 %v18196_v57, %v5812_v46  ;;  %v5026_v42 = vsel %vm18252_vm2, %v15915_v2, 0.0  ;;  %v5157_v56 = vmul.f32 %v18081_v0, %v5113_v50  ;;  %v7147_v2 = vpop.xlane.xlu1 %7146 }
 0x534   : > { %v6275_v1 = vadd.f32 %v6251_v40, %v6144_v32  ;;  %v5570_v41 = vadd.f32 %v5546_v30, %v5478_v31  ;;  %v5696_v43 = vsel %vm3125_vm0, %v18282_v58, %v5695_v11  ;;  %v5415_v55 = vsel %vm18283_vm13, %v15978_v12, 0.0 }
 0x535   : > { %6450 = vmatprep.mubr.f32.mxu1 %v6301_v8  ;;  %v18285_v26 = vrot.slane %v18284_v48, 2  ;;  %v18286_v9 = vrot.slane %v16133_v14, 2  ;;  %v5067_v13 = vmul.f32 %v18287_v62, %v5026_v42  ;;  %v5945_v0 = vmul.f32 %v18201_v49, %v5904_v19 }
 0x536   : > { %v6299_v22 = vmax.f32 %v6275_v1, 0.0  ;;  %v5746_v18 = vadd.f32 %v5696_v43, %v5570_v41  ;;  %v6094_v27 = vrot.slane %v6019_v45, 1  ;;  %v5234_v44 = vrot.slane %v5157_v56, 1 }
 0x537   : > { %v6176_v57 = vsel %vm3282_vm3, %v18286_v9, %v18285_v26  ;;  %v5107_v6 = vadd.f32 %v18288_v61, %v5067_v13  ;;  %v5456_v36 = vmul.f32 %v18289_v39, %v5415_v55  ;;  %v5780_v5 = vrot.slane %v5754_v51, 2  ;;  %v10030_v26 = vpop.f32.mrf.mxu1  ;;  %v18302_v61 = vld [vmem:[#allocation67_spill] sm:$0xff] }
 0x538   : > { %10405 = vmatprep.mubr.f32.mxu0 %v6299_v22  ;;  %v5877_v12 = vadd.f32 %v5853_v25, %v5746_v18  ;;  %v6211_v14 = vsel %vm18258_vm4, %v6176_v57, 0.0  ;;  %v18291_v37 = vrot.slane %v18290_v28, 1  ;;  %v5507_v49 = vsel %vm18292_vm14, %v16030_v15, 0.0 }
 0x539   : > { %v5622_v23 = vmul.f32 %v18159_v60, %v5578_v21  ;;  %v7148_v3 = vmax.f32 %v7147_v2, 1e-24  ;;  %v5781_v11 = vsel %vm3282_vm3, %v16057_v20, %v5780_v5  ;;  %v18293_v35 = vrot.slane %v16155_v34, 1  ;;  %v10031_v9 = vpop.f32.mrf.mxu1 }
 0x53a   : > { %v5235_v29 = vsel %vm3125_vm0, %v18291_v37, %v5234_v44  ;;  %v5969_v40 = vadd.f32 %v5945_v0, %v5877_v12  ;;  %v6179_v31 = vrot.slane %v6153_v16, 2  ;;  %v6252_v50 = vmul.f32 %v18157_v33, %v6211_v14 }
 0x53b   : > { %v5283_v30 = vadd.f32 %v5235_v29, %v5107_v6  ;;  %v6095_v32 = vsel %vm3125_vm0, %v18293_v35, %v6094_v27  ;;  %v5548_v15 = vmul.f32 %v18213_v54, %v5507_v49  ;;  %v5699_v45 = vrot.slane %v5622_v23, 1  ;;  %v18296_v54 = vld [vmem:[#allocation24_spill] sm:$0xff] }
 0x53c   : > { %v6145_v46 = vadd.f32 %v6095_v32, %v5969_v40  ;;  %v5814_v60 = vsel %vm18294_vm12, %v5781_v11, 0.0  ;;  %v6021_v8 = vmul.f32 %v18135_v47, %v5977_v63  ;;  %10640 = vrsqrt.f32 %v7148_v3  ;;  %v18300_v27 = vld [vmem:[#allocation80_spill] sm:$0xff]  ;;  %v18304_v40 = vld [vmem:[#allocation83_spill] sm:$0xff] }
 0x53d   : > { %v5480_v19 = vadd.f32 %v5456_v36, %v5283_v30  ;;  %v5700_v34 = vsel %vm3125_vm0, %v5693_v17, %v5699_v45  ;;  %v5906_v33 = vsel %vm18295_vm6, %v16216_v52, 0.0  ;;  %v5855_v43 = vmul.f32 %v18296_v54, %v5814_v60  ;;  %v18298_v17 = vld [vmem:[#allocation44_spill] sm:$0xff]  ;;  %v18306_v63 = vld [vmem:[#allocation91_spill] sm:$0xff] }
 0x53e   : > { %v6276_v20 = vadd.f32 %v6252_v50, %v6145_v46  ;;  %v6180_v25 = vsel %vm3282_vm3, %v6173_v59, %v6179_v31  ;;  %v6098_v47 = vrot.slane %v6021_v8, 1  ;;  %v5947_v56 = vmul.f32 %v18222_v4, %v5906_v33  ;;  %v18299_v4 = vld [vmem:[#allocation98_spill] sm:$0xff] }
 0x53f   : > { %v5572_v1 = vadd.f32 %v5548_v15, %v5480_v19  ;;  %v6213_v7 = vsel %vm18297_vm8, %v6180_v25, 0.0  ;;  %vm10794_vm9 = vmmov 0  }
 0x540   : > { %v6300_v41 = vmax.f32 %v6276_v20, 0.0  ;;  %v6099_v51 = vsel %vm3125_vm0, %v6092_v53, %v6098_v47  ;;  %v6254_v59 = vmul.f32 %v14986_v38, %v6213_v7  ;;  %v10032_v38 = vadd.f32 %v10031_v9, %v10030_v26 }
 0x541   : > { %v5748_v58 = vadd.f32 %v5700_v34, %v5572_v1  ;;  %vm18301_vm0 = vcmask 130048   ;;  %v18308_v34 = vld [vmem:[#allocation87_spill] sm:$0xff] }
 0x542   : > { %6451 = vmatmul.mubr.f32.gmra.mxu1 %v6300_v41  ;;  %vm18303_vm3 = vmmov %vm18301_vm0 }
 0x543   : > { %v5879_v42 = vadd.f32 %v5855_v43, %v5748_v58  ;;  %10429 = vmatprep.mubr.msk.f32.mxu1 %vm10794_vm9, %v18298_v17  ;;  %vm18305_vm7 = vmmov %vm18301_vm0  ;;  %v18310_v58 = vld [vmem:[#allocation100_spill] sm:$0xff] }
 0x544   : > { %vm18307_vm11 = vmmov %vm18301_vm0 }
 0x545   : > { %v5971_v55 = vadd.f32 %v5947_v56, %v5879_v42  ;;  %vm18309_vm10 = vmmov %vm18301_vm0 }
 0x546   : > { %vm18311_vm15 = vmmov %vm18301_vm0 }
 0x547   : > { %v6147_v52 = vadd.f32 %v6099_v51, %v5971_v55  ;;  %vm18313_vm2 = vmmov %vm18301_vm0 }
 0x548   : > { %vm18317_vm13 = vmmov %vm18301_vm0 }
 0x549   : > { %v6278_v22 = vadd.f32 %v6254_v59, %v6147_v52  ;;  %v10641_v48 = vpop.eup %10640  ;;  %v7235_v59 = vstv %s7234_s29  ;;  %s10797_s29 = smov 120  }
 0x54a   : > { %v7150_v10 = vmul.f32 %v10641_v48, %v18299_v4  ;;  %v18312_v4 = vld [vmem:[#allocation71_spill] sm:$0xff] }
 0x54b   : > { %v6302_v18 = vmax.f32 %v6278_v22, 0.0 }
 0x54d   : > { %10406 = vmatmul.mubr.f32.gmra.mxu0 %v6302_v18 }
 0x54e   : > { %10410 = vmatprep.mubr.msk.f32.mxu0 %vm10794_vm9, %v18298_v17 }
 0x551   : > { %10411 = vmatmul.mubr.msk.f32.vlgmr.msra.gmra.mxu0 %vm7144_vm1, %v7150_v10 }
 0x55a   : > { %v10033_v24 = vpop.f32.mrf.mxu1 }
 0x55c   : > { %v10034_v57 = vpop.f32.mrf.mxu1 }
 0x55d   : > { %v10035_v53 = vadd.f32 %v10034_v57, %v10033_v24  ;;  %v18314_v57 = vld [vmem:[#allocation86_spill] sm:$0xff] }
 0x564   : > { %v10398_v62 = vpop.f32.mrf.mxu0 }
 0x565   : > { %v6528_v13 = vadd.f32 %v10398_v62, %v10035_v53 }
 0x566   : > { %v6522_v21 = vpop.f32.mrf.mxu0 }
 0x567   : > { %v6562_v2 = vmax.f32 %v6528_v13, 0.0  ;;  %v6523_v0 = vadd.f32 %v10032_v38, %v6522_v21  ;;  %v18315_v38 = vld [vmem:[#allocation59_spill] sm:$0xff]  ;;  %v18316_v21 = vld [vmem:[#allocation20_spill] sm:$0xff] }
 0x569   : > { %v6570_v44 = vadd.f32 %v6562_v2, %v18300_v27  ;;  %v6561_v12 = vmax.f32 %v6523_v0, 0.0  ;;  %v16384_v2 = vsub.s32 4, %v18316_v21  ;;  %v16390_v27 = vsub.s32 6, %v18316_v21 }
 0x56b   : > { %6578 = vst.msk [vmem:[%s16358_s18 + $0x8] sm:$0xff] %vm18301_vm0, %v6570_v44  ;;  %v6569_v6 = vadd.f32 %v6561_v12, %v18302_v61  ;;  %v18318_v12 = vld [vmem:[#allocation60_spill] sm:$0xff] }
 0x56d   : > { %6577 = vst.msk [vmem:[%s16358_s18] sm:$0xff] %vm18303_vm3, %v6569_v6  ;;  %v18319_v6 = vld [vmem:[#allocation61_spill] sm:$0xff] }
 0x585   : > { %v10036_v39 = vpop.f32.mrf.mxu1 }
 0x587   : > { %v10037_v36 = vpop.f32.mrf.mxu1 }
 0x588   : > { %v10038_v37 = vadd.f32 %v10037_v36, %v10036_v39  ;;  %v16396_v36 = vsub.s32 3, %v18316_v21 }
 0x5a2   : > { %v10039_v5 = vpop.f32.mrf.mxu1 }
 0x5a4   : > { %v10040_v16 = vpop.f32.mrf.mxu1 }
 0x5a5   : > { %v10041_v14 = vadd.f32 %v10040_v16, %v10039_v5  ;;  %v16400_v16 = vsub.s32 5, %v18316_v21 }
 0x5ac   : > { %v10401_v28 = vpop.f32.mrf.mxu0 }
 0x5ad   : > { %v6538_v29 = vadd.f32 %v10401_v28, %v10041_v14  ;;  %v16404_v28 = vsub.s32 7, %v18316_v21 }
 0x5ae   : > { %v6532_v49 = vpop.f32.mrf.mxu0 }
 0x5af   : > { %v6564_v23 = vmax.f32 %v6538_v29, 0.0  ;;  %v6533_v3 = vadd.f32 %v10038_v37, %v6532_v49  ;;  %v10795_v29 = vmov 1966171168  }
 0x5b0   : > { %v7240_v49 = vunpack.c.l.s4 %v10795_v29 }
 0x5b1   : > { %v6572_v30 = vadd.f32 %v6564_v23, %v18304_v40  ;;  %v6563_v11 = vmax.f32 %v6533_v3, 0.0 }
 0x5b2   : > { %v7241_v23 = vunpack.c.0.s8 %v7240_v49 }
 0x5b3   : > { %6580 = vst.msk [vmem:[%s16358_s18 + $0x18] sm:$0xff] %vm18305_vm7, %v6572_v30  ;;  %v6571_v35 = vadd.f32 %v6563_v11, %v18306_v63 }
 0x5b4   : > { %v16408_v3 = vsub.s32 %v7241_v23, %v18316_v21 }
 0x5b5   : > { %6579 = vst.msk [vmem:[%s16358_s18 + $0x10] sm:$0xff] %vm18307_vm11, %v6571_v35 }
 0x5c1   : > { %v10042_v32 = vpop.f32.mrf.mxu1 }
 0x5c3   : > { %v10043_v31 = vpop.f32.mrf.mxu1 }
 0x5c4   : > { %v10044_v45 = vadd.f32 %v10043_v31, %v10042_v32 }
 0x5d5   : > { %v10045_v46 = vpop.f32.mrf.mxu1 }
 0x5d7   : > { %v10046_v50 = vpop.f32.mrf.mxu1 }
 0x5d8   : > { %v10047_v19 = vadd.f32 %v10046_v50, %v10045_v46 }
 0x5dc   : > { %v10404_v15 = vpop.f32.mrf.mxu0 }
 0x5dd   : > { %v6548_v60 = vadd.f32 %v10404_v15, %v10047_v19 }
 0x5de   : > { %v6542_v8 = vpop.f32.mrf.mxu0 }
 0x5df   : > { %v6566_v20 = vmax.f32 %v6548_v60, 0.0  ;;  %v6543_v1 = vadd.f32 %v10044_v45, %v6542_v8 }
 0x5e1   : > { %v6574_v33 = vadd.f32 %v6566_v20, %v18308_v34  ;;  %v6565_v41 = vmax.f32 %v6543_v1, 0.0 }
 0x5e3   : > { %6582 = vst.msk [vmem:[%s16358_s18 + $0x28] sm:$0xff] %vm18309_vm10, %v6574_v33  ;;  %v6573_v54 = vadd.f32 %v6565_v41, %v18310_v58 }
 0x5e5   : > { %6581 = vst.msk [vmem:[%s16358_s18 + $0x20] sm:$0xff] %vm18311_vm15, %v6573_v54 }
 0x5e9   : > { %v10048_v43 = vpop.f32.mrf.mxu1 }
 0x5eb   : > { %v10049_v25 = vpop.f32.mrf.mxu1 }
 0x5ec   : > { %v10050_v55 = vadd.f32 %v10049_v25, %v10048_v43 }
 0x602   : > { %v10051_v47 = vpop.f32.mrf.mxu1 }
 0x604   : > { %v10052_v42 = vpop.f32.mrf.mxu1 }
 0x605   : > { %v10053_v56 = vadd.f32 %v10052_v42, %v10051_v47 }
 0x60d   : > { %v10407_v7 = vpop.f32.mrf.mxu0 }
 0x60e   : > { %v6558_v51 = vadd.f32 %v10407_v7, %v10053_v56 }
 0x60f   : > { %v6552_v52 = vpop.f32.mrf.mxu0 }
 0x610   : > { %v6568_v22 = vmax.f32 %v6558_v51, 0.0  ;;  %v6553_v18 = vadd.f32 %v10050_v55, %v6552_v52 }
 0x611   : > { %v7230_v48 = vpop.f32.mrf.mxu0 }
 0x612   : > { %v6576_v10 = vadd.f32 %v6568_v22, %v18312_v4  ;;  %v6567_v26 = vmax.f32 %v6553_v18, 0.0  ;;  %v7236_v9 = vmul.f32 %v7235_v59, %v7230_v48 }
 0x613   : > { %v10412_v24 = vpop.f32.mrf.mxu0 }
 0x614   : > { %6584 = vst.msk [vmem:[%s16358_s18 + $0x38] sm:$0xff] %vm18313_vm2, %v6576_v10  ;;  %v6575_v53 = vadd.f32 %v6567_v26, %v18314_v57  ;;  %v7424_v62 = vsel %vm7399_vm5, %v7236_v9, -inf  ;;  %v7297_v13 = vrot.slane %v7236_v9, %v18315_v38  ;;  %v7318_v0 = vrot.slane %v7236_v9, %v16384_v2 }
 0x615   : > { %7425 = vmax.xlane.f32.xlu1 %v7424_v62  ;;  %v7332_v44 = vrot.slane %v7236_v9, %v16390_v27  ;;  %v7290_v61 = vrot.slane %v7236_v9, %v18318_v12  ;;  %v7304_v39 = vrot.slane %v7236_v9, %v18319_v6  ;;  %v7311_v5 = vrot.slane %v7236_v9, %v16396_v36 }
 0x616   : > { %6583 = vst.msk [vmem:[%s16358_s18 + $0x30] sm:$0xff] %vm18317_vm13, %v6575_v53  ;;  %7299 = vbcast.lane.b32.xlu0 %v7297_v13, 256  ;;  %v7325_v14 = vrot.slane %v7236_v9, %v16400_v16  ;;  %v7339_v37 = vrot.slane %v7236_v9, %v16404_v28  ;;  %v7245_v40 = vrot.slane %v7236_v9, %v16408_v3  ;;  %s10697_s18 = scalar_lea.vmem %s10696_s2, 2048 }
 0x617   : > { %v7238_v11 = vcombine.high %v7236_v9, %v7236_v9 }
 0x618   : > { %v7253_v30 = vcombine.high %v7245_v40, %v7245_v40  ;;  %v7261_v58 = vrot.slane %v7245_v40, %v16408_v3 }
 0x619   : > { %v7252_v35 = vrot.slane %v7238_v11, %v16408_v3 }
 0x61a   : > { %7320 = vbcast.lane.b32.xlu0 %v7318_v0, 256  ;;  %v7275_v63 = vrot.slane %v7253_v30, %v16408_v3  ;;  %v7346_v47 = vrot.slane %v7261_v58, %v18318_v12  ;;  %v7283_v42 = vcombine.high %v7261_v58, %v7261_v58 }
 0x61b   : > { %v7268_v31 = vrot.slane %v7252_v35, %v16408_v3  ;;  %v7254_v59 = vcombine.high %v7252_v35, %v7252_v35 }
 0x61c   : > { %v7350_v32 = vrot.slane %v7275_v63, %v18318_v12  ;;  %v7354_v55 = vrot.slane %v7283_v42, %v18318_v12  ;;  %v7285_v52 = vcombine.high %v7275_v63, %v7275_v63 }
 0x61d   : > { %v7362_v19 = vrot.slane %v7268_v31, %v18318_v12  ;;  %v7284_v45 = vcombine.high %v7268_v31, %v7268_v31  ;;  %v7282_v10 = vrot.slane %v7254_v59, %v16408_v3 }
 0x61e   : > { %7334 = vbcast.lane.b32.xlu0 %v7332_v44, 256  ;;  %v7358_v48 = vrot.slane %v7285_v52, %v18318_v12  ;;  %v10796_v44 = vmov 0  }
 0x61f   : > { %v7370_v20 = vrot.slane %v7284_v45, %v18318_v12  ;;  %v7366_v24 = vrot.slane %v7282_v10, %v18318_v12  ;;  %v7286_v53 = vcombine.high %v7282_v10, %v7282_v10  ;;  %10572 = vset.pattern.permute.xlu0 %v10796_v44  ;;  %10573 = vset.pattern.permute.xlu1 %v10796_v44  ;;  %v18320_v44 = vlaneseq }
 0x626   : > { %7292 = vbcast.lane.b32.xlu1 %v7290_v61, 256  ;;  %v7374_v61 = vrot.slane %v7286_v53, %v18318_v12 }
 0x62a   : > { %7306 = vbcast.lane.b32.xlu1 %v7304_v39, 256 }
 0x62e   : > { %7313 = vbcast.lane.b32.xlu1 %v7311_v5, 256 }
 0x632   : > { %7327 = vbcast.lane.b32.xlu1 %v7325_v14, 256 }
 0x636   : > { %7341 = vbcast.lane.b32.xlu1 %v7339_v37, 256 }
 0x688   : > { %v7300_v46 = vpop.permute.xlu0 %7299 }
 0x689   : > { %vm7384_vm4 = vcmp.gt.f32.partialorder %v7350_v32, %v7300_v46 }
 0x68a   : > { %v7392_v50 = vsel %vm7384_vm4, 1.0, %v18298_v17 }
 0x68b   : > { %v7403_v15 = vsel %vm7399_vm5, %v7392_v50, 0.0 }
 0x68c   : > { %v7321_v60 = vpop.permute.xlu0 %7320  ;;  %7404 = vadd.xlane.f32.xlu1 %v7403_v15 }
 0x68d   : > { %vm7387_vm14 = vcmp.gt.f32.partialorder %v7362_v19, %v7321_v60 }
 0x68e   : > { %v7395_v8 = vsel %vm7387_vm14, 1.0, %v18298_v17 }
 0x68f   : > { %v7412_v1 = vsel %vm7399_vm5, %v7395_v8, 0.0 }
 0x690   : > { %v7335_v34 = vpop.permute.xlu0 %7334  ;;  %7413 = vadd.xlane.f32.xlu1 %v7412_v1 }
 0x691   : > { %vm7389_vm12 = vcmp.gt.f32.partialorder %v7370_v20, %v7335_v34 }
 0x692   : > { %v7397_v33 = vsel %vm7389_vm12, 1.0, %v18298_v17 }
 0x693   : > { %v7418_v41 = vsel %vm7399_vm5, %v7397_v33, 0.0 }
 0x694   : > { %7419 = vadd.xlane.f32.xlu1 %v7418_v41 }
 0x69e   : > { %v7426_v54 = vpop.xlane.xlu1 %7425 }
 0x69f   : > { %v7427_v43 = vsub.f32 %v7236_v9, %v7426_v54 }
 0x6a1   : > { %v7428_v25 = vmul.f32 1.442695, %v7427_v43 }
 0x6a2   : > { %v7293_v56 = vpop.permute.xlu1 %7292 }
 0x6a3   : > { %10642 = vpow2.f32 %v7428_v25  ;;  %vm7383_vm6 = vcmp.gt.f32.partialorder %v7346_v47, %v7293_v56 }
 0x6a4   : > { %v7391_v7 = vsel %vm7383_vm6, 1.0, %v18298_v17 }
 0x6a5   : > { %v7400_v51 = vsel %vm7399_vm5, %v7391_v7, 0.0 }
 0x6a6   : > { %v7307_v22 = vpop.permute.xlu1 %7306  ;;  %7401 = vadd.xlane.f32.xlu0 %v7400_v51 }
 0x6a7   : > { %vm7385_vm8 = vcmp.gt.f32.partialorder %v7354_v55, %v7307_v22 }
 0x6a8   : > { %v7393_v18 = vsel %vm7385_vm8, 1.0, %v18298_v17 }
 0x6a9   : > { %v7406_v4 = vsel %vm7399_vm5, %v7393_v18, 0.0 }
 0x6aa   : > { %v7314_v26 = vpop.permute.xlu1 %7313  ;;  %7407 = vadd.xlane.f32.xlu0 %v7406_v4 }
 0x6ab   : > { %vm7386_vm0 = vcmp.gt.f32.partialorder %v7358_v48, %v7314_v26 }
 0x6ac   : > { %v7394_v9 = vsel %vm7386_vm0, 1.0, %v18298_v17 }
 0x6ad   : > { %v7409_v57 = vsel %vm7399_vm5, %v7394_v9, 0.0 }
 0x6ae   : > { %v7328_v62 = vpop.permute.xlu1 %7327  ;;  %7410 = vadd.xlane.f32.xlu0 %v7409_v57 }
 0x6af   : > { %vm7388_vm3 = vcmp.gt.f32.partialorder %v7366_v24, %v7328_v62 }
 0x6b0   : > { %v10643_v13 = vpop.eup %10642  ;;  %v7396_v0 = vsel %vm7388_vm3, 1.0, %v18298_v17 }
 0x6b1   : > { %v7415_v39 = vsel %vm7399_vm5, %v7396_v0, 0.0  ;;  %v7442_v5 = vrot.slane %v10643_v13, %v18318_v12  ;;  %v7456_v49 = vrot.slane %v10643_v13, %v18319_v6  ;;  %v7463_v23 = vrot.slane %v10643_v13, %v16396_v36 }
 0x6b2   : > { %v7342_v14 = vpop.permute.xlu1 %7341  ;;  %7416 = vadd.xlane.f32.xlu0 %v7415_v39  ;;  %v7477_v40 = vrot.slane %v10643_v13, %v16400_v16  ;;  %v7491_v30 = vrot.slane %v10643_v13, %v16404_v28  ;;  %v7449_v11 = vrot.slane %v10643_v13, %v18315_v38  ;;  %v7470_v63 = vrot.slane %v10643_v13, %v16384_v2 }
 0x6b3   : > { %vm7390_vm7 = vcmp.gt.f32.partialorder %v7374_v61, %v7342_v14  ;;  %7444 = vbcast.lane.b32.xlu1 %v7442_v5, 256  ;;  %v7484_v35 = vrot.slane %v10643_v13, %v16390_v27  ;;  %v7560_v61 = vand.u32 127, %v18320_v44 }
 0x6b4   : > { %v7398_v37 = vsel %vm7390_vm7, 1.0, %v18298_v17 }
 0x6b5   : > { %v7421_v29 = vsel %vm7399_vm5, %v7398_v37, 0.0  ;;  %v16498_v14 = vsub.s32 %v7560_v61, %v18316_v21 }
 0x6b6   : > { %7422 = vadd.xlane.f32.xlu0 %v7421_v29 }
 0x6b7   : > { %7458 = vbcast.lane.b32.xlu1 %v7456_v49, 256 }
 0x6bb   : > { %7465 = vbcast.lane.b32.xlu1 %v7463_v23, 256 }
 0x6bf   : > { %7479 = vbcast.lane.b32.xlu1 %v7477_v40, 256 }
 0x6c3   : > { %7493 = vbcast.lane.b32.xlu1 %v7491_v30, 256 }
 0x6cc   : > { %7451 = vbcast.lane.b32.xlu0 %v7449_v11, 256 }
 0x6d0   : > { %7472 = vbcast.lane.b32.xlu0 %v7470_v63, 256 }
 0x6d4   : > { %7486 = vbcast.lane.b32.xlu0 %v7484_v35, 256 }
 0x715   : > { %v7405_v32 = vpop.xlane.xlu1 %7404 }
 0x716   : > { %vm7512_vm10 = vcmp.lt.f32.partialorder %v7405_v32, 6.0  ;;  %vm7431_vm15 = vcmp.lt.f32.partialorder %v7405_v32, 4.0 }
 0x719   : > { %v7414_v31 = vpop.xlane.xlu1 %7413 }
 0x71a   : > { %vm7515_vm6 = vcmp.lt.f32.partialorder %v7414_v31, 6.0  ;;  %vm7434_vm0 = vcmp.lt.f32.partialorder %v7414_v31, 4.0 }
 0x71d   : > { %v7420_v46 = vpop.xlane.xlu1 %7419 }
 0x71e   : > { %vm7517_vm7 = vcmp.lt.f32.partialorder %v7420_v46, 6.0 }
 0x725   : > { %v7445_v19 = vpop.permute.xlu1 %7444 }
 0x729   : > { %v7459_v41 = vpop.permute.xlu1 %7458 }
 0x72d   : > { %v7466_v43 = vpop.permute.xlu1 %7465 }
 0x72f   : > { %v7402_v50 = vpop.xlane.xlu0 %7401 }
 0x730   : > { %vm7430_vm11 = vcmp.lt.f32.partialorder %v7402_v50, 4.0  ;;  %vm7511_vm13 = vcmp.lt.f32.partialorder %v7402_v50, 6.0 }
 0x731   : > { %v16448_v15 = vsel %vm7430_vm11, %v7445_v19, 0.0  ;;  %v16459_v54 = vsel %vm7511_vm13, %v7445_v19, 0.0  ;;  %v7480_v55 = vpop.permute.xlu1 %7479  ;;  %vm7595_vm13 = vcmask 1042434  }
 0x732   : > { %7536 = vperm.xlu0 %10572, %v16448_v15  }
 0x733   : > { %v7408_v45 = vpop.xlane.xlu0 %7407 }
 0x734   : > { %vm7513_vm2 = vcmp.lt.f32.partialorder %v7408_v45, 6.0  ;;  %vm7432_vm14 = vcmp.lt.f32.partialorder %v7408_v45, 4.0 }
 0x735   : > { %v16457_v58 = vsel %vm7513_vm2, %v7459_v41, 0.0  ;;  %v16465_v47 = vsel %vm7432_vm14, %v7459_v41, 0.0  ;;  %v7494_v48 = vpop.permute.xlu1 %7493  ;;  %vm7593_vm2 = vcmask 1041409   ;;  %vm7599_vm14 = vcmask 1044484  }
 0x737   : > { %v7411_v60 = vpop.xlane.xlu0 %7410 }
 0x738   : > { %vm7514_vm4 = vcmp.lt.f32.partialorder %v7411_v60, 6.0  ;;  %vm7433_vm12 = vcmp.lt.f32.partialorder %v7411_v60, 4.0 }
 0x739   : > { %v16463_v25 = vsel %vm7514_vm4, %v7466_v43, 0.0  ;;  %v16469_v56 = vsel %vm7433_vm12, %v7466_v43, 0.0  ;;  %vm7597_vm4 = vcmask 1043459   ;;  %vm7601_vm12 = vcmask 1045509  }
 0x73b   : > { %v7417_v8 = vpop.xlane.xlu0 %7416 }
 0x73c   : > { %vm7516_vm8 = vcmp.lt.f32.partialorder %v7417_v8, 6.0  ;;  %vm7435_vm3 = vcmp.lt.f32.partialorder %v7417_v8, 4.0 }
 0x73d   : > { %v16475_v51 = vsel %vm7516_vm8, %v7480_v55, 0.0  ;;  %v16481_v22 = vsel %vm7435_vm3, %v7480_v55, 0.0  ;;  %vm7605_vm8 = vcmask 1047559  }
 0x73f   : > { %v7423_v20 = vpop.xlane.xlu0 %7422 }
 0x740   : > { %vm7518_vm11 = vcmp.lt.f32.partialorder %v7423_v20, 6.0 }
 0x741   : > { %v16487_v4 = vsel %vm7518_vm11, %v7494_v48, 0.0 }
 0x743   : > { %v7452_v1 = vpop.permute.xlu0 %7451 }
 0x744   : > { %v16451_v34 = vsel %vm7512_vm10, %v7452_v1, 0.0  ;;  %v16453_v33 = vsel %vm7431_vm15, %v7452_v1, 0.0  ;;  %vm7436_vm10 = vcmp.lt.f32.partialorder %v7420_v46, 4.0  ;;  %vm7437_vm15 = vcmp.lt.f32.partialorder %v7423_v20, 4.0 }
 0x745   : > { %7673 = vperm.xlu0 %10572, %v16451_v34   ;;  %7539 = vperm.xlu1 %10573, %v16453_v33   ;;  %v16493_v26 = vsel %vm7437_vm15, %v7494_v48, 0.0 }
 0x747   : > { %v7473_v42 = vpop.permute.xlu0 %7472 }
 0x748   : > { %v16471_v7 = vsel %vm7515_vm6, %v7473_v42, 0.0  ;;  %v16477_v52 = vsel %vm7434_vm0, %v7473_v42, 0.0  ;;  %vm7603_vm6 = vcmask 1046534   ;;  %vm18338_vm0 = vcmask 130048  }
 0x749   : > { %7676 = vperm.xlu0 %10572, %v16457_v58   ;;  %7670 = vperm.xlu1 %10573, %v16459_v54   ;;  %vm18341_vm3 = vmmov %vm18338_vm0 }
 0x74a   : > { %vm18345_vm11 = vmmov %vm18338_vm0 }
 0x74b   : > { %v7487_v59 = vpop.permute.xlu0 %7486  ;;  %vm18349_vm15 = vmmov %vm18338_vm0 }
 0x74c   : > { %v16483_v18 = vsel %vm7517_vm7, %v7487_v59, 0.0  ;;  %v16489_v10 = vsel %vm7436_vm10, %v7487_v59, 0.0  ;;  %vm18342_vm7 = vmmov %vm18338_vm0 }
 0x74d   : > { %7679 = vperm.xlu0 %10572, %v16463_v25   ;;  %7542 = vperm.xlu1 %10573, %v16465_v47   ;;  %vm18346_vm10 = vmmov %vm18338_vm0 }
 0x751   : > { %7545 = vperm.xlu1 %10573, %v16469_v56   ;;  %7682 = vperm.xlu0 %10572, %v16471_v7  }
 0x755   : > { %7685 = vperm.xlu0 %10572, %v16475_v51   ;;  %7548 = vperm.xlu1 %10573, %v16477_v52  }
 0x759   : > { %7551 = vperm.xlu1 %10573, %v16481_v22   ;;  %7688 = vperm.xlu0 %10572, %v16483_v18  }
 0x75d   : > { %7691 = vperm.xlu0 %10572, %v16487_v4   ;;  %7554 = vperm.xlu1 %10573, %v16489_v10  }
 0x761   : > { %7557 = vperm.xlu1 %10573, %v16493_v26  }
 0x7ad   : > { %v7537_v9 = vpop.permute.xlu0 %7536 }
 0x7ae   : > { %v7564_v45 = vrot.slane %v7537_v9, %v16498_v14 }
 0x7c0   : > { %v7540_v24 = vpop.permute.xlu1 %7539  ;;  %v7674_v57 = vpop.permute.xlu0 %7673 }
 0x7c1   : > { %v7700_v23 = vrot.slane %v7674_v57, %v16498_v14  ;;  %v7568_v32 = vrot.slane %v7540_v24, %v16498_v14 }
 0x7c3   : > { %v7594_v42 = vsel %vm7593_vm2, %v7568_v32, %v7564_v45  ;;  %v16537_v32 = vstv %s9741_s19  ;;  %s16966_s19 = scalar_lea.hbm %s17096_s15, %s17514_s13 }
 0x7c4   : > { %v7671_v53 = vpop.permute.xlu1 %7670  ;;  %v7677_v62 = vpop.permute.xlu0 %7676 }
 0x7c5   : > { %v7696_v37 = vrot.slane %v7671_v53, %v16498_v14  ;;  %v7704_v40 = vrot.slane %v7677_v62, %v16498_v14 }
 0x7c7   : > { %v7725_v30 = vsel %vm7593_vm2, %v7700_v23, %v7696_v37 }
 0x7c8   : > { %v7543_v13 = vpop.permute.xlu1 %7542  ;;  %v7680_v0 = vpop.permute.xlu0 %7679  ;;  %v7726_v46 = vsel %vm7595_vm13, %v7704_v40, %v7725_v30 }
 0x7c9   : > { %v7708_v11 = vrot.slane %v7680_v0, %v16498_v14  ;;  %v7572_v50 = vrot.slane %v7543_v13, %v16498_v14 }
 0x7cb   : > { %v7727_v60 = vsel %vm7597_vm4, %v7708_v11, %v7726_v46  ;;  %v7596_v9 = vsel %vm7595_vm13, %v7572_v50, %v7594_v42 }
 0x7cc   : > { %v7546_v39 = vpop.permute.xlu1 %7545  ;;  %v7683_v5 = vpop.permute.xlu0 %7682 }
 0x7cd   : > { %v7712_v63 = vrot.slane %v7683_v5, %v16498_v14  ;;  %v7576_v8 = vrot.slane %v7546_v39, %v16498_v14 }
 0x7cf   : > { %v7728_v20 = vsel %vm7599_vm14, %v7712_v63, %v7727_v60  ;;  %v7598_v53 = vsel %vm7597_vm4, %v7576_v8, %v7596_v9 }
 0x7d0   : > { %v7549_v29 = vpop.permute.xlu1 %7548  ;;  %v7686_v49 = vpop.permute.xlu0 %7685 }
 0x7d1   : > { %v7716_v31 = vrot.slane %v7686_v49, %v16498_v14  ;;  %v7580_v1 = vrot.slane %v7549_v29, %v16498_v14 }
 0x7d3   : > { %v7729_v55 = vsel %vm7601_vm12, %v7716_v31, %v7728_v20  ;;  %v7600_v13 = vsel %vm7599_vm14, %v7580_v1, %v7598_v53 }
 0x7d4   : > { %v7552_v35 = vpop.permute.xlu1 %7551  ;;  %v7689_v21 = vpop.permute.xlu0 %7688 }
 0x7d5   : > { %v7720_v19 = vrot.slane %v7689_v21, %v16498_v14  ;;  %v7584_v59 = vrot.slane %v7552_v35, %v16498_v14  ;;  %v16535_v21 = vstv %s7786_s20 }
 0x7d7   : > { %v7730_v57 = vsel %vm7603_vm6, %v7720_v19, %v7729_v55  ;;  %v7602_v39 = vsel %vm7601_vm12, %v7584_v59, %v7600_v13 }
 0x7d8   : > { %v7555_v41 = vpop.permute.xlu1 %7554  ;;  %v7692_v43 = vpop.permute.xlu0 %7691 }
 0x7d9   : > { %v7724_v48 = vrot.slane %v7692_v43, %v16498_v14  ;;  %v7588_v24 = vrot.slane %v7555_v41, %v16498_v14 }
 0x7db   : > { %v7731_v62 = vsel %vm7605_vm8, %v7724_v48, %v7730_v57  ;;  %v7604_v5 = vsel %vm7603_vm6, %v7588_v24, %v7602_v39 }
 0x7dc   : > { %v7558_v0 = vpop.permute.xlu1 %7557  ;;  %v7733_v44 = vsel %vm7399_vm5, %v7731_v62, 0.0 }
 0x7dd   : > { %v7592_v61 = vrot.slane %v7558_v0, %v16498_v14  ;;  %7734 = vadd.xlane.f32.xlu0 %v7733_v44 }
 0x7df   : > { %v7606_v37 = vsel %vm7605_vm8, %v7592_v61, %v7604_v5 }
 0x7e0   : > { %v7608_v29 = vsel %vm7399_vm5, %v7606_v37, 0.0 }
 0x7e1   : > { %7609 = vadd.xlane.f32.xlu1 %v7608_v29 }
 0x866   : > { %v7735_v49 = vpop.xlane.xlu0 %7734 }
 0x867   : > { %10644 = vrcp.f32 %v7735_v49 }
 0x86a   : > { %v7610_v23 = vpop.xlane.xlu1 %7609 }
 0x86b   : > { %10646 = vrcp.f32 %v7610_v23 }
 0x874   : > { %v10645_v40 = vpop.eup %10644 }
 0x875   : > { %v7745_v30 = vrot.slane %v10645_v40, %v18315_v38  ;;  %v7741_v11 = vrot.slane %v10645_v40, %v18318_v12  ;;  %v7749_v63 = vrot.slane %v10645_v40, %v18319_v6  ;;  %v7753_v31 = vrot.slane %v10645_v40, %v16396_v36 }
 0x876   : > { %v7757_v20 = vrot.slane %v10645_v40, %v16384_v2  ;;  %v7761_v1 = vrot.slane %v10645_v40, %v16400_v16  ;;  %v7765_v0 = vrot.slane %v10645_v40, %v16390_v27  ;;  %v7769_v61 = vrot.slane %v10645_v40, %v16404_v28 }
 0x877   : > { %v7779_v50 = vmul.f32 %v7745_v30, %v16451_v34  ;;  %v7778_v45 = vmul.f32 %v7741_v11, %v16459_v54  ;;  %v7780_v42 = vmul.f32 %v7749_v63, %v16457_v58  ;;  %v7781_v59 = vmul.f32 %v7753_v31, %v16463_v25 }
 0x878   : > { %v10647_v35 = vpop.eup %10646  ;;  %v7782_v13 = vmul.f32 %v7757_v20, %v16471_v7  ;;  %v7783_v5 = vmul.f32 %v7761_v1, %v16475_v51  ;;  %v7784_v40 = vmul.f32 %v7765_v0, %v16483_v18  ;;  %v7785_v51 = vmul.f32 %v7769_v61, %v16487_v4  ;;  %v16587_v4 = vld [vmem:[%s17093_s12 + $0x8] sm:$0xff]  ;;  %v18324_v20 = vld [vmem:[#allocation50_spill] sm:$0xff]  ;;  %v18325_v1 = vld [vmem:[#allocation49_spill] sm:$0xff] }
 0x879   : > { %v7620_v46 = vrot.slane %v10647_v35, %v18315_v38  ;;  %v7616_v19 = vrot.slane %v10647_v35, %v18318_v12  ;;  %v7624_v60 = vrot.slane %v10647_v35, %v18319_v6  ;;  %v7628_v8 = vrot.slane %v10647_v35, %v16396_v36  ;;  %10446 = vmatprep.subr.mxu1 %v16587_v4 }
 0x87a   : > { %v7632_v34 = vrot.slane %v10647_v35, %v16384_v2  ;;  %v7636_v48 = vrot.slane %v10647_v35, %v16400_v16  ;;  %v7799_v24 = vmul.f32 %v16537_v32, %v7779_v50  ;;  %v7644_v44 = vrot.slane %v10647_v35, %v16404_v28 }
 0x87b   : > { %v7654_v41 = vmul.f32 %v7620_v46, %v16453_v33  ;;  %v7653_v43 = vmul.f32 %v7616_v19, %v16448_v15  ;;  %v7655_v55 = vmul.f32 %v7624_v60, %v16465_v47  ;;  %v7656_v54 = vmul.f32 %v7628_v8, %v16469_v56  ;;  %v7077_v19 = vld [vmem:[%s17093_s12] sm:$0xff]  ;;  %v18322_v60 = vld [vmem:[#allocation48_spill] sm:$0xff] }
 0x87c   : > { %v7798_v15 = vmul.f32 %v16537_v32, %v7778_v45  ;;  %v7657_v57 = vmul.f32 %v7632_v34, %v16477_v52  ;;  %v7640_v47 = vrot.slane %v10647_v35, %v16390_v27  ;;  %v7658_v62 = vmul.f32 %v7636_v48, %v16481_v22  ;;  %10432 = vmatprep.subr.mxu0 %v7077_v19  ;;  %v18321_v45 = vld [vmem:[#allocation46_spill] sm:$0xff]  ;;  %v18323_v8 = vld [vmem:[#allocation47_spill] sm:$0xff]  ;;  %v18329_v34 = vld [vmem:[#allocation53_spill] sm:$0xff] }
 0x87d   : > { %v7789_v9 = vmul.f32 %v16535_v21, %v7654_v41  ;;  %v7788_v33 = vmul.f32 %v16535_v21, %v7653_v43  ;;  %v7790_v58 = vmul.f32 %v16535_v21, %v7655_v55  ;;  %v7791_v25 = vmul.f32 %v16535_v21, %v7656_v54  ;;  %10433 = vmatpush3.msra.mxu0 %v7077_v19  ;;  %v18326_v41 = vld [vmem:[#allocation52_spill] sm:$0xff]  ;;  %v18327_v43 = vld [vmem:[#allocation51_spill] sm:$0xff]  ;;  %v18333_v48 = vld [vmem:[#allocation57_spill] sm:$0xff] }
 0x87e   : > { %v7800_v52 = vmul.f32 %v16537_v32, %v7780_v42  ;;  %v7801_v39 = vmul.f32 %v16537_v32, %v7781_v59  ;;  %v7792_v37 = vmul.f32 %v16535_v21, %v7657_v57  ;;  %v7659_v22 = vmul.f32 %v7640_v47, %v16489_v10  ;;  %10462 = vmatprep.subr.mxu0 %v18298_v17  ;;  %v18328_v42 = vld [vmem:[#allocation54_spill] sm:$0xff]  ;;  %v18330_v55 = vld [vmem:[#allocation56_spill] sm:$0xff]  ;;  %v18331_v54 = vld [vmem:[#allocation55_spill] sm:$0xff] }
 0x87f   : > { %v7807_v53 = vadd.f32 %v7799_v24, %v7789_v9  ;;  %v7806_v56 = vadd.f32 %v7798_v15, %v7788_v33  ;;  %v7793_v49 = vmul.f32 %v16535_v21, %v7658_v62  ;;  %v7660_v23 = vmul.f32 %v7644_v44, %v16493_v26  ;;  %v18332_v59 = vld [vmem:[#allocation58_spill] sm:$0xff]  ;;  %v18334_v9 = vld [vmem:[#allocation39_spill] sm:$0xff]  ;;  %v18335_v24 = vld [vmem:[#allocation41_spill] sm:$0xff] }
 0x880   : > { %v7808_v29 = vadd.f32 %v7800_v52, %v7790_v58  ;;  %v7809_v7 = vadd.f32 %v7801_v39, %v7791_v25  ;;  %v7802_v30 = vmul.f32 %v16537_v32, %v7782_v13  ;;  %v7803_v11 = vmul.f32 %v16537_v32, %v7783_v5  ;;  %v18336_v33 = vld [vmem:[#allocation43_spill] sm:$0xff] }
 0x881   : > { %7826 = vperm.xlu1 %10573, %v7807_v53   ;;  %7823 = vperm.xlu0 %10572, %v7806_v56   ;;  %v7794_v10 = vmul.f32 %v16535_v21, %v7659_v22  ;;  %v7795_v31 = vmul.f32 %v16535_v21, %v7660_v23  ;;  %v7804_v26 = vmul.f32 %v16537_v32, %v7784_v40 }
 0x882   : > { %v7810_v63 = vadd.f32 %v7802_v30, %v7792_v37  ;;  %v7811_v35 = vadd.f32 %v7803_v11, %v7793_v49  ;;  %v7805_v18 = vmul.f32 %v16537_v32, %v7785_v51  ;;  %v9738_v30 = vld [vmem:[%s17092_s11] ss:$0 sm:$0xff] }
 0x883   : > { %v7812_v46 = vadd.f32 %v7804_v26, %v7794_v10 }
 0x884   : > { %v7813_v50 = vadd.f32 %v7805_v18, %v7795_v31  ;;  %v18339_v18 = vld [vmem:[#allocation37_spill] sm:$0xff] }
 0x885   : > { %7829 = vperm.xlu1 %10573, %v7808_v29   ;;  %7832 = vperm.xlu0 %10572, %v7809_v7  }
 0x889   : > { %7835 = vperm.xlu1 %10573, %v7810_v63   ;;  %7838 = vperm.xlu0 %10572, %v7811_v35   ;;  %v18337_v35 = vld [vmem:[#allocation35_spill] sm:$0xff] }
 0x88a   : > { %v7069_v10 = vmul.f32 %v9738_v30, %v18337_v35 }
 0x88d   : > { %7841 = vperm.xlu1 %10573, %v7812_v46   ;;  %7844 = vperm.xlu0 %10572, %v7813_v50   ;;  %v7070_v46 = vmul.f32 %v9738_v30, %v18339_v18  ;;  %v18340_v50 = vld [vmem:[#allocation19_spill] sm:$0xff] }
 0x891   : > { %8344 = vrot.lane.b32.xlu1 %v18321_v45, %s10797_s29  ;;  %8346 = vrot.lane.b32.xlu0 %v18322_v60, %s10797_s29  ;;  %v7071_v45 = vmul.f32 %v9738_v30, %v18340_v50 }
 0x895   : > { %8280 = vrot.lane.b32.xlu1 %v18323_v8, %s10797_s29  ;;  %8348 = vrot.lane.b32.xlu0 %v18324_v20, %s10797_s29  ;;  %v18343_v20 = vld [vmem:[#allocation17_spill] sm:$0xff] }
 0x899   : > { %8282 = vrot.lane.b32.xlu1 %v18325_v1, %s10797_s29  ;;  %8350 = vrot.lane.b32.xlu0 %v18326_v41, %s10797_s29  ;;  %v7072_v1 = vmul.f32 %v9738_v30, %v18343_v20  ;;  %v18344_v41 = vld [vmem:[#allocation40_spill] sm:$0xff] }
 0x89d   : > { %8284 = vrot.lane.b32.xlu1 %v18327_v43, %s10797_s29  ;;  %8352 = vrot.lane.b32.xlu0 %v18328_v42, %s10797_s29 }
 0x8a1   : > { %8286 = vrot.lane.b32.xlu1 %v18329_v34, %s10797_s29  ;;  %8354 = vrot.lane.b32.xlu0 %v18330_v55, %s10797_s29  ;;  %v18347_v34 = vld [vmem:[#allocation38_spill] sm:$0xff] }
 0x8a2   : > { %v7074_v55 = vmul.f32 %v9738_v30, %v18347_v34 }
 0x8a5   : > { %8288 = vrot.lane.b32.xlu1 %v18331_v54, %s10797_s29  ;;  %8356 = vrot.lane.b32.xlu0 %v18332_v59, %s10797_s29  ;;  %v18348_v54 = vld [vmem:[#allocation45_spill] sm:$0xff] }
 0x8a6   : > { %v7075_v59 = vmul.f32 %v9738_v30, %v18348_v54 }
 0x8a9   : > { %8290 = vrot.lane.b32.xlu1 %v18333_v48, %s10797_s29  ;;  %8358 = vrot.lane.b32.xlu0 %v18334_v9, %s10797_s29 }
 0x8ad   : > { %8292 = vrot.lane.b32.xlu1 %v18335_v24, %s10797_s29  ;;  %8294 = vrot.lane.b32.xlu0 %v18336_v33, %s10797_s29  ;;  %v18350_v24 = vld [vmem:[#allocation42_spill] sm:$0xff] }
 0x8ae   : > { %v7076_v33 = vmul.f32 %v9738_v30, %v18350_v24 }
 0x8fc   : > { %v7827_v15 = vpop.permute.xlu1 %7826  ;;  %v7824_v58 = vpop.permute.xlu0 %7823 }
 0x8fd   : > { %v7853_v57 = vrot.slane %v7827_v15, %v16498_v14  ;;  %v7849_v47 = vrot.slane %v7824_v58, %v16498_v14 }
 0x8ff   : > { %v7878_v62 = vsel %vm7593_vm2, %v7853_v57, %v7849_v47 }
 0x900   : > { %v7830_v53 = vpop.permute.xlu1 %7829  ;;  %v7833_v56 = vpop.permute.xlu0 %7832 }
 0x901   : > { %v7857_v25 = vrot.slane %v7830_v53, %v16498_v14  ;;  %v7861_v13 = vrot.slane %v7833_v56, %v16498_v14 }
 0x903   : > { %v7879_v0 = vsel %vm7595_vm13, %v7857_v25, %v7878_v62 }
 0x904   : > { %v7836_v44 = vpop.permute.xlu1 %7835  ;;  %v7839_v61 = vpop.permute.xlu0 %7838  ;;  %v7880_v39 = vsel %vm7597_vm4, %v7861_v13, %v7879_v0 }
 0x905   : > { %v7865_v52 = vrot.slane %v7836_v44, %v16498_v14  ;;  %v7869_v5 = vrot.slane %v7839_v61, %v16498_v14 }
 0x907   : > { %v7881_v37 = vsel %vm7599_vm14, %v7865_v52, %v7880_v39 }
 0x908   : > { %v7842_v22 = vpop.permute.xlu1 %7841  ;;  %v7845_v29 = vpop.permute.xlu0 %7844  ;;  %v7882_v23 = vsel %vm7601_vm12, %v7869_v5, %v7881_v37 }
 0x909   : > { %v7873_v7 = vrot.slane %v7842_v22, %v16498_v14  ;;  %v7877_v49 = vrot.slane %v7845_v29, %v16498_v14 }
 0x90b   : > { %v7883_v40 = vsel %vm7603_vm6, %v7873_v7, %v7882_v23 }
 0x90c   : > { %v7884_v11 = vsel %vm7605_vm8, %v7877_v49, %v7883_v40  ;;  %v8345_v51 = vpop.permute.xlu1 %8344  ;;  %v8347_v63 = vpop.permute.xlu0 %8346 }
 0x90d   : > { %8368 = vxpose.xlu1.b32.start [1/8] (short) (narrow) %v8345_v51, 8  ;;  %10430 = vmatmul.mubr.msk.f32.vlgmr.msra.gmra.mxu1 %vm7399_vm5, %v7884_v11 }
 0x90e   : > { %10447 = vmatpush3.msra.mxu1 %v16587_v4  ;;  %10450 = vmatprep.mubr.msk.f32.mxu1 %vm18338_vm0, %v7069_v10 }
 0x90f   : > { %10448 = vmatprep.subr.mxu1 %v7077_v19 }
 0x910   : > { %v8281_v31 = vpop.permute.xlu1 %8280  ;;  %v8349_v26 = vpop.permute.xlu0 %8348  ;;  %10449 = vmatpush3.msra.mxu1 %v7077_v19  ;;  %v7073_v19 = vmul.f32 %v9738_v30, %v18344_v41  ;;  %v8491_v41 = vstv %s9769_s28  ;;  %s10691_s28 = scalar_lea.vmem %s16968_s1, 1024 }
 0x911   : > { %8304 = vxpose.xlu0.b32.start [1/8] (short) (narrow) %v8281_v31, 8  ;;  %8369 = vxpose.xlu1.b32.cont [2/8] (short) (narrow) %v8347_v63, 8  ;;  %p10692_p9 = scmp.ne.s32.totalorder %s16968_s1, %s10691_s28  ;;  %p10699_p0 = scmp.lt.s32.totalorder %s10697_s18, %s10691_s28 }
 0x912   : > { %10451 = vmatmul.mubr.msk.f32.vlgmr.msra.gmra.mxu1 %vm18341_vm3, %v7070_v46  ;;  %10467 = vmatprep.subr.mxu1 %v18298_v17  ;;  %vm18351_vm3 = vmmov %vm18338_vm0 }
 0x913   : > { %10453 = vmatprep.mubr.msk.f32.mxu1 %vm18342_vm7, %v7071_v45  ;;  %p10693_p11 = pnand %p10692_p9, %p10925_p5  ;;  %p10700_p1 = por %p10699_p0, %p10698_p13 }
 0x914   : > { %v8283_v60 = vpop.permute.xlu1 %8282  ;;  %v8351_v8 = vpop.permute.xlu0 %8350 }
 0x915   : > { %8305 = vxpose.xlu0.b32.cont [2/8] (short) (narrow) %v8283_v60, 8  ;;  %8370 = vxpose.xlu1.b32.cont [3/8] (short) (narrow) %v8349_v26, 8  ;;  %p10694_p12 = pneg %p10693_p11 }
 0x916   : > { %10454 = vmatmul.mubr.msk.f32.gmra.mxu1 %vm18345_vm11, %v7072_v1 }
 0x917   : > { %10456 = vmatprep.mubr.msk.f32.mxu1 %vm18346_vm10, %v7073_v19  ;;  %p10701_p2 = pnand %p10700_p1, %p10694_p12 }
 0x918   : > { %v8285_v43 = vpop.permute.xlu1 %8284  ;;  %v8353_v42 = vpop.permute.xlu0 %8352 }
 0x919   : > { %8306 = vxpose.xlu0.b32.cont [3/8] (short) (narrow) %v8285_v43, 8  ;;  %8371 = vxpose.xlu1.b32.cont [4/8] (short) (narrow) %v8351_v8, 8 }
 0x91a   : > { %10457 = vmatmul.mubr.msk.f32.gmra.mxu1 %vm18349_vm15, %v7074_v55 }
 0x91b   : > { %10459 = vmatprep.mubr.msk.f32.mxu1 %vm18338_vm0, %v7075_v59 }
 0x91c   : > { %v8287_v48 = vpop.permute.xlu1 %8286  ;;  %v8355_v9 = vpop.permute.xlu0 %8354 }
 0x91d   : > { %8307 = vxpose.xlu0.b32.cont [4/8] (short) (narrow) %v8287_v48, 8  ;;  %8372 = vxpose.xlu1.b32.cont [5/8] (short) (narrow) %v8353_v42, 8 }
 0x91e   : > { %10460 = vmatmul.mubr.msk.f32.gmra.mxu1 %vm18351_vm3, %v7076_v33 }
 0x91f   : > { %10483 = vmatprep.mubr.msk.f32.mxu1 %vm10794_vm9, %v18298_v17 }
 0x920   : > { %v8289_v15 = vpop.permute.xlu1 %8288  ;;  %v8357_v58 = vpop.permute.xlu0 %8356 }
 0x921   : > { %8308 = vxpose.xlu0.b32.cont [5/8] (short) (narrow) %v8289_v15, 8  ;;  %8373 = vxpose.xlu1.b32.cont [6/8] (short) (narrow) %v8355_v9, 8 }
 0x924   : > { %v8291_v57 = vpop.permute.xlu1 %8290  ;;  %v8359_v47 = vpop.permute.xlu0 %8358 }
 0x925   : > { %8309 = vxpose.xlu0.b32.cont [6/8] (short) (narrow) %v8291_v57, 8  ;;  %8374 = vxpose.xlu1.b32.cont [7/8] (short) (narrow) %v8357_v58, 8 }
 0x928   : > { %v8293_v53 = vpop.permute.xlu1 %8292  ;;  %v8295_v56 = vpop.permute.xlu0 %8294 }
 0x929   : > { %8310 = vxpose.xlu0.b32.cont [7/8] (short) (narrow) %v8293_v53, 8  ;;  %8375 = vxpose.xlu1.b32.end [8/8] (short) (narrow) %v8359_v47, 8 }
 0x92d   : > { %8311 = vxpose.xlu0.b32.end [8/8] (short) (narrow) %v8295_v56, 8 }
 0x989   : > { %v8384_v25 = vpop.trf.xlu1 }
 0x98a   : > { %v8407_v62 = vmul.f32 %v8384_v25, %v8384_v25 }
 0x98c   : > { %v8408_v13 = vsel %vm7144_vm1, %v8407_v62, 0.0 }
 0x98d   : > { %8409 = vadd.xlane.f32.xlu0 %v8408_v13  ;;  %v8320_v0 = vpop.trf.xlu0 }
 0x98e   : > { %v8400_v44 = vmul.f32 %v8320_v0, %v8320_v0 }
 0x990   : > { %v8401_v61 = vsel %vm7144_vm1, %v8400_v44, 0.0 }
 0x991   : > { %8402 = vadd.xlane.f32.xlu1 %v8401_v61 }
 0x9cd   : > { %v7977_v52 = vpop.f32.mrf.mxu1 }
 0x9ce   : > { %7981 = vxpose.xlu0.b32.start.end [1/1] (short) (narrow) %v7977_v52, 64 }
 0x9cf   : > { %v10431_v39 = vpop.f32.mrf.mxu1 }
 0xa16   : > { %v8410_v5 = vpop.xlane.xlu0 %8409 }
 0xa17   : > { %v8411_v37 = vmax.f32 %v8410_v5, 1e-24 }
 0xa19   : > { %10648 = vrsqrt.f32 %v8411_v37 }
 0xa1a   : > { %v8403_v23 = vpop.xlane.xlu1 %8402 }
 0xa1b   : > { %v8404_v30 = vmax.f32 %v8403_v23, 1e-24 }
 0xa1d   : > { %10650 = vrsqrt.f32 %v8404_v30 }
 0xa26   : > { %v10649_v29 = vpop.eup %10648 }
 0xa27   : > { %v8413_v49 = vmul.f32 %v10649_v29, %v8384_v25 }
 0xa2a   : > { %v10651_v10 = vpop.eup %10650 }
 0xa2b   : > { %v8406_v26 = vmul.f32 %v10651_v10, %v8320_v0 }
 0xa4a   : > { %v7997_v22 = vpop.trf.xlu0 }
 0xa4b   : > { %10434 = vmatprep.mubr.msk.f32.mxu0 %vm7399_vm5, %v7997_v22 }
 0xa4e   : > { %v7998_v7 = vpop.trf.xlu0 }
 0xa4f   : > { %10435 = vmatmul.mubr.msk.f32.vlgmr.msra.gmra.mxu0 %vm7399_vm5, %v7998_v7 }
 0xa50   : > { %10463 = vmatpush3.xpose.msk.msra.mxu0 %vm7144_vm1, %v8413_v49 }
 0xa51   : > { %10486 = vmatprep.subr.mxu0 %v16587_v4 }
 0xa52   : > { %v7999_v40 = vpop.trf.xlu0 }
 0xa53   : > { %10437 = vmatprep.mubr.msk.f32.mxu0 %vm7399_vm5, %v7999_v40 }
 0xa56   : > { %v8000_v11 = vpop.trf.xlu0 }
 0xa57   : > { %10438 = vmatmul.mubr.msk.f32.gmra.mxu0 %vm7399_vm5, %v8000_v11 }
 0xa5a   : > { %v8001_v51 = vpop.trf.xlu0 }
 0xa5b   : > { %10440 = vmatprep.mubr.msk.f32.mxu0 %vm7399_vm5, %v8001_v51 }
 0xa5e   : > { %v8002_v63 = vpop.trf.xlu0 }
 0xa5f   : > { %10441 = vmatmul.mubr.msk.f32.gmra.mxu0 %vm7399_vm5, %v8002_v63 }
 0xa62   : > { %v8003_v35 = vpop.trf.xlu0 }
 0xa63   : > { %10443 = vmatprep.mubr.msk.f32.mxu0 %vm7399_vm5, %v8003_v35 }
 0xa66   : > { %v8004_v31 = vpop.trf.xlu0 }
 0xa67   : > { %10444 = vmatmul.mubr.msk.f32.gmra.mxu0 %vm7399_vm5, %v8004_v31 }
 0xa68   : > { %10464 = vmatprep.mubr.msk.f32.mxu0 %vm10794_vm9, %v18298_v17 }
 0xa6b   : > { %10465 = vmatmul.mubr.msk.f32.vlgmr.msra.gmra.mxu0 %vm7144_vm1, %v8406_v26 }
 0xa6c   : > { %10487 = vmatpush3.msra.mxu0 %v16587_v4 }
 0xb0f   : > { %v16681_v18 = vpop.f32.mrf.mxu0 }
 0xb11   : > { %v16683_v46 = vpop.f32.mrf.mxu0 }
 0xb17   : > { %v16685_v50 = vpop.f32.mrf.mxu0 }
 0xb19   : > { %v16687_v45 = vpop.f32.mrf.mxu0 }
 0xb1f   : > { %v16689_v60 = vpop.f32.mrf.mxu0 }
 0xb21   : > { %v16691_v8 = vpop.f32.mrf.mxu0 }
 0xb27   : > { %v16693_v20 = vpop.f32.mrf.mxu0 }
 0xb29   : > { %v16695_v1 = vpop.f32.mrf.mxu0 }
 0xb2b   : > { %v8486_v19 = vpop.f32.mrf.mxu0 }
 0xb2c   : > { %v8492_v4 = vmul.f32 %v8491_v41, %v8486_v19 }
 0xb2d   : > { %v10466_v43 = vpop.f32.mrf.mxu0 }
 0xb2e   : > { %v8679_v42 = vsel %vm7399_vm5, %v8492_v4, -inf  ;;  %v8595_v34 = vrot.slane %v8492_v4, %v16404_v28  ;;  %v8546_v55 = vrot.slane %v8492_v4, %v18318_v12  ;;  %v8553_v54 = vrot.slane %v8492_v4, %v18315_v38 }
 0xb2f   : > { %8680 = vmax.xlane.f32.xlu1 %v8679_v42  ;;  %v8560_v59 = vrot.slane %v8492_v4, %v18319_v6  ;;  %v8567_v48 = vrot.slane %v8492_v4, %v16396_v36  ;;  %v8574_v9 = vrot.slane %v8492_v4, %v16384_v2  ;;  %v8581_v24 = vrot.slane %v8492_v4, %v16400_v16 }
 0xb30   : > { %8597 = vbcast.lane.b32.xlu0 %v8595_v34, 256  ;;  %v8588_v33 = vrot.slane %v8492_v4, %v16390_v27  ;;  %v8501_v15 = vrot.slane %v8492_v4, %v16408_v3  ;;  %v8494_v44 = vcombine.high %v8492_v4, %v8492_v4 }
 0xb32   : > { %v8517_v58 = vrot.slane %v8501_v15, %v16408_v3  ;;  %v8509_v57 = vcombine.high %v8501_v15, %v8501_v15  ;;  %v8508_v22 = vrot.slane %v8494_v44, %v16408_v3 }
 0xb34   : > { %v8602_v25 = vrot.slane %v8517_v58, %v18318_v12  ;;  %v8531_v62 = vrot.slane %v8509_v57, %v16408_v3  ;;  %v8539_v39 = vcombine.high %v8517_v58, %v8517_v58  ;;  %v8510_v30 = vcombine.high %v8508_v22, %v8508_v22 }
 0xb35   : > { %v8524_v63 = vrot.slane %v8508_v22, %v16408_v3 }
 0xb36   : > { %v8606_v61 = vrot.slane %v8531_v62, %v18318_v12  ;;  %v8610_v29 = vrot.slane %v8539_v39, %v18318_v12  ;;  %v8541_v49 = vcombine.high %v8531_v62, %v8531_v62  ;;  %v8538_v26 = vrot.slane %v8510_v30, %v16408_v3 }
 0xb37   : > { %v8618_v41 = vrot.slane %v8524_v63, %v18318_v12  ;;  %v8540_v34 = vcombine.high %v8524_v63, %v8524_v63 }
 0xb38   : > { %v8614_v11 = vrot.slane %v8541_v49, %v18318_v12 }
 0xb39   : > { %v8626_v15 = vrot.slane %v8540_v34, %v18318_v12 }
 0xb40   : > { %8548 = vbcast.lane.b32.xlu1 %v8546_v55, 256  ;;  %v8542_v55 = vcombine.high %v8538_v26, %v8538_v26 }
 0xb44   : > { %8555 = vbcast.lane.b32.xlu1 %v8553_v54, 256  ;;  %v8622_v54 = vrot.slane %v8538_v26, %v18318_v12 }
 0xb48   : > { %8562 = vbcast.lane.b32.xlu1 %v8560_v59, 256 }
 0xb4c   : > { %8569 = vbcast.lane.b32.xlu1 %v8567_v48, 256 }
 0xb50   : > { %8576 = vbcast.lane.b32.xlu1 %v8574_v9, 256 }
 0xb54   : > { %8583 = vbcast.lane.b32.xlu1 %v8581_v24, 256 }
 0xb58   : > { %8590 = vbcast.lane.b32.xlu1 %v8588_v33, 256  ;;  %v8630_v33 = vrot.slane %v8542_v55, %v18318_v12 }
 0xba2   : > { %v8598_v9 = vpop.permute.xlu0 %8597 }
 0xba3   : > { %vm8646_vm0 = vcmp.gt.f32.partialorder %v8630_v33, %v8598_v9 }
 0xba4   : > { %v8654_v62 = vsel %vm8646_vm0, 1.0, %v18298_v17 }
 0xbb8   : > { %v8681_v47 = vpop.xlane.xlu1 %8680 }
 0xbb9   : > { %v8682_v53 = vsub.f32 %v8492_v4, %v8681_v47 }
 0xbbb   : > { %v8683_v56 = vmul.f32 1.442695, %v8682_v53 }
 0xbbc   : > { %v8549_v13 = vpop.permute.xlu1 %8548 }
 0xbbd   : > { %10652 = vpow2.f32 %v8683_v56  ;;  %vm8639_vm1 = vcmp.gt.f32.partialorder %v8602_v25, %v8549_v13  ;;  %v8676_v13 = vsel %vm7399_vm5, %v8654_v62, 0.0 }
 0xbbe   : > { %v8647_v0 = vsel %vm8639_vm1, 1.0, %v18298_v17 }
 0xbbf   : > { %v8655_v52 = vsel %vm7399_vm5, %v8647_v0, 0.0 }
 0xbc0   : > { %v8556_v5 = vpop.permute.xlu1 %8555  ;;  %8656 = vadd.xlane.f32.xlu1 %v8655_v52 }
 0xbc1   : > { %vm8640_vm9 = vcmp.gt.f32.partialorder %v8606_v61, %v8556_v5 }
 0xbc2   : > { %v8648_v37 = vsel %vm8640_vm9, 1.0, %v18298_v17 }
 0xbc3   : > { %v8658_v7 = vsel %vm7399_vm5, %v8648_v37, 0.0 }
 0xbc4   : > { %v8563_v23 = vpop.permute.xlu1 %8562  ;;  %8659 = vadd.xlane.f32.xlu1 %v8658_v7 }
 0xbc5   : > { %vm8641_vm7 = vcmp.gt.f32.partialorder %v8610_v29, %v8563_v23 }
 0xbc6   : > { %v8649_v40 = vsel %vm8641_vm7, 1.0, %v18298_v17 }
 0xbc7   : > { %v8661_v51 = vsel %vm7399_vm5, %v8649_v40, 0.0 }
 0xbc8   : > { %v8570_v35 = vpop.permute.xlu1 %8569  ;;  %8662 = vadd.xlane.f32.xlu1 %v8661_v51 }
 0xbc9   : > { %vm8642_vm11 = vcmp.gt.f32.partialorder %v8614_v11, %v8570_v35 }
 0xbca   : > { %v10653_v10 = vpop.eup %10652  ;;  %v8650_v31 = vsel %vm8642_vm11, 1.0, %v18298_v17 }
 0xbcb   : > { %v8664_v19 = vsel %vm7399_vm5, %v8650_v31, 0.0  ;;  %v8704_v4 = vrot.slane %v10653_v10, %v18315_v38  ;;  %v8711_v3 = vrot.slane %v10653_v10, %v18319_v6  ;;  %v8718_v57 = vrot.slane %v10653_v10, %v16396_v36 }
 0xbcc   : > { %v8577_v43 = vpop.permute.xlu1 %8576  ;;  %8665 = vadd.xlane.f32.xlu1 %v8664_v19  ;;  %v8725_v25 = vrot.slane %v10653_v10, %v16384_v2  ;;  %v8739_v0 = vrot.slane %v10653_v10, %v16390_v27  ;;  %v8697_v44 = vrot.slane %v10653_v10, %v18318_v12  ;;  %v8732_v61 = vrot.slane %v10653_v10, %v16400_v16 }
 0xbcd   : > { %vm8643_vm10 = vcmp.gt.f32.partialorder %v8618_v41, %v8577_v43  ;;  %8706 = vbcast.lane.b32.xlu0 %v8704_v4, 256  ;;  %v8746_v52 = vrot.slane %v10653_v10, %v16404_v28 }
 0xbce   : > { %v8651_v42 = vsel %vm8643_vm10, 1.0, %v18298_v17 }
 0xbcf   : > { %v8667_v59 = vsel %vm7399_vm5, %v8651_v42, 0.0 }
 0xbd0   : > { %v8584_v48 = vpop.permute.xlu1 %8583  ;;  %8668 = vadd.xlane.f32.xlu1 %v8667_v59 }
 0xbd1   : > { %vm8644_vm15 = vcmp.gt.f32.partialorder %v8622_v54, %v8584_v48  ;;  %8713 = vbcast.lane.b32.xlu0 %v8711_v3, 256 }
 0xbd2   : > { %v8652_v24 = vsel %vm8644_vm15, 1.0, %v18298_v17 }
 0xbd3   : > { %v8670_v58 = vsel %vm7399_vm5, %v8652_v24, 0.0 }
 0xbd4   : > { %v8591_v47 = vpop.permute.xlu1 %8590  ;;  %8671 = vadd.xlane.f32.xlu1 %v8670_v58 }
 0xbd5   : > { %vm8645_vm3 = vcmp.gt.f32.partialorder %v8626_v15, %v8591_v47  ;;  %8720 = vbcast.lane.b32.xlu0 %v8718_v57, 256 }
 0xbd6   : > { %v8653_v53 = vsel %vm8645_vm3, 1.0, %v18298_v17 }
 0xbd7   : > { %v8673_v56 = vsel %vm7399_vm5, %v8653_v53, 0.0 }
 0xbd8   : > { %8674 = vadd.xlane.f32.xlu1 %v8673_v56 }
 0xbd9   : > { %8727 = vbcast.lane.b32.xlu0 %v8725_v25, 256 }
 0xbdc   : > { %8677 = vadd.xlane.f32.xlu1 %v8676_v13 }
 0xbdd   : > { %8741 = vbcast.lane.b32.xlu0 %v8739_v0, 256 }
 0xbed   : > { %8699 = vbcast.lane.b32.xlu1 %v8697_v44, 256 }
 0xbf1   : > { %8734 = vbcast.lane.b32.xlu1 %v8732_v61, 256 }
 0xbf5   : > { %8748 = vbcast.lane.b32.xlu1 %v8746_v52, 256 }
 0xc3f   : > { %v8707_v5 = vpop.permute.xlu0 %8706 }
 0xc43   : > { %v8714_v7 = vpop.permute.xlu0 %8713 }
 0xc47   : > { %v8721_v30 = vpop.permute.xlu0 %8720 }
 0xc49   : > { %v8657_v39 = vpop.xlane.xlu1 %8656 }
 0xc4a   : > { %vm8685_vm15 = vcmp.lt.f32.partialorder %v8657_v39, 4.0  ;;  %vm8766_vm0 = vcmp.lt.f32.partialorder %v8657_v39, 6.0 }
 0xc4b   : > { %v8728_v35 = vpop.permute.xlu0 %8727 }
 0xc4d   : > { %v8660_v37 = vpop.xlane.xlu1 %8659 }
 0xc4e   : > { %vm8686_vm1 = vcmp.lt.f32.partialorder %v8660_v37, 4.0  ;;  %vm8767_vm9 = vcmp.lt.f32.partialorder %v8660_v37, 6.0 }
 0xc4f   : > { %v16744_v22 = vsel %vm8686_vm1, %v8707_v5, 0.0  ;;  %v16747_v49 = vsel %vm8767_vm9, %v8707_v5, 0.0  ;;  %v8742_v34 = vpop.permute.xlu0 %8741 }
 0xc50   : > { %8794 = vperm.xlu1 %10573, %v16744_v22  }
 0xc51   : > { %v8663_v29 = vpop.xlane.xlu1 %8662 }
 0xc52   : > { %vm8768_vm7 = vcmp.lt.f32.partialorder %v8663_v29, 6.0  ;;  %vm8687_vm1 = vcmp.lt.f32.partialorder %v8663_v29, 4.0 }
 0xc53   : > { %v16750_v40 = vsel %vm8768_vm7, %v8714_v7, 0.0  ;;  %v16768_v55 = vsel %vm8687_vm1, %v8714_v7, 0.0 }
 0xc54   : > { %8919 = vperm.xlu1 %10573, %v16747_v49  }
 0xc55   : > { %v8666_v23 = vpop.xlane.xlu1 %8665 }
 0xc56   : > { %vm8769_vm11 = vcmp.lt.f32.partialorder %v8666_v23, 6.0  ;;  %vm8688_vm7 = vcmp.lt.f32.partialorder %v8666_v23, 4.0 }
 0xc57   : > { %v16753_v51 = vsel %vm8769_vm11, %v8721_v30, 0.0  ;;  %v16774_v3 = vsel %vm8688_vm7, %v8721_v30, 0.0 }
 0xc58   : > { %8922 = vperm.xlu1 %10573, %v16750_v40  }
 0xc59   : > { %v8669_v11 = vpop.xlane.xlu1 %8668 }
 0xc5a   : > { %vm8770_vm10 = vcmp.lt.f32.partialorder %v8669_v11, 6.0 }
 0xc5b   : > { %v16756_v10 = vsel %vm8770_vm10, %v8728_v35, 0.0  ;;  %vm8689_vm10 = vcmp.lt.f32.partialorder %v8669_v11, 4.0 }
 0xc5c   : > { %8925 = vperm.xlu1 %10573, %v16753_v51   ;;  %v16780_v9 = vsel %vm8689_vm10, %v8728_v35, 0.0 }
 0xc5d   : > { %v8672_v63 = vpop.xlane.xlu1 %8671 }
 0xc5e   : > { %vm8771_vm3 = vcmp.lt.f32.partialorder %v8672_v63, 6.0 }
 0xc60   : > { %8928 = vperm.xlu1 %10573, %v16756_v10  }
 0xc61   : > { %v8675_v31 = vpop.xlane.xlu1 %8674 }
 0xc62   : > { %vm8772_vm9 = vcmp.lt.f32.partialorder %v8675_v31, 6.0 }
 0xc63   : > { %v16770_v54 = vsel %vm8772_vm9, %v8742_v34, 0.0 }
 0xc65   : > { %v8678_v26 = vpop.xlane.xlu1 %8677 }
 0xc66   : > { %vm8773_vm11 = vcmp.lt.f32.partialorder %v8678_v26, 6.0 }
 0xc69   : > { %v8700_v41 = vpop.permute.xlu1 %8699 }
 0xc6a   : > { %v16759_v19 = vsel %vm8685_vm15, %v8700_v41, 0.0  ;;  %v16762_v43 = vsel %vm8766_vm0, %v8700_v41, 0.0  ;;  %vm8690_vm15 = vcmp.lt.f32.partialorder %v8672_v63, 4.0  ;;  %vm8691_vm0 = vcmp.lt.f32.partialorder %v8675_v31, 4.0 }
 0xc6b   : > { %8791 = vperm.xlu0 %10572, %v16759_v19   ;;  %v16786_v33 = vsel %vm8691_vm0, %v8742_v34, 0.0 }
 0xc6d   : > { %v8735_v4 = vpop.permute.xlu1 %8734 }
 0xc6e   : > { %v16764_v42 = vsel %vm8771_vm3, %v8735_v4, 0.0  ;;  %v16783_v24 = vsel %vm8690_vm15, %v8735_v4, 0.0  ;;  %vm8692_vm3 = vcmp.lt.f32.partialorder %v8678_v26, 4.0 }
 0xc6f   : > { %8916 = vperm.xlu0 %10572, %v16762_v43   ;;  %8931 = vperm.xlu1 %10573, %v16764_v42  }
 0xc71   : > { %v8749_v59 = vpop.permute.xlu1 %8748 }
 0xc72   : > { %v16776_v48 = vsel %vm8773_vm11, %v8749_v59, 0.0  ;;  %v16789_v15 = vsel %vm8692_vm3, %v8749_v59, 0.0 }
 0xc73   : > { %8797 = vperm.xlu0 %10572, %v16768_v55   ;;  %8934 = vperm.xlu1 %10573, %v16770_v54  }
 0xc77   : > { %8800 = vperm.xlu0 %10572, %v16774_v3   ;;  %8937 = vperm.xlu1 %10573, %v16776_v48  }
 0xc7b   : > { %8803 = vperm.xlu0 %10572, %v16780_v9  }
 0xc7f   : > { %8806 = vperm.xlu0 %10572, %v16783_v24  }
 0xc83   : > { %8809 = vperm.xlu0 %10572, %v16786_v33  }
 0xc87   : > { %8812 = vperm.xlu0 %10572, %v16789_v15  }
 0xccb   : > { %v8795_v58 = vpop.permute.xlu1 %8794 }
 0xccf   : > { %v8920_v57 = vpop.permute.xlu1 %8919 }
 0xcd0   : > { %v8946_v0 = vrot.slane %v8920_v57, %v16498_v14 }
 0xcd3   : > { %v8923_v47 = vpop.permute.xlu1 %8922 }
 0xcd4   : > { %v8950_v61 = vrot.slane %v8923_v47, %v16498_v14 }
 0xcd7   : > { %v8926_v53 = vpop.permute.xlu1 %8925 }
 0xcd8   : > { %v8954_v52 = vrot.slane %v8926_v53, %v16498_v14 }
 0xcdb   : > { %v8929_v56 = vpop.permute.xlu1 %8928 }
 0xcdc   : > { %v8958_v5 = vrot.slane %v8929_v56, %v16498_v14 }
 0xce6   : > { %v8792_v25 = vpop.permute.xlu0 %8791 }
 0xce7   : > { %v8817_v53 = vrot.slane %v8792_v25, %v16498_v14 }
 0xcea   : > { %v8917_v62 = vpop.permute.xlu0 %8916  ;;  %v8932_v13 = vpop.permute.xlu1 %8931 }
 0xceb   : > { %v8942_v44 = vrot.slane %v8917_v62, %v16498_v14  ;;  %v8962_v30 = vrot.slane %v8932_v13, %v16498_v14  ;;  %v8821_v62 = vrot.slane %v8795_v58, %v16498_v14 }
 0xced   : > { %v8971_v39 = vsel %vm7593_vm2, %v8946_v0, %v8942_v44 }
 0xcee   : > { %v8972_v37 = vsel %vm7595_vm13, %v8950_v61, %v8971_v39  ;;  %v8798_v29 = vpop.permute.xlu0 %8797  ;;  %v8935_v7 = vpop.permute.xlu1 %8934  ;;  %v8846_v61 = vsel %vm7593_vm2, %v8821_v62, %v8817_v53 }
 0xcef   : > { %v8973_v23 = vsel %vm7597_vm4, %v8954_v52, %v8972_v37  ;;  %v8966_v63 = vrot.slane %v8935_v7, %v16498_v14  ;;  %v8825_v56 = vrot.slane %v8798_v29, %v16498_v14 }
 0xcf0   : > { %v8974_v11 = vsel %vm7599_vm14, %v8958_v5, %v8973_v23 }
 0xcf1   : > { %v8975_v35 = vsel %vm7601_vm12, %v8962_v30, %v8974_v11  ;;  %v8847_v39 = vsel %vm7595_vm13, %v8825_v56, %v8846_v61 }
 0xcf2   : > { %v8801_v31 = vpop.permute.xlu0 %8800  ;;  %v8938_v26 = vpop.permute.xlu1 %8937  ;;  %v8976_v4 = vsel %vm7603_vm6, %v8966_v63, %v8975_v35  ;;  %v18352_v63 = vld [vmem:[#allocation78_spill] sm:$0xff] }
 0xcf3   : > { %v8970_v41 = vrot.slane %v8938_v26, %v16498_v14  ;;  %v8829_v13 = vrot.slane %v8801_v31, %v16498_v14  ;;  %v18353_v35 = vld [vmem:[#allocation82_spill] sm:$0xff]  ;;  %v18354_v31 = vld [vmem:[#allocation75_spill] sm:$0xff]  ;;  %v18355_v26 = vld [vmem:[#allocation76_spill] sm:$0xff] }
 0xcf5   : > { %v8977_v34 = vsel %vm7605_vm8, %v8970_v41, %v8976_v4  ;;  %v8848_v37 = vsel %vm7597_vm4, %v8829_v13, %v8847_v39  ;;  %v18356_v41 = vld [vmem:[#allocation102_spill] sm:$0xff]  ;;  %v18357_v4 = vld [vmem:[#allocation103_spill] sm:$0xff] }
 0xcf6   : > { %v8804_v59 = vpop.permute.xlu0 %8803  ;;  %v8979_v57 = vsel %vm7399_vm5, %v8977_v34, 0.0 }
 0xcf7   : > { %8980 = vadd.xlane.f32.xlu1 %v8979_v57  ;;  %v8833_v0 = vrot.slane %v8804_v59, %v16498_v14 }
 0xcf9   : > { %v8849_v25 = vsel %vm7599_vm14, %v8833_v0, %v8848_v37 }
 0xcfa   : > { %v8807_v47 = vpop.permute.xlu0 %8806 }
 0xcfb   : > { %v8837_v52 = vrot.slane %v8807_v47, %v16498_v14 }
 0xcfd   : > { %v8850_v58 = vsel %vm7601_vm12, %v8837_v52, %v8849_v25 }
 0xcfe   : > { %v8810_v44 = vpop.permute.xlu0 %8809 }
 0xcff   : > { %v8841_v5 = vrot.slane %v8810_v44, %v16498_v14 }
 0xd01   : > { %v8851_v23 = vsel %vm7603_vm6, %v8841_v5, %v8850_v58 }
 0xd02   : > { %v8813_v29 = vpop.permute.xlu0 %8812 }
 0xd03   : > { %v8845_v7 = vrot.slane %v8813_v29, %v16498_v14 }
 0xd05   : > { %v8852_v30 = vsel %vm7605_vm8, %v8845_v7, %v8851_v23 }
 0xd06   : > { %v8854_v11 = vsel %vm7399_vm5, %v8852_v30, 0.0 }
 0xd07   : > { %8855 = vadd.xlane.f32.xlu0 %v8854_v11 }
 0xd08   : > { %9139 = vrot.lane.b32.xlu1 %v18352_v63, %s10797_s29 }
 0xd0c   : > { %9135 = vrot.lane.b32.xlu1 %v18353_v35, %s10797_s29 }
 0xd1d   : > { %9141 = vrot.lane.b32.xlu0 %v18354_v31, %s10797_s29 }
 0xd21   : > { %9137 = vrot.lane.b32.xlu0 %v18355_v26, %s10797_s29 }
 0xd25   : > { %9133 = vrot.lane.b32.xlu0 %v18356_v41, %s10797_s29 }
 0xd29   : > { %9131 = vrot.lane.b32.xlu0 %v18357_v4, %s10797_s29 }
 0xd80   : > { %v8981_v34 = vpop.xlane.xlu1 %8980 }
 0xd81   : > { %10654 = vrcp.f32 %v8981_v34 }
 0xd84   : > { %v9140_v53 = vpop.permute.xlu1 %9139 }
 0xd88   : > { %v9136_v29 = vpop.permute.xlu1 %9135 }
 0xd8e   : > { %v16838_v47 = vpop.eup %10654 }
 0xd8f   : > { %v8991_v56 = vrot.slane %v16838_v47, %v18315_v38  ;;  %v8987_v62 = vrot.slane %v16838_v47, %v18318_v12  ;;  %v8999_v52 = vrot.slane %v16838_v47, %v16396_v36  ;;  %v8995_v39 = vrot.slane %v16838_v47, %v18319_v6 }
 0xd90   : > { %v8856_v59 = vpop.xlane.xlu0 %8855  ;;  %v9011_v11 = vrot.slane %v16838_v47, %v16390_v27  ;;  %v9003_v63 = vrot.slane %v16838_v47, %v16384_v2 }
 0xd91   : > { %10656 = vrcp.f32 %v8856_v59  ;;  %v9025_v44 = vmul.f32 %v8991_v56, %v16747_v49  ;;  %v9024_v61 = vmul.f32 %v8987_v62, %v16762_v43  ;;  %v9026_v30 = vmul.f32 %v8995_v39, %v16750_v40 }
 0xd92   : > { %v9030_v41 = vmul.f32 %v9011_v11, %v16770_v54  ;;  %v9028_v34 = vmul.f32 %v9003_v63, %v16756_v10 }
 0xd93   : > { %v9042_v4 = vmul.f32 %v9026_v30, %v16537_v32 }
 0xd94   : > { %v9142_v57 = vpop.permute.xlu0 %9141  ;;  %v9046_v10 = vmul.f32 %v9030_v41, %v16537_v32 }
 0xd95   : > { %10468 = vmatpush3.xpose.msk.msra.mxu1 %vm7399_vm5, %v9142_v57 }
 0xd96   : > { %10469 = vmatprep.subr.mxu1 %v18298_v17 }
 0xd98   : > { %v9138_v13 = vpop.permute.xlu0 %9137 }
 0xd99   : > { %10470 = vmatpush3.xpose.msk.msra.mxu1 %vm7399_vm5, %v9140_v53 }
 0xd9a   : > { %10471 = vmatprep.subr.mxu1 %v18298_v17 }
 0xd9c   : > { %v9134_v23 = vpop.permute.xlu0 %9133 }
 0xd9d   : > { %10472 = vmatpush3.xpose.msk.msra.mxu1 %vm7399_vm5, %v9138_v13  ;;  %v9015_v13 = vrot.slane %v16838_v47, %v16404_v28 }
 0xd9e   : > { %v16847_v0 = vpop.eup %10656  ;;  %10473 = vmatprep.subr.mxu1 %v18298_v17 }
 0xd9f   : > { %v8866_v5 = vrot.slane %v16847_v0, %v18315_v38  ;;  %v8862_v37 = vrot.slane %v16847_v0, %v18318_v12  ;;  %v8874_v25 = vrot.slane %v16847_v0, %v16396_v36  ;;  %v8870_v49 = vrot.slane %v16847_v0, %v18319_v6 }
 0xda0   : > { %v8886_v43 = vrot.slane %v16847_v0, %v16390_v27  ;;  %v8878_v58 = vrot.slane %v16847_v0, %v16384_v2  ;;  %v9027_v6 = vmul.f32 %v8999_v52, %v16753_v51  ;;  %v8882_v40 = vrot.slane %v16847_v0, %v16400_v16  ;;  %v9132_v59 = vpop.permute.xlu0 %9131 }
 0xda1   : > { %10474 = vmatpush3.xpose.msk.msra.mxu1 %vm7399_vm5, %v9136_v29  ;;  %v8900_v38 = vmul.f32 %v8866_v5, %v16744_v22  ;;  %v8899_v7 = vmul.f32 %v8862_v37, %v16759_v19  ;;  %v8902_v12 = vmul.f32 %v8874_v25, %v16774_v3  ;;  %v8901_v36 = vmul.f32 %v8870_v49, %v16768_v55  ;;  %v18358_v25 = vld [vmem:[#allocation105_spill] sm:$0xff] }
 0xda2   : > { %10475 = vmatprep.subr.mxu1 %v18298_v17  ;;  %v9041_v19 = vmul.f32 %v9025_v44, %v16537_v32  ;;  %v9040_v55 = vmul.f32 %v9024_v61, %v16537_v32  ;;  %v8905_v35 = vmul.f32 %v8886_v43, %v16786_v33  ;;  %v8903_v51 = vmul.f32 %v8878_v58, %v16780_v9  ;;  %v18359_v29 = vld [vmem:[#allocation65_spill] sm:$0xff] }
 0xda3   : > { %v9033_v22 = vmul.f32 %v8900_v38, %v16535_v21  ;;  %v9032_v3 = vmul.f32 %v8899_v7, %v16535_v21  ;;  %v9035_v2 = vmul.f32 %v8902_v12, %v16535_v21  ;;  %v9034_v26 = vmul.f32 %v8901_v36, %v16535_v21 }
 0xda4   : > { %v9007_v33 = vrot.slane %v16838_v47, %v16400_v16  ;;  %v9043_v9 = vmul.f32 %v9027_v6, %v16537_v32  ;;  %v8904_v57 = vmul.f32 %v8882_v40, %v16783_v24  ;;  %v8890_v53 = vrot.slane %v16847_v0, %v16404_v28 }
 0xda5   : > { %10476 = vmatpush3.xpose.msk.msra.mxu1 %vm7399_vm5, %v9134_v23  ;;  %v9049_v27 = vadd.f32 %v9041_v19, %v9033_v22  ;;  %v9048_v31 = vadd.f32 %v9040_v55, %v9032_v3  ;;  %v9050_v56 = vadd.f32 %v9042_v4, %v9034_v26  ;;  %v9038_v16 = vmul.f32 %v8905_v35, %v16535_v21 }
 0xda6   : > { %10477 = vmatprep.subr.mxu1 %v18298_v17  ;;  %v9051_v54 = vadd.f32 %v9043_v9, %v9035_v2  ;;  %v9036_v62 = vmul.f32 %v8903_v51, %v16535_v21  ;;  %v9044_v24 = vmul.f32 %v9028_v34, %v16537_v32  ;;  %v9029_v0 = vmul.f32 %v9007_v33, %v16764_v42  ;;  %v10452_v2 = vpop.f32.mrf.mxu1 }
 0xda7   : > { %9068 = vperm.xlu0 %10572, %v9049_v27   ;;  %9065 = vperm.xlu1 %10573, %v9048_v31   ;;  %v9054_v44 = vadd.f32 %v9046_v10, %v9038_v16  ;;  %v9037_v52 = vmul.f32 %v8904_v57, %v16535_v21  ;;  %v8906_v39 = vmul.f32 %v8890_v53, %v16789_v15 }
 0xda8   : > { %v9052_v61 = vadd.f32 %v9044_v24, %v9036_v62  ;;  %v9045_v28 = vmul.f32 %v9029_v0, %v16537_v32  ;;  %v9031_v47 = vmul.f32 %v9015_v13, %v16776_v48  ;;  %v8233_v26 = vpop.f32.mrf.mxu1 }
 0xda9   : > { %10478 = vmatpush3.xpose.msk.msra.mxu1 %vm7399_vm5, %v9132_v59  ;;  %v9039_v37 = vmul.f32 %v8906_v39, %v16535_v21 }
 0xdaa   : > { %10479 = vmatprep.subr.mxu1 %v18298_v17  ;;  %v9053_v5 = vadd.f32 %v9045_v28, %v9037_v52  ;;  %v9047_v42 = vmul.f32 %v9031_v47, %v16537_v32  ;;  %v16939_v41 = vpop.f32.mrf.mxu1 }
 0xdab   : > { %9074 = vperm.xlu0 %10572, %v9051_v54   ;;  %9071 = vperm.xlu1 %10573, %v9050_v56  }
 0xdac   : > { %v9055_v49 = vadd.f32 %v9047_v42, %v9039_v37  ;;  %v16941_v33 = vpop.f32.mrf.mxu1 }
 0xdae   : > { %v16943_v9 = vpop.f32.mrf.mxu1 }
 0xdaf   : > { %9083 = vperm.xlu0 %10572, %v9054_v44   ;;  %9077 = vperm.xlu1 %10573, %v9052_v61  }
 0xdb0   : > { %v16945_v4 = vpop.f32.mrf.mxu1 }
 0xdb3   : > { %9129 = vrot.lane.b32.xlu0 %v18358_v25, %s10797_s29  ;;  %9080 = vperm.xlu1 %10573, %v9053_v5  }
 0xdb7   : > { %9086 = vperm.xlu1 %10573, %v9055_v49  }
 0xdbb   : > { %9127 = vrot.lane.b32.xlu1 %v18359_v29, %s10797_s29 }
 0xe22   : > { %v9069_v15 = vpop.permute.xlu0 %9068  ;;  %v9066_v43 = vpop.permute.xlu1 %9065 }
 0xe23   : > { %v9095_v12 = vrot.slane %v9069_v15, %v16498_v14  ;;  %v9091_v21 = vrot.slane %v9066_v43, %v16498_v14 }
 0xe25   : > { %v9120_v32 = vsel %vm7593_vm2, %v9095_v12, %v9091_v21 }
 0xe26   : > { %v9075_v58 = vpop.permute.xlu0 %9074  ;;  %v9072_v38 = vpop.permute.xlu1 %9071 }
 0xe27   : > { %v9099_v36 = vrot.slane %v9072_v38, %v16498_v14  ;;  %v9103_v30 = vrot.slane %v9075_v58, %v16498_v14 }
 0xe29   : > { %v9121_v11 = vsel %vm7595_vm13, %v9099_v36, %v9120_v32 }
 0xe2a   : > { %v9084_v7 = vpop.permute.xlu0 %9083  ;;  %v9078_v48 = vpop.permute.xlu1 %9077  ;;  %v9122_v3 = vsel %vm7597_vm4, %v9103_v30, %v9121_v11 }
 0xe2b   : > { %v9107_v63 = vrot.slane %v9078_v48, %v16498_v14  ;;  %v9115_v40 = vrot.slane %v9084_v7, %v16498_v14 }
 0xe2d   : > { %v9123_v55 = vsel %vm7599_vm14, %v9107_v63, %v9122_v3 }
 0xe2e   : > { %v9130_v23 = vpop.permute.xlu0 %9129  ;;  %v9081_v6 = vpop.permute.xlu1 %9080 }
 0xe2f   : > { %10480 = vmatpush3.xpose.msk.msra.mxu1 %vm7399_vm5, %v9130_v23  ;;  %v9111_v22 = vrot.slane %v9081_v6, %v16498_v14 }
 0xe30   : > { %10481 = vmatprep.subr.mxu1 %v18298_v17 }
 0xe31   : > { %v9124_v35 = vsel %vm7601_vm12, %v9111_v22, %v9123_v55 }
 0xe32   : > { %v9087_v19 = vpop.permute.xlu1 %9086  ;;  %v9125_v31 = vsel %vm7603_vm6, %v9115_v40, %v9124_v35 }
 0xe33   : > { %v9119_v51 = vrot.slane %v9087_v19, %v16498_v14  ;;  %v16947_v14 = vpop.f32.mrf.mxu1 }
 0xe35   : > { %v9126_v17 = vsel %vm7605_vm8, %v9119_v51, %v9125_v31  ;;  %v16949_v34 = vpop.f32.mrf.mxu1 }
 0xe36   : > { %v9128_v27 = vpop.permute.xlu1 %9127 }
 0xe37   : > { %10482 = vmatpush3.xpose.msk.msra.mxu1 %vm7399_vm5, %v9128_v27 }
 0xe3a   : > { %10484 = vmatmul.mubr.msk.f32.vlgmr.msra.gmra.mxu1 %vm7399_vm5, %v9126_v17 }
 0xefa   : > { %v9227_v59 = vpop.f32.mrf.mxu1 }
 0xefb   : > { %9231 = vxpose.xlu0.b32.start.end [1/1] (short) (narrow) %v9227_v59, 64 }
 0xefc   : > { %v10485_v57 = vpop.f32.mrf.mxu1 }
 0xf77   : > { %v9247_v53 = vpop.trf.xlu0 }
 0xf78   : > { %10488 = vmatprep.mubr.msk.f32.mxu0 %vm7399_vm5, %v9247_v53 }
 0xf7b   : > { %v9248_v54 = vpop.trf.xlu0 }
 0xf7c   : > { %10489 = vmatmul.mubr.msk.f32.vlgmr.msra.gmra.mxu0 %vm7399_vm5, %v9248_v54 }
 0xf7f   : > { %v9249_v56 = vpop.trf.xlu0 }
 0xf80   : > { %10491 = vmatprep.mubr.msk.f32.mxu0 %vm7399_vm5, %v9249_v56 }
 0xf83   : > { %v9250_v16 = vpop.trf.xlu0 }
 0xf84   : > { %10492 = vmatmul.mubr.msk.f32.gmra.mxu0 %vm7399_vm5, %v9250_v16 }
 0xf87   : > { %v9251_v62 = vpop.trf.xlu0 }
 0xf88   : > { %10494 = vmatprep.mubr.msk.f32.mxu0 %vm7399_vm5, %v9251_v62 }
 0xf8b   : > { %v9252_v13 = vpop.trf.xlu0 }
 0xf8c   : > { %10495 = vmatmul.mubr.msk.f32.gmra.mxu0 %vm7399_vm5, %v9252_v13 }
 0xf8f   : > { %v9253_v10 = vpop.trf.xlu0 }
 0xf90   : > { %10497 = vmatprep.mubr.msk.f32.mxu0 %vm7399_vm5, %v9253_v10 }
 0xf93   : > { %v9254_v24 = vpop.trf.xlu0 }
 0xf94   : > { %10498 = vmatmul.mubr.msk.f32.gmra.mxu0 %vm7399_vm5, %v9254_v24 }
 0xf95   : > { %10704 = shalt.err (!%p10701_p2)
}
 0xf96   : > { %s10705_s26 = scalar_lea.hbm %s16966_s19, 1024  ;;  %s10709_s30 = scalar_lea.hbm %s17096_s15, 2048 }
 0xf97   : > { %p10706_p3 = scmp.ne.s32.totalorder %s16966_s19, %s10705_s26  ;;  %p10710_p8 = scmp.lt.s32.totalorder %s16966_s19, %s17096_s15 }
 0xf98   : > { %p10711_p10 = scmp.lt.s32.totalorder %s10709_s30, %s10705_s26 }
 0xf99   : > { %p10707_p4 = pnand %p10706_p3, %p10925_p5 }
 0xf9a   : > { %p10712_p9 = por %p10711_p10, %p10710_p8 }
 0xf9b   : > { %p10708_p7 = pneg %p10707_p4 }
 0xf9d   : > { %p10713_p11 = pnand %p10712_p9, %p10708_p7 }
 0xf9f   : > { %10716 = shalt.err (!%p10713_p11)
}
 0xfa0   : > { %s17515_s2 = smov 128   ;;  %s10800_s28 = smov 8   ;;  %v8239_v0 = vadd.f32 %v10452_v2, %v16681_v18  ;;  %v8234_v61 = vadd.f32 %v8233_v26, %v16683_v46  ;;  %vm18362_vm5 = vcmask 130048   ;;  %v8249_v18 = vadd.f32 %v16939_v41, %v16685_v50 }
 0xfa1   : > { %s18360_s13 = scalar_lea.sflag [#allocation5], %s16352_s14  ;;  %s18361_s3 = sshll.u32 %s16352_s14, 6  ;;  %vm18363_vm2 = vmmov %vm18362_vm5  ;;  %v8244_v47 = vadd.f32 %v16941_v33, %v16687_v45  ;;  %v8259_v42 = vadd.f32 %v16943_v9, %v16689_v60  ;;  %v8254_v50 = vadd.f32 %v16945_v4, %v16691_v8  ;;  %v8269_v43 = vadd.f32 %v16947_v14, %v16693_v20 }
 0xfa2   : > { %10508 = dma.vmem_to_hbm [thread:$0]  (%p10925_p5), %s16968_s1, 1024, %s16966_s19, %s18360_s13, %s17515_s2, %s17515_s2, %s10800_s28   ;;  %vm18364_vm13 = vmmov %vm18363_vm2  ;;  %v8264_v60 = vadd.f32 %v16949_v34, %v16695_v1 }
 0xfa3   : > { %s17000_s20 = scalar_lea.vmem [#allocation10], %s18361_s3  ;;  %vm18365_vm4 = vmmov %vm18363_vm2  ;;  %s18369_s19 = sshll.u32 %s10908_s25, 10 }
 0xfa4   : > { %vm18366_vm14 = vmmov %vm18363_vm2  ;;  %s9444_s1 = sshll.u32 %s17000_s20, 4  ;;  %s17034_s29 = scalar_lea.hbm %s17097_s16, %s18369_s19  ;;  %s17036_s1 = int_to_ptr.vmem [resolvable:$true] %s9444_s1 }
 0xfa5   : > { %vm18367_vm12 = vmmov %vm18363_vm2  ;;  %s9415_s30 = scalar_lea.sflag [#allocation11], %s16352_s14  ;;  %s10717_s13 = scalar_lea.vmem %s17036_s1, 1024 }
 0xfa6   : > { %vm18368_vm6 = vmmov %vm18363_vm2  ;;  %p10718_p12 = scmp.ne.s32.totalorder %s17036_s1, %s10717_s13  ;;  %s10801_s3 = smov [#allocation10]  }
 0xfa7   : > { %vm18370_vm8 = vmmov %vm18363_vm2  ;;  %s10721_s25 = sshll.u32 %s10801_s3, 4  ;;  %s10722_s25 = int_to_ptr.vmem [resolvable:$false] %s10721_s25 }
 0xfa8   : > { %p10719_p13 = pnand %p10718_p12, %p10925_p5  ;;  %s10723_s2 = scalar_lea.vmem %s10722_s25, 2048 }
 0xfa9   : > { %p10724_p1 = scmp.lt.s32.totalorder %s17036_s1, %s10722_s25  ;;  %p10725_p2 = scmp.lt.s32.totalorder %s10723_s2, %s10717_s13 }
 0xfaa   : > { %p10720_p0 = pneg %p10719_p13 }
 0xfab   : > { %p10726_p3 = por %p10725_p2, %p10724_p1 }
 0xfad   : > { %p10727_p4 = pnand %p10726_p3, %p10720_p0 }
0x103c   : > { %v10490_v44 = vpop.f32.mrf.mxu0 }
0x103d   : > { %v9394_v52 = vadd.f32 %v10490_v44, %v8239_v0 }
0x103e   : > { %v9354_v39 = vpop.f32.mrf.mxu0 }
0x103f   : > { %9402 = vst.msk [vmem:[%s17000_s20 + $0x8] sm:$0xff] %vm18362_vm5, %v9394_v52  ;;  %v9393_v28 = vadd.f32 %v9354_v39, %v8234_v61 }
0x1041   : > { %9401 = vst.msk [vmem:[%s17000_s20] sm:$0xff] %vm18363_vm2, %v9393_v28 }
0x1044   : > { %v10493_v46 = vpop.f32.mrf.mxu0 }
0x1045   : > { %v9396_v5 = vadd.f32 %v10493_v46, %v8249_v18 }
0x1046   : > { %v9364_v37 = vpop.f32.mrf.mxu0 }
0x1047   : > { %9404 = vst.msk [vmem:[%s17000_s20 + $0x18] sm:$0xff] %vm18364_vm13, %v9396_v5  ;;  %v9395_v25 = vadd.f32 %v9364_v37, %v8244_v47 }
0x1049   : > { %9403 = vst.msk [vmem:[%s17000_s20 + $0x10] sm:$0xff] %vm18365_vm4, %v9395_v25 }
0x104c   : > { %v10496_v49 = vpop.f32.mrf.mxu0 }
0x104d   : > { %v9398_v29 = vadd.f32 %v10496_v49, %v8259_v42 }
0x104e   : > { %v9374_v45 = vpop.f32.mrf.mxu0 }
0x104f   : > { %9406 = vst.msk [vmem:[%s17000_s20 + $0x28] sm:$0xff] %vm18366_vm14, %v9398_v29  ;;  %v9397_v15 = vadd.f32 %v9374_v45, %v8254_v50 }
0x1051   : > { %9405 = vst.msk [vmem:[%s17000_s20 + $0x20] sm:$0xff] %vm18367_vm12, %v9397_v15 }
0x1054   : > { %v10499_v58 = vpop.f32.mrf.mxu0 }
0x1055   : > { %v9400_v38 = vadd.f32 %v10499_v58, %v8269_v43 }
0x1056   : > { %v9384_v8 = vpop.f32.mrf.mxu0 }
0x1057   : > { %9408 = vst.msk [vmem:[%s17000_s20 + $0x38] sm:$0xff] %vm18368_vm6, %v9400_v38  ;;  %v9399_v7 = vadd.f32 %v9384_v8, %v8264_v60 }
0x1059   : > { %9407 = vst.msk [vmem:[%s17000_s20 + $0x30] sm:$0xff] %vm18370_vm8, %v9399_v7 }
0x105a   : > { %10730 = shalt.err (!%p10727_p4)
}
0x105b   : > { %s10731_s20 = scalar_lea.hbm %s17034_s29, 1024  ;;  %s10735_s18 = scalar_lea.hbm %s17097_s16, 2048 }
0x105c   : > { %p10732_p7 = scmp.ne.s32.totalorder %s17034_s29, %s10731_s20  ;;  %p10736_p9 = scmp.lt.s32.totalorder %s17034_s29, %s17097_s16 }
0x105d   : > { %p10737_p11 = scmp.lt.s32.totalorder %s10735_s18, %s10731_s20 }
0x105e   : > { %p10733_p8 = pnand %p10732_p7, %p10925_p5 }
0x105f   : > { %p10738_p12 = por %p10737_p11, %p10736_p9 }
0x1060   : > { %p10734_p10 = pneg %p10733_p8 }
0x1062   : > { %p10739_p13 = pnand %p10738_p12, %p10734_p10 }
0x1064   : > { %10742 = shalt.err (!%p10739_p13)
}
0x1065   : > { %s18371_s2 = smov 128  }
0x1066   : > { %10509 = dma.vmem_to_hbm [thread:$0]  (%p10925_p5), %s17036_s1, 1024, %s17034_s29, %s9415_s30, %s18371_s2, %s18371_s2, %s10800_s28  }
0x1067 PF: > { %p10530_p0 = scmp.ge.s32.totalorder %s10789_s24, 2  ;;  %s9459_s13 = sand.u32 1, %s10777_s21  }
0x1068   : > { %s9460_s25 = scalar_lea.sflag [#allocation5], %s9459_s13 }
0x1069   : > { %p10520_p1 = pnand %p10530_p0, %p10929_p6 }
0x106b   : > { %p10521_p2 = pneg %p10520_p1 }
0x106d   : > { %10768 = dma.done.wait (%p10521_p2), %s9460_s25, 1024  }
0x106e   : > { %10770 = vsyncadd (%p10521_p2), %s9460_s25, 4294966272  ;;  %s9469_s20 = scalar_lea.sflag [#allocation11], %s9459_s13 }
0x106f   : > { %10772 = dma.done.wait (%p10521_p2), %s9469_s20, 1024  }
0x1070   : > { %10774 = vsyncadd (%p10521_p2), %s9469_s20, 4294966272  ;;  %s18372_s0 = sld [smem:[#allocation16_spill]]  ;;  %p32_p5 = scmp.ge.s32.totalorder %s10912_s27, 4  }
0x1071   : > { %s18373_s21 = smov %s10781_s22  ;;  %s18374_s22 = smov %s10785_s23 }
0x1072   : > { %s18376_s24 = smov %s10912_s27  ;;  %34 = sbr.rel (!%p32_p5) target bundleno = 14 (0xe), region = 158 }
0x1076   : > { %s18375_s23 = smov %s18372_s0 }
0x1077   :  { %9474 = vsyncpa [#allocation5], 1 }
0x1078   :  { %9476 = vsyncpa [#allocation5 + $0x1], 1 }
0x1079   :  { %9477 = vsyncpa [#allocation11], 1 }
0x107a   :  { %9479 = vsyncpa [#allocation11 + $0x1], 1 }
0x107b   :  { %9480 = vsyncpa [#allocation6], 1 }
0x107c   :  { %9482 = vsyncpa [#allocation6 + $0x1], 1 }
0x107d   :  { %9483 = vsyncpa [#allocation7], 1 }
0x107e   :  { %9485 = vsyncpa [#allocation7 + $0x1], 1 }

</bundles_post_ra>
